<compile_context>
chip_gen: v6e
topology: v6e:2x2x1
jax: 0.10.0
libtpu: 0.0.40
codegen_flags: <defaults>
</compile_context>

<pallas_src>
import math
from functools import partial

import jax
import jax.numpy as jnp
from jax.experimental import pallas as pl
from jax.experimental.pallas import tpu as pltpu

NUM_MULTIMASK_OUTPUTS = 3
NUM_MASK_TOKENS = NUM_MULTIMASK_OUTPUTS + 1

TILE_M = 512          # row tile for pixel-major matmuls (multiple of 8 and 128)
TILE_N_MASK = 8192    # lane tile for the final masks bmm
TILE_Q_ATTN = 512     # query-row tile for the image->tokens attention
TILE_M_CLS = 2048     # row tile for the classifier

_GELU_C = math.sqrt(2.0 / math.pi)


def _gelu(x):
    # tanh-approximate GELU: transcendental lands on the EUP slot instead of a
    # long VALU erf polynomial.  Small numerics delta vs torch.nn.GELU (exact erf).
    return 0.5 * x * (1.0 + jnp.tanh(_GELU_C * (x + 0.044715 * (x * x * x))))


# ----------------------------------------------------------------------------
# Generic row-tiled linear (+ fused relu/gelu), bf16 MXU inputs, f32 epilogue.
# ----------------------------------------------------------------------------
def _linear_kernel(x_ref, w_ref, b_ref, o_ref, *, act):
    y = jnp.dot(x_ref[...].astype(jnp.bfloat16),
                w_ref[...].astype(jnp.bfloat16),
                preferred_element_type=jnp.float32) + b_ref[...]
    if act == "relu":
        y = jnp.maximum(y, 0.0)
    elif act == "gelu":
        y = _gelu(y)
    o_ref[...] = y.astype(o_ref.dtype)


def linear(x, w, b, act=None, out_dtype=jnp.float32, tile_m=TILE_M):
    """y = x @ w + b (optional fused relu/gelu). x:(M,K) w:(K,N) b:(N,)."""
    M, K = x.shape
    N = w.shape[1]
    tm = min(M, tile_m)
    return pl.pallas_call(
        partial(_linear_kernel, act=act),
        out_shape=jax.ShapeDtypeStruct((M, N), out_dtype),
        grid=(pl.cdiv(M, tm),),
        in_specs=[
            pl.BlockSpec((tm, K), lambda i: (i, 0)),
            pl.BlockSpec((K, N), lambda i: (0, 0)),
            pl.BlockSpec((1, N), lambda i: (0, 0)),
        ],
        out_specs=pl.BlockSpec((tm, N), lambda i: (i, 0)),
        compiler_params=pltpu.CompilerParams(dimension_semantics=("parallel",)),
    )(x, w.astype(jnp.bfloat16), b.reshape(1, N).astype(jnp.float32))


# ----------------------------------------------------------------------------
# Classifier -> softmax -> max == sigmoid(|x@(w0-w1)+(b0-b1)|).
# Single launch over all batches, row-tiled, lane-dense (1, B*Ncnn) output.
# ----------------------------------------------------------------------------
def _cls_kernel(x_ref, wd_ref, bd_ref, o_ref):
    d = jax.lax.dot_general(wd_ref[...], x_ref[...], (((1,), (1,)), ((), ())),
                            preferred_element_type=jnp.float32) + bd_ref[...]
    o_ref[...] = jax.nn.sigmoid(jnp.abs(d)).astype(o_ref.dtype)


def classifier_softmax_max(cnn_output, cls_w, cls_b, tile_m=TILE_M_CLS):
    B, Ncnn, C = cnn_output.shape
    M = B * Ncnn
    x = cnn_output.reshape(M, C)
    wd = (cls_w[:, 0] - cls_w[:, 1]).reshape(1, C)
    bd = (cls_b[0] - cls_b[1]).reshape(1, 1)
    tm = min(M, tile_m)
    out = pl.pallas_call(
        _cls_kernel,
        out_shape=jax.ShapeDtypeStruct((1, M), jnp.float32),
        grid=(pl.cdiv(M, tm),),
        in_specs=[
            pl.BlockSpec((tm, C), lambda i: (i, 0)),
            pl.BlockSpec((1, C), lambda i: (0, 0)),
            pl.BlockSpec((1, 1), lambda i: (0, 0)),
        ],
        out_specs=pl.BlockSpec((1, tm), lambda i: (0, i)),
        compiler_params=pltpu.CompilerParams(dimension_semantics=("parallel",)),
    )(x, wd, bd)
    return out.reshape(B, Ncnn)


# ----------------------------------------------------------------------------
# Fused ConvTranspose2d(2,2,s=2) + LayerNorm2d + GELU on pixel-major tiles.
# Columns of the (tm, 4*Cout) tile are ordered (ky, kx, co); each Cout-wide group
# is one output sub-pixel, so LayerNorm2d acts per group.  Single lane-dense store.
# ----------------------------------------------------------------------------
def _ct_ln_gelu_kernel(x_ref, w_ref, b_ref, g_ref, be_ref, o_ref, *, cout):
    y = jnp.dot(x_ref[...].astype(jnp.bfloat16),
                w_ref[...].astype(jnp.bfloat16),
                preferred_element_type=jnp.float32) + b_ref[...]      # (tm, 4*cout) f32
    gamma, beta = g_ref[...], be_ref[...]
    parts = []
    for gi in range(4):
        yg = y[:, gi * cout:(gi + 1) * cout]
        mu = jnp.mean(yg, axis=-1, keepdims=True)
        var = jnp.mean((yg - mu) * (yg - mu), axis=-1, keepdims=True)
        yn = (yg - mu) * jax.lax.rsqrt(var + 1e-6)                    # LayerNorm2d eps
        parts.append(_gelu(yn * gamma + beta))
    o_ref[...] = jnp.concatenate(parts, axis=-1).astype(o_ref.dtype)  # one full-width store


def conv_t1_ln_gelu(x_pix, w, b, gamma, beta, out_dtype=jnp.bfloat16, tile_m=TILE_M):
    """ConvT(2,2,s=2) + LayerNorm2d + GELU fused.  x_pix:(P,Cin); w:(Cin,Cout,2,2)."""
    P, Cin = x_pix.shape
    Cout = w.shape[1]
    w2 = jnp.transpose(w, (0, 2, 3, 1)).reshape(Cin, 4 * Cout).astype(jnp.bfloat16)
    b2 = jnp.tile(b, 4).reshape(1, 4 * Cout)
    tm = min(P, tile_m)
    return pl.pallas_call(
        partial(_ct_ln_gelu_kernel, cout=Cout),
        out_shape=jax.ShapeDtypeStruct((P, 4 * Cout), out_dtype),
        grid=(pl.cdiv(P, tm),),
        in_specs=[
            pl.BlockSpec((tm, Cin), lambda i: (i, 0)),
            pl.BlockSpec((Cin, 4 * Cout), lambda i: (0, 0)),
            pl.BlockSpec((1, 4 * Cout), lambda i: (0, 0)),
            pl.BlockSpec((1, Cout), lambda i: (0, 0)),
            pl.BlockSpec((1, Cout), lambda i: (0, 0)),
        ],
        out_specs=pl.BlockSpec((tm, 4 * Cout), lambda i: (i, 0)),
        compiler_params=pltpu.CompilerParams(dimension_semantics=("parallel",)),
    )(x_pix, w2, b2, gamma.reshape(1, Cout), beta.reshape(1, Cout))


def conv_t2_gelu(x_pix, w, b, out_dtype=jnp.bfloat16):
    """ConvT(2,2,s=2) + GELU fused via the row-tiled linear kernel (pixel-major)."""
    Cin, Cout = w.shape[0], w.shape[1]
    w2 = jnp.transpose(w, (0, 2, 3, 1)).reshape(Cin, 4 * Cout)
    b2 = jnp.tile(b, 4)
    return linear(x_pix, w2, b2, act="gelu", out_dtype=out_dtype)


# ----------------------------------------------------------------------------
# Cross-attention (transformer stand-in), two direction-specific kernels that
# avoid duplicated operand DMAs (residual / k=v aliases built in-kernel).
# ----------------------------------------------------------------------------
def _attn_t2i_kernel(tok_ref, src_ref, pos_ref, wq_ref, wk_ref, wv_ref,
                     bq_ref, bk_ref, bv_ref, o_ref, *, scale):
    bf, f32 = jnp.bfloat16, jnp.float32
    tok = tok_ref[0]                                   # (T, C)   queries + residual
    src = src_ref[0]                                   # (HW, C)  values
    kin = src + pos_ref[0]                             # keys = src + pos
    q = jnp.dot(tok.astype(bf), wq_ref[...], preferred_element_type=f32) + bq_ref[...]
    k = jnp.dot(kin.astype(bf), wk_ref[...], preferred_element_type=f32) + bk_ref[...]
    v = jnp.dot(src.astype(bf), wv_ref[...], preferred_element_type=f32) + bv_ref[...]
    s = jax.lax.dot_general(q.astype(bf), k.astype(bf), (((1,), (1,)), ((), ())),
                            preferred_element_type=f32) * scale
    p = jax.nn.softmax(s, axis=-1)
    o = jnp.dot(p.astype(bf), v.astype(bf), preferred_element_type=f32)
    o_ref[0] = (tok + o).astype(o_ref.dtype)


def attn_tokens_to_image(tokens, src_flat, pos_flat, wq, bq, wk, bk, wv, bv):
    """hs = tokens + softmax((tok Wq)((src+pos) Wk)^T / sqrt(C)) (src Wv)."""
    # TODO(synk): for production HW (64x64, C=256) add flash-style KV tiling here.
    B, T, C = tokens.shape
    HW = src_flat.shape[1]
    return pl.pallas_call(
        partial(_attn_t2i_kernel, scale=1.0 / math.sqrt(C)),
        out_shape=jax.ShapeDtypeStruct((B, T, C), jnp.float32),
        grid=(B,),
        in_specs=[
            pl.BlockSpec((1, T, C), lambda b: (b, 0, 0)),
            pl.BlockSpec((1, HW, C), lambda b: (b, 0, 0)),
            pl.BlockSpec((1, HW, C), lambda b: (0, 0, 0)),   # pos has batch 1 (not broadcast)
            pl.BlockSpec((C, C), lambda b: (0, 0)),
            pl.BlockSpec((C, C), lambda b: (0, 0)),
            pl.BlockSpec((C, C), lambda b: (0, 0)),
            pl.BlockSpec((1, C), lambda b: (0, 0)),
            pl.BlockSpec((1, C), lambda b: (0, 0)),
            pl.BlockSpec((1, C), lambda b: (0, 0)),
        ],
        out_specs=pl.BlockSpec((1, T, C), lambda b: (b, 0, 0)),
        compiler_params=pltpu.CompilerParams(dimension_semantics=("parallel",)),
    )(tokens, src_flat, pos_flat,
      wq.astype(jnp.bfloat16), wk.astype(jnp.bfloat16), wv.astype(jnp.bfloat16),
      bq.reshape(1, C), bk.reshape(1, C), bv.reshape(1, C))


def _attn_i2t_kernel(src_ref, pos_ref, kv_ref, wq_ref, wk_ref, wv_ref,
                     bq_ref, bk_ref, bv_ref, o_ref, *, scale):
    bf, f32 = jnp.bfloat16, jnp.float32
    src = src_ref[0]                                   # (tq, C)  residual
    qin = src + pos_ref[0]                             # queries = src + pos
    kv = kv_ref[0]                                     # (T, C)   keys == values source
    q = jnp.dot(qin.astype(bf), wq_ref[...], preferred_element_type=f32) + bq_ref[...]
    k = jnp.dot(kv.astype(bf), wk_ref[...], preferred_element_type=f32) + bk_ref[...]
    v = jnp.dot(kv.astype(bf), wv_ref[...], preferred_element_type=f32) + bv_ref[...]
    s = jax.lax.dot_general(q.astype(bf), k.astype(bf), (((1,), (1,)), ((), ())),
                            preferred_element_type=f32) * scale       # (tq, T)
    p = jax.nn.softmax(s, axis=-1)
    o = jnp.dot(p.astype(bf), v.astype(bf), preferred_element_type=f32)
    o_ref[0] = (src + o).astype(o_ref.dtype)


def attn_image_to_tokens(src_flat, pos_flat, kv, wq, bq, wk, bk, wv, bv,
                         out_dtype=jnp.bfloat16, tile_q=TILE_Q_ATTN):
    """src_out = src + softmax(((src+pos) Wq)(kv Wk)^T / sqrt(C)) (kv Wv), query-row-tiled."""
    B, HW, C = src_flat.shape
    T = kv.shape[1]
    tq = min(HW, tile_q)
    return pl.pallas_call(
        partial(_attn_i2t_kernel, scale=1.0 / math.sqrt(C)),
        out_shape=jax.ShapeDtypeStruct((B, HW, C), out_dtype),
        grid=(B, pl.cdiv(HW, tq)),
        in_specs=[
            pl.BlockSpec((1, tq, C), lambda b, m: (b, m, 0)),
            pl.BlockSpec((1, tq, C), lambda b, m: (0, m, 0)),
            pl.BlockSpec((1, T, C), lambda b, m: (b, 0, 0)),
            pl.BlockSpec((C, C), lambda b, m: (0, 0)),
            pl.BlockSpec((C, C), lambda b, m: (0, 0)),
            pl.BlockSpec((C, C), lambda b, m: (0, 0)),
            pl.BlockSpec((1, C), lambda b, m: (0, 0)),
            pl.BlockSpec((1, C), lambda b, m: (0, 0)),
            pl.BlockSpec((1, C), lambda b, m: (0, 0)),
        ],
        out_specs=pl.BlockSpec((1, tq, C), lambda b, m: (b, m, 0)),
        compiler_params=pltpu.CompilerParams(dimension_semantics=("parallel", "parallel")),
    )(src_flat, pos_flat, kv,
      wq.astype(jnp.bfloat16), wk.astype(jnp.bfloat16), wv.astype(jnp.bfloat16),
      bq.reshape(1, C), bk.reshape(1, C), bv.reshape(1, C))


# ----------------------------------------------------------------------------
# Fused 3-layer MLP (Linear-ReLU-Linear-ReLU-Linear) batched over a leading
# group axis: 4 hypernet MLPs + the iou head as a 5th (zero-padded) group.
# ----------------------------------------------------------------------------
def _mlp3_kernel(x_ref, w1_ref, b1_ref, w2_ref, b2_ref, w3_ref, b3_ref, o_ref):
    bf, f32 = jnp.bfloat16, jnp.float32
    x = x_ref[0]
    h = jnp.maximum(jnp.dot(x.astype(bf), w1_ref[0].astype(bf),
                            preferred_element_type=f32) + b1_ref[0], 0.0)
    h = jnp.maximum(jnp.dot(h.astype(bf), w2_ref[0].astype(bf),
                            preferred_element_type=f32) + b2_ref[0], 0.0)
    y = jnp.dot(h.astype(bf), w3_ref[0].astype(bf),
                preferred_element_type=f32) + b3_ref[0]
    o_ref[0] = y.astype(o_ref.dtype)


def batched_mlp3(x, w1, b1, w2, b2, w3, b3):
    """x:(G,M,D0); w_i:(G,Di-1,Di); b_i:(G,Di) -> (G,M,D3)."""
    G, M, D0 = x.shape
    D1, D2, D3 = w1.shape[2], w2.shape[2], w3.shape[2]
    return pl.pallas_call(
        _mlp3_kernel,
        out_shape=jax.ShapeDtypeStruct((G, M, D3), jnp.float32),
        grid=(G,),
        in_specs=[
            pl.BlockSpec((1, M, D0), lambda i: (i, 0, 0)),
            pl.BlockSpec((1, D0, D1), lambda i: (i, 0, 0)),
            pl.BlockSpec((1, 1, D1), lambda i: (i, 0, 0)),
            pl.BlockSpec((1, D1, D2), lambda i: (i, 0, 0)),
            pl.BlockSpec((1, 1, D2), lambda i: (i, 0, 0)),
            pl.BlockSpec((1, D2, D3), lambda i: (i, 0, 0)),
            pl.BlockSpec((1, 1, D3), lambda i: (i, 0, 0)),
        ],
        out_specs=pl.BlockSpec((1, M, D3), lambda i: (i, 0, 0)),
        compiler_params=pltpu.CompilerParams(dimension_semantics=("parallel",)),
    )(x, w1, b1.reshape(G, 1, D1), w2, b2.reshape(G, 1, D2), w3, b3.reshape(G, 1, D3))


# ----------------------------------------------------------------------------
# masks = hyper_in (B,M,K) contracted with the PIXEL-MAJOR upscaled embedding
# (B,N,K) over K -> (B,M,N).  No channel-major transpose of the big intermediate;
# output is lane-dense along the (tiled) pixel axis.
# ----------------------------------------------------------------------------
def _mask_bmm_kernel(h_ref, u_ref, o_ref):
    o_ref[0] = jax.lax.dot_general(
        h_ref[0].astype(jnp.bfloat16), u_ref[0].astype(jnp.bfloat16),
        (((1,), (1,)), ((), ())), preferred_element_type=jnp.float32
    ).astype(o_ref.dtype)


def mask_bmm_pixel_major(hyper_in, up_pm, tile_n=TILE_N_MASK):
    B, M, K = hyper_in.shape
    N = up_pm.shape[1]
    tn = min(N, tile_n)
    return pl.pallas_call(
        _mask_bmm_kernel,
        out_shape=jax.ShapeDtypeStruct((B, M, N), jnp.float32),
        grid=(B, pl.cdiv(N, tn)),
        in_specs=[
            pl.BlockSpec((1, M, K), lambda b, j: (b, 0, 0)),
            pl.BlockSpec((1, tn, K), lambda b, j: (b, j, 0)),
        ],
        out_specs=pl.BlockSpec((1, M, tn), lambda b, j: (b, 0, j)),
        compiler_params=pltpu.CompilerParams(dimension_semantics=("parallel", "parallel")),
    )(hyper_in, up_pm)


# ----------------------------------------------------------------------------
# Transformer stand-in
# ----------------------------------------------------------------------------
def transformer_forward(p, src_nchw, pos_nchw, tokens):
    # TODO(synk): the real `transformer` is an injected nn.Module (SAM TwoWayTransformer);
    # this is a deterministic single-layer two-way cross-attention stand-in with the same
    # (src, pos, tokens) -> (hs, src) interface, built on the fused Pallas kernels above.
    B, C, H, W = src_nchw.shape
    HW = H * W
    src_flat = jnp.transpose(src_nchw, (0, 2, 3, 1)).reshape(B, HW, C)
    pos1 = pos_nchw if pos_nchw.shape[0] == 1 else pos_nchw[:1]
    pos_flat = jnp.transpose(pos1, (0, 2, 3, 1)).reshape(1, HW, C)

    hs = attn_tokens_to_image(tokens, src_flat, pos_flat,
                              p["t_wq"], p["t_bq"], p["t_wk"], p["t_bk"],
                              p["t_wv"], p["t_bv"])
    src_out = attn_image_to_tokens(src_flat, pos_flat, hs,
                                   p["t_wq2"], p["t_bq2"], p["t_wk2"], p["t_bk2"],
                                   p["t_wv2"], p["t_bv2"],
                                   out_dtype=jnp.bfloat16)   # bf16: feeds the BW-bound upscaling
    return hs, src_out


# ----------------------------------------------------------------------------
# MaskDecoder_token forward
# ----------------------------------------------------------------------------
def predict_masks(params, cnn_output, image_embeddings, image_pe,
                  sparse_prompt_embeddings, dense_prompt_embeddings):
    B, Ncnn, C = cnn_output.shape

    # classifier -> softmax -> max  (single fused, lane-dense launch)
    max_scores = classifier_softmax_max(cnn_output, params["cls_w"], params["cls_b"])

    # top-k token selection + gather (glue; no Pallas top-k primitive)
    _, topk_idx = jax.lax.top_k(max_scores, NUM_MASK_TOKENS)
    sel = jnp.take_along_axis(
        cnn_output,
        jnp.broadcast_to(topk_idx[:, :, None], (B, NUM_MASK_TOKENS, C)),
        axis=1)
    # query_projection: M = B*4 rows -> launch-overhead bound, left to XLA per perf review.
    mask_tokens = sel @ params["qp_w"] + params["qp_b"]

    Bs = sparse_prompt_embeddings.shape[0]
    if mask_tokens.shape[0] != Bs:
        mask_tokens = jnp.repeat(mask_tokens, Bs, axis=0)   # == torch.repeat_interleave

    iou_tok = jnp.broadcast_to(params["iou_token"][None, :, :], (Bs, 1, C))
    output_tokens = jnp.concatenate([iou_tok, mask_tokens], axis=1)
    tokens = jnp.concatenate([output_tokens, sparse_prompt_embeddings], axis=1)

    if image_embeddings.ndim == 3:
        src = jnp.repeat(image_embeddings[None], tokens.shape[0], axis=0)
    else:
        src = image_embeddings
    src = src + dense_prompt_embeddings
    b, c, h, w = src.shape

    hs, src_tr = transformer_forward(params, src, image_pe, tokens)
    iou_token_out = hs[:, 0, :]
    mask_tokens_out = hs[:, 1:1 + NUM_MASK_TOKENS, :]

    # ---- hypernet MLPs + iou head: ONE batched 3-layer kernel (5 groups) ----
    C4, C8 = c // 4, c // 8
    iou_mlp = params["iou_mlp"]
    D1 = max(c, iou_mlp[0][0].shape[1])
    D2 = max(c, iou_mlp[1][0].shape[1])
    D3 = max(C8, NUM_MASK_TOKENS)

    def pad2(wm, r, cc):
        return jnp.pad(wm, ((0, r - wm.shape[0]), (0, cc - wm.shape[1])))

    def pad1(v, n):
        return jnp.pad(v, (0, n - v.shape[0]))

    hyper = params["hyper"]
    w1s = jnp.stack([pad2(hyper[i][0][0], c, D1) for i in range(NUM_MASK_TOKENS)]
                    + [pad2(iou_mlp[0][0], c, D1)])
    b1s = jnp.stack([pad1(hyper[i][0][1], D1) for i in range(NUM_MASK_TOKENS)]
                    + [pad1(iou_mlp[0][1], D1)])
    w2s = jnp.stack([pad2(hyper[i][1][0], D1, D2) for i in range(NUM_MASK_TOKENS)]
                    + [pad2(iou_mlp[1][0], D1, D2)])
    b2s = jnp.stack([pad1(hyper[i][1][1], D2) for i in range(NUM_MASK_TOKENS)]
                    + [pad1(iou_mlp[1][1], D2)])
    w3s = jnp.stack([pad2(hyper[i][2][0], D2, D3) for i in range(NUM_MASK_TOKENS)]
                    + [pad2(iou_mlp[2][0], D2, D3)])
    b3s = jnp.stack([pad1(hyper[i][2][1], D3) for i in range(NUM_MASK_TOKENS)]
                    + [pad1(iou_mlp[2][1], D3)])

    x_groups = jnp.concatenate(
        [jnp.transpose(mask_tokens_out, (1, 0, 2)), iou_token_out[None]], axis=0)  # (5,Bs,C)
    out5 = batched_mlp3(x_groups, w1s, b1s, w2s, b2s, w3s, b3s)                    # (5,Bs,D3)
    hyper_in = jnp.transpose(out5[:NUM_MASK_TOKENS, :, :C8], (1, 0, 2))            # (Bs,4,C8)
    iou_pred = out5[NUM_MASK_TOKENS][:, :NUM_MASK_TOKENS]                          # (Bs,4)

    # ---- output upscaling, pixel-major end-to-end (no big transposes) -------
    x_pix = src_tr.reshape(b * h * w, c)                       # bf16, free reshape
    up1 = conv_t1_ln_gelu(x_pix, params["ct1_w"], params["ct1_b"],
                          params["ln_g"], params["ln_b"])      # (P, 4*C4) bf16, cols (ky,kx,c4)
    up1_r = up1.reshape(b * h * w * 4, C4)                     # free reshape
    up2 = conv_t2_gelu(up1_r, params["ct2_w"], params["ct2_b"])  # (P*4, 4*C8) bf16, cols (ky,kx,c8)
    up_pm = up2.reshape(b, h * w * 16, C8)                     # free reshape, pixel-major

    # masks bmm on the pixel-major layout; pixel-shuffle the SMALL masks tensor after.
    masks_pm = mask_bmm_pixel_major(hyper_in, up_pm)           # (b, 4, 16*h*w)
    masks = (masks_pm.reshape(b, NUM_MASK_TOKENS, h, w, 2, 2, 2, 2)
                     .transpose(0, 1, 2, 4, 6, 3, 5, 7)        # (b,m,h,ky1,ky2,w,kx1,kx2)
                     .reshape(b, NUM_MASK_TOKENS, 4 * h, 4 * w))

    return masks, iou_pred


@partial(jax.jit, static_argnames=("multimask_output",))
def mask_decoder_token_forward(params, cnn_output, image_embeddings, image_pe,
                               sparse_prompt_embeddings, dense_prompt_embeddings,
                               multimask_output):
    masks, iou_pred = predict_masks(params, cnn_output, image_embeddings, image_pe,
                                    sparse_prompt_embeddings, dense_prompt_embeddings)
    if multimask_output:
        masks = masks[:, 1:, :, :]
        iou_pred = iou_pred[:, 1:]
    else:
        masks = masks[:, 0:1, :, :]
        iou_pred = iou_pred[:, 0:1]
    return masks, iou_pred


# ----------------------------------------------------------------------------
# Deterministic parameter init (shapes follow the module __init__)
# ----------------------------------------------------------------------------
def init_params(key, C, iou_head_hidden_dim=256, iou_head_depth=3):
    keys = iter(jax.random.split(key, 64))

    def w(shape, scale=0.05):
        return scale * jax.random.normal(next(keys), shape, jnp.float32)

    p = {
        "iou_token": w((1, C)),
        "qp_w": w((C, C)), "qp_b": w((C,)),
        "cls_w": w((C, 2)), "cls_b": w((2,)),
        "ct1_w": w((C, C // 4, 2, 2)), "ct1_b": w((C // 4,)),
        "ln_g": jnp.ones((C // 4,), jnp.float32),
        "ln_b": jnp.zeros((C // 4,), jnp.float32),
        "ct2_w": w((C // 4, C // 8, 2, 2)), "ct2_b": w((C // 8,)),
    }
    # output_hypernetworks_mlps: MLP(C, C, C//8, num_layers=3)  x NUM_MASK_TOKENS
    p["hyper"] = [
        [(w((C, C)), w((C,))),
         (w((C, C)), w((C,))),
         (w((C, C // 8)), w((C // 8,)))]
        for _ in range(NUM_MASK_TOKENS)
    ]
    # iou_prediction_head: MLP(C, 256, num_mask_tokens, depth=3)
    dims = [C] + [iou_head_hidden_dim] * (iou_head_depth - 1) + [NUM_MASK_TOKENS]
    p["iou_mlp"] = [(w((dims[i], dims[i + 1])), w((dims[i + 1],)))
                    for i in range(iou_head_depth)]
    # stand-in transformer weights
    for name in ["t_wq", "t_wk", "t_wv", "t_wq2", "t_wk2", "t_wv2"]:
        p[name] = w((C, C))
    for name in ["t_bq", "t_bk", "t_bv", "t_bq2", "t_bk2", "t_bv2"]:
        p[name] = w((C,))
    return p


if __name__ == "__main__":
    key = jax.random.PRNGKey(0)
    C = 32        # transformer_dim
    B = 2
    H = W = 8     # image embedding spatial size
    N_CNN = 16    # cnn_output sequence length
    N_SPARSE = 2  # sparse prompt tokens

    kp, k1, k2, k3, k4, k5 = jax.random.split(key, 6)
    params = init_params(kp, C)

    cnn_output = jax.random.normal(k1, (B, N_CNN, C), jnp.float32)
    image_embeddings = jax.random.normal(k2, (B, C, H, W), jnp.float32)
    image_pe = jax.random.normal(k3, (1, C, H, W), jnp.float32)
    sparse_prompt_embeddings = jax.random.normal(k4, (B, N_SPARSE, C), jnp.float32)
    dense_prompt_embeddings = jax.random.normal(k5, (B, C, H, W), jnp.float32)

    masks, iou_pred = mask_decoder_token_forward(
        params, cnn_output, image_embeddings, image_pe,
        sparse_prompt_embeddings, dense_prompt_embeddings,
        multimask_output=True)
    jax.block_until_ready((masks, iou_pred))

    assert masks.shape == (B, NUM_MULTIMASK_OUTPUTS, 4 * H, 4 * W), masks.shape
    assert iou_pred.shape == (B, NUM_MULTIMASK_OUTPUTS), iou_pred.shape
    assert jnp.all(jnp.isfinite(masks)) and jnp.all(jnp.isfinite(iou_pred))
    print("KERNEL_OK")
</pallas_src>

<mosaic_0001>
module attributes {stable_mosaic.version = 11 : i64} {
  func.func @_cls_kernel(%arg0: i32, %arg1: memref<32x32xf32, #tpu.memory_space<vmem>>, %arg2: memref<1x32xf32, #tpu.memory_space<vmem>>, %arg3: memref<1x1xf32, #tpu.memory_space<vmem>>, %arg4: memref<1x32xf32, #tpu.memory_space<vmem>>) attributes {dimension_semantics = [#tpu.dimension_semantics<parallel>], iteration_bounds = array<i64: 1>, scalar_prefetch = 0 : i64, scratch_operands = 0 : i64, tpu.core_type = #tpu.core_type<tc>, window_params = [{transform_indices = @transform_0, window_bounds = array<i64: 32, 32>}, {pipeline_mode = #tpu.pipeline_mode<synchronous>, transform_indices = @transform_1, window_bounds = array<i64: 1, 32>}, {pipeline_mode = #tpu.pipeline_mode<synchronous>, transform_indices = @transform_2, window_bounds = array<i64: 1, 1>}, {transform_indices = @transform_3, window_bounds = array<i64: 1, 32>}]} {
    %c0 = arith.constant 0 : index
    %c0_0 = arith.constant 0 : index
    %0 = vector.load %arg2[%c0, %c0_0] : memref<1x32xf32, #tpu.memory_space<vmem>>, vector<1x32xf32>
    %c0_1 = arith.constant 0 : index
    %c0_2 = arith.constant 0 : index
    %1 = vector.load %arg1[%c0_1, %c0_2] : memref<32x32xf32, #tpu.memory_space<vmem>>, vector<32x32xf32>
    %cst = arith.constant dense<0.000000e+00> : vector<1x32xf32>
    %2 = tpu.matmul %0, %1, %cst {dimension_numbers = #tpu.dot_dimension_numbers<[1], [1], [0], [0], [0, 0, 1, 0], [], []>} : vector<1x32xf32>, vector<32x32xf32>, vector<1x32xf32> -> vector<1x32xf32>
    %c0_3 = arith.constant 0 : index
    %c0_4 = arith.constant 0 : index
    %3 = vector.load %arg3[%c0_3, %c0_4] : memref<1x1xf32, #tpu.memory_space<vmem>>, vector<1x1xf32>
    %4 = vector.broadcast %3 : vector<1x1xf32> to vector<1x32xf32>
    %5 = arith.addf %2, %4 : vector<1x32xf32>
    %6 = math.absf %5 : vector<1x32xf32>
    %7 = arith.negf %6 : vector<1x32xf32>
    %8 = math.exp %7 : vector<1x32xf32>
    %cst_5 = arith.constant 1.000000e+00 : f32
    %9 = vector.broadcast %cst_5 : f32 to vector<1x32xf32>
    %10 = arith.addf %9, %8 : vector<1x32xf32>
    %11 = arith.divf %9, %10 : vector<1x32xf32>
    %c0_6 = arith.constant 0 : index
    %c0_7 = arith.constant 0 : index
    %12 = vector.load %arg4[%c0_6, %c0_7] : memref<1x32xf32, #tpu.memory_space<vmem>>, vector<1x32xf32>
    tpu.vector_store %arg4[%c0_6, %c0_7], %11 {strides = array<i32>} : memref<1x32xf32, #tpu.memory_space<vmem>>, vector<1x32xf32>,
    return
  }
  func.func @transform_0(%arg0: i32) -> (i32, i32) {
    %c0_i32 = arith.constant 0 : i32
    %c0_i32_0 = arith.constant 0 : i32
    return %arg0, %c0_i32 : i32, i32
  }
  func.func @transform_1(%arg0: i32) -> (i32, i32) {
    %c0_i32 = arith.constant 0 : i32
    %c0_i32_0 = arith.constant 0 : i32
    %c0_i32_1 = arith.constant 0 : i32
    return %c0_i32, %c0_i32_0 : i32, i32
  }
  func.func @transform_2(%arg0: i32) -> (i32, i32) {
    %c0_i32 = arith.constant 0 : i32
    %c0_i32_0 = arith.constant 0 : i32
    %c0_i32_1 = arith.constant 0 : i32
    return %c0_i32, %c0_i32_0 : i32, i32
  }
  func.func @transform_3(%arg0: i32) -> (i32, i32) {
    %c0_i32 = arith.constant 0 : i32
    %c0_i32_0 = arith.constant 0 : i32
    return %c0_i32, %arg0 : i32, i32
  }
}

module attributes {stable_mosaic.version = 11 : i64} {
  func.func @_attn_t2i_kernel(%arg0: i32, %arg1: memref<1x7x32xf32, #tpu.memory_space<vmem>>, %arg2: memref<1x64x32xf32, #tpu.memory_space<vmem>>, %arg3: memref<1x64x32xf32, #tpu.memory_space<vmem>>, %arg4: memref<32x32xbf16, #tpu.memory_space<vmem>>, %arg5: memref<32x32xbf16, #tpu.memory_space<vmem>>, %arg6: memref<32x32xbf16, #tpu.memory_space<vmem>>, %arg7: memref<1x32xf32, #tpu.memory_space<vmem>>, %arg8: memref<1x32xf32, #tpu.memory_space<vmem>>, %arg9: memref<1x32xf32, #tpu.memory_space<vmem>>, %arg10: memref<1x7x32xf32, #tpu.memory_space<vmem>>) attributes {dimension_semantics = [#tpu.dimension_semantics<parallel>], iteration_bounds = array<i64: 2>, scalar_prefetch = 0 : i64, scratch_operands = 0 : i64, tpu.core_type = #tpu.core_type<tc>, window_params = [{transform_indices = @transform_0, window_bounds = array<i64: 1, 7, 32>}, {transform_indices = @transform_1, window_bounds = array<i64: 1, 64, 32>}, {pipeline_mode = #tpu.pipeline_mode<synchronous>, transform_indices = @transform_2, window_bounds = array<i64: 1, 64, 32>}, {pipeline_mode = #tpu.pipeline_mode<synchronous>, transform_indices = @transform_3, window_bounds = array<i64: 32, 32>}, {pipeline_mode = #tpu.pipeline_mode<synchronous>, transform_indices = @transform_4, window_bounds = array<i64: 32, 32>}, {pipeline_mode = #tpu.pipeline_mode<synchronous>, transform_indices = @transform_5, window_bounds = array<i64: 32, 32>}, {pipeline_mode = #tpu.pipeline_mode<synchronous>, transform_indices = @transform_6, window_bounds = array<i64: 1, 32>}, {pipeline_mode = #tpu.pipeline_mode<synchronous>, transform_indices = @transform_7, window_bounds = array<i64: 1, 32>}, {pipeline_mode = #tpu.pipeline_mode<synchronous>, transform_indices = @transform_8, window_bounds = array<i64: 1, 32>}, {transform_indices = @transform_9, window_bounds = array<i64: 1, 7, 32>}]} {
    %c0 = arith.constant 0 : index
    %c0_0 = arith.constant 0 : index
    %c0_1 = arith.constant 0 : index
    %0 = vector.load %arg1[%c0, %c0_0, %c0_1] : memref<1x7x32xf32, #tpu.memory_space<vmem>>, vector<1x7x32xf32>
    %1 = vector.shape_cast %0 : vector<1x7x32xf32> to vector<7x32xf32>
    %c0_2 = arith.constant 0 : index
    %c0_3 = arith.constant 0 : index
    %c0_4 = arith.constant 0 : index
    %2 = vector.load %arg2[%c0_2, %c0_3, %c0_4] : memref<1x64x32xf32, #tpu.memory_space<vmem>>, vector<1x64x32xf32>
    %3 = vector.shape_cast %2 : vector<1x64x32xf32> to vector<64x32xf32>
    %c0_5 = arith.constant 0 : index
    %c0_6 = arith.constant 0 : index
    %c0_7 = arith.constant 0 : index
    %4 = vector.load %arg3[%c0_5, %c0_6, %c0_7] : memref<1x64x32xf32, #tpu.memory_space<vmem>>, vector<1x64x32xf32>
    %5 = vector.shape_cast %4 : vector<1x64x32xf32> to vector<64x32xf32>
    %6 = arith.addf %3, %5 : vector<64x32xf32>
    %7 = arith.truncf %1 : vector<7x32xf32> to vector<7x32xbf16>
    %c0_8 = arith.constant 0 : index
    %c0_9 = arith.constant 0 : index
    %8 = vector.load %arg4[%c0_8, %c0_9] : memref<32x32xbf16, #tpu.memory_space<vmem>>, vector<32x32xbf16>
    %cst = arith.constant dense<0.000000e+00> : vector<7x32xf32>
    %9 = tpu.matmul %7, %8, %cst {dimension_numbers = #tpu.dot_dimension_numbers<[1], [0], [0], [1], [0, 0, 1, 1], [], []>} : vector<7x32xbf16>, vector<32x32xbf16>, vector<7x32xf32> -> vector<7x32xf32>
    %c0_10 = arith.constant 0 : index
    %c0_11 = arith.constant 0 : index
    %10 = vector.load %arg7[%c0_10, %c0_11] : memref<1x32xf32, #tpu.memory_space<vmem>>, vector<1x32xf32>
    %11 = vector.broadcast %10 : vector<1x32xf32> to vector<7x32xf32>
    %12 = arith.addf %9, %11 : vector<7x32xf32>
    %13 = arith.truncf %6 : vector<64x32xf32> to vector<64x32xbf16>
    %c0_12 = arith.constant 0 : index
    %c0_13 = arith.constant 0 : index
    %14 = vector.load %arg5[%c0_12, %c0_13] : memref<32x32xbf16, #tpu.memory_space<vmem>>, vector<32x32xbf16>
    %cst_14 = arith.constant dense<0.000000e+00> : vector<64x32xf32>
    %15 = tpu.matmul %13, %14, %cst_14 {dimension_numbers = #tpu.dot_dimension_numbers<[1], [0], [0], [1], [0, 0, 1, 1], [], []>} : vector<64x32xbf16>, vector<32x32xbf16>, vector<64x32xf32> -> vector<64x32xf32>
    %c0_15 = arith.constant 0 : index
    %c0_16 = arith.constant 0 : index
    %16 = vector.load %arg8[%c0_15, %c0_16] : memref<1x32xf32, #tpu.memory_space<vmem>>, vector<1x32xf32>
    %17 = vector.broadcast %16 : vector<1x32xf32> to vector<64x32xf32>
    %18 = arith.addf %15, %17 : vector<64x32xf32>
    %19 = arith.truncf %3 : vector<64x32xf32> to vector<64x32xbf16>
    %c0_17 = arith.constant 0 : index
    %c0_18 = arith.constant 0 : index
    %20 = vector.load %arg6[%c0_17, %c0_18] : memref<32x32xbf16, #tpu.memory_space<vmem>>, vector<32x32xbf16>
    %cst_19 = arith.constant dense<0.000000e+00> : vector<64x32xf32>
    %21 = tpu.matmul %19, %20, %cst_19 {dimension_numbers = #tpu.dot_dimension_numbers<[1], [0], [0], [1], [0, 0, 1, 1], [], []>} : vector<64x32xbf16>, vector<32x32xbf16>, vector<64x32xf32> -> vector<64x32xf32>
    %c0_20 = arith.constant 0 : index
    %c0_21 = arith.constant 0 : index
    %22 = vector.load %arg9[%c0_20, %c0_21] : memref<1x32xf32, #tpu.memory_space<vmem>>, vector<1x32xf32>
    %23 = vector.broadcast %22 : vector<1x32xf32> to vector<64x32xf32>
    %24 = arith.addf %21, %23 : vector<64x32xf32>
    %25 = arith.truncf %12 : vector<7x32xf32> to vector<7x32xbf16>
    %26 = arith.truncf %18 : vector<64x32xf32> to vector<64x32xbf16>
    %cst_22 = arith.constant dense<0.000000e+00> : vector<7x64xf32>
    %27 = tpu.matmul %25, %26, %cst_22 {dimension_numbers = #tpu.dot_dimension_numbers<[1], [1], [0], [0], [0, 0, 1, 0], [], []>} : vector<7x32xbf16>, vector<64x32xbf16>, vector<7x64xf32> -> vector<7x64xf32>
    %cst_23 = arith.constant 0.176776692 : f32
    %28 = vector.broadcast %cst_23 : f32 to vector<7x64xf32>
    %29 = arith.mulf %27, %28 : vector<7x64xf32>
    %cst_24 = arith.constant dense<0xFF800000> : vector<7xf32>
    %30 = vector.multi_reduction <maximumf>, %29, %cst_24 [1] : vector<7x64xf32> to vector<7xf32>
    %cst_25 = arith.constant 0xFF800000 : f32
    %31 = vector.broadcast %cst_25 : f32 to vector<7xf32>
    %32 = arith.maximumf %31, %30 : vector<7xf32>
    %33 = vector.shape_cast %32 : vector<7xf32> to vector<7x1xf32>
    %34 = vector.broadcast %33 : vector<7x1xf32> to vector<7x64xf32>
    %35 = arith.subf %29, %34 : vector<7x64xf32>
    %36 = math.exp %35 : vector<7x64xf32>
    %cst_26 = arith.constant dense<0.000000e+00> : vector<7xf32>
    %37 = vector.multi_reduction <add>, %36, %cst_26 [1] : vector<7x64xf32> to vector<7xf32>
    %38 = vector.shape_cast %37 : vector<7xf32> to vector<7x1xf32>
    %39 = vector.broadcast %38 : vector<7x1xf32> to vector<7x64xf32>
    %40 = arith.divf %36, %39 : vector<7x64xf32>
    %41 = arith.truncf %40 : vector<7x64xf32> to vector<7x64xbf16>
    %42 = arith.truncf %24 : vector<64x32xf32> to vector<64x32xbf16>
    %cst_27 = arith.constant dense<0.000000e+00> : vector<7x32xf32>
    %43 = tpu.matmul %41, %42, %cst_27 {dimension_numbers = #tpu.dot_dimension_numbers<[1], [0], [0], [1], [0, 0, 1, 1], [], []>} : vector<7x64xbf16>, vector<64x32xbf16>, vector<7x32xf32> -> vector<7x32xf32>
    %44 = arith.addf %1, %43 : vector<7x32xf32>
    %c0_28 = arith.constant 0 : index
    %c0_29 = arith.constant 0 : index
    %c0_30 = arith.constant 0 : index
    %45 = vector.load %arg10[%c0_28, %c0_29, %c0_30] : memref<1x7x32xf32, #tpu.memory_space<vmem>>, vector<1x7x32xf32>
    %46 = vector.shape_cast %45 : vector<1x7x32xf32> to vector<7x32xf32>
    %47 = vector.shape_cast %44 : vector<7x32xf32> to vector<1x7x32xf32>
    tpu.vector_store %arg10[%c0_28, %c0_29, %c0_30], %47 {strides = array<i32>} : memref<1x7x32xf32, #tpu.memory_space<vmem>>, vector<1x7x32xf32>,
    return
  }
  func.func @transform_0(%arg0: i32) -> (i32, i32, i32) {
    %c0_i32 = arith.constant 0 : i32
    %c0_i32_0 = arith.constant 0 : i32
    %c0_i32_1 = arith.constant 0 : i32
    return %arg0, %c0_i32, %c0_i32_0 : i32, i32, i32
  }
  func.func @transform_1(%arg0: i32) -> (i32, i32, i32) {
    %c0_i32 = arith.constant 0 : i32
    %c0_i32_0 = arith.constant 0 : i32
    %c0_i32_1 = arith.constant 0 : i32
    return %arg0, %c0_i32, %c0_i32_0 : i32, i32, i32
  }
  func.func @transform_2(%arg0: i32) -> (i32, i32, i32) {
    %c0_i32 = arith.constant 0 : i32
    %c0_i32_0 = arith.constant 0 : i32
    %c0_i32_1 = arith.constant 0 : i32
    %c0_i32_2 = arith.constant 0 : i32
    return %c0_i32, %c0_i32_0, %c0_i32_1 : i32, i32, i32
  }
  func.func @transform_3(%arg0: i32) -> (i32, i32) {
    %c0_i32 = arith.constant 0 : i32
    %c0_i32_0 = arith.constant 0 : i32
    %c0_i32_1 = arith.constant 0 : i32
    return %c0_i32, %c0_i32_0 : i32, i32
  }
  func.func @transform_4(%arg0: i32) -> (i32, i32) {
    %c0_i32 = arith.constant 0 : i32
    %c0_i32_0 = arith.constant 0 : i32
    %c0_i32_1 = arith.constant 0 : i32
    return %c0_i32, %c0_i32_0 : i32, i32
  }
  func.func @transform_5(%arg0: i32) -> (i32, i32) {
    %c0_i32 = arith.constant 0 : i32
    %c0_i32_0 = arith.constant 0 : i32
    %c0_i32_1 = arith.constant 0 : i32
    return %c0_i32, %c0_i32_0 : i32, i32
  }
  func.func @transform_6(%arg0: i32) -> (i32, i32) {
    %c0_i32 = arith.constant 0 : i32
    %c0_i32_0 = arith.constant 0 : i32
    %c0_i32_1 = arith.constant 0 : i32
    return %c0_i32, %c0_i32_0 : i32, i32
  }
  func.func @transform_7(%arg0: i32) -> (i32, i32) {
    %c0_i32 = arith.constant 0 : i32
    %c0_i32_0 = arith.constant 0 : i32
    %c0_i32_1 = arith.constant 0 : i32
    return %c0_i32, %c0_i32_0 : i32, i32
  }
  func.func @transform_8(%arg0: i32) -> (i32, i32) {
    %c0_i32 = arith.constant 0 : i32
    %c0_i32_0 = arith.constant 0 : i32
    %c0_i32_1 = arith.constant 0 : i32
    return %c0_i32, %c0_i32_0 : i32, i32
  }
  func.func @transform_9(%arg0: i32) -> (i32, i32, i32) {
    %c0_i32 = arith.constant 0 : i32
    %c0_i32_0 = arith.constant 0 : i32
    %c0_i32_1 = arith.constant 0 : i32
    return %arg0, %c0_i32, %c0_i32_0 : i32, i32, i32
  }
}

module attributes {stable_mosaic.version = 11 : i64} {
  func.func @_mlp3_kernel(%arg0: i32, %arg1: memref<1x2x32xf32, #tpu.memory_space<vmem>>, %arg2: memref<1x32x256xf32, #tpu.memory_space<vmem>>, %arg3: memref<1x1x256xf32, #tpu.memory_space<vmem>>, %arg4: memref<1x256x256xf32, #tpu.memory_space<vmem>>, %arg5: memref<1x1x256xf32, #tpu.memory_space<vmem>>, %arg6: memref<1x256x4xf32, #tpu.memory_space<vmem>>, %arg7: memref<1x1x4xf32, #tpu.memory_space<vmem>>, %arg8: memref<1x2x4xf32, #tpu.memory_space<vmem>>) attributes {dimension_semantics = [#tpu.dimension_semantics<parallel>], iteration_bounds = array<i64: 5>, scalar_prefetch = 0 : i64, scratch_operands = 0 : i64, tpu.core_type = #tpu.core_type<tc>, window_params = [{transform_indices = @transform_0, window_bounds = array<i64: 1, 2, 32>}, {transform_indices = @transform_1, window_bounds = array<i64: 1, 32, 256>}, {transform_indices = @transform_2, window_bounds = array<i64: 1, 1, 256>}, {transform_indices = @transform_3, window_bounds = array<i64: 1, 256, 256>}, {transform_indices = @transform_4, window_bounds = array<i64: 1, 1, 256>}, {transform_indices = @transform_5, window_bounds = array<i64: 1, 256, 4>}, {transform_indices = @transform_6, window_bounds = array<i64: 1, 1, 4>}, {transform_indices = @transform_7, window_bounds = array<i64: 1, 2, 4>}]} {
    %c0 = arith.constant 0 : index
    %c0_0 = arith.constant 0 : index
    %c0_1 = arith.constant 0 : index
    %0 = vector.load %arg1[%c0, %c0_0, %c0_1] : memref<1x2x32xf32, #tpu.memory_space<vmem>>, vector<1x2x32xf32>
    %1 = vector.shape_cast %0 : vector<1x2x32xf32> to vector<2x32xf32>
    %2 = arith.truncf %1 : vector<2x32xf32> to vector<2x32xbf16>
    %c0_2 = arith.constant 0 : index
    %c0_3 = arith.constant 0 : index
    %c0_4 = arith.constant 0 : index
    %3 = vector.load %arg2[%c0_2, %c0_3, %c0_4] : memref<1x32x256xf32, #tpu.memory_space<vmem>>, vector<1x32x256xf32>
    %4 = vector.shape_cast %3 : vector<1x32x256xf32> to vector<32x256xf32>
    %5 = arith.truncf %4 : vector<32x256xf32> to vector<32x256xbf16>
    %cst = arith.constant dense<0.000000e+00> : vector<2x256xf32>
    %6 = tpu.matmul %2, %5, %cst {dimension_numbers = #tpu.dot_dimension_numbers<[1], [0], [0], [1], [0, 0, 1, 1], [], []>} : vector<2x32xbf16>, vector<32x256xbf16>, vector<2x256xf32> -> vector<2x256xf32>
    %c0_5 = arith.constant 0 : index
    %c0_6 = arith.constant 0 : index
    %c0_7 = arith.constant 0 : index
    %7 = vector.load %arg3[%c0_5, %c0_6, %c0_7] : memref<1x1x256xf32, #tpu.memory_space<vmem>>, vector<1x1x256xf32>
    %8 = vector.shape_cast %7 : vector<1x1x256xf32> to vector<1x256xf32>
    %9 = vector.broadcast %8 : vector<1x256xf32> to vector<2x256xf32>
    %10 = arith.addf %6, %9 : vector<2x256xf32>
    %cst_8 = arith.constant 0.000000e+00 : f32
    %11 = vector.broadcast %cst_8 : f32 to vector<2x256xf32>
    %12 = arith.maximumf %10, %11 : vector<2x256xf32>
    %13 = arith.truncf %12 : vector<2x256xf32> to vector<2x256xbf16>
    %c0_9 = arith.constant 0 : index
    %c0_10 = arith.constant 0 : index
    %c0_11 = arith.constant 0 : index
    %14 = vector.load %arg4[%c0_9, %c0_10, %c0_11] : memref<1x256x256xf32, #tpu.memory_space<vmem>>, vector<1x256x256xf32>
    %15 = vector.shape_cast %14 : vector<1x256x256xf32> to vector<256x256xf32>
    %16 = arith.truncf %15 : vector<256x256xf32> to vector<256x256xbf16>
    %cst_12 = arith.constant dense<0.000000e+00> : vector<2x256xf32>
    %17 = tpu.matmul %13, %16, %cst_12 {dimension_numbers = #tpu.dot_dimension_numbers<[1], [0], [0], [1], [0, 0, 1, 1], [], []>} : vector<2x256xbf16>, vector<256x256xbf16>, vector<2x256xf32> -> vector<2x256xf32>
    %c0_13 = arith.constant 0 : index
    %c0_14 = arith.constant 0 : index
    %c0_15 = arith.constant 0 : index
    %18 = vector.load %arg5[%c0_13, %c0_14, %c0_15] : memref<1x1x256xf32, #tpu.memory_space<vmem>>, vector<1x1x256xf32>
    %19 = vector.shape_cast %18 : vector<1x1x256xf32> to vector<1x256xf32>
    %20 = vector.broadcast %19 : vector<1x256xf32> to vector<2x256xf32>
    %21 = arith.addf %17, %20 : vector<2x256xf32>
    %cst_16 = arith.constant 0.000000e+00 : f32
    %22 = vector.broadcast %cst_16 : f32 to vector<2x256xf32>
    %23 = arith.maximumf %21, %22 : vector<2x256xf32>
    %24 = arith.truncf %23 : vector<2x256xf32> to vector<2x256xbf16>
    %c0_17 = arith.constant 0 : index
    %c0_18 = arith.constant 0 : index
    %c0_19 = arith.constant 0 : index
    %25 = vector.load %arg6[%c0_17, %c0_18, %c0_19] : memref<1x256x4xf32, #tpu.memory_space<vmem>>, vector<1x256x4xf32>
    %26 = vector.shape_cast %25 : vector<1x256x4xf32> to vector<256x4xf32>
    %27 = arith.truncf %26 : vector<256x4xf32> to vector<256x4xbf16>
    %cst_20 = arith.constant dense<0.000000e+00> : vector<2x4xf32>
    %28 = tpu.matmul %24, %27, %cst_20 {dimension_numbers = #tpu.dot_dimension_numbers<[1], [0], [0], [1], [0, 0, 1, 1], [], []>} : vector<2x256xbf16>, vector<256x4xbf16>, vector<2x4xf32> -> vector<2x4xf32>
    %c0_21 = arith.constant 0 : index
    %c0_22 = arith.constant 0 : index
    %c0_23 = arith.constant 0 : index
    %29 = vector.load %arg7[%c0_21, %c0_22, %c0_23] : memref<1x1x4xf32, #tpu.memory_space<vmem>>, vector<1x1x4xf32>
    %30 = vector.shape_cast %29 : vector<1x1x4xf32> to vector<1x4xf32>
    %31 = vector.broadcast %30 : vector<1x4xf32> to vector<2x4xf32>
    %32 = arith.addf %28, %31 : vector<2x4xf32>
    %c0_24 = arith.constant 0 : index
    %c0_25 = arith.constant 0 : index
    %c0_26 = arith.constant 0 : index
    %33 = vector.load %arg8[%c0_24, %c0_25, %c0_26] : memref<1x2x4xf32, #tpu.memory_space<vmem>>, vector<1x2x4xf32>
    %34 = vector.shape_cast %33 : vector<1x2x4xf32> to vector<2x4xf32>
    %35 = vector.shape_cast %32 : vector<2x4xf32> to vector<1x2x4xf32>
    tpu.vector_store %arg8[%c0_24, %c0_25, %c0_26], %35 {strides = array<i32>} : memref<1x2x4xf32, #tpu.memory_space<vmem>>, vector<1x2x4xf32>,
    return
  }
  func.func @transform_0(%arg0: i32) -> (i32, i32, i32) {
    %c0_i32 = arith.constant 0 : i32
    %c0_i32_0 = arith.constant 0 : i32
    %c0_i32_1 = arith.constant 0 : i32
    return %arg0, %c0_i32, %c0_i32_0 : i32, i32, i32
  }
  func.func @transform_1(%arg0: i32) -> (i32, i32, i32) {
    %c0_i32 = arith.constant 0 : i32
    %c0_i32_0 = arith.constant 0 : i32
    %c0_i32_1 = arith.constant 0 : i32
    return %arg0, %c0_i32, %c0_i32_0 : i32, i32, i32
  }
  func.func @transform_2(%arg0: i32) -> (i32, i32, i32) {
    %c0_i32 = arith.constant 0 : i32
    %c0_i32_0 = arith.constant 0 : i32
    %c0_i32_1 = arith.constant 0 : i32
    return %arg0, %c0_i32, %c0_i32_0 : i32, i32, i32
  }
  func.func @transform_3(%arg0: i32) -> (i32, i32, i32) {
    %c0_i32 = arith.constant 0 : i32
    %c0_i32_0 = arith.constant 0 : i32
    %c0_i32_1 = arith.constant 0 : i32
    return %arg0, %c0_i32, %c0_i32_0 : i32, i32, i32
  }
  func.func @transform_4(%arg0: i32) -> (i32, i32, i32) {
    %c0_i32 = arith.constant 0 : i32
    %c0_i32_0 = arith.constant 0 : i32
    %c0_i32_1 = arith.constant 0 : i32
    return %arg0, %c0_i32, %c0_i32_0 : i32, i32, i32
  }
  func.func @transform_5(%arg0: i32) -> (i32, i32, i32) {
    %c0_i32 = arith.constant 0 : i32
    %c0_i32_0 = arith.constant 0 : i32
    %c0_i32_1 = arith.constant 0 : i32
    return %arg0, %c0_i32, %c0_i32_0 : i32, i32, i32
  }
  func.func @transform_6(%arg0: i32) -> (i32, i32, i32) {
    %c0_i32 = arith.constant 0 : i32
    %c0_i32_0 = arith.constant 0 : i32
    %c0_i32_1 = arith.constant 0 : i32
    return %arg0, %c0_i32, %c0_i32_0 : i32, i32, i32
  }
  func.func @transform_7(%arg0: i32) -> (i32, i32, i32) {
    %c0_i32 = arith.constant 0 : i32
    %c0_i32_0 = arith.constant 0 : i32
    %c0_i32_1 = arith.constant 0 : i32
    return %arg0, %c0_i32, %c0_i32_0 : i32, i32, i32
  }
}

module attributes {stable_mosaic.version = 11 : i64} {
  func.func @_attn_i2t_kernel(%arg0: i32, %arg1: i32, %arg2: memref<1x64x32xf32, #tpu.memory_space<vmem>>, %arg3: memref<1x64x32xf32, #tpu.memory_space<vmem>>, %arg4: memref<1x7x32xf32, #tpu.memory_space<vmem>>, %arg5: memref<32x32xbf16, #tpu.memory_space<vmem>>, %arg6: memref<32x32xbf16, #tpu.memory_space<vmem>>, %arg7: memref<32x32xbf16, #tpu.memory_space<vmem>>, %arg8: memref<1x32xf32, #tpu.memory_space<vmem>>, %arg9: memref<1x32xf32, #tpu.memory_space<vmem>>, %arg10: memref<1x32xf32, #tpu.memory_space<vmem>>, %arg11: memref<1x64x32xbf16, #tpu.memory_space<vmem>>) attributes {dimension_semantics = [#tpu.dimension_semantics<parallel>, #tpu.dimension_semantics<parallel>], iteration_bounds = array<i64: 2, 1>, scalar_prefetch = 0 : i64, scratch_operands = 0 : i64, tpu.core_type = #tpu.core_type<tc>, window_params = [{transform_indices = @transform_0, window_bounds = array<i64: 1, 64, 32>}, {transform_indices = @transform_1, window_bounds = array<i64: 1, 64, 32>}, {transform_indices = @transform_2, window_bounds = array<i64: 1, 7, 32>}, {pipeline_mode = #tpu.pipeline_mode<synchronous>, transform_indices = @transform_3, window_bounds = array<i64: 32, 32>}, {pipeline_mode = #tpu.pipeline_mode<synchronous>, transform_indices = @transform_4, window_bounds = array<i64: 32, 32>}, {pipeline_mode = #tpu.pipeline_mode<synchronous>, transform_indices = @transform_5, window_bounds = array<i64: 32, 32>}, {pipeline_mode = #tpu.pipeline_mode<synchronous>, transform_indices = @transform_6, window_bounds = array<i64: 1, 32>}, {pipeline_mode = #tpu.pipeline_mode<synchronous>, transform_indices = @transform_7, window_bounds = array<i64: 1, 32>}, {pipeline_mode = #tpu.pipeline_mode<synchronous>, transform_indices = @transform_8, window_bounds = array<i64: 1, 32>}, {transform_indices = @transform_9, window_bounds = array<i64: 1, 64, 32>}]} {
    %c0 = arith.constant 0 : index
    %c0_0 = arith.constant 0 : index
    %c0_1 = arith.constant 0 : index
    %0 = vector.load %arg2[%c0, %c0_0, %c0_1] : memref<1x64x32xf32, #tpu.memory_space<vmem>>, vector<1x64x32xf32>
    %1 = vector.shape_cast %0 : vector<1x64x32xf32> to vector<64x32xf32>
    %c0_2 = arith.constant 0 : index
    %c0_3 = arith.constant 0 : index
    %c0_4 = arith.constant 0 : index
    %2 = vector.load %arg3[%c0_2, %c0_3, %c0_4] : memref<1x64x32xf32, #tpu.memory_space<vmem>>, vector<1x64x32xf32>
    %3 = vector.shape_cast %2 : vector<1x64x32xf32> to vector<64x32xf32>
    %4 = arith.addf %1, %3 : vector<64x32xf32>
    %c0_5 = arith.constant 0 : index
    %c0_6 = arith.constant 0 : index
    %c0_7 = arith.constant 0 : index
    %5 = vector.load %arg4[%c0_5, %c0_6, %c0_7] : memref<1x7x32xf32, #tpu.memory_space<vmem>>, vector<1x7x32xf32>
    %6 = vector.shape_cast %5 : vector<1x7x32xf32> to vector<7x32xf32>
    %7 = arith.truncf %4 : vector<64x32xf32> to vector<64x32xbf16>
    %c0_8 = arith.constant 0 : index
    %c0_9 = arith.constant 0 : index
    %8 = vector.load %arg5[%c0_8, %c0_9] : memref<32x32xbf16, #tpu.memory_space<vmem>>, vector<32x32xbf16>
    %cst = arith.constant dense<0.000000e+00> : vector<64x32xf32>
    %9 = tpu.matmul %7, %8, %cst {dimension_numbers = #tpu.dot_dimension_numbers<[1], [0], [0], [1], [0, 0, 1, 1], [], []>} : vector<64x32xbf16>, vector<32x32xbf16>, vector<64x32xf32> -> vector<64x32xf32>
    %c0_10 = arith.constant 0 : index
    %c0_11 = arith.constant 0 : index
    %10 = vector.load %arg8[%c0_10, %c0_11] : memref<1x32xf32, #tpu.memory_space<vmem>>, vector<1x32xf32>
    %11 = vector.broadcast %10 : vector<1x32xf32> to vector<64x32xf32>
    %12 = arith.addf %9, %11 : vector<64x32xf32>
    %13 = arith.truncf %6 : vector<7x32xf32> to vector<7x32xbf16>
    %c0_12 = arith.constant 0 : index
    %c0_13 = arith.constant 0 : index
    %14 = vector.load %arg6[%c0_12, %c0_13] : memref<32x32xbf16, #tpu.memory_space<vmem>>, vector<32x32xbf16>
    %cst_14 = arith.constant dense<0.000000e+00> : vector<7x32xf32>
    %15 = tpu.matmul %13, %14, %cst_14 {dimension_numbers = #tpu.dot_dimension_numbers<[1], [0], [0], [1], [0, 0, 1, 1], [], []>} : vector<7x32xbf16>, vector<32x32xbf16>, vector<7x32xf32> -> vector<7x32xf32>
    %c0_15 = arith.constant 0 : index
    %c0_16 = arith.constant 0 : index
    %16 = vector.load %arg9[%c0_15, %c0_16] : memref<1x32xf32, #tpu.memory_space<vmem>>, vector<1x32xf32>
    %17 = vector.broadcast %16 : vector<1x32xf32> to vector<7x32xf32>
    %18 = arith.addf %15, %17 : vector<7x32xf32>
    %19 = arith.truncf %6 : vector<7x32xf32> to vector<7x32xbf16>
    %c0_17 = arith.constant 0 : index
    %c0_18 = arith.constant 0 : index
    %20 = vector.load %arg7[%c0_17, %c0_18] : memref<32x32xbf16, #tpu.memory_space<vmem>>, vector<32x32xbf16>
    %cst_19 = arith.constant dense<0.000000e+00> : vector<7x32xf32>
    %21 = tpu.matmul %19, %20, %cst_19 {dimension_numbers = #tpu.dot_dimension_numbers<[1], [0], [0], [1], [0, 0, 1, 1], [], []>} : vector<7x32xbf16>, vector<32x32xbf16>, vector<7x32xf32> -> vector<7x32xf32>
    %c0_20 = arith.constant 0 : index
    %c0_21 = arith.constant 0 : index
    %22 = vector.load %arg10[%c0_20, %c0_21] : memref<1x32xf32, #tpu.memory_space<vmem>>, vector<1x32xf32>
    %23 = vector.broadcast %22 : vector<1x32xf32> to vector<7x32xf32>
    %24 = arith.addf %21, %23 : vector<7x32xf32>
    %25 = arith.truncf %12 : vector<64x32xf32> to vector<64x32xbf16>
    %26 = arith.truncf %18 : vector<7x32xf32> to vector<7x32xbf16>
    %cst_22 = arith.constant dense<0.000000e+00> : vector<64x7xf32>
    %27 = tpu.matmul %25, %26, %cst_22 {dimension_numbers = #tpu.dot_dimension_numbers<[1], [1], [0], [0], [0, 0, 1, 0], [], []>} : vector<64x32xbf16>, vector<7x32xbf16>, vector<64x7xf32> -> vector<64x7xf32>
    %cst_23 = arith.constant 0.176776692 : f32
    %28 = vector.broadcast %cst_23 : f32 to vector<64x7xf32>
    %29 = arith.mulf %27, %28 : vector<64x7xf32>
    %cst_24 = arith.constant dense<0xFF800000> : vector<64xf32>
    %30 = vector.multi_reduction <maximumf>, %29, %cst_24 [1] : vector<64x7xf32> to vector<64xf32>
    %cst_25 = arith.constant 0xFF800000 : f32
    %31 = vector.broadcast %cst_25 : f32 to vector<64xf32>
    %32 = arith.maximumf %31, %30 : vector<64xf32>
    %33 = vector.shape_cast %32 : vector<64xf32> to vector<64x1xf32>
    %34 = vector.broadcast %33 : vector<64x1xf32> to vector<64x7xf32>
    %35 = arith.subf %29, %34 : vector<64x7xf32>
    %36 = math.exp %35 : vector<64x7xf32>
    %cst_26 = arith.constant dense<0.000000e+00> : vector<64xf32>
    %37 = vector.multi_reduction <add>, %36, %cst_26 [1] : vector<64x7xf32> to vector<64xf32>
    %38 = vector.shape_cast %37 : vector<64xf32> to vector<64x1xf32>
    %39 = vector.broadcast %38 : vector<64x1xf32> to vector<64x7xf32>
    %40 = arith.divf %36, %39 : vector<64x7xf32>
    %41 = arith.truncf %40 : vector<64x7xf32> to vector<64x7xbf16>
    %42 = arith.truncf %24 : vector<7x32xf32> to vector<7x32xbf16>
    %cst_27 = arith.constant dense<0.000000e+00> : vector<64x32xf32>
    %43 = tpu.matmul %41, %42, %cst_27 {dimension_numbers = #tpu.dot_dimension_numbers<[1], [0], [0], [1], [0, 0, 1, 1], [], []>} : vector<64x7xbf16>, vector<7x32xbf16>, vector<64x32xf32> -> vector<64x32xf32>
    %44 = arith.addf %1, %43 : vector<64x32xf32>
    %45 = arith.truncf %44 : vector<64x32xf32> to vector<64x32xbf16>
    %c0_28 = arith.constant 0 : index
    %c0_29 = arith.constant 0 : index
    %c0_30 = arith.constant 0 : index
    %46 = vector.load %arg11[%c0_28, %c0_29, %c0_30] : memref<1x64x32xbf16, #tpu.memory_space<vmem>>, vector<1x64x32xbf16>
    %47 = vector.shape_cast %46 : vector<1x64x32xbf16> to vector<64x32xbf16>
    %48 = vector.shape_cast %45 : vector<64x32xbf16> to vector<1x64x32xbf16>
    tpu.vector_store %arg11[%c0_28, %c0_29, %c0_30], %48 {strides = array<i32>} : memref<1x64x32xbf16, #tpu.memory_space<vmem>>, vector<1x64x32xbf16>,
    return
  }
  func.func @transform_0(%arg0: i32, %arg1: i32) -> (i32, i32, i32) {
    %c0_i32 = arith.constant 0 : i32
    %c0_i32_0 = arith.constant 0 : i32
    return %arg0, %arg1, %c0_i32 : i32, i32, i32
  }
  func.func @transform_1(%arg0: i32, %arg1: i32) -> (i32, i32, i32) {
    %c0_i32 = arith.constant 0 : i32
    %c0_i32_0 = arith.constant 0 : i32
    %c0_i32_1 = arith.constant 0 : i32
    return %c0_i32, %arg1, %c0_i32_0 : i32, i32, i32
  }
  func.func @transform_2(%arg0: i32, %arg1: i32) -> (i32, i32, i32) {
    %c0_i32 = arith.constant 0 : i32
    %c0_i32_0 = arith.constant 0 : i32
    %c0_i32_1 = arith.constant 0 : i32
    return %arg0, %c0_i32, %c0_i32_0 : i32, i32, i32
  }
  func.func @transform_3(%arg0: i32, %arg1: i32) -> (i32, i32) {
    %c0_i32 = arith.constant 0 : i32
    %c0_i32_0 = arith.constant 0 : i32
    %c0_i32_1 = arith.constant 0 : i32
    return %c0_i32, %c0_i32_0 : i32, i32
  }
  func.func @transform_4(%arg0: i32, %arg1: i32) -> (i32, i32) {
    %c0_i32 = arith.constant 0 : i32
    %c0_i32_0 = arith.constant 0 : i32
    %c0_i32_1 = arith.constant 0 : i32
    return %c0_i32, %c0_i32_0 : i32, i32
  }
  func.func @transform_5(%arg0: i32, %arg1: i32) -> (i32, i32) {
    %c0_i32 = arith.constant 0 : i32
    %c0_i32_0 = arith.constant 0 : i32
    %c0_i32_1 = arith.constant 0 : i32
    return %c0_i32, %c0_i32_0 : i32, i32
  }
  func.func @transform_6(%arg0: i32, %arg1: i32) -> (i32, i32) {
    %c0_i32 = arith.constant 0 : i32
    %c0_i32_0 = arith.constant 0 : i32
    %c0_i32_1 = arith.constant 0 : i32
    return %c0_i32, %c0_i32_0 : i32, i32
  }
  func.func @transform_7(%arg0: i32, %arg1: i32) -> (i32, i32) {
    %c0_i32 = arith.constant 0 : i32
    %c0_i32_0 = arith.constant 0 : i32
    %c0_i32_1 = arith.constant 0 : i32
    return %c0_i32, %c0_i32_0 : i32, i32
  }
  func.func @transform_8(%arg0: i32, %arg1: i32) -> (i32, i32) {
    %c0_i32 = arith.constant 0 : i32
    %c0_i32_0 = arith.constant 0 : i32
    %c0_i32_1 = arith.constant 0 : i32
    return %c0_i32, %c0_i32_0 : i32, i32
  }
  func.func @transform_9(%arg0: i32, %arg1: i32) -> (i32, i32, i32) {
    %c0_i32 = arith.constant 0 : i32
    %c0_i32_0 = arith.constant 0 : i32
    return %arg0, %arg1, %c0_i32 : i32, i32, i32
  }
}

module attributes {stable_mosaic.version = 11 : i64} {
  func.func @_ct_ln_gelu_kernel(%arg0: i32, %arg1: memref<128x32xbf16, #tpu.memory_space<vmem>>, %arg2: memref<32x32xbf16, #tpu.memory_space<vmem>>, %arg3: memref<1x32xf32, #tpu.memory_space<vmem>>, %arg4: memref<1x8xf32, #tpu.memory_space<vmem>>, %arg5: memref<1x8xf32, #tpu.memory_space<vmem>>, %arg6: memref<128x32xbf16, #tpu.memory_space<vmem>>) attributes {dimension_semantics = [#tpu.dimension_semantics<parallel>], iteration_bounds = array<i64: 1>, scalar_prefetch = 0 : i64, scratch_operands = 0 : i64, tpu.core_type = #tpu.core_type<tc>, window_params = [{transform_indices = @transform_0, window_bounds = array<i64: 128, 32>}, {pipeline_mode = #tpu.pipeline_mode<synchronous>, transform_indices = @transform_1, window_bounds = array<i64: 32, 32>}, {pipeline_mode = #tpu.pipeline_mode<synchronous>, transform_indices = @transform_2, window_bounds = array<i64: 1, 32>}, {pipeline_mode = #tpu.pipeline_mode<synchronous>, transform_indices = @transform_3, window_bounds = array<i64: 1, 8>}, {pipeline_mode = #tpu.pipeline_mode<synchronous>, transform_indices = @transform_4, window_bounds = array<i64: 1, 8>}, {transform_indices = @transform_5, window_bounds = array<i64: 128, 32>}]} {
    %c0 = arith.constant 0 : index
    %c0_0 = arith.constant 0 : index
    %0 = vector.load %arg1[%c0, %c0_0] : memref<128x32xbf16, #tpu.memory_space<vmem>>, vector<128x32xbf16>
    %c0_1 = arith.constant 0 : index
    %c0_2 = arith.constant 0 : index
    %1 = vector.load %arg2[%c0_1, %c0_2] : memref<32x32xbf16, #tpu.memory_space<vmem>>, vector<32x32xbf16>
    %cst = arith.constant dense<0.000000e+00> : vector<128x32xf32>
    %2 = tpu.matmul %0, %1, %cst {dimension_numbers = #tpu.dot_dimension_numbers<[1], [0], [0], [1], [0, 0, 1, 1], [], []>} : vector<128x32xbf16>, vector<32x32xbf16>, vector<128x32xf32> -> vector<128x32xf32>
    %c0_3 = arith.constant 0 : index
    %c0_4 = arith.constant 0 : index
    %3 = vector.load %arg3[%c0_3, %c0_4] : memref<1x32xf32, #tpu.memory_space<vmem>>, vector<1x32xf32>
    %4 = vector.broadcast %3 : vector<1x32xf32> to vector<128x32xf32>
    %5 = arith.addf %2, %4 : vector<128x32xf32>
    %c0_5 = arith.constant 0 : index
    %c0_6 = arith.constant 0 : index
    %6 = vector.load %arg4[%c0_5, %c0_6] : memref<1x8xf32, #tpu.memory_space<vmem>>, vector<1x8xf32>
    %c0_7 = arith.constant 0 : index
    %c0_8 = arith.constant 0 : index
    %7 = vector.load %arg5[%c0_7, %c0_8] : memref<1x8xf32, #tpu.memory_space<vmem>>, vector<1x8xf32>
    %8 = vector.extract_strided_slice %5 {offsets = [0, 0], sizes = [128, 8], strides = [1, 1]} : vector<128x32xf32> to vector<128x8xf32>
    %cst_9 = arith.constant dense<0.000000e+00> : vector<128xf32>
    %9 = vector.multi_reduction <add>, %8, %cst_9 [1] : vector<128x8xf32> to vector<128xf32>
    %10 = vector.shape_cast %9 : vector<128xf32> to vector<128x1xf32>
    %cst_10 = arith.constant 8.000000e+00 : f32
    %11 = vector.broadcast %cst_10 : f32 to vector<128x1xf32>
    %12 = arith.divf %10, %11 : vector<128x1xf32>
    %13 = vector.broadcast %12 : vector<128x1xf32> to vector<128x8xf32>
    %14 = arith.subf %8, %13 : vector<128x8xf32>
    %15 = vector.broadcast %12 : vector<128x1xf32> to vector<128x8xf32>
    %16 = arith.subf %8, %15 : vector<128x8xf32>
    %17 = arith.mulf %14, %16 : vector<128x8xf32>
    %cst_11 = arith.constant dense<0.000000e+00> : vector<128xf32>
    %18 = vector.multi_reduction <add>, %17, %cst_11 [1] : vector<128x8xf32> to vector<128xf32>
    %19 = vector.shape_cast %18 : vector<128xf32> to vector<128x1xf32>
    %cst_12 = arith.constant 8.000000e+00 : f32
    %20 = vector.broadcast %cst_12 : f32 to vector<128x1xf32>
    %21 = arith.divf %19, %20 : vector<128x1xf32>
    %22 = vector.broadcast %12 : vector<128x1xf32> to vector<128x8xf32>
    %23 = arith.subf %8, %22 : vector<128x8xf32>
    %cst_13 = arith.constant 9.99999997E-7 : f32
    %24 = vector.broadcast %cst_13 : f32 to vector<128x1xf32>
    %25 = arith.addf %21, %24 : vector<128x1xf32>
    %26 = math.rsqrt %25 : vector<128x1xf32>
    %27 = vector.broadcast %26 : vector<128x1xf32> to vector<128x8xf32>
    %28 = arith.mulf %23, %27 : vector<128x8xf32>
    %29 = vector.broadcast %6 : vector<1x8xf32> to vector<128x8xf32>
    %30 = arith.mulf %28, %29 : vector<128x8xf32>
    %31 = vector.broadcast %7 : vector<1x8xf32> to vector<128x8xf32>
    %32 = arith.addf %30, %31 : vector<128x8xf32>
    %cst_14 = arith.constant 5.000000e-01 : f32
    %33 = vector.broadcast %cst_14 : f32 to vector<128x8xf32>
    %34 = arith.mulf %33, %32 : vector<128x8xf32>
    %35 = arith.mulf %32, %32 : vector<128x8xf32>
    %36 = arith.mulf %35, %32 : vector<128x8xf32>
    %cst_15 = arith.constant 4.471500e-02 : f32
    %37 = vector.broadcast %cst_15 : f32 to vector<128x8xf32>
    %38 = arith.mulf %37, %36 : vector<128x8xf32>
    %39 = arith.addf %32, %38 : vector<128x8xf32>
    %cst_16 = arith.constant 0.797884583 : f32
    %40 = vector.broadcast %cst_16 : f32 to vector<128x8xf32>
    %41 = arith.mulf %40, %39 : vector<128x8xf32>
    %42 = math.tanh %41 : vector<128x8xf32>
    %cst_17 = arith.constant 1.000000e+00 : f32
    %43 = vector.broadcast %cst_17 : f32 to vector<128x8xf32>
    %44 = arith.addf %43, %42 : vector<128x8xf32>
    %45 = arith.mulf %34, %44 : vector<128x8xf32>
    %46 = vector.extract_strided_slice %5 {offsets = [0, 8], sizes = [128, 8], strides = [1, 1]} : vector<128x32xf32> to vector<128x8xf32>
    %cst_18 = arith.constant dense<0.000000e+00> : vector<128xf32>
    %47 = vector.multi_reduction <add>, %46, %cst_18 [1] : vector<128x8xf32> to vector<128xf32>
    %48 = vector.shape_cast %47 : vector<128xf32> to vector<128x1xf32>
    %cst_19 = arith.constant 8.000000e+00 : f32
    %49 = vector.broadcast %cst_19 : f32 to vector<128x1xf32>
    %50 = arith.divf %48, %49 : vector<128x1xf32>
    %51 = vector.broadcast %50 : vector<128x1xf32> to vector<128x8xf32>
    %52 = arith.subf %46, %51 : vector<128x8xf32>
    %53 = vector.broadcast %50 : vector<128x1xf32> to vector<128x8xf32>
    %54 = arith.subf %46, %53 : vector<128x8xf32>
    %55 = arith.mulf %52, %54 : vector<128x8xf32>
    %cst_20 = arith.constant dense<0.000000e+00> : vector<128xf32>
    %56 = vector.multi_reduction <add>, %55, %cst_20 [1] : vector<128x8xf32> to vector<128xf32>
    %57 = vector.shape_cast %56 : vector<128xf32> to vector<128x1xf32>
    %cst_21 = arith.constant 8.000000e+00 : f32
    %58 = vector.broadcast %cst_21 : f32 to vector<128x1xf32>
    %59 = arith.divf %57, %58 : vector<128x1xf32>
    %60 = vector.broadcast %50 : vector<128x1xf32> to vector<128x8xf32>
    %61 = arith.subf %46, %60 : vector<128x8xf32>
    %cst_22 = arith.constant 9.99999997E-7 : f32
    %62 = vector.broadcast %cst_22 : f32 to vector<128x1xf32>
    %63 = arith.addf %59, %62 : vector<128x1xf32>
    %64 = math.rsqrt %63 : vector<128x1xf32>
    %65 = vector.broadcast %64 : vector<128x1xf32> to vector<128x8xf32>
    %66 = arith.mulf %61, %65 : vector<128x8xf32>
    %67 = vector.broadcast %6 : vector<1x8xf32> to vector<128x8xf32>
    %68 = arith.mulf %66, %67 : vector<128x8xf32>
    %69 = vector.broadcast %7 : vector<1x8xf32> to vector<128x8xf32>
    %70 = arith.addf %68, %69 : vector<128x8xf32>
    %cst_23 = arith.constant 5.000000e-01 : f32
    %71 = vector.broadcast %cst_23 : f32 to vector<128x8xf32>
    %72 = arith.mulf %71, %70 : vector<128x8xf32>
    %73 = arith.mulf %70, %70 : vector<128x8xf32>
    %74 = arith.mulf %73, %70 : vector<128x8xf32>
    %cst_24 = arith.constant 4.471500e-02 : f32
    %75 = vector.broadcast %cst_24 : f32 to vector<128x8xf32>
    %76 = arith.mulf %75, %74 : vector<128x8xf32>
    %77 = arith.addf %70, %76 : vector<128x8xf32>
    %cst_25 = arith.constant 0.797884583 : f32
    %78 = vector.broadcast %cst_25 : f32 to vector<128x8xf32>
    %79 = arith.mulf %78, %77 : vector<128x8xf32>
    %80 = math.tanh %79 : vector<128x8xf32>
    %cst_26 = arith.constant 1.000000e+00 : f32
    %81 = vector.broadcast %cst_26 : f32 to vector<128x8xf32>
    %82 = arith.addf %81, %80 : vector<128x8xf32>
    %83 = arith.mulf %72, %82 : vector<128x8xf32>
    %84 = vector.extract_strided_slice %5 {offsets = [0, 16], sizes = [128, 8], strides = [1, 1]} : vector<128x32xf32> to vector<128x8xf32>
    %cst_27 = arith.constant dense<0.000000e+00> : vector<128xf32>
    %85 = vector.multi_reduction <add>, %84, %cst_27 [1] : vector<128x8xf32> to vector<128xf32>
    %86 = vector.shape_cast %85 : vector<128xf32> to vector<128x1xf32>
    %cst_28 = arith.constant 8.000000e+00 : f32
    %87 = vector.broadcast %cst_28 : f32 to vector<128x1xf32>
    %88 = arith.divf %86, %87 : vector<128x1xf32>
    %89 = vector.broadcast %88 : vector<128x1xf32> to vector<128x8xf32>
    %90 = arith.subf %84, %89 : vector<128x8xf32>
    %91 = vector.broadcast %88 : vector<128x1xf32> to vector<128x8xf32>
    %92 = arith.subf %84, %91 : vector<128x8xf32>
    %93 = arith.mulf %90, %92 : vector<128x8xf32>
    %cst_29 = arith.constant dense<0.000000e+00> : vector<128xf32>
    %94 = vector.multi_reduction <add>, %93, %cst_29 [1] : vector<128x8xf32> to vector<128xf32>
    %95 = vector.shape_cast %94 : vector<128xf32> to vector<128x1xf32>
    %cst_30 = arith.constant 8.000000e+00 : f32
    %96 = vector.broadcast %cst_30 : f32 to vector<128x1xf32>
    %97 = arith.divf %95, %96 : vector<128x1xf32>
    %98 = vector.broadcast %88 : vector<128x1xf32> to vector<128x8xf32>
    %99 = arith.subf %84, %98 : vector<128x8xf32>
    %cst_31 = arith.constant 9.99999997E-7 : f32
    %100 = vector.broadcast %cst_31 : f32 to vector<128x1xf32>
    %101 = arith.addf %97, %100 : vector<128x1xf32>
    %102 = math.rsqrt %101 : vector<128x1xf32>
    %103 = vector.broadcast %102 : vector<128x1xf32> to vector<128x8xf32>
    %104 = arith.mulf %99, %103 : vector<128x8xf32>
    %105 = vector.broadcast %6 : vector<1x8xf32> to vector<128x8xf32>
    %106 = arith.mulf %104, %105 : vector<128x8xf32>
    %107 = vector.broadcast %7 : vector<1x8xf32> to vector<128x8xf32>
    %108 = arith.addf %106, %107 : vector<128x8xf32>
    %cst_32 = arith.constant 5.000000e-01 : f32
    %109 = vector.broadcast %cst_32 : f32 to vector<128x8xf32>
    %110 = arith.mulf %109, %108 : vector<128x8xf32>
    %111 = arith.mulf %108, %108 : vector<128x8xf32>
    %112 = arith.mulf %111, %108 : vector<128x8xf32>
    %cst_33 = arith.constant 4.471500e-02 : f32
    %113 = vector.broadcast %cst_33 : f32 to vector<128x8xf32>
    %114 = arith.mulf %113, %112 : vector<128x8xf32>
    %115 = arith.addf %108, %114 : vector<128x8xf32>
    %cst_34 = arith.constant 0.797884583 : f32
    %116 = vector.broadcast %cst_34 : f32 to vector<128x8xf32>
    %117 = arith.mulf %116, %115 : vector<128x8xf32>
    %118 = math.tanh %117 : vector<128x8xf32>
    %cst_35 = arith.constant 1.000000e+00 : f32
    %119 = vector.broadcast %cst_35 : f32 to vector<128x8xf32>
    %120 = arith.addf %119, %118 : vector<128x8xf32>
    %121 = arith.mulf %110, %120 : vector<128x8xf32>
    %122 = vector.extract_strided_slice %5 {offsets = [0, 24], sizes = [128, 8], strides = [1, 1]} : vector<128x32xf32> to vector<128x8xf32>
    %cst_36 = arith.constant dense<0.000000e+00> : vector<128xf32>
    %123 = vector.multi_reduction <add>, %122, %cst_36 [1] : vector<128x8xf32> to vector<128xf32>
    %124 = vector.shape_cast %123 : vector<128xf32> to vector<128x1xf32>
    %cst_37 = arith.constant 8.000000e+00 : f32
    %125 = vector.broadcast %cst_37 : f32 to vector<128x1xf32>
    %126 = arith.divf %124, %125 : vector<128x1xf32>
    %127 = vector.broadcast %126 : vector<128x1xf32> to vector<128x8xf32>
    %128 = arith.subf %122, %127 : vector<128x8xf32>
    %129 = vector.broadcast %126 : vector<128x1xf32> to vector<128x8xf32>
    %130 = arith.subf %122, %129 : vector<128x8xf32>
    %131 = arith.mulf %128, %130 : vector<128x8xf32>
    %cst_38 = arith.constant dense<0.000000e+00> : vector<128xf32>
    %132 = vector.multi_reduction <add>, %131, %cst_38 [1] : vector<128x8xf32> to vector<128xf32>
    %133 = vector.shape_cast %132 : vector<128xf32> to vector<128x1xf32>
    %cst_39 = arith.constant 8.000000e+00 : f32
    %134 = vector.broadcast %cst_39 : f32 to vector<128x1xf32>
    %135 = arith.divf %133, %134 : vector<128x1xf32>
    %136 = vector.broadcast %126 : vector<128x1xf32> to vector<128x8xf32>
    %137 = arith.subf %122, %136 : vector<128x8xf32>
    %cst_40 = arith.constant 9.99999997E-7 : f32
    %138 = vector.broadcast %cst_40 : f32 to vector<128x1xf32>
    %139 = arith.addf %135, %138 : vector<128x1xf32>
    %140 = math.rsqrt %139 : vector<128x1xf32>
    %141 = vector.broadcast %140 : vector<128x1xf32> to vector<128x8xf32>
    %142 = arith.mulf %137, %141 : vector<128x8xf32>
    %143 = vector.broadcast %6 : vector<1x8xf32> to vector<128x8xf32>
    %144 = arith.mulf %142, %143 : vector<128x8xf32>
    %145 = vector.broadcast %7 : vector<1x8xf32> to vector<128x8xf32>
    %146 = arith.addf %144, %145 : vector<128x8xf32>
    %cst_41 = arith.constant 5.000000e-01 : f32
    %147 = vector.broadcast %cst_41 : f32 to vector<128x8xf32>
    %148 = arith.mulf %147, %146 : vector<128x8xf32>
    %149 = arith.mulf %146, %146 : vector<128x8xf32>
    %150 = arith.mulf %149, %146 : vector<128x8xf32>
    %cst_42 = arith.constant 4.471500e-02 : f32
    %151 = vector.broadcast %cst_42 : f32 to vector<128x8xf32>
    %152 = arith.mulf %151, %150 : vector<128x8xf32>
    %153 = arith.addf %146, %152 : vector<128x8xf32>
    %cst_43 = arith.constant 0.797884583 : f32
    %154 = vector.broadcast %cst_43 : f32 to vector<128x8xf32>
    %155 = arith.mulf %154, %153 : vector<128x8xf32>
    %156 = math.tanh %155 : vector<128x8xf32>
    %cst_44 = arith.constant 1.000000e+00 : f32
    %157 = vector.broadcast %cst_44 : f32 to vector<128x8xf32>
    %158 = arith.addf %157, %156 : vector<128x8xf32>
    %159 = arith.mulf %148, %158 : vector<128x8xf32>
    %160 = tpu.concatenate %45, %83, %121, %159 in 1 : vector<128x8xf32>, vector<128x8xf32>, vector<128x8xf32>, vector<128x8xf32> -> vector<128x32xf32>
    %161 = arith.truncf %160 : vector<128x32xf32> to vector<128x32xbf16>
    %c0_45 = arith.constant 0 : index
    %c0_46 = arith.constant 0 : index
    %162 = vector.load %arg6[%c0_45, %c0_46] : memref<128x32xbf16, #tpu.memory_space<vmem>>, vector<128x32xbf16>
    tpu.vector_store %arg6[%c0_45, %c0_46], %161 {strides = array<i32>} : memref<128x32xbf16, #tpu.memory_space<vmem>>, vector<128x32xbf16>,
    return
  }
  func.func @transform_0(%arg0: i32) -> (i32, i32) {
    %c0_i32 = arith.constant 0 : i32
    %c0_i32_0 = arith.constant 0 : i32
    return %arg0, %c0_i32 : i32, i32
  }
  func.func @transform_1(%arg0: i32) -> (i32, i32) {
    %c0_i32 = arith.constant 0 : i32
    %c0_i32_0 = arith.constant 0 : i32
    %c0_i32_1 = arith.constant 0 : i32
    return %c0_i32, %c0_i32_0 : i32, i32
  }
  func.func @transform_2(%arg0: i32) -> (i32, i32) {
    %c0_i32 = arith.constant 0 : i32
    %c0_i32_0 = arith.constant 0 : i32
    %c0_i32_1 = arith.constant 0 : i32
    return %c0_i32, %c0_i32_0 : i32, i32
  }
  func.func @transform_3(%arg0: i32) -> (i32, i32) {
    %c0_i32 = arith.constant 0 : i32
    %c0_i32_0 = arith.constant 0 : i32
    %c0_i32_1 = arith.constant 0 : i32
    return %c0_i32, %c0_i32_0 : i32, i32
  }
  func.func @transform_4(%arg0: i32) -> (i32, i32) {
    %c0_i32 = arith.constant 0 : i32
    %c0_i32_0 = arith.constant 0 : i32
    %c0_i32_1 = arith.constant 0 : i32
    return %c0_i32, %c0_i32_0 : i32, i32
  }
  func.func @transform_5(%arg0: i32) -> (i32, i32) {
    %c0_i32 = arith.constant 0 : i32
    %c0_i32_0 = arith.constant 0 : i32
    return %arg0, %c0_i32 : i32, i32
  }
}

module attributes {stable_mosaic.version = 11 : i64} {
  func.func @_mask_bmm_kernel(%arg0: i32, %arg1: i32, %arg2: memref<1x4x4xf32, #tpu.memory_space<vmem>>, %arg3: memref<1x1024x4xbf16, #tpu.memory_space<vmem>>, %arg4: memref<1x4x1024xf32, #tpu.memory_space<vmem>>) attributes {dimension_semantics = [#tpu.dimension_semantics<parallel>, #tpu.dimension_semantics<parallel>], iteration_bounds = array<i64: 2, 1>, scalar_prefetch = 0 : i64, scratch_operands = 0 : i64, tpu.core_type = #tpu.core_type<tc>, window_params = [{transform_indices = @transform_0, window_bounds = array<i64: 1, 4, 4>}, {transform_indices = @transform_1, window_bounds = array<i64: 1, 1024, 4>}, {transform_indices = @transform_2, window_bounds = array<i64: 1, 4, 1024>}]} {
    %c0 = arith.constant 0 : index
    %c0_0 = arith.constant 0 : index
    %c0_1 = arith.constant 0 : index
    %0 = vector.load %arg2[%c0, %c0_0, %c0_1] : memref<1x4x4xf32, #tpu.memory_space<vmem>>, vector<1x4x4xf32>
    %1 = vector.shape_cast %0 : vector<1x4x4xf32> to vector<4x4xf32>
    %2 = arith.truncf %1 : vector<4x4xf32> to vector<4x4xbf16>
    %c0_2 = arith.constant 0 : index
    %c0_3 = arith.constant 0 : index
    %c0_4 = arith.constant 0 : index
    %3 = vector.load %arg3[%c0_2, %c0_3, %c0_4] : memref<1x1024x4xbf16, #tpu.memory_space<vmem>>, vector<1x1024x4xbf16>
    %4 = vector.shape_cast %3 : vector<1x1024x4xbf16> to vector<1024x4xbf16>
    %cst = arith.constant dense<0.000000e+00> : vector<4x1024xf32>
    %5 = tpu.matmul %2, %4, %cst {dimension_numbers = #tpu.dot_dimension_numbers<[1], [1], [0], [0], [0, 0, 1, 0], [], []>} : vector<4x4xbf16>, vector<1024x4xbf16>, vector<4x1024xf32> -> vector<4x1024xf32>
    %c0_5 = arith.constant 0 : index
    %c0_6 = arith.constant 0 : index
    %c0_7 = arith.constant 0 : index
    %6 = vector.load %arg4[%c0_5, %c0_6, %c0_7] : memref<1x4x1024xf32, #tpu.memory_space<vmem>>, vector<1x4x1024xf32>
    %7 = vector.shape_cast %6 : vector<1x4x1024xf32> to vector<4x1024xf32>
    %8 = vector.shape_cast %5 : vector<4x1024xf32> to vector<1x4x1024xf32>
    tpu.vector_store %arg4[%c0_5, %c0_6, %c0_7], %8 {strides = array<i32>} : memref<1x4x1024xf32, #tpu.memory_space<vmem>>, vector<1x4x1024xf32>,
    return
  }
  func.func @transform_0(%arg0: i32, %arg1: i32) -> (i32, i32, i32) {
    %c0_i32 = arith.constant 0 : i32
    %c0_i32_0 = arith.constant 0 : i32
    %c0_i32_1 = arith.constant 0 : i32
    return %arg0, %c0_i32, %c0_i32_0 : i32, i32, i32
  }
  func.func @transform_1(%arg0: i32, %arg1: i32) -> (i32, i32, i32) {
    %c0_i32 = arith.constant 0 : i32
    %c0_i32_0 = arith.constant 0 : i32
    return %arg0, %arg1, %c0_i32 : i32, i32, i32
  }
  func.func @transform_2(%arg0: i32, %arg1: i32) -> (i32, i32, i32) {
    %c0_i32 = arith.constant 0 : i32
    %c0_i32_0 = arith.constant 0 : i32
    return %arg0, %c0_i32, %arg1 : i32, i32, i32
  }
}

module attributes {stable_mosaic.version = 11 : i64} {
  func.func @_linear_kernel(%arg0: i32, %arg1: memref<512x8xbf16, #tpu.memory_space<vmem>>, %arg2: memref<8x16xbf16, #tpu.memory_space<vmem>>, %arg3: memref<1x16xf32, #tpu.memory_space<vmem>>, %arg4: memref<512x16xbf16, #tpu.memory_space<vmem>>) attributes {dimension_semantics = [#tpu.dimension_semantics<parallel>], iteration_bounds = array<i64: 1>, scalar_prefetch = 0 : i64, scratch_operands = 0 : i64, tpu.core_type = #tpu.core_type<tc>, window_params = [{transform_indices = @transform_0, window_bounds = array<i64: 512, 8>}, {pipeline_mode = #tpu.pipeline_mode<synchronous>, transform_indices = @transform_1, window_bounds = array<i64: 8, 16>}, {pipeline_mode = #tpu.pipeline_mode<synchronous>, transform_indices = @transform_2, window_bounds = array<i64: 1, 16>}, {transform_indices = @transform_3, window_bounds = array<i64: 512, 16>}]} {
    %c0 = arith.constant 0 : index
    %c0_0 = arith.constant 0 : index
    %0 = vector.load %arg1[%c0, %c0_0] : memref<512x8xbf16, #tpu.memory_space<vmem>>, vector<512x8xbf16>
    %c0_1 = arith.constant 0 : index
    %c0_2 = arith.constant 0 : index
    %1 = vector.load %arg2[%c0_1, %c0_2] : memref<8x16xbf16, #tpu.memory_space<vmem>>, vector<8x16xbf16>
    %cst = arith.constant dense<0.000000e+00> : vector<512x16xf32>
    %2 = tpu.matmul %0, %1, %cst {dimension_numbers = #tpu.dot_dimension_numbers<[1], [0], [0], [1], [0, 0, 1, 1], [], []>} : vector<512x8xbf16>, vector<8x16xbf16>, vector<512x16xf32> -> vector<512x16xf32>
    %c0_3 = arith.constant 0 : index
    %c0_4 = arith.constant 0 : index
    %3 = vector.load %arg3[%c0_3, %c0_4] : memref<1x16xf32, #tpu.memory_space<vmem>>, vector<1x16xf32>
    %4 = vector.broadcast %3 : vector<1x16xf32> to vector<512x16xf32>
    %5 = arith.addf %2, %4 : vector<512x16xf32>
    %cst_5 = arith.constant 5.000000e-01 : f32
    %6 = vector.broadcast %cst_5 : f32 to vector<512x16xf32>
    %7 = arith.mulf %6, %5 : vector<512x16xf32>
    %8 = arith.mulf %5, %5 : vector<512x16xf32>
    %9 = arith.mulf %8, %5 : vector<512x16xf32>
    %cst_6 = arith.constant 4.471500e-02 : f32
    %10 = vector.broadcast %cst_6 : f32 to vector<512x16xf32>
    %11 = arith.mulf %10, %9 : vector<512x16xf32>
    %12 = arith.addf %5, %11 : vector<512x16xf32>
    %cst_7 = arith.constant 0.797884583 : f32
    %13 = vector.broadcast %cst_7 : f32 to vector<512x16xf32>
    %14 = arith.mulf %13, %12 : vector<512x16xf32>
    %15 = math.tanh %14 : vector<512x16xf32>
    %cst_8 = arith.constant 1.000000e+00 : f32
    %16 = vector.broadcast %cst_8 : f32 to vector<512x16xf32>
    %17 = arith.addf %16, %15 : vector<512x16xf32>
    %18 = arith.mulf %7, %17 : vector<512x16xf32>
    %19 = arith.truncf %18 : vector<512x16xf32> to vector<512x16xbf16>
    %c0_9 = arith.constant 0 : index
    %c0_10 = arith.constant 0 : index
    %20 = vector.load %arg4[%c0_9, %c0_10] : memref<512x16xbf16, #tpu.memory_space<vmem>>, vector<512x16xbf16>
    tpu.vector_store %arg4[%c0_9, %c0_10], %19 {strides = array<i32>} : memref<512x16xbf16, #tpu.memory_space<vmem>>, vector<512x16xbf16>,
    return
  }
  func.func @transform_0(%arg0: i32) -> (i32, i32) {
    %c0_i32 = arith.constant 0 : i32
    %c0_i32_0 = arith.constant 0 : i32
    return %arg0, %c0_i32 : i32, i32
  }
  func.func @transform_1(%arg0: i32) -> (i32, i32) {
    %c0_i32 = arith.constant 0 : i32
    %c0_i32_0 = arith.constant 0 : i32
    %c0_i32_1 = arith.constant 0 : i32
    return %c0_i32, %c0_i32_0 : i32, i32
  }
  func.func @transform_2(%arg0: i32) -> (i32, i32) {
    %c0_i32 = arith.constant 0 : i32
    %c0_i32_0 = arith.constant 0 : i32
    %c0_i32_1 = arith.constant 0 : i32
    return %c0_i32, %c0_i32_0 : i32, i32
  }
  func.func @transform_3(%arg0: i32) -> (i32, i32) {
    %c0_i32 = arith.constant 0 : i32
    %c0_i32_0 = arith.constant 0 : i32
    return %arg0, %c0_i32 : i32, i32
  }
}

</mosaic_0001>

<bundles_post_ra>
// kernel: mask_decoder_token_forward.7
= control target key start
LH: loop header
LB: loop body
LE: loop exit
PB: predicated region body
PF: predicated region fallthrough
CT: control target
= control target key end

     0   :  { %s238_s0 = inlined_call_operand.hbm [shape: f32[32,32], index: 0, kind: input, shape index: {}]   ;;  %s239_s1 = inlined_call_operand.vmem [shape: f32[1,32], index: 1, kind: input, shape index: {}]   ;;  %s240_s2 = inlined_call_operand.<no memory space> [shape: f32[1,1], index: 2, kind: input, shape index: {}]   ;;  %s241_s3 = inlined_call_operand.vmem [shape: f32[1,32], index: 3, kind: output, shape index: {}]  }
   0x1   :  { %v8_v0 = vstv %s240_s2 }
   0x2   :  { %9 = vst [vmem:[#allocation2] sm:$0x1] %v8_v0 }
   0x3   :  { %10 = vsyncpa [#allocation4], 0  ;;  %s200_s14 = smov [#allocation3]  }
   0x4   :  { %s16_s15 = sshll.u32 %s200_s14, 4  ;;  %s17_s15 = int_to_ptr.vmem [resolvable:$true] %s16_s15 }
   0x5   :  { %s186_s16 = scalar_lea.vmem %s17_s15, 512  ;;  %p191_p1 = scmp.lt.s32.totalorder %s17_s15, %s17_s15 }
   0x6   :  { %p187_p0 = scmp.ne.s32.totalorder %s17_s15, %s186_s16  ;;  %p192_p2 = scmp.lt.s32.totalorder %s186_s16, %s186_s16 }
   0x8   :  { %p193_p3 = por %p192_p2, %p191_p1 }
   0xa   :  { %p194_p4 = pnand %p193_p3, %p187_p0 }
   0xc   :  { %197 = shalt.err (!%p194_p4)
}
   0xd   :  { %s201_s17 = smov 128   ;;  %s202_s18 = smov 8  }
   0xe   :  { %22 = dma.hbm_to_vmem [thread:$0]  %s238_s0, 512, %s17_s15, [#allocation4], %s201_s17, %s201_s17, %s202_s18  }
   0xf   :  { %198 = dma.done.wait [#allocation4], 512  }
  0x10   :  { %199 = vsyncadd [#allocation4], 4294966784  ;;  %v203_v1 = vmov 0.0   ;;  %vm204_vm0 = vmmov 0   ;;  %v205_v2 = vmov 0   ;;  %vm45_vm1 = vcmask 261120  }
  0x11   :  { %156 = vmatprep.subr.mxu0 %v203_v1  ;;  %164 = vmatprep.mubr.msk.f32.mxu0 %vm204_vm0, %v203_v1  ;;  %v34_v3 = vld [vmem:[#allocation3 + $0x18] sm:$0xff]  ;;  %v33_v5 = vld [vmem:[#allocation3 + $0x10] sm:$0xff]  ;;  %v32_v6 = vld [vmem:[#allocation3 + $0x8] sm:$0xff]  ;;  %v41_v9 = vlaneseq  ;;  %vm138_vm2 = vcmask 253952  }
  0x12   :  { %173 = vset.pattern.permute.xlu0 %v205_v2  ;;  %157 = vmatpush3.xpose.msk.msra.mxu0 %vm45_vm1, %v34_v3  ;;  %v35_v4 = vld [vmem:[#allocation2] sm:$0x1]  ;;  %v31_v7 = vld [vmem:[#allocation3] sm:$0xff] }
  0x13   :  { %158 = vmatprep.subr.mxu0 %v203_v1  ;;  %38 = vperm.xlu0 %173, %v35_v4   ;;  %v30_v8 = vld [vmem:[%s239_s1] sm:$0x1]  ;;  %v42_v10 = vshrl.u32 %v41_v9, 7 }
  0x15   :  { %v43_v11 = vsub.s32 0, %v42_v10 }
  0x16   :  { %159 = vmatpush3.xpose.msk.msra.mxu0 %vm45_vm1, %v33_v5 }
  0x17   :  { %160 = vmatprep.subr.mxu0 %v203_v1 }
  0x1a   :  { %161 = vmatpush3.xpose.msk.msra.mxu0 %vm45_vm1, %v32_v6 }
  0x1b   :  { %162 = vmatprep.subr.mxu0 %v203_v1 }
  0x1e   :  { %163 = vmatpush3.xpose.msk.msra.mxu0 %vm45_vm1, %v31_v7 }
  0x21   :  { %165 = vmatmul.mubr.msk.f32.vlgmr.msra.gmra.mxu0 %vm45_vm1, %v30_v8 }
  0x8e   :  { %v39_v12 = vpop.permute.xlu0 %38 }
  0x8f   :  { %v44_v13 = vrot.slane %v39_v12, %v43_v11 }
  0xe1   :  { %v127_v14 = vpop.f32.mrf.mxu0 }
  0xe2   :  { %v128_v15 = vadd.f32 %v127_v14, %v44_v13 }
  0xe3   :  { %v166_v16 = vpop.f32.mrf.mxu0 }
  0xe4   :  { %v131_v17 = vand.u32 2147483647, %v128_v15 }
  0xe6   :  { %v150_v18 = vmul.f32 -1.442695, %v131_v17 }
  0xe8   :  { %174 = vpow2.f32 %v150_v18 }
  0xf5   :  { %v175_v19 = vpop.eup %174 }
  0xf6   :  { %v135_v20 = vadd.f32 1.0, %v175_v19 }
  0xf8   :  { %176 = vrcp.f32 %v135_v20 }
 0x105   :  { %v177_v21 = vpop.eup %176 }
 0x106   :  { %139 = vst.msk [vmem:[%s241_s3] sm:$0x1] %vm138_vm2, %v177_v21 }
 0x107   :  { %144 = vsyncpa [#allocation4], 1 }

// kernel: mask_decoder_token_forward.8
= control target key start
LH: loop header
LB: loop body
LE: loop exit
PB: predicated region body
PF: predicated region fallthrough
CT: control target
= control target key end

     0   :  { %s1033_s30 = smov 0   ;;  %s1176_s0 = inlined_call_operand.vmem [shape: f32[2,7,32], index: 0, kind: input, shape index: {}]   ;;  %s1177_s1 = inlined_call_operand.vmem [shape: f32[2,64,32], index: 1, kind: input, shape index: {}]   ;;  %s1178_s2 = inlined_call_operand.vmem [shape: f32[1,64,32], index: 2, kind: input, shape index: {}]   ;;  %s1179_s3 = inlined_call_operand.vmem [shape: bf16[32,32], index: 3, kind: input, shape index: {}]   ;;  %s1180_s4 = inlined_call_operand.vmem [shape: bf16[32,32], index: 4, kind: input, shape index: {}]   ;;  %s1181_s5 = inlined_call_operand.vmem [shape: bf16[32,32], index: 5, kind: input, shape index: {}]   ;;  %s1182_s6 = inlined_call_operand.vmem [shape: f32[1,32], index: 6, kind: input, shape index: {}]   ;;  %s1183_s7 = inlined_call_operand.vmem [shape: f32[1,32], index: 7, kind: input, shape index: {}]   ;;  %s1184_s8 = inlined_call_operand.vmem [shape: f32[1,32], index: 8, kind: input, shape index: {}]   ;;  %s1185_s9 = inlined_call_operand.vmem [shape: f32[2,7,32], index: 9, kind: output, shape index: {}]  }
   0x1 LB: > { %s840_s10 = sadd.s32 4294967295, %s979_s30   ;;  %p844_p0 = scmp.ge.s32.totalorder %s979_s30, 1  ;;  %s979_s30 = sphi %s1033_s30, %s19_s30  }
   0x2   : > { %p296_p1 = scmp.lt.s32.totalorder %s979_s30, 3 }
   0x4   : > { %p297_p2 = pnand %p844_p0, %p296_p1 }
   0x5   : > { %p335_p3 = scmp.lt.s32.totalorder (!%p297_p2), %s840_s10, 1 }
   0x6   : > { %300 = sbr.rel (%p297_p2) target bundleno = 970 (0x3ca), region = 56 }
   0xb   : > { %v963_v0 = vld [vmem:[%s1180_s4 + $0x8] sm:$0xff]   ;;  %v964_v1 = vld [vmem:[%s1180_s4] sm:$0xff]   ;;  %s1187_s10 = smov (!%p335_p3, %s840_s10), 1  ;;  %v360_v4 = vld [vmem:[%s1178_s2 + $0x10] sm:$0xff]  ;;  %v981_v6 = vmov 0.0   ;;  %vm982_vm0 = vmmov 0  }
   0xc   : > { %905 = vmatprep.subr.bf16.mxu1 %v963_v0  ;;  %v358_v2 = vld [vmem:[%s1178_s2] sm:$0xff]  ;;  %v359_v3 = vld [vmem:[%s1178_s2 + $0x8] sm:$0xff]  ;;  %v361_v5 = vld [vmem:[%s1178_s2 + $0x18] sm:$0xff]  ;;  %897 = vmatprep.subr.bf16.mxu0 %v981_v6  ;;  %s871_s23 = sshll.u32 %s1187_s10, 6  ;;  %s845_s28 = sshll.u32 %s1187_s10, 3  ;;  %vm398_vm1 = vcmask 261120  }
   0xd   : > { %906 = vmatpush3.bf16.msra.mxu1 %v963_v0  ;;  %v362_v7 = vld [vmem:[%s1178_s2 + $0x20] sm:$0xff]  ;;  %v363_v8 = vld [vmem:[%s1178_s2 + $0x28] sm:$0xff]  ;;  %901 = vmatprep.mubr.msk.bf16.mxu0 %vm982_vm0, %v981_v6  ;;  %s343_s12 = scalar_lea.vmem %s1177_s1, %s871_s23  ;;  %s338_s17 = scalar_lea.vmem %s1176_s0, %s845_s28  ;;  %v364_v19 = vld [vmem:[%s1178_s2 + $0x30] sm:$0xff]  ;;  %vm711_vm2 = vcmask 522240   ;;  %vm728_vm3 = vcmask 523264   ;;  %vm773_vm4 = vcmask 260096  }
   0xe   : > { %907 = vmatprep.subr.bf16.mxu1 %v964_v1  ;;  %v965_v9 = vld [vmem:[%s1179_s3 + $0x8] sm:$0xff]   ;;  %v350_v10 = vld [vmem:[%s343_s12] sm:$0xff]  ;;  %v1078_v12 = vld [vmem:[%s343_s12 + $0x10] sm:$0xff]  ;;  %s347_s18 = scalar_lea.vmem %s1185_s9, %s845_s28 }
   0xf   : > { %v351_v11 = vld [vmem:[%s343_s12 + $0x8] sm:$0xff]  ;;  %v366_v13 = vadd.f32 %v358_v2, %v350_v10  ;;  %v1085_v15 = vld [vmem:[%s343_s12 + $0x18] sm:$0xff]  ;;  %v368_v16 = vadd.f32 %v360_v4, %v1078_v12  ;;  %v1088_v17 = vld [vmem:[%s343_s12 + $0x20] sm:$0xff]  ;;  %898 = vmatpush3.bf16.msra.mxu0 %v965_v9 }
  0x10   : > { %v367_v14 = vadd.f32 %v359_v3, %v351_v11  ;;  %v1090_v18 = vld [vmem:[%s343_s12 + $0x28] sm:$0xff]  ;;  %v365_v20 = vld [vmem:[%s1178_s2 + $0x38] sm:$0xff]  ;;  %v369_v21 = vadd.f32 %v361_v5, %v1085_v15  ;;  %v547_v22 = vpack.c.bf16 %v1085_v15, %v1078_v12  ;;  %v370_v23 = vadd.f32 %v362_v7, %v1088_v17  ;;  %v1103_v25 = vld [vmem:[%s343_s12 + $0x30] sm:$0xff]  ;;  %899 = vmatprep.subr.bf16.mxu0 %v981_v6 }
  0x11   : > { %908 = vmatpush3.bf16.msra.mxu1 %v964_v1  ;;  %v371_v24 = vadd.f32 %v363_v8, %v1090_v18  ;;  %v1105_v26 = vld [vmem:[%s343_s12 + $0x38] sm:$0xff]  ;;  %v966_v28 = vld [vmem:[%s1179_s3] sm:$0xff]   ;;  %v546_v33 = vpack.c.bf16 %v351_v11, %v350_v10  ;;  %v372_v34 = vadd.f32 %v364_v19, %v1103_v25  ;;  %v967_v5 = vld [vmem:[%s1181_s5 + $0x8] sm:$0xff]   ;;  %v548_v8 = vpack.c.bf16 %v1090_v18, %v1088_v17 }
  0x12   : > { %v442_v27 = vpack.c.bf16 %v367_v14, %v366_v13  ;;  %v1111_v29 = vld [vmem:[%s338_s17] sm:$0x7f]  ;;  %929 = vmatprep.subr.bf16.mxu1 %v981_v6  ;;  %v443_v30 = vpack.c.bf16 %v369_v21, %v368_v16  ;;  %v373_v35 = vadd.f32 %v365_v20, %v1105_v26  ;;  %v549_v9 = vpack.c.bf16 %v1105_v26, %v1103_v25 }
  0x13   : > { %v444_v31 = vpack.c.bf16 %v371_v24, %v370_v23  ;;  %v374_v32 = vpack.c.bf16 %v1111_v29, %v1111_v29  ;;  %900 = vmatpush3.bf16.msra.mxu0 %v966_v28  ;;  %v853_v47 = vld [vmem:[%s1183_s7] ss:$0 sm:$0xff] }
  0x14   : > { %909 = vmatprep.mubr.msk.bf16.mxu1 %vm398_vm1, %v442_v27  ;;  %v445_v36 = vpack.c.bf16 %v373_v35, %v372_v34  ;;  %v849_v1 = vld [vmem:[%s1182_s6] ss:$0 sm:$0xff]  ;;  %917 = vmatprep.subr.bf16.mxu0 %v967_v5 }
  0x15   : > { %910 = vmatmul.mubr.msk.bf16.vlgmr.msra.gmra.mxu1 %vm398_vm1, %v443_v30  ;;  %v968_v7 = vld [vmem:[%s1181_s5] sm:$0xff]  }
  0x16   : > { %913 = vmatprep.mubr.msk.bf16.mxu1 %vm398_vm1, %v444_v31  ;;  %902 = vmatmul.mubr.msk.bf16.vlgmr.msra.gmra.mxu0 %vm398_vm1, %v374_v32  ;;  %v860_v20 = vld [vmem:[%s1184_s8] ss:$0 sm:$0xff] }
  0x17   : > { %921 = vmatprep.mubr.msk.bf16.mxu0 %vm398_vm1, %v546_v33  ;;  %918 = vmatpush3.bf16.msra.mxu0 %v967_v5 }
  0x18   : > { %919 = vmatprep.subr.bf16.mxu0 %v968_v7 }
  0x1b   : > { %920 = vmatpush3.bf16.msra.mxu0 %v968_v7 }
  0x1c   : > { %941 = vmatprep.subr.bf16.mxu0 %v981_v6 }
  0x1d   : > { %914 = vmatmul.mubr.msk.bf16.gmra.mxu1 %vm398_vm1, %v445_v36 }
  0x1e   : > { %937 = vmatprep.mubr.msk.bf16.mxu1 %vm982_vm0, %v981_v6  ;;  %922 = vmatmul.mubr.msk.bf16.vlgmr.msra.gmra.mxu0 %vm398_vm1, %v547_v22 }
  0x1f   : > { %925 = vmatprep.mubr.msk.bf16.mxu0 %vm398_vm1, %v548_v8 }
  0x26   : > { %926 = vmatmul.mubr.msk.bf16.gmra.mxu0 %vm398_vm1, %v549_v9 }
  0x27   : > { %949 = vmatprep.mubr.msk.bf16.mxu0 %vm982_vm0, %v981_v6 }
  0xd5   : > { %v911_v37 = vpop.f32.mrf.mxu1 }
  0xd6   : > { %v436_v39 = vpop.f32.mrf.mxu0  ;;  %v524_v59 = vadd.f32 %v911_v37, %v853_v47 }
  0xd7   : > { %v515_v38 = vpop.f32.mrf.mxu1  ;;  %v437_v2 = vadd.f32 %v849_v1, %v436_v39 }
  0xd8   : > { %v903_v41 = vpop.f32.mrf.mxu0  ;;  %v516_v63 = vadd.f32 %v853_v47, %v515_v38 }
  0xd9   : > { %v912_v40 = vpop.f32.mrf.mxu1  ;;  %v650_v4 = vpack.c.bf16 %v437_v2, %v437_v2 }
  0xda   : > { %v439_v43 = vpop.f32.mrf.mxu0  ;;  %v527_v57 = vadd.f32 %v912_v40, %v853_v47 }
  0xdb   : > { %v518_v42 = vpop.f32.mrf.mxu1 }
  0xdc   : > { %v904_v45 = vpop.f32.mrf.mxu0  ;;  %v652_v60 = vpack.c.bf16 %v527_v57, %v524_v59  ;;  %v519_v61 = vadd.f32 %v853_v47, %v518_v42 }
  0xdd   : > { %v915_v44 = vpop.f32.mrf.mxu1 }
  0xde   : > { %v540_v49 = vadd.f32 %v915_v44, %v853_v47  ;;  %v662_v62 = vsel %vm398_vm1, %v652_v60, 0  ;;  %v651_v0 = vpack.c.bf16 %v519_v61, %v516_v63  ;;  %v923_v16 = vpop.f32.mrf.mxu0 }
  0xdf   : > { %v531_v46 = vpop.f32.mrf.mxu1  ;;  %v628_v31 = vadd.f32 %v923_v16, %v860_v20 }
  0xe0   : > { %v532_v55 = vadd.f32 %v853_v47, %v531_v46  ;;  %v659_v3 = vsel %vm398_vm1, %v651_v0, 0  ;;  %v619_v17 = vpop.f32.mrf.mxu0 }
  0xe1   : > { %v916_v48 = vpop.f32.mrf.mxu1  ;;  %v620_v34 = vadd.f32 %v860_v20, %v619_v17 }
  0xe2   : > { %v543_v50 = vadd.f32 %v916_v48, %v853_v47  ;;  %v924_v18 = vpop.f32.mrf.mxu0 }
  0xe3   : > { %v534_v51 = vpop.f32.mrf.mxu1  ;;  %v631_v32 = vadd.f32 %v924_v18, %v860_v20 }
  0xe4   : > { %v654_v52 = vpack.c.bf16 %v543_v50, %v540_v49  ;;  %v535_v53 = vadd.f32 %v853_v47, %v534_v51  ;;  %v622_v19 = vpop.f32.mrf.mxu0 }
  0xe5   : > { %v725_v35 = vpack.c.bf16 %v631_v32, %v628_v31  ;;  %v623_v36 = vadd.f32 %v860_v20, %v622_v19 }
  0xe6   : > { %v668_v54 = vsel %vm398_vm1, %v654_v52, 0  ;;  %v653_v56 = vpack.c.bf16 %v535_v53, %v532_v55  ;;  %v927_v21 = vpop.f32.mrf.mxu0 }
  0xe7   : > { %930 = vmatpush3.bf16.xpose.msra.mxu1 %v668_v54  ;;  %v644_v23 = vadd.f32 %v927_v21, %v860_v20  ;;  %v724_v37 = vpack.c.bf16 %v623_v36, %v620_v34 }
  0xe8   : > { %931 = vmatprep.subr.bf16.mxu1 %v981_v6  ;;  %v665_v58 = vsel %vm398_vm1, %v653_v56, 0  ;;  %v635_v22 = vpop.f32.mrf.mxu0 }
  0xe9   : > { %v636_v25 = vadd.f32 %v860_v20, %v635_v22 }
  0xea   : > { %v928_v24 = vpop.f32.mrf.mxu0 }
  0xeb   : > { %v647_v26 = vadd.f32 %v928_v24, %v860_v20 }
  0xec   : > { %v638_v27 = vpop.f32.mrf.mxu0 }
  0xed   : > { %v727_v28 = vpack.c.bf16 %v647_v26, %v644_v23  ;;  %v639_v30 = vadd.f32 %v860_v20, %v638_v27 }
  0xef   : > { %932 = vmatpush3.bf16.xpose.msra.mxu1 %v665_v58  ;;  %v726_v33 = vpack.c.bf16 %v639_v30, %v636_v25  ;;  %942 = vmatpush3.bf16.msra.mxu0 %v727_v28 }
  0xf0   : > { %933 = vmatprep.subr.bf16.mxu1 %v981_v6  ;;  %943 = vmatprep.subr.bf16.mxu0 %v981_v6 }
  0xf3   : > { %944 = vmatpush3.bf16.msra.mxu0 %v726_v33 }
  0xf4   : > { %945 = vmatprep.subr.bf16.mxu0 %v981_v6 }
  0xf7   : > { %934 = vmatpush3.bf16.xpose.msra.mxu1 %v662_v62  ;;  %946 = vmatpush3.bf16.msra.mxu0 %v725_v35 }
  0xf8   : > { %935 = vmatprep.subr.bf16.mxu1 %v981_v6  ;;  %947 = vmatprep.subr.bf16.mxu0 %v981_v6 }
  0xfb   : > { %948 = vmatpush3.bf16.msra.mxu0 %v724_v37 }
  0xff   : > { %936 = vmatpush3.bf16.xpose.msra.mxu1 %v659_v3 }
 0x106   : > { %938 = vmatmul.mubr.msk.bf16.vlgmr.msra.gmra.mxu1 %vm398_vm1, %v650_v4 }
 0x1c6   : > { %v704_v10 = vpop.f32.mrf.mxu1 }
 0x1c7   : > { %v710_v11 = vmul.f32 0.17677669, %v704_v10 }
 0x1c8   : > { %v939_v13 = vpop.f32.mrf.mxu1 }
 0x1c9   : > { %v712_v14 = vsel %vm711_vm2, %v710_v11, -inf }
 0x1ca   : > { %713 = vmax.xlane.f32.xlu0 %v712_v14  ;;  %v707_v12 = vpop.f32.mrf.mxu1 }
 0x1cc   : > { %v940_v15 = vpop.f32.mrf.mxu1 }
 0x253   : > { %v714_v38 = vpop.xlane.xlu0 %713 }
 0x254   : > { %v715_v39 = vsub.f32 %v710_v11, %v714_v38 }
 0x256   : > { %v716_v40 = vmul.f32 1.442695, %v715_v39 }
 0x258   : > { %969 = vpow2.f32 %v716_v40 }
 0x265   : > { %v970_v41 = vpop.eup %969 }
 0x266   : > { %v718_v42 = vsel %vm711_vm2, %v970_v41, 0.0 }
 0x267   : > { %719 = vadd.xlane.f32.xlu0 %v718_v42 }
 0x2f0   : > { %v720_v43 = vpop.xlane.xlu0 %719 }
 0x2f1   : > { %971 = vrcp.f32 %v720_v43 }
 0x2fe   : > { %v972_v44 = vpop.eup %971 }
 0x2ff   : > { %v722_v45 = vmul.f32 %v972_v44, %v970_v41 }
 0x301   : > { %v723_v46 = vpack.c.bf16 %v722_v45, %v722_v45 }
 0x303   : > { %950 = vmatmul.mubr.msk.bf16.vlgmr.msra.gmra.mxu0 %vm728_vm3, %v723_v46 }
 0x3c3   : > { %v766_v6 = vpop.f32.mrf.mxu0 }
 0x3c4   : > { %v772_v47 = vadd.f32 %v766_v6, %v1111_v29 }
 0x3c5   : > { %v951_v48 = vpop.f32.mrf.mxu0 }
 0x3c6   : > { %774 = vst.msk [vmem:[%s347_s18] sm:$0x7f] %vm773_vm4, %v772_v47 }
 0x3c7   : > { %v769_v49 = vpop.f32.mrf.mxu0 }
 0x3c9   : > { %v952_v50 = vpop.f32.mrf.mxu0 }
 0x3ca PF: > { %s19_s30 = sadd.s32 1, %s979_s30  }
 0x3cb   : > { %p16_p4 = scmp.ge.s32.totalorder %s19_s30, 4  }
 0x3cd   :  { %18 = sbr.rel (!%p16_p4) target bundleno = 1 (0x1), region = 89 }

// kernel: tile.13
= control target key start
LH: loop header
LB: loop body
LE: loop exit
PB: predicated region body
PF: predicated region fallthrough
CT: control target
= control target key end

     0   :  { %s22_s0 = inlined_call_operand.vmem [shape: f32[8], index: 0, kind: input, shape index: {}]   ;;  %s23_s1 = inlined_call_operand.vmem [shape: f32[4,8], index: 1, kind: output, shape index: {}]  }
   0x1   :  { %v4_v0 = vld [vmem:[%s22_s0] ss:$0 sm:$0xff] }
   0x2   :  { %5 = vst [vmem:[%s23_s1] sm:$0xf] %v4_v0 }

// kernel: tile.14
= control target key start
LH: loop header
LB: loop body
LE: loop exit
PB: predicated region body
PF: predicated region fallthrough
CT: control target
= control target key end

     0   :  { %vm8_vm0 = vcmask 64512   ;;  %s40_s8 = smov 8   ;;  %s41_s9 = smov 16   ;;  %vm14_vm1 = vcmask 261312   ;;  %vm20_vm2 = vcmask 195712   ;;  %vm26_vm3 = vcmask 130112   ;;  %s58_s0 = inlined_call_operand.vmem [shape: f32[4,8], index: 0, kind: input, shape index: {}]   ;;  %s59_s1 = inlined_call_operand.vmem [shape: f32[1,32], index: 1, kind: output, shape index: {}]  }
   0x1   :  { %v5_v0 = vld [vmem:[%s58_s0] sm:$0xf]  ;;  %s39_s0 = smov 24  }
   0x2   :  { %6 = vst [vmem:[#allocation1] sm:$0xf] %v5_v0 }
   0x9   :  { %v11_v1 = vld [vmem:[#allocation1 + $0x3] sm:$0x1]   ;;  %v23_v2 = vld [vmem:[#allocation1 + $0x1] sm:$0x1]   ;;  %v7_v3 = vld [vmem:[#allocation1] sm:$0x1]  }
   0xa   :  { %12 = vrot.lane.b32.xlu0 %v11_v1, %s39_s0  ;;  %24 = vrot.lane.b32.xlu1 %v23_v2, %s40_s8  ;;  %v17_v4 = vld [vmem:[#allocation1 + $0x2] sm:$0x1]   ;;  %9 = vst.msk [vmem:[#allocation0] sm:$0x1] %vm8_vm0, %v7_v3  }
   0xe   :  { %18 = vrot.lane.b32.xlu0 %v17_v4, %s41_s9 }
  0x7c   :  { %v13_v5 = vpop.permute.xlu0 %12   ;;  %v25_v6 = vpop.permute.xlu1 %24  }
  0x7d   :  { %15 = vst.msk [vmem:[#allocation0] sm:$0x1] %vm14_vm1, %v13_v5  }
  0x80   :  { %v19_v7 = vpop.permute.xlu0 %18  }
  0x81   :  { %21 = vst.msk [vmem:[#allocation0] sm:$0x1] %vm20_vm2, %v19_v7  }
  0x82   :  { %27 = vst.msk [vmem:[#allocation0] sm:$0x1] %vm26_vm3, %v25_v6  }
  0x89   :  { %v32_v8 = vld [vmem:[#allocation0] sm:$0x1] }
  0x8a   :  { %35 = vst [vmem:[%s59_s1] sm:$0x1] %v32_v8 }

// kernel: mask_decoder_token_forward.10
= control target key start
LH: loop header
LB: loop body
LE: loop exit
PB: predicated region body
PF: predicated region fallthrough
CT: control target
= control target key end

     0   :  { %s932_s24 = smov 0   ;;  %s1080_s0 = inlined_call_operand.vmem [shape: f32[5,2,32], index: 0, kind: input, shape index: {}]   ;;  %s1081_s1 = inlined_call_operand.vmem [shape: f32[5,32,256], index: 1, kind: input, shape index: {}]   ;;  %s1082_s2 = inlined_call_operand.vmem [shape: f32[5,1,256], index: 2, kind: input, shape index: {}]   ;;  %s1083_s3 = inlined_call_operand.vmem [shape: f32[5,256,256], index: 3, kind: input, shape index: {}]   ;;  %s1084_s4 = inlined_call_operand.vmem [shape: f32[5,1,256], index: 4, kind: input, shape index: {}]   ;;  %s1085_s5 = inlined_call_operand.vmem [shape: f32[5,256,4], index: 5, kind: input, shape index: {}]   ;;  %s1086_s6 = inlined_call_operand.vmem [shape: f32[5,1,4], index: 6, kind: input, shape index: {}]   ;;  %s1087_s7 = inlined_call_operand.vmem [shape: f32[5,2,4], index: 7, kind: output, shape index: {}]  }
   0x1 LB: > { %s830_s25 = sadd.s32 4294967295, %s889_s24   ;;  %p834_p0 = scmp.ge.s32.totalorder %s889_s24, 1  ;;  %s889_s24 = sphi %s932_s24, %s17_s24  }
   0x2   : > { %p292_p1 = scmp.lt.s32.totalorder %s889_s24, 6 }
   0x4   : > { %p293_p2 = pnand %p834_p0, %p292_p1 }
   0x5   : > { %p348_p3 = scmp.lt.s32.totalorder (!%p293_p2), %s830_s25, 4 }
   0x6   : > { %296 = sbr.rel (%p293_p2) target bundleno = 629 (0x275), region = 48 }
   0xb   : > { %v891_v0 = vmov 0   ;;  %s1089_s25 = smov (!%p348_p3, %s830_s25), 4  ;;  %vm409_vm0 = vcmask 261120   ;;  %vm706_vm1 = vcmask 25600  }
   0xc   : > { %445 = vmatprep.mubr.bf16.mxu0 %v891_v0  ;;  %s849_s26 = sshll.u32 %s1089_s25, 6  ;;  %s850_s27 = sshll.u32 %s1089_s25, 9 }
   0xd   : > { %s356_s30 = scalar_lea.vmem %s1081_s1, %s849_s26  ;;  %s950_s10 = scalar_lea.vmem %s1083_s3, %s850_s27 }
   0xe   : > { %v390_v1 = vld [vmem:[%s356_s30 + $0x28] sm:$0xff]  ;;  %v392_v2 = vld [vmem:[%s356_s30 + $0x38] sm:$0xff]  ;;  %v389_v3 = vld [vmem:[%s356_s30 + $0x20] sm:$0xff]  ;;  %s953_s11 = sshll.u32 %s1089_s25, 1  ;;  %s851_s15 = sshll.u32 %s1089_s25, 8 }
   0xf   : > { %v396_v4 = vpack.c.bf16 %v392_v2, %v390_v1  ;;  %v391_v5 = vld [vmem:[%s356_s30 + $0x30] sm:$0xff]  ;;  %v386_v6 = vld [vmem:[%s356_s30 + $0x8] sm:$0xff]  ;;  %v388_v7 = vld [vmem:[%s356_s30 + $0x18] sm:$0xff]  ;;  %s351_s14 = scalar_lea.vmem %s1080_s0, %s953_s11  ;;  %s1027_s18 = scalar_lea.vmem %s1085_s5, %s851_s15 }
  0x10   : > { %v395_v8 = vpack.c.bf16 %v391_v5, %v389_v3  ;;  %v394_v9 = vpack.c.bf16 %v388_v7, %v386_v6  ;;  %v385_v10 = vld [vmem:[%s356_s30] sm:$0xff]  ;;  %v387_v11 = vld [vmem:[%s356_s30 + $0x10] sm:$0xff]  ;;  %v487_v13 = vld [vmem:[%s950_s10 + $0xe8] sm:$0xff]  ;;  %s360_s21 = scalar_lea.vmem %s1082_s2, %s953_s11  ;;  %s369_s26 = scalar_lea.vmem %s1084_s4, %s953_s11 }
  0x11   : > { %v383_v12 = vld [vmem:[%s351_s14] sm:$0x3]  ;;  %425 = vmatprep.subr.bf16.mxu0 %v396_v4  ;;  %v489_v14 = vld [vmem:[%s950_s10 + $0xf8] sm:$0xff]  ;;  %v393_v16 = vpack.c.bf16 %v387_v11, %v385_v10  ;;  %v488_v18 = vld [vmem:[%s950_s10 + $0xf0] sm:$0xff]  ;;  %s377_s29 = scalar_lea.vmem %s1086_s6, %s1089_s25  ;;  %s381_s9 = scalar_lea.vmem %s1087_s7, %s953_s11 }
  0x12   : > { %v486_v15 = vld [vmem:[%s950_s10 + $0xe0] sm:$0xff]  ;;  %426 = vmatpush1.bf16.msra.mxu0 %v395_v8  ;;  %v537_v17 = vpack.c.bf16 %v489_v14, %v487_v13  ;;  %v483_v19 = vld [vmem:[%s950_s10 + $0xc8] sm:$0xff]  ;;  %v485_v20 = vld [vmem:[%s950_s10 + $0xd8] sm:$0xff]  ;;  %v384_v27 = vpack.c.bf16 %v383_v12, %v383_v12 }
  0x13   : > { %427 = vmatprep.subr.bf16.mxu0 %v394_v9  ;;  %v536_v21 = vpack.c.bf16 %v488_v18, %v486_v15  ;;  %v535_v22 = vpack.c.bf16 %v485_v20, %v483_v19  ;;  %v482_v23 = vld [vmem:[%s950_s10 + $0xc0] sm:$0xff]  ;;  %v484_v24 = vld [vmem:[%s950_s10 + $0xd0] sm:$0xff]  ;;  %v479_v25 = vld [vmem:[%s950_s10 + $0xa8] sm:$0xff] }
  0x14   : > { %566 = vmatprep.subr.bf16.mxu1 %v537_v17  ;;  %v481_v26 = vld [vmem:[%s950_s10 + $0xb8] sm:$0xff]  ;;  %v534_v28 = vpack.c.bf16 %v484_v24, %v482_v23  ;;  %v478_v30 = vld [vmem:[%s950_s10 + $0xa0] sm:$0xff]  ;;  %v480_v31 = vld [vmem:[%s950_s10 + $0xb0] sm:$0xff] }
  0x15   : > { %567 = vmatpush1.bf16.msra.mxu1 %v536_v21  ;;  %v533_v29 = vpack.c.bf16 %v481_v26, %v479_v25  ;;  %v475_v32 = vld [vmem:[%s950_s10 + $0x88] sm:$0xff]  ;;  %v477_v33 = vld [vmem:[%s950_s10 + $0x98] sm:$0xff]  ;;  %v532_v34 = vpack.c.bf16 %v480_v31, %v478_v30  ;;  %v474_v36 = vld [vmem:[%s950_s10 + $0x80] sm:$0xff] }
  0x16   : > { %428 = vmatpush1.bf16.msra.mxu0 %v393_v16  ;;  %568 = vmatprep.subr.bf16.mxu1 %v535_v22  ;;  %v531_v35 = vpack.c.bf16 %v477_v33, %v475_v32  ;;  %v476_v37 = vld [vmem:[%s950_s10 + $0x90] sm:$0xff]  ;;  %v471_v38 = vld [vmem:[%s950_s10 + $0x68] sm:$0xff]  ;;  %v473_v39 = vld [vmem:[%s950_s10 + $0x78] sm:$0xff] }
  0x17   : > { %v530_v40 = vpack.c.bf16 %v476_v37, %v474_v36  ;;  %v529_v41 = vpack.c.bf16 %v473_v39, %v471_v38  ;;  %v470_v42 = vld [vmem:[%s950_s10 + $0x60] sm:$0xff]  ;;  %v472_v43 = vld [vmem:[%s950_s10 + $0x70] sm:$0xff]  ;;  %v467_v44 = vld [vmem:[%s950_s10 + $0x48] sm:$0xff] }
  0x18   : > { %v469_v45 = vld [vmem:[%s950_s10 + $0x58] sm:$0xff]  ;;  %v528_v46 = vpack.c.bf16 %v472_v43, %v470_v42  ;;  %v466_v48 = vld [vmem:[%s950_s10 + $0x40] sm:$0xff]  ;;  %v468_v49 = vld [vmem:[%s950_s10 + $0x50] sm:$0xff] }
  0x19   : > { %845 = vmatmul.mubr.msk.bf16.vlgmr.msra.gmra.mxu0 %vm409_vm0, %v384_v27  ;;  %569 = vmatpush1.bf16.msra.mxu1 %v534_v28  ;;  %v527_v47 = vpack.c.bf16 %v469_v45, %v467_v44  ;;  %v463_v50 = vld [vmem:[%s950_s10 + $0x28] sm:$0xff]  ;;  %v465_v51 = vld [vmem:[%s950_s10 + $0x38] sm:$0xff]  ;;  %v526_v52 = vpack.c.bf16 %v468_v49, %v466_v48  ;;  %v462_v54 = vld [vmem:[%s950_s10 + $0x20] sm:$0xff] }
  0x1a   : > { %570 = vmatprep.subr.bf16.mxu1 %v533_v29  ;;  %v525_v53 = vpack.c.bf16 %v465_v51, %v463_v50  ;;  %v464_v55 = vld [vmem:[%s950_s10 + $0x30] sm:$0xff]  ;;  %v459_v56 = vld [vmem:[%s950_s10 + $0x8] sm:$0xff]  ;;  %v461_v57 = vld [vmem:[%s950_s10 + $0x18] sm:$0xff] }
  0x1b   : > { %v524_v58 = vpack.c.bf16 %v464_v55, %v462_v54  ;;  %v523_v59 = vpack.c.bf16 %v461_v57, %v459_v56  ;;  %v458_v60 = vld [vmem:[%s950_s10] sm:$0xff]  ;;  %v460_v61 = vld [vmem:[%s950_s10 + $0x10] sm:$0xff]  ;;  %v519_v62 = vld [vmem:[%s950_s10 + $0x1e8] sm:$0xff] }
  0x1c   : > { %v521_v63 = vld [vmem:[%s950_s10 + $0x1f8] sm:$0xff]  ;;  %v522_v0 = vpack.c.bf16 %v460_v61, %v458_v60  ;;  %v518_v2 = vld [vmem:[%s950_s10 + $0x1e0] sm:$0xff]  ;;  %v520_v3 = vld [vmem:[%s950_s10 + $0x1f0] sm:$0xff] }
  0x1d   : > { %571 = vmatpush1.bf16.msra.mxu1 %v532_v34  ;;  %v553_v1 = vpack.c.bf16 %v521_v63, %v519_v62  ;;  %v515_v4 = vld [vmem:[%s950_s10 + $0x1c8] sm:$0xff]  ;;  %v517_v5 = vld [vmem:[%s950_s10 + $0x1d8] sm:$0xff]  ;;  %v552_v6 = vpack.c.bf16 %v520_v3, %v518_v2  ;;  %v514_v8 = vld [vmem:[%s950_s10 + $0x1c0] sm:$0xff] }
  0x1e   : > { %572 = vmatprep.subr.bf16.mxu1 %v531_v35  ;;  %v551_v7 = vpack.c.bf16 %v517_v5, %v515_v4  ;;  %v516_v9 = vld [vmem:[%s950_s10 + $0x1d0] sm:$0xff]  ;;  %v511_v10 = vld [vmem:[%s950_s10 + $0x1a8] sm:$0xff]  ;;  %v513_v11 = vld [vmem:[%s950_s10 + $0x1b8] sm:$0xff] }
  0x1f   : > { %v550_v12 = vpack.c.bf16 %v516_v9, %v514_v8  ;;  %v549_v13 = vpack.c.bf16 %v513_v11, %v511_v10  ;;  %v510_v14 = vld [vmem:[%s950_s10 + $0x1a0] sm:$0xff]  ;;  %v512_v15 = vld [vmem:[%s950_s10 + $0x1b0] sm:$0xff]  ;;  %v507_v16 = vld [vmem:[%s950_s10 + $0x188] sm:$0xff] }
  0x20   : > { %v509_v17 = vld [vmem:[%s950_s10 + $0x198] sm:$0xff]  ;;  %v548_v18 = vpack.c.bf16 %v512_v15, %v510_v14  ;;  %v506_v20 = vld [vmem:[%s950_s10 + $0x180] sm:$0xff]  ;;  %v508_v21 = vld [vmem:[%s950_s10 + $0x190] sm:$0xff] }
  0x21   : > { %573 = vmatpush1.bf16.msra.mxu1 %v530_v40  ;;  %v547_v19 = vpack.c.bf16 %v509_v17, %v507_v16  ;;  %v503_v22 = vld [vmem:[%s950_s10 + $0x168] sm:$0xff]  ;;  %v505_v23 = vld [vmem:[%s950_s10 + $0x178] sm:$0xff]  ;;  %v546_v24 = vpack.c.bf16 %v508_v21, %v506_v20  ;;  %v502_v26 = vld [vmem:[%s950_s10 + $0x160] sm:$0xff] }
  0x22   : > { %574 = vmatprep.subr.bf16.mxu1 %v529_v41  ;;  %v545_v25 = vpack.c.bf16 %v505_v23, %v503_v22  ;;  %v504_v27 = vld [vmem:[%s950_s10 + $0x170] sm:$0xff]  ;;  %v499_v28 = vld [vmem:[%s950_s10 + $0x148] sm:$0xff]  ;;  %v501_v29 = vld [vmem:[%s950_s10 + $0x158] sm:$0xff] }
  0x23   : > { %v544_v30 = vpack.c.bf16 %v504_v27, %v502_v26  ;;  %v543_v31 = vpack.c.bf16 %v501_v29, %v499_v28  ;;  %v498_v32 = vld [vmem:[%s950_s10 + $0x140] sm:$0xff]  ;;  %v500_v33 = vld [vmem:[%s950_s10 + $0x150] sm:$0xff]  ;;  %v495_v35 = vld [vmem:[%s950_s10 + $0x128] sm:$0xff] }
  0x24   : > { %v542_v34 = vpack.c.bf16 %v500_v33, %v498_v32  ;;  %v497_v36 = vld [vmem:[%s950_s10 + $0x138] sm:$0xff]  ;;  %v494_v38 = vld [vmem:[%s950_s10 + $0x120] sm:$0xff]  ;;  %v496_v39 = vld [vmem:[%s950_s10 + $0x130] sm:$0xff] }
  0x25   : > { %575 = vmatpush1.bf16.msra.mxu1 %v528_v46  ;;  %v541_v37 = vpack.c.bf16 %v497_v36, %v495_v35  ;;  %v540_v40 = vpack.c.bf16 %v496_v39, %v494_v38  ;;  %v491_v41 = vld [vmem:[%s950_s10 + $0x108] sm:$0xff]  ;;  %v493_v42 = vld [vmem:[%s950_s10 + $0x118] sm:$0xff]  ;;  %v490_v44 = vld [vmem:[%s950_s10 + $0x100] sm:$0xff] }
  0x26   : > { %576 = vmatprep.subr.bf16.mxu1 %v527_v47  ;;  %v539_v43 = vpack.c.bf16 %v493_v42, %v491_v41  ;;  %v492_v45 = vld [vmem:[%s950_s10 + $0x110] sm:$0xff]  ;;  %v642_v48 = vld [vmem:[%s1027_s18 + $0xf8] sm:$0xff]  ;;  %v623_v56 = vld [vmem:[%s1027_s18 + $0x60] sm:$0xff] }
  0x27   : > { %v538_v46 = vpack.c.bf16 %v492_v45, %v490_v44  ;;  %v641_v47 = vld [vmem:[%s1027_s18 + $0xf0] sm:$0xff]  ;;  %v626_v51 = vld [vmem:[%s1027_s18 + $0x78] sm:$0xff]  ;;  %v624_v57 = vld [vmem:[%s1027_s18 + $0x68] sm:$0xff] }
  0x28   : > { %v625_v49 = vld [vmem:[%s1027_s18 + $0x70] sm:$0xff]  ;;  %v658_v50 = vpack.c.bf16 %v642_v48, %v641_v47  ;;  %v649_v60 = vpack.c.bf16 %v624_v57, %v623_v56  ;;  %v622_v63 = vld [vmem:[%s1027_s18 + $0x58] sm:$0xff]  ;;  %v619_v4 = vld [vmem:[%s1027_s18 + $0x40] sm:$0xff] }
  0x29   : > { %577 = vmatpush1.bf16.msra.mxu1 %v526_v52  ;;  %v639_v52 = vld [vmem:[%s1027_s18 + $0xe0] sm:$0xff]  ;;  %v650_v54 = vpack.c.bf16 %v626_v51, %v625_v49  ;;  %v621_v62 = vld [vmem:[%s1027_s18 + $0x50] sm:$0xff]  ;;  %v620_v5 = vld [vmem:[%s1027_s18 + $0x48] sm:$0xff] }
  0x2a   : > { %578 = vmatprep.subr.bf16.mxu1 %v525_v53  ;;  %v640_v53 = vld [vmem:[%s1027_s18 + $0xe8] sm:$0xff]  ;;  %852 = vmatprep.subr.bf16.mxu0 %v658_v50  ;;  %v648_v2 = vpack.c.bf16 %v622_v63, %v621_v62  ;;  %v647_v8 = vpack.c.bf16 %v620_v5, %v619_v4  ;;  %v617_v10 = vld [vmem:[%s1027_s18 + $0x30] sm:$0xff]  ;;  %v618_v11 = vld [vmem:[%s1027_s18 + $0x38] sm:$0xff] }
  0x2b   : > { %v657_v55 = vpack.c.bf16 %v640_v53, %v639_v52  ;;  %853 = vmatpush3.bf16.msra.mxu0 %v650_v54  ;;  %v646_v14 = vpack.c.bf16 %v618_v11, %v617_v10  ;;  %v615_v16 = vld [vmem:[%s1027_s18 + $0x20] sm:$0xff]  ;;  %v616_v17 = vld [vmem:[%s1027_s18 + $0x28] sm:$0xff]  ;;  %v629_v36 = vld [vmem:[%s1027_s18 + $0x90] sm:$0xff] }
  0x2c   : > { %v397_v22 = vld [vmem:[%s360_s21] sm:$0x3]  ;;  %v613_v39 = vld [vmem:[%s1027_s18 + $0x10] sm:$0xff] }
  0x2d   : > { %579 = vmatpush1.bf16.msra.mxu1 %v524_v58  ;;  %v637_v58 = vld [vmem:[%s1027_s18 + $0xd0] sm:$0xff]  ;;  %854 = vmatprep.subr.bf16.mxu0 %v657_v55  ;;  %v627_v42 = vld [vmem:[%s1027_s18 + $0x80] sm:$0xff] }
  0x2e   : > { %580 = vmatprep.subr.bf16.mxu1 %v523_v59  ;;  %v638_v59 = vld [vmem:[%s1027_s18 + $0xd8] sm:$0xff]  ;;  %v611_v45 = vld [vmem:[%s1027_s18] sm:$0xff] }
  0x2f   : > { %v656_v61 = vpack.c.bf16 %v638_v59, %v637_v58  ;;  %855 = vmatpush3.bf16.msra.mxu0 %v649_v60  ;;  %v554_v48 = vld [vmem:[%s369_s26] sm:$0x3] }
  0x30   : > { %v846_v62 = vld [vmem:[%s377_s29] ss:$0 sm:$0xff] }
  0x31   : > { %581 = vmatpush1.bf16.msra.mxu1 %v522_v0  ;;  %v635_v0 = vld [vmem:[%s1027_s18 + $0xc0] sm:$0xff]  ;;  %856 = vmatprep.subr.bf16.mxu0 %v656_v61 }
  0x32   : > { %582 = vmatprep.subr.bf16.mxu1 %v553_v1  ;;  %v636_v1 = vld [vmem:[%s1027_s18 + $0xc8] sm:$0xff] }
  0x33   : > { %v655_v3 = vpack.c.bf16 %v636_v1, %v635_v0  ;;  %857 = vmatpush3.bf16.msra.mxu0 %v648_v2 }
  0x35   : > { %583 = vmatpush2.bf16.msra.mxu1 %v552_v6  ;;  %v633_v6 = vld [vmem:[%s1027_s18 + $0xb0] sm:$0xff]  ;;  %858 = vmatprep.subr.bf16.mxu0 %v655_v3 }
  0x36   : > { %584 = vmatprep.subr.bf16.mxu1 %v551_v7  ;;  %v634_v7 = vld [vmem:[%s1027_s18 + $0xb8] sm:$0xff] }
  0x37   : > { %v654_v9 = vpack.c.bf16 %v634_v7, %v633_v6  ;;  %859 = vmatpush3.bf16.msra.mxu0 %v647_v8 }
  0x39   : > { %585 = vmatpush2.bf16.msra.mxu1 %v550_v12  ;;  %v631_v12 = vld [vmem:[%s1027_s18 + $0xa0] sm:$0xff]  ;;  %860 = vmatprep.subr.bf16.mxu0 %v654_v9 }
  0x3a   : > { %586 = vmatprep.subr.bf16.mxu1 %v549_v13  ;;  %v632_v13 = vld [vmem:[%s1027_s18 + $0xa8] sm:$0xff] }
  0x3b   : > { %v653_v15 = vpack.c.bf16 %v632_v13, %v631_v12  ;;  %861 = vmatpush3.bf16.msra.mxu0 %v646_v14 }
  0x3d   : > { %587 = vmatpush2.bf16.msra.mxu1 %v548_v18  ;;  %v645_v18 = vpack.c.bf16 %v616_v17, %v615_v16  ;;  %862 = vmatprep.subr.bf16.mxu0 %v653_v15 }
  0x3e   : > { %588 = vmatprep.subr.bf16.mxu1 %v547_v19  ;;  %v399_v19 = vlaneseq }
  0x3f   : > { %863 = vmatpush3.bf16.msra.mxu0 %v645_v18 }
  0x40   : > { %v400_v20 = vshrl.u32 %v399_v19, 7 }
  0x41   : > { %589 = vmatpush2.bf16.msra.mxu1 %v546_v24 }
  0x42   : > { %590 = vmatprep.subr.bf16.mxu1 %v545_v25  ;;  %v401_v21 = vsub.s32 0, %v400_v20  ;;  %v405_v23 = vsub.s32 1, %v400_v20 }
  0x44   : > { %v402_v24 = vrot.slane %v397_v22, %v401_v21  ;;  %v406_v25 = vrot.slane %v397_v22, %v405_v23  ;;  %v559_v49 = vrot.slane %v554_v48, %v401_v21  ;;  %v563_v50 = vrot.slane %v554_v48, %v405_v23 }
  0x45   : > { %591 = vmatpush2.bf16.msra.mxu1 %v544_v30 }
  0x46   : > { %592 = vmatprep.subr.bf16.mxu1 %v543_v31 }
  0x49   : > { %593 = vmatpush2.bf16.msra.mxu1 %v542_v34 }
  0x4a   : > { %594 = vmatprep.subr.bf16.mxu1 %v541_v37  ;;  %v630_v37 = vld [vmem:[%s1027_s18 + $0x98] sm:$0xff] }
  0x4b   : > { %v652_v38 = vpack.c.bf16 %v630_v37, %v629_v36 }
  0x4d   : > { %595 = vmatpush2.bf16.msra.mxu1 %v540_v40  ;;  %v614_v40 = vld [vmem:[%s1027_s18 + $0x18] sm:$0xff]  ;;  %864 = vmatprep.subr.bf16.mxu0 %v652_v38 }
  0x4e   : > { %596 = vmatprep.subr.bf16.mxu1 %v539_v43  ;;  %v644_v41 = vpack.c.bf16 %v614_v40, %v613_v39  ;;  %v628_v43 = vld [vmem:[%s1027_s18 + $0x88] sm:$0xff] }
  0x4f   : > { %v651_v44 = vpack.c.bf16 %v628_v43, %v627_v42 }
  0x50   : > { %865 = vmatpush3.bf16.msra.mxu0 %v644_v41 }
  0x51   : > { %597 = vmatpush2.bf16.msra.mxu1 %v538_v46  ;;  %v612_v46 = vld [vmem:[%s1027_s18 + $0x8] sm:$0xff]  ;;  %866 = vmatprep.subr.bf16.mxu0 %v651_v44 }
  0x52   : > { %v643_v47 = vpack.c.bf16 %v612_v46, %v611_v45 }
  0x54   : > { %867 = vmatpush3.bf16.msra.mxu0 %v643_v47 }
  0xd9   : > { %v447_v26 = vpop.f32.mrf.mxu0 }
  0xda   : > { %v448_v27 = vadd.f32 %v447_v26, %v402_v24 }
  0xdb   : > { %v449_v28 = vpop.f32.mrf.mxu0 }
  0xdc   : > { %v450_v29 = vadd.f32 %v449_v28, %v406_v25  ;;  %v454_v30 = vmax.f32 %v448_v27, 0.0 }
  0xdd   : > { %v451_v31 = vpop.f32.mrf.mxu0 }
  0xde   : > { %v455_v32 = vmax.f32 %v450_v29, 0.0  ;;  %v456_v35 = vpack.c.bf16 %v454_v30, %v454_v30 }
  0xdf   : > { %v452_v33 = vpop.f32.mrf.mxu0 }
  0xe0   : > { %v457_v34 = vpack.c.bf16 %v455_v32, %v455_v32 }
  0xe2   : > { %598 = vmatprep.mubr.bf16.mxu1 %v457_v34 }
  0xe3   : > { %599 = vmatmul.mubr.bf16.vlgmr.msra.gmra.mxu1 %v456_v35 }
 0x1a3   : > { %v600_v51 = vpop.f32.mrf.mxu1 }
 0x1a4   : > { %v601_v52 = vadd.f32 %v600_v51, %v559_v49 }
 0x1a5   : > { %v602_v53 = vpop.f32.mrf.mxu1 }
 0x1a6   : > { %v603_v54 = vadd.f32 %v602_v53, %v563_v50  ;;  %v607_v55 = vmax.f32 %v601_v52, 0.0 }
 0x1a7   : > { %v604_v56 = vpop.f32.mrf.mxu1 }
 0x1a8   : > { %v608_v57 = vmax.f32 %v603_v54, 0.0  ;;  %v609_v60 = vpack.c.bf16 %v607_v55, %v607_v55 }
 0x1a9   : > { %v605_v58 = vpop.f32.mrf.mxu1 }
 0x1aa   : > { %v610_v59 = vpack.c.bf16 %v608_v57, %v608_v57 }
 0x1ac   : > { %698 = vmatprep.mubr.bf16.mxu0 %v610_v59 }
 0x1ad   : > { %699 = vmatmul.mubr.bf16.vlgmr.msra.gmra.mxu0 %v609_v60 }
 0x26d   : > { %v868_v61 = vpop.f32.mrf.mxu0 }
 0x26f   : > { %v869_v63 = vpop.f32.mrf.mxu0 }
 0x270   : > { %v870_v0 = vadd.f32 %v869_v63, %v868_v61 }
 0x271   : > { %v871_v1 = vpop.f32.mrf.mxu0 }
 0x272   : > { %v701_v2 = vadd.f32 %v870_v0, %v846_v62 }
 0x273   : > { %v872_v3 = vpop.f32.mrf.mxu0 }
 0x274   : > { %707 = vst.msk [vmem:[%s381_s9] sm:$0x3] %vm706_vm1, %v701_v2 }
 0x275 PF: > { %s17_s24 = sadd.s32 1, %s889_s24  }
 0x276   : > { %p14_p4 = scmp.ge.s32.totalorder %s17_s24, 7  }
 0x278   :  { %16 = sbr.rel (!%p14_p4) target bundleno = 1 (0x1), region = 96 }

// kernel: mask_decoder_token_forward.9
= control target key start
LH: loop header
LB: loop body
LE: loop exit
PB: predicated region body
PF: predicated region fallthrough
CT: control target
= control target key end

     0   :  { %s1373_s30 = smov 0   ;;  %s1375_s10 = smov 0   ;;  %s1559_s0 = inlined_call_operand.vmem [shape: f32[2,64,32], index: 0, kind: input, shape index: {}]   ;;  %s1560_s1 = inlined_call_operand.vmem [shape: f32[1,64,32], index: 1, kind: input, shape index: {}]   ;;  %s1561_s2 = inlined_call_operand.vmem [shape: f32[2,7,32], index: 2, kind: input, shape index: {}]   ;;  %s1562_s3 = inlined_call_operand.vmem [shape: bf16[32,32], index: 3, kind: input, shape index: {}]   ;;  %s1563_s4 = inlined_call_operand.vmem [shape: bf16[32,32], index: 4, kind: input, shape index: {}]   ;;  %s1564_s5 = inlined_call_operand.vmem [shape: bf16[32,32], index: 5, kind: input, shape index: {}]   ;;  %s1565_s6 = inlined_call_operand.vmem [shape: f32[1,32], index: 6, kind: input, shape index: {}]   ;;  %s1566_s7 = inlined_call_operand.vmem [shape: f32[1,32], index: 7, kind: input, shape index: {}]   ;;  %s1567_s8 = inlined_call_operand.vmem [shape: f32[1,32], index: 8, kind: input, shape index: {}]   ;;  %s1568_s9 = inlined_call_operand.vmem [shape: bf16[2,64,32], index: 9, kind: output, shape index: {}]  }
   0x1   :  { %s1377_s11 = smov 0  }
   0x2 LB: > { %s31_s12 = sadd.s32 1, %s1314_s10  ;;  %p1111_p0 = scmp.ge.s32.totalorder %s1318_s11, 1  ;;  %s1318_s11 = sphi %s1377_s11, %s19_s11   ;;  %s1314_s10 = sphi %s1375_s10, %s1570_s10   ;;  %s1310_s30 = sphi %s1373_s30, %s1569_s30  }
   0x3   : > { %p33_p1 = scmp.ge.s32.totalorder %s31_s12, 2  ;;  %p328_p2 = scmp.lt.s32.totalorder %s1318_s11, 3 }
   0x5   : > { %s1572_s12 = smov (%p33_p1, %s31_s12), 0  ;;  %p329_p3 = pnand %p1111_p0, %p328_p2 }
   0x6   : > { %p382_p4 = scmp.lt.s32.totalorder (!%p329_p3), %s1310_s30, 1 }
   0x7   : > { %332 = sbr.rel (%p329_p3) target bundleno = 959 (0x3bf), region = 56 }
   0xc   : > { %v1258_v0 = vld [vmem:[%s1563_s4 + $0x8] sm:$0xff]   ;;  %v1320_v1 = vmov 0.0   ;;  %v1260_v3 = vld [vmem:[%s1563_s4] sm:$0xff]   ;;  %vm1321_vm0 = vmmov 0   ;;  %s1574_s30 = smov (!%p382_p4, %s1310_s30), 1  ;;  %v422_v7 = vld [vmem:[%s1560_s1 + $0x10] sm:$0xff] }
   0xd   : > { %1194 = vmatprep.subr.bf16.mxu1 %v1320_v1  ;;  %v1259_v2 = vld [vmem:[%s1562_s3 + $0x8] sm:$0xff]   ;;  %1198 = vmatprep.mubr.msk.bf16.mxu1 %vm1321_vm0, %v1320_v1  ;;  %v1261_v4 = vld [vmem:[%s1562_s3] sm:$0xff]   ;;  %s1150_s27 = sshll.u32 %s1574_s30, 6  ;;  %s1114_s28 = sshll.u32 %s1574_s30, 3  ;;  %v423_v8 = vld [vmem:[%s1560_s1 + $0x18] sm:$0xff]  ;;  %vm464_vm1 = vcmask 261120  }
   0xe   : > { %1195 = vmatpush3.bf16.msra.mxu1 %v1258_v0  ;;  %1182 = vmatprep.subr.bf16.mxu0 %v1259_v2  ;;  %v420_v5 = vld [vmem:[%s1560_s1] sm:$0xff]  ;;  %v421_v6 = vld [vmem:[%s1560_s1 + $0x8] sm:$0xff]  ;;  %s389_s20 = scalar_lea.vmem %s1559_s0, %s1150_s27  ;;  %s400_s23 = scalar_lea.vmem %s1561_s2, %s1114_s28  ;;  %v426_v24 = vld [vmem:[%s1560_s1 + $0x30] sm:$0xff]  ;;  %vm765_vm2 = vcmask 56320   ;;  %vm871_vm3 = vcmask 1042432   ;;  %vm872_vm4 = vcmask 1043456  }
   0xf   : > { %1196 = vmatprep.subr.bf16.mxu1 %v1320_v1  ;;  %1183 = vmatpush3.bf16.msra.mxu0 %v1259_v2  ;;  %v424_v9 = vld [vmem:[%s1560_s1 + $0x20] sm:$0xff]  ;;  %v425_v10 = vld [vmem:[%s1560_s1 + $0x28] sm:$0xff]  ;;  %v1444_v17 = vld [vmem:[%s389_s20 + $0x10] sm:$0xff]  ;;  %s1151_s21 = sshll.u32 %s1574_s30, 5  ;;  %vm983_vm5 = vcmask 257024  }
  0x10   : > { %1184 = vmatprep.subr.bf16.mxu0 %v1261_v4  ;;  %v436_v11 = vld [vmem:[%s400_s23] sm:$0x7f]  ;;  %v1438_v13 = vld [vmem:[%s389_s20 + $0x8] sm:$0xff]  ;;  %v1446_v18 = vld [vmem:[%s389_s20 + $0x18] sm:$0xff]  ;;  %v430_v20 = vadd.f32 %v422_v7, %v1444_v17  ;;  %s1525_s24 = scalar_lea.vmem %s1568_s9, %s1151_s21 }
  0x11   : > { %v1436_v12 = vld [vmem:[%s389_s20] sm:$0xff]  ;;  %v1440_v14 = vpack.c.bf16 %v436_v11, %v436_v11  ;;  %v429_v16 = vadd.f32 %v421_v6, %v1438_v13  ;;  %v431_v21 = vadd.f32 %v423_v8, %v1446_v18  ;;  %v1452_v22 = vld [vmem:[%s389_s20 + $0x28] sm:$0xff]  ;;  %v427_v25 = vld [vmem:[%s1560_s1 + $0x38] sm:$0xff] }
  0x12   : > { %1197 = vmatpush3.bf16.msra.mxu1 %v1260_v3  ;;  %v428_v15 = vadd.f32 %v420_v5, %v1436_v12  ;;  %v1448_v19 = vld [vmem:[%s389_s20 + $0x20] sm:$0xff]  ;;  %v433_v27 = vadd.f32 %v425_v10, %v1452_v22  ;;  %v1464_v28 = vld [vmem:[%s389_s20 + $0x30] sm:$0xff]  ;;  %v1466_v29 = vld [vmem:[%s389_s20 + $0x38] sm:$0xff] }
  0x13   : > { %1202 = vmatprep.subr.bf16.mxu1 %v1320_v1  ;;  %1185 = vmatpush3.bf16.msra.mxu0 %v1261_v4  ;;  %v432_v23 = vadd.f32 %v424_v9, %v1448_v19  ;;  %v438_v30 = vpack.c.bf16 %v431_v21, %v430_v20  ;;  %v434_v32 = vadd.f32 %v426_v24, %v1464_v28  ;;  %v1124_v35 = vld [vmem:[%s1566_s7] ss:$0 sm:$0xff]  ;;  %v1262_v0 = vld [vmem:[%s1564_s5 + $0x8] sm:$0xff]  }
  0x14   : > { %v437_v26 = vpack.c.bf16 %v429_v16, %v428_v15  ;;  %v435_v33 = vadd.f32 %v427_v25, %v1466_v29  ;;  %v1117_v46 = vld [vmem:[%s1565_s6] ss:$0 sm:$0xff] }
  0x15   : > { %1199 = vmatmul.mubr.msk.bf16.vlgmr.msra.gmra.mxu1 %vm464_vm1, %v1440_v14  ;;  %v439_v31 = vpack.c.bf16 %v433_v27, %v432_v23  ;;  %v1263_v2 = vld [vmem:[%s1564_s5] sm:$0xff]  }
  0x16   : > { %1206 = vmatprep.mubr.msk.bf16.mxu1 %vm1321_vm0, %v1320_v1  ;;  %1186 = vmatprep.mubr.msk.bf16.mxu0 %vm464_vm1, %v437_v26  ;;  %v440_v34 = vpack.c.bf16 %v435_v33, %v434_v32 }
  0x17   : > { %1187 = vmatmul.mubr.msk.bf16.vlgmr.msra.gmra.mxu0 %vm464_vm1, %v438_v30  ;;  %1203 = vmatpush3.bf16.msra.mxu1 %v1262_v0 }
  0x18   : > { %1190 = vmatprep.mubr.msk.bf16.mxu0 %vm464_vm1, %v439_v31  ;;  %1204 = vmatprep.subr.bf16.mxu1 %v1320_v1 }
  0x1b   : > { %1205 = vmatpush3.bf16.msra.mxu1 %v1263_v2 }
  0x1e   : > { %1207 = vmatmul.mubr.msk.bf16.vlgmr.msra.gmra.mxu1 %vm464_vm1, %v1440_v14 }
  0x1f   : > { %1191 = vmatmul.mubr.msk.bf16.gmra.mxu0 %vm464_vm1, %v440_v34 }
  0xd5   : > { %v603_v36 = vpop.f32.mrf.mxu1 }
  0xd6   : > { %v604_v37 = vadd.f32 %v1124_v35, %v603_v36 }
  0xd7   : > { %v1200_v38 = vpop.f32.mrf.mxu1  ;;  %v1188_v40 = vpop.f32.mrf.mxu0 }
  0xd8   : > { %v676_v39 = vpack.c.bf16 %v604_v37, %v604_v37  ;;  %v520_v51 = vadd.f32 %v1188_v40, %v1117_v46 }
  0xd9   : > { %v606_v41 = vpop.f32.mrf.mxu1  ;;  %v511_v43 = vpop.f32.mrf.mxu0 }
  0xda   : > { %v690_v42 = vsel %vm464_vm1, %v676_v39, 0  ;;  %1230 = vmatprep.subr.msk.bf16.mxu0 %vm464_vm1, %v676_v39  ;;  %v512_v49 = vadd.f32 %v1117_v46, %v511_v43 }
  0xdb   : > { %v1201_v44 = vpop.f32.mrf.mxu1  ;;  %1211 = vmatpush3.bf16.xpose.msra.mxu0 %v690_v42  ;;  %v1189_v45 = vpop.f32.mrf.mxu0 }
  0xdc   : > { %v523_v47 = vadd.f32 %v1189_v45, %v1117_v46 }
  0xdd   : > { %v514_v48 = vpop.f32.mrf.mxu0 }
  0xde   : > { %v515_v50 = vadd.f32 %v1117_v46, %v514_v48  ;;  %v673_v54 = vpack.c.bf16 %v523_v47, %v520_v51 }
  0xdf   : > { %v1192_v52 = vpop.f32.mrf.mxu0 }
  0xe0   : > { %v672_v53 = vpack.c.bf16 %v515_v50, %v512_v49  ;;  %v536_v61 = vadd.f32 %v1192_v52, %v1117_v46 }
  0xe1   : > { %v527_v55 = vpop.f32.mrf.mxu0 }
  0xe2   : > { %1212 = vmatprep.mubr.msk.bf16.mxu0 %vm464_vm1, %v672_v53  ;;  %v528_v59 = vadd.f32 %v1117_v46, %v527_v55 }
  0xe3   : > { %v1193_v56 = vpop.f32.mrf.mxu0  ;;  %1213 = vmatmul.mubr.msk.bf16.vlgmr.msra.gmra.mxu0 %vm464_vm1, %v673_v54 }
  0xe4   : > { %v539_v57 = vadd.f32 %v1193_v56, %v1117_v46 }
  0xe5   : > { %v530_v58 = vpop.f32.mrf.mxu0 }
  0xe6   : > { %v531_v60 = vadd.f32 %v1117_v46, %v530_v58  ;;  %v675_v63 = vpack.c.bf16 %v539_v57, %v536_v61 }
  0xe8   : > { %v674_v62 = vpack.c.bf16 %v531_v60, %v528_v59 }
  0xea   : > { %1216 = vmatprep.mubr.msk.bf16.mxu0 %vm464_vm1, %v674_v62 }
  0xeb   : > { %1217 = vmatmul.mubr.msk.bf16.gmra.mxu0 %vm464_vm1, %v675_v63 }
 0x1a3   : > { %v1214_v3 = vpop.f32.mrf.mxu0 }
 0x1a4   : > { %v759_v4 = vmul.f32 0.17677669, %v1214_v3 }
 0x1a5   : > { %v726_v5 = vpop.f32.mrf.mxu0 }
 0x1a6   : > { %v757_v6 = vmul.f32 0.17677669, %v726_v5  ;;  %v772_v7 = vsel %vm765_vm2, %v759_v4, -inf }
 0x1a7   : > { %773 = vmax.xlane.f32.xlu1 %v772_v7  ;;  %v1215_v8 = vpop.f32.mrf.mxu0 }
 0x1a8   : > { %v760_v9 = vmul.f32 0.17677669, %v1215_v8  ;;  %v766_v10 = vsel %vm765_vm2, %v757_v6, -inf }
 0x1a9   : > { %767 = vmax.xlane.f32.xlu0 %v766_v10  ;;  %v729_v11 = vpop.f32.mrf.mxu0 }
 0x1aa   : > { %v758_v15 = vmul.f32 0.17677669, %v729_v11  ;;  %v775_v1 = vsel %vm765_vm2, %v760_v9, -inf  ;;  %v666_v11 = vpop.f32.mrf.mxu1 }
 0x1ab   : > { %776 = vmax.xlane.f32.xlu1 %v775_v1  ;;  %v1218_v16 = vpop.f32.mrf.mxu0  ;;  %v1128_v1 = vld [vmem:[%s1567_s8] ss:$0 sm:$0xff] }
 0x1ac   : > { %v769_v14 = vsel %vm765_vm2, %v758_v15, -inf  ;;  %v763_v24 = vmul.f32 0.17677669, %v1218_v16  ;;  %v667_v16 = vadd.f32 %v1128_v1, %v666_v11 }
 0x1ad   : > { %770 = vmax.xlane.f32.xlu0 %v769_v14  ;;  %v742_v20 = vpop.f32.mrf.mxu0  ;;  %v1322_v14 = vmov 65535  }
 0x1ae   : > { %v761_v21 = vmul.f32 0.17677669, %v742_v20  ;;  %v784_v31 = vsel %vm765_vm2, %v763_v24, -inf  ;;  %v873_v20 = vsel %vm871_vm3, 4294967295, %v1322_v14 }
 0x1af   : > { %v1219_v23 = vpop.f32.mrf.mxu0 }
 0x1b0   : > { %v778_v25 = vsel %vm765_vm2, %v761_v21, -inf  ;;  %v764_v30 = vmul.f32 0.17677669, %v1219_v23  ;;  %v874_v23 = vsel %vm872_vm4, %v873_v20, 0 }
 0x1b1   : > { %779 = vmax.xlane.f32.xlu0 %v778_v25  ;;  %v745_v26 = vpop.f32.mrf.mxu0 }
 0x1b2   : > { %v762_v27 = vmul.f32 0.17677669, %v745_v26  ;;  %v787_v33 = vsel %vm765_vm2, %v764_v30, -inf }
 0x1b4   : > { %v781_v32 = vsel %vm765_vm2, %v762_v27, -inf }
 0x1b5   : > { %785 = vmax.xlane.f32.xlu0 %v784_v31  ;;  %782 = vmax.xlane.f32.xlu1 %v781_v32 }
 0x1b9   : > { %788 = vmax.xlane.f32.xlu1 %v787_v33 }
 0x230   : > { %v774_v34 = vpop.xlane.xlu1 %773 }
 0x231   : > { %v792_v35 = vsub.f32 %v759_v4, %v774_v34 }
 0x232   : > { %v768_v36 = vpop.xlane.xlu0 %767 }
 0x233   : > { %v790_v37 = vsub.f32 %v757_v6, %v768_v36  ;;  %v802_v39 = vmul.f32 1.442695, %v792_v35 }
 0x234   : > { %v777_v38 = vpop.xlane.xlu1 %776 }
 0x235   : > { %v798_v40 = vmul.f32 1.442695, %v790_v37  ;;  %v793_v41 = vsub.f32 %v760_v9, %v777_v38 }
 0x236   : > { %v771_v42 = vpop.xlane.xlu0 %770 }
 0x237   : > { %1264 = vpow2.f32 %v798_v40  ;;  %v791_v43 = vsub.f32 %v758_v15, %v771_v42  ;;  %v804_v44 = vmul.f32 1.442695, %v793_v41  ;;  %v1208_v15 = vpop.f32.mrf.mxu1 }
 0x238   : > { %1266 = vpow2.f32 %v802_v39 }
 0x239   : > { %v800_v45 = vmul.f32 1.442695, %v791_v43 }
 0x23a   : > { %v780_v46 = vpop.xlane.xlu0 %779 }
 0x23b   : > { %1268 = vpow2.f32 %v800_v45  ;;  %v794_v47 = vsub.f32 %v761_v21, %v780_v46  ;;  %v669_v21 = vpop.f32.mrf.mxu1 }
 0x23c   : > { %1270 = vpow2.f32 %v804_v44 }
 0x23d   : > { %v806_v48 = vmul.f32 1.442695, %v794_v47  ;;  %v1209_v25 = vpop.f32.mrf.mxu1 }
 0x23e   : > { %v786_v49 = vpop.xlane.xlu0 %785  ;;  %v783_v50 = vpop.xlane.xlu1 %782 }
 0x23f   : > { %1272 = vpow2.f32 %v806_v48  ;;  %v796_v51 = vsub.f32 %v763_v24, %v786_v49  ;;  %v795_v52 = vsub.f32 %v762_v27, %v783_v50  ;;  %v858_v24 = vpack.c.bf16 %v667_v16, %v667_v16 }
 0x241   : > { %v810_v53 = vmul.f32 1.442695, %v796_v51  ;;  %v808_v54 = vmul.f32 1.442695, %v795_v52  ;;  %v876_v26 = vand.u32 %v874_v23, %v858_v24 }
 0x242   : > { %v789_v55 = vpop.xlane.xlu1 %788 }
 0x243   : > { %1274 = vpow2.f32 %v810_v53  ;;  %v797_v56 = vsub.f32 %v764_v30, %v789_v55  ;;  %1220 = vmatprep.subr.bf16.mxu1 %v876_v26 }
 0x244   : > { %v1265_v57 = vpop.eup %1264  ;;  %1276 = vpow2.f32 %v808_v54  ;;  %1221 = vmatpush3.bf16.msra.mxu1 %v876_v26 }
 0x245   : > { %v812_v58 = vmul.f32 1.442695, %v797_v56  ;;  %v814_v59 = vsel %vm765_vm2, %v1265_v57, 0.0  ;;  %v1267_v60 = vpop.eup %1266 }
 0x246   : > { %815 = vadd.xlane.f32.xlu0 %v814_v59  ;;  %v820_v62 = vsel %vm765_vm2, %v1267_v60, 0.0 }
 0x247   : > { %1278 = vpow2.f32 %v812_v58 }
 0x248   : > { %v1269_v61 = vpop.eup %1268 }
 0x249   : > { %v817_v63 = vsel %vm765_vm2, %v1269_v61, 0.0  ;;  %v1271_v0 = vpop.eup %1270 }
 0x24a   : > { %821 = vadd.xlane.f32.xlu0 %v820_v62  ;;  %818 = vadd.xlane.f32.xlu1 %v817_v63  ;;  %v823_v4 = vsel %vm765_vm2, %v1271_v0, 0.0 }
 0x24c   : > { %v1273_v2 = vpop.eup %1272 }
 0x24d   : > { %v826_v3 = vsel %vm765_vm2, %v1273_v2, 0.0 }
 0x24e   : > { %827 = vadd.xlane.f32.xlu0 %v826_v3  ;;  %824 = vadd.xlane.f32.xlu1 %v823_v4 }
 0x250   : > { %v1275_v5 = vpop.eup %1274 }
 0x251   : > { %v1277_v6 = vpop.eup %1276  ;;  %v832_v7 = vsel %vm765_vm2, %v1275_v5, 0.0 }
 0x252   : > { %833 = vadd.xlane.f32.xlu0 %v832_v7  ;;  %v829_v8 = vsel %vm765_vm2, %v1277_v6, 0.0 }
 0x253   : > { %830 = vadd.xlane.f32.xlu1 %v829_v8 }
 0x254   : > { %v1279_v9 = vpop.eup %1278 }
 0x255   : > { %v835_v10 = vsel %vm765_vm2, %v1279_v9, 0.0 }
 0x257   : > { %836 = vadd.xlane.f32.xlu1 %v835_v10 }
 0x2cf   : > { %v816_v27 = vpop.xlane.xlu0 %815 }
 0x2d0   : > { %1280 = vrcp.f32 %v816_v27 }
 0x2d3   : > { %v822_v30 = vpop.xlane.xlu0 %821  ;;  %v819_v31 = vpop.xlane.xlu1 %818 }
 0x2d4   : > { %1282 = vrcp.f32 %v819_v31 }
 0x2d5   : > { %1284 = vrcp.f32 %v822_v30 }
 0x2d7   : > { %v828_v32 = vpop.xlane.xlu0 %827  ;;  %v825_v33 = vpop.xlane.xlu1 %824 }
 0x2d8   : > { %1286 = vrcp.f32 %v825_v33 }
 0x2d9   : > { %1288 = vrcp.f32 %v828_v32 }
 0x2db   : > { %v834_v34 = vpop.xlane.xlu0 %833 }
 0x2dc   : > { %v831_v35 = vpop.xlane.xlu1 %830 }
 0x2dd   : > { %1290 = vrcp.f32 %v831_v35  ;;  %v1281_v36 = vpop.eup %1280 }
 0x2de   : > { %1292 = vrcp.f32 %v834_v34  ;;  %v839_v39 = vmul.f32 %v1281_v36, %v1265_v57 }
 0x2e0   : > { %v837_v37 = vpop.xlane.xlu1 %836 }
 0x2e1   : > { %1294 = vrcp.f32 %v837_v37  ;;  %v1283_v38 = vpop.eup %1282 }
 0x2e2   : > { %v841_v40 = vmul.f32 %v1283_v38, %v1269_v61  ;;  %v1285_v41 = vpop.eup %1284 }
 0x2e3   : > { %v843_v44 = vmul.f32 %v1285_v41, %v1267_v60 }
 0x2e4   : > { %v854_v42 = vpack.c.bf16 %v841_v40, %v839_v39 }
 0x2e5   : > { %v1287_v43 = vpop.eup %1286 }
 0x2e6   : > { %1222 = vmatprep.mubr.msk.bf16.mxu1 %vm765_vm2, %v854_v42  ;;  %v845_v45 = vmul.f32 %v1287_v43, %v1271_v0  ;;  %v1289_v46 = vpop.eup %1288 }
 0x2e7   : > { %v847_v49 = vmul.f32 %v1289_v46, %v1273_v2 }
 0x2e8   : > { %v855_v47 = vpack.c.bf16 %v845_v45, %v843_v44 }
 0x2ea   : > { %v1291_v48 = vpop.eup %1290  ;;  %1223 = vmatmul.mubr.msk.bf16.vlgmr.msra.gmra.mxu1 %vm765_vm2, %v855_v47 }
 0x2eb   : > { %v849_v50 = vmul.f32 %v1291_v48, %v1277_v6  ;;  %v1293_v51 = vpop.eup %1292 }
 0x2ec   : > { %v851_v54 = vmul.f32 %v1293_v51, %v1275_v5 }
 0x2ed   : > { %v856_v52 = vpack.c.bf16 %v849_v50, %v847_v49 }
 0x2ee   : > { %v1295_v53 = vpop.eup %1294 }
 0x2ef   : > { %1226 = vmatprep.mubr.msk.bf16.mxu1 %vm765_vm2, %v856_v52  ;;  %v853_v55 = vmul.f32 %v1295_v53, %v1279_v9 }
 0x2f1   : > { %v857_v56 = vpack.c.bf16 %v853_v55, %v851_v54 }
 0x2f3   : > { %1227 = vmatmul.mubr.msk.bf16.gmra.mxu1 %vm765_vm2, %v857_v56 }
 0x3aa   : > { %v1224_v57 = vpop.f32.mrf.mxu1 }
 0x3ab   : > { %v945_v58 = vadd.f32 %v1224_v57, %v1444_v17 }
 0x3ac   : > { %v912_v59 = vpop.f32.mrf.mxu1 }
 0x3ad   : > { %v1154_v60 = vpack.c.bf16 %v945_v58, %v945_v58  ;;  %v943_v61 = vadd.f32 %v912_v59, %v1436_v12 }
 0x3ae   : > { %v1225_v62 = vpop.f32.mrf.mxu1 }
 0x3af   : > { %986 = vst.msk [vmem:[%s1525_s24 + $0x8] sm:$0xf] %vm983_vm5, %v1154_v60  ;;  %v1152_v63 = vpack.c.bf16 %v943_v61, %v943_v61  ;;  %v946_v17 = vadd.f32 %v1225_v62, %v1446_v18 }
 0x3b0   : > { %v915_v0 = vpop.f32.mrf.mxu1 }
 0x3b1   : > { %984 = vst.msk [vmem:[%s1525_s24] sm:$0xf] %vm983_vm5, %v1152_v63  ;;  %v1155_v2 = vpack.c.bf16 %v946_v17, %v946_v17  ;;  %v944_v3 = vadd.f32 %v915_v0, %v1438_v13 }
 0x3b3   : > { %v1228_v4 = vpop.f32.mrf.mxu1  ;;  %987 = vst.msk [vmem:[%s1525_s24 + $0xc] sm:$0xf] %vm983_vm5, %v1155_v2  ;;  %v1153_v5 = vpack.c.bf16 %v944_v3, %v944_v3 }
 0x3b4   : > { %v949_v12 = vadd.f32 %v1228_v4, %v1464_v28 }
 0x3b5   : > { %v928_v6 = vpop.f32.mrf.mxu1  ;;  %985 = vst.msk [vmem:[%s1525_s24 + $0x4] sm:$0xf] %vm983_vm5, %v1153_v5 }
 0x3b6   : > { %v1158_v7 = vpack.c.bf16 %v949_v12, %v949_v12  ;;  %v947_v18 = vadd.f32 %v928_v6, %v1448_v19 }
 0x3b7   : > { %v1229_v8 = vpop.f32.mrf.mxu1 }
 0x3b8   : > { %990 = vst.msk [vmem:[%s1525_s24 + $0x18] sm:$0xf] %vm983_vm5, %v1158_v7  ;;  %v1156_v9 = vpack.c.bf16 %v947_v18, %v947_v18  ;;  %v950_v13 = vadd.f32 %v1229_v8, %v1466_v29 }
 0x3b9   : > { %v931_v10 = vpop.f32.mrf.mxu1 }
 0x3ba   : > { %988 = vst.msk [vmem:[%s1525_s24 + $0x10] sm:$0xf] %vm983_vm5, %v1156_v9  ;;  %v1159_v11 = vpack.c.bf16 %v950_v13, %v950_v13  ;;  %v948_v15 = vadd.f32 %v931_v10, %v1452_v22 }
 0x3bc   : > { %991 = vst.msk [vmem:[%s1525_s24 + $0x1c] sm:$0xf] %vm983_vm5, %v1159_v11  ;;  %v1157_v28 = vpack.c.bf16 %v948_v15, %v948_v15 }
 0x3be   : > { %989 = vst.msk [vmem:[%s1525_s24 + $0x14] sm:$0xf] %vm983_vm5, %v1157_v28 }
 0x3bf PF: > { %s19_s11 = sadd.s32 1, %s1318_s11   ;;  %s1569_s30 = smov %s1314_s10 }
 0x3c0   : > { %p16_p5 = scmp.ge.s32.totalorder %s19_s11, 4   ;;  %s1570_s10 = smov %s1572_s12 }
 0x3c2   :  { %18 = sbr.rel (!%p16_p5) target bundleno = 2 (0x2), region = 92 }

// kernel: tile.18
= control target key start
LH: loop header
LB: loop body
LE: loop exit
PB: predicated region body
PF: predicated region fallthrough
CT: control target
= control target key end

     0   :  { %s22_s0 = inlined_call_operand.vmem [shape: f32[4], index: 0, kind: input, shape index: {}]   ;;  %s23_s1 = inlined_call_operand.vmem [shape: f32[4,4], index: 1, kind: output, shape index: {}]  }
   0x1   :  { %v4_v0 = vld [vmem:[%s22_s0] ss:$0 sm:$0xff] }
   0x2   :  { %5 = vst [vmem:[%s23_s1] sm:$0xf] %v4_v0 }

// kernel: tile.19
= control target key start
LH: loop header
LB: loop body
LE: loop exit
PB: predicated region body
PF: predicated region fallthrough
CT: control target
= control target key end

     0   :  { %vm8_vm0 = vcmask 31744   ;;  %s40_s8 = smov 4   ;;  %s41_s9 = smov 8   ;;  %vm14_vm1 = vcmask 130144   ;;  %vm20_vm2 = vcmask 97344   ;;  %vm26_vm3 = vcmask 64544   ;;  %s58_s0 = inlined_call_operand.vmem [shape: f32[4,4], index: 0, kind: input, shape index: {}]   ;;  %s59_s1 = inlined_call_operand.vmem [shape: f32[1,16], index: 1, kind: output, shape index: {}]  }
   0x1   :  { %v5_v0 = vld [vmem:[%s58_s0] sm:$0xf]  ;;  %s39_s0 = smov 12  }
   0x2   :  { %6 = vst [vmem:[#allocation1] sm:$0xf] %v5_v0 }
   0x9   :  { %v11_v1 = vld [vmem:[#allocation1 + $0x3] sm:$0x1]   ;;  %v23_v2 = vld [vmem:[#allocation1 + $0x1] sm:$0x1]   ;;  %v7_v3 = vld [vmem:[#allocation1] sm:$0x1]  }
   0xa   :  { %12 = vrot.lane.b32.xlu0 %v11_v1, %s39_s0  ;;  %24 = vrot.lane.b32.xlu1 %v23_v2, %s40_s8  ;;  %v17_v4 = vld [vmem:[#allocation1 + $0x2] sm:$0x1]   ;;  %9 = vst.msk [vmem:[#allocation0] sm:$0x1] %vm8_vm0, %v7_v3  }
   0xe   :  { %18 = vrot.lane.b32.xlu0 %v17_v4, %s41_s9 }
  0x7c   :  { %v13_v5 = vpop.permute.xlu0 %12   ;;  %v25_v6 = vpop.permute.xlu1 %24  }
  0x7d   :  { %15 = vst.msk [vmem:[#allocation0] sm:$0x1] %vm14_vm1, %v13_v5  }
  0x80   :  { %v19_v7 = vpop.permute.xlu0 %18  }
  0x81   :  { %21 = vst.msk [vmem:[#allocation0] sm:$0x1] %vm20_vm2, %v19_v7  }
  0x82   :  { %27 = vst.msk [vmem:[#allocation0] sm:$0x1] %vm26_vm3, %v25_v6  }
  0x89   :  { %v32_v8 = vld [vmem:[#allocation0] sm:$0x1] }
  0x8a   :  { %35 = vst [vmem:[%s59_s1] sm:$0x1] %v32_v8 }

// kernel: mask_decoder_token_forward.13
= control target key start
LH: loop header
LB: loop body
LE: loop exit
PB: predicated region body
PF: predicated region fallthrough
CT: control target
= control target key end

     0   :  { %s1443_s9 = smov 0   ;;  %s1445_s10 = smov 0   ;;  %s1632_s0 = inlined_call_operand.vmem [shape: f32[2,4,4], index: 0, kind: input, shape index: {}]   ;;  %s1633_s1 = inlined_call_operand.vmem [shape: bf16[2,1024,4], index: 1, kind: input, shape index: {}]   ;;  %s1634_s2 = inlined_call_operand.vmem [shape: f32[2,4,1024], index: 2, kind: output, shape index: {}]  }
   0x1   :  { %s1447_s11 = smov 0  }
   0x2 LB: > { %s24_s12 = sadd.s32 1, %s1422_s10  ;;  %p1134_p0 = scmp.ge.s32.totalorder %s1426_s11, 1  ;;  %s1426_s11 = sphi %s1447_s11, %s12_s11   ;;  %s1422_s10 = sphi %s1445_s10, %s1636_s10   ;;  %s1418_s9 = sphi %s1443_s9, %s1635_s9  }
   0x3   : > { %p26_p1 = scmp.ge.s32.totalorder %s24_s12, 2  ;;  %p142_p2 = scmp.lt.s32.totalorder %s1426_s11, 3 }
   0x5   : > { %s1638_s12 = smov (%p26_p1, %s24_s12), 0  ;;  %p143_p3 = pnand %p1134_p0, %p142_p2 }
   0x6   : > { %p176_p4 = scmp.lt.s32.totalorder (!%p143_p3), %s1418_s9, 1 }
   0x7   : > { %146 = sbr.rel (%p143_p3) target bundleno = 346 (0x15a), region = 28 }
   0xc   : > { %s1640_s9 = smov (!%p176_p4, %s1418_s9), 1  ;;  %vm651_vm0 = vcmask 31744  }
   0xd   : > { %s1210_s13 = sshll.u32 %s1640_s9, 9  ;;  %s1135_s17 = sshll.u32 %s1640_s9, 2 }
   0xe   : > { %s1467_s16 = scalar_lea.vmem %s1633_s1, %s1210_s13  ;;  %s179_s20 = scalar_lea.vmem %s1632_s0, %s1135_s17 }
   0xf   : > { %v1340_v0 = vld [vmem:[%s1467_s16 + $0x78] sm:$0xff]   ;;  %v1344_v5 = vld [vmem:[%s1467_s16 + $0x70] sm:$0xff]   ;;  %v1348_v11 = vld [vmem:[%s1467_s16 + $0x68] sm:$0xff]   ;;  %s1211_s21 = sshll.u32 %s1640_s9, 5 }
  0x10   : > { %v1341_v1 = vld [vmem:[%s1467_s16 + $0xf8] sm:$0xff]   ;;  %1284 = vmatprep.subr.msk.bf16.mxu0 %vm651_vm0, %v1340_v0  ;;  %v1345_v7 = vld [vmem:[%s1467_s16 + $0xf0] sm:$0xff]   ;;  %v1349_v13 = vld [vmem:[%s1467_s16 + $0xe8] sm:$0xff]   ;;  %s198_s24 = scalar_lea.vmem %s1634_s2, %s1211_s21 }
  0x11   : > { %v1342_v2 = vld [vmem:[%s1467_s16 + $0x38] sm:$0xff]   ;;  %1292 = vmatprep.subr.msk.bf16.mxu1 %vm651_vm0, %v1341_v1  ;;  %v1346_v8 = vld [vmem:[%s1467_s16 + $0x30] sm:$0xff]   ;;  %v1350_v14 = vld [vmem:[%s1467_s16 + $0x28] sm:$0xff]  }
  0x12   : > { %v1343_v3 = vld [vmem:[%s1467_s16 + $0xb8] sm:$0xff]   ;;  %v677_v4 = vsel %vm651_vm0, %v1342_v2, 0  ;;  %v1347_v9 = vld [vmem:[%s1467_s16 + $0xb0] sm:$0xff]   ;;  %v674_v10 = vsel %vm651_vm0, %v1346_v8, 0  ;;  %v1351_v15 = vld [vmem:[%s1467_s16 + $0xa8] sm:$0xff]   ;;  %v671_v16 = vsel %vm651_vm0, %v1350_v14, 0 }
  0x13   : > { %1213 = vmatpush3.bf16.xpose.msra.mxu0 %v677_v4  ;;  %v725_v6 = vsel %vm651_vm0, %v1343_v3, 0  ;;  %v722_v12 = vsel %vm651_vm0, %v1347_v9, 0  ;;  %v1352_v17 = vld [vmem:[%s1467_s16 + $0x60] sm:$0xff]   ;;  %v719_v18 = vsel %vm651_vm0, %v1351_v15, 0  ;;  %v1356_v23 = vld [vmem:[%s1467_s16 + $0x58] sm:$0xff]   ;;  %v1360_v30 = vld [vmem:[%s1467_s16 + $0x50] sm:$0xff]  }
  0x14   : > { %1231 = vmatpush3.bf16.xpose.msra.mxu1 %v725_v6  ;;  %1285 = vmatprep.subr.msk.bf16.mxu0 %vm651_vm0, %v1344_v5  ;;  %v1353_v19 = vld [vmem:[%s1467_s16 + $0xe0] sm:$0xff]   ;;  %v1357_v25 = vld [vmem:[%s1467_s16 + $0xd8] sm:$0xff]   ;;  %v1361_v33 = vld [vmem:[%s1467_s16 + $0xd0] sm:$0xff]  }
  0x15   : > { %1293 = vmatprep.subr.msk.bf16.mxu1 %vm651_vm0, %v1345_v7  ;;  %v1354_v20 = vld [vmem:[%s1467_s16 + $0x20] sm:$0xff]   ;;  %v1358_v26 = vld [vmem:[%s1467_s16 + $0x18] sm:$0xff]   ;;  %v1362_v34 = vld [vmem:[%s1467_s16 + $0x10] sm:$0xff]  }
  0x16   : > { %v1355_v21 = vld [vmem:[%s1467_s16 + $0xa0] sm:$0xff]   ;;  %v668_v22 = vsel %vm651_vm0, %v1354_v20, 0  ;;  %v1359_v27 = vld [vmem:[%s1467_s16 + $0x98] sm:$0xff]   ;;  %v665_v29 = vsel %vm651_vm0, %v1358_v26, 0  ;;  %v1363_v35 = vld [vmem:[%s1467_s16 + $0x90] sm:$0xff]   ;;  %v662_v36 = vsel %vm651_vm0, %v1362_v34, 0 }
  0x17   : > { %v716_v24 = vsel %vm651_vm0, %v1355_v21, 0  ;;  %v201_v28 = vld [vmem:[%s179_s20] sm:$0xf]  ;;  %v713_v32 = vsel %vm651_vm0, %v1359_v27, 0  ;;  %v1364_v37 = vld [vmem:[%s1467_s16 + $0x48] sm:$0xff]   ;;  %v710_v38 = vsel %vm651_vm0, %v1363_v35, 0 }
  0x18   : > { %v1513_v31 = vpack.c.bf16 %v201_v28, %v201_v28  ;;  %v1365_v39 = vld [vmem:[%s1467_s16 + $0xc8] sm:$0xff]   ;;  %v1368_v43 = vld [vmem:[%s1467_s16 + $0x40] sm:$0xff]   ;;  %v1372_v49 = vld [vmem:[%s1467_s16 + $0x178] sm:$0xff]  }
  0x19   : > { %v1366_v40 = vld [vmem:[%s1467_s16 + $0x8] sm:$0xff]   ;;  %v1369_v45 = vld [vmem:[%s1467_s16 + $0xc0] sm:$0xff]   ;;  %v1373_v51 = vld [vmem:[%s1467_s16 + $0x1f8] sm:$0xff]  }
  0x1a   : > { %1228 = vmatprep.mubr.msk.bf16.mxu0 %vm651_vm0, %v1513_v31  ;;  %1246 = vmatprep.mubr.msk.bf16.mxu1 %vm651_vm0, %v1513_v31  ;;  %v1367_v41 = vld [vmem:[%s1467_s16 + $0x88] sm:$0xff]   ;;  %v659_v42 = vsel %vm651_vm0, %v1366_v40, 0  ;;  %v1370_v46 = vld [vmem:[%s1467_s16] sm:$0xff]   ;;  %v1374_v52 = vld [vmem:[%s1467_s16 + $0x138] sm:$0xff]  }
  0x1b   : > { %1215 = vmatpush3.bf16.xpose.msra.mxu0 %v674_v10  ;;  %v707_v44 = vsel %vm651_vm0, %v1367_v41, 0  ;;  %v1371_v47 = vld [vmem:[%s1467_s16 + $0x80] sm:$0xff]   ;;  %v656_v48 = vsel %vm651_vm0, %v1370_v46, 0  ;;  %v1375_v53 = vld [vmem:[%s1467_s16 + $0x1b8] sm:$0xff]   ;;  %v773_v54 = vsel %vm651_vm0, %v1374_v52, 0  ;;  %v1376_v55 = vld [vmem:[%s1467_s16 + $0x170] sm:$0xff]  }
  0x1c   : > { %1233 = vmatpush3.bf16.xpose.msra.mxu1 %v722_v12  ;;  %1286 = vmatprep.subr.msk.bf16.mxu0 %vm651_vm0, %v1348_v11  ;;  %v704_v50 = vsel %vm651_vm0, %v1371_v47, 0  ;;  %v821_v56 = vsel %vm651_vm0, %v1375_v53, 0  ;;  %v1377_v57 = vld [vmem:[%s1467_s16 + $0x1f0] sm:$0xff]   ;;  %v1380_v61 = vld [vmem:[%s1467_s16 + $0x168] sm:$0xff]   ;;  %v1384_v3 = vld [vmem:[%s1467_s16 + $0x160] sm:$0xff]  }
  0x1d   : > { %1294 = vmatprep.subr.msk.bf16.mxu1 %vm651_vm0, %v1349_v13  ;;  %v1378_v58 = vld [vmem:[%s1467_s16 + $0x130] sm:$0xff]   ;;  %v1381_v63 = vld [vmem:[%s1467_s16 + $0x1e8] sm:$0xff]   ;;  %v1385_v5 = vld [vmem:[%s1467_s16 + $0x1e0] sm:$0xff]  }
  0x1e   : > { %v1379_v59 = vld [vmem:[%s1467_s16 + $0x1b0] sm:$0xff]   ;;  %v770_v60 = vsel %vm651_vm0, %v1378_v58, 0  ;;  %v1382_v0 = vld [vmem:[%s1467_s16 + $0x128] sm:$0xff]   ;;  %v1386_v6 = vld [vmem:[%s1467_s16 + $0x120] sm:$0xff]  }
  0x1f   : > { %v818_v62 = vsel %vm651_vm0, %v1379_v59, 0  ;;  %v1383_v1 = vld [vmem:[%s1467_s16 + $0x1a8] sm:$0xff]   ;;  %v767_v2 = vsel %vm651_vm0, %v1382_v0, 0  ;;  %v1387_v7 = vld [vmem:[%s1467_s16 + $0x1a0] sm:$0xff]   ;;  %v764_v8 = vsel %vm651_vm0, %v1386_v6, 0  ;;  %v1388_v9 = vld [vmem:[%s1467_s16 + $0x158] sm:$0xff]  }
  0x20   : > { %v815_v4 = vsel %vm651_vm0, %v1383_v1, 0  ;;  %v812_v10 = vsel %vm651_vm0, %v1387_v7, 0  ;;  %v1389_v11 = vld [vmem:[%s1467_s16 + $0x1d8] sm:$0xff]   ;;  %v1392_v15 = vld [vmem:[%s1467_s16 + $0x150] sm:$0xff]   ;;  %v1396_v21 = vld [vmem:[%s1467_s16 + $0x148] sm:$0xff]  }
  0x21   : > { %v1390_v12 = vld [vmem:[%s1467_s16 + $0x118] sm:$0xff]   ;;  %v1400_v27 = vld [vmem:[%s1467_s16 + $0x140] sm:$0xff]  }
  0x22   : > { %v1391_v13 = vld [vmem:[%s1467_s16 + $0x198] sm:$0xff]   ;;  %v761_v14 = vsel %vm651_vm0, %v1390_v12, 0 }
  0x23   : > { %1217 = vmatpush3.bf16.xpose.msra.mxu0 %v671_v16  ;;  %v809_v16 = vsel %vm651_vm0, %v1391_v13, 0 }
  0x24   : > { %1235 = vmatpush3.bf16.xpose.msra.mxu1 %v719_v18  ;;  %1287 = vmatprep.subr.msk.bf16.mxu0 %vm651_vm0, %v1352_v17  ;;  %v1393_v17 = vld [vmem:[%s1467_s16 + $0x1d0] sm:$0xff]  }
  0x25   : > { %1295 = vmatprep.subr.msk.bf16.mxu1 %vm651_vm0, %v1353_v19  ;;  %v1394_v18 = vld [vmem:[%s1467_s16 + $0x110] sm:$0xff]  }
  0x26   : > { %v1395_v19 = vld [vmem:[%s1467_s16 + $0x190] sm:$0xff]   ;;  %v758_v20 = vsel %vm651_vm0, %v1394_v18, 0 }
  0x2b   : > { %1219 = vmatpush3.bf16.xpose.msra.mxu0 %v668_v22  ;;  %v806_v22 = vsel %vm651_vm0, %v1395_v19, 0 }
  0x2c   : > { %1237 = vmatpush3.bf16.xpose.msra.mxu1 %v716_v24  ;;  %1288 = vmatprep.subr.msk.bf16.mxu0 %vm651_vm0, %v1356_v23  ;;  %v1397_v23 = vld [vmem:[%s1467_s16 + $0x1c8] sm:$0xff]  }
  0x2d   : > { %1296 = vmatprep.subr.msk.bf16.mxu1 %vm651_vm0, %v1357_v25  ;;  %v1398_v24 = vld [vmem:[%s1467_s16 + $0x108] sm:$0xff]  }
  0x2e   : > { %v1399_v25 = vld [vmem:[%s1467_s16 + $0x188] sm:$0xff]   ;;  %v755_v26 = vsel %vm651_vm0, %v1398_v24, 0 }
  0x2f   : > { %v803_v28 = vsel %vm651_vm0, %v1399_v25, 0 }
  0x33   : > { %1221 = vmatpush3.bf16.xpose.msra.mxu0 %v665_v29  ;;  %v1401_v29 = vld [vmem:[%s1467_s16 + $0x1c0] sm:$0xff]  }
  0x34   : > { %1239 = vmatpush3.bf16.xpose.msra.mxu1 %v713_v32  ;;  %1289 = vmatprep.subr.msk.bf16.mxu0 %vm651_vm0, %v1360_v30  ;;  %v1402_v30 = vld [vmem:[%s1467_s16 + $0x100] sm:$0xff]  }
  0x35   : > { %1297 = vmatprep.subr.msk.bf16.mxu1 %vm651_vm0, %v1361_v33  ;;  %v1403_v32 = vld [vmem:[%s1467_s16 + $0x180] sm:$0xff]   ;;  %v752_v33 = vsel %vm651_vm0, %v1402_v30, 0 }
  0x36   : > { %v800_v34 = vsel %vm651_vm0, %v1403_v32, 0 }
  0x3b   : > { %1223 = vmatpush3.bf16.xpose.msra.mxu0 %v662_v36 }
  0x3c   : > { %1241 = vmatpush3.bf16.xpose.msra.mxu1 %v710_v38  ;;  %1290 = vmatprep.subr.msk.bf16.mxu0 %vm651_vm0, %v1364_v37 }
  0x3d   : > { %1298 = vmatprep.subr.msk.bf16.mxu1 %vm651_vm0, %v1365_v39 }
  0x43   : > { %1225 = vmatpush3.bf16.xpose.msra.mxu0 %v659_v42 }
  0x44   : > { %1243 = vmatpush3.bf16.xpose.msra.mxu1 %v707_v44  ;;  %1291 = vmatprep.subr.msk.bf16.mxu0 %vm651_vm0, %v1368_v43 }
  0x45   : > { %1299 = vmatprep.subr.msk.bf16.mxu1 %vm651_vm0, %v1369_v45 }
  0x4b   : > { %1227 = vmatpush3.bf16.xpose.msra.mxu0 %v656_v48 }
  0x4c   : > { %1245 = vmatpush3.bf16.xpose.msra.mxu1 %v704_v50  ;;  %1300 = vmatprep.subr.msk.bf16.mxu0 %vm651_vm0, %v1372_v49 }
  0x4d   : > { %1308 = vmatprep.subr.msk.bf16.mxu1 %vm651_vm0, %v1373_v51 }
  0x52   : > { %1229 = vmatmul.mubr.msk.bf16.vlgmr.msra.gmra.mxu0 %vm651_vm0, %v1513_v31 }
  0x53   : > { %1247 = vmatmul.mubr.msk.bf16.vlgmr.msra.gmra.mxu1 %vm651_vm0, %v1513_v31  ;;  %1249 = vmatpush3.bf16.xpose.msra.mxu0 %v773_v54 }
  0x54   : > { %1267 = vmatpush3.bf16.xpose.msra.mxu1 %v821_v56  ;;  %1301 = vmatprep.subr.msk.bf16.mxu0 %vm651_vm0, %v1376_v55 }
  0x55   : > { %1309 = vmatprep.subr.msk.bf16.mxu1 %vm651_vm0, %v1377_v57  ;;  %1264 = vmatprep.mubr.msk.bf16.mxu0 %vm651_vm0, %v1513_v31 }
  0x56   : > { %1282 = vmatprep.mubr.msk.bf16.mxu1 %vm651_vm0, %v1513_v31 }
  0x5b   : > { %1251 = vmatpush3.bf16.xpose.msra.mxu0 %v770_v60 }
  0x5c   : > { %1269 = vmatpush3.bf16.xpose.msra.mxu1 %v818_v62  ;;  %1302 = vmatprep.subr.msk.bf16.mxu0 %vm651_vm0, %v1380_v61 }
  0x5d   : > { %1310 = vmatprep.subr.msk.bf16.mxu1 %vm651_vm0, %v1381_v63 }
  0x63   : > { %1253 = vmatpush3.bf16.xpose.msra.mxu0 %v767_v2 }
  0x64   : > { %1271 = vmatpush3.bf16.xpose.msra.mxu1 %v815_v4  ;;  %1303 = vmatprep.subr.msk.bf16.mxu0 %vm651_vm0, %v1384_v3 }
  0x65   : > { %1311 = vmatprep.subr.msk.bf16.mxu1 %vm651_vm0, %v1385_v5 }
  0x6b   : > { %1255 = vmatpush3.bf16.xpose.msra.mxu0 %v764_v8 }
  0x6c   : > { %1273 = vmatpush3.bf16.xpose.msra.mxu1 %v812_v10  ;;  %1304 = vmatprep.subr.msk.bf16.mxu0 %vm651_vm0, %v1388_v9 }
  0x6d   : > { %1312 = vmatprep.subr.msk.bf16.mxu1 %vm651_vm0, %v1389_v11 }
  0x73   : > { %1257 = vmatpush3.bf16.xpose.msra.mxu0 %v761_v14 }
  0x74   : > { %1275 = vmatpush3.bf16.xpose.msra.mxu1 %v809_v16  ;;  %1305 = vmatprep.subr.msk.bf16.mxu0 %vm651_vm0, %v1392_v15 }
  0x75   : > { %1313 = vmatprep.subr.msk.bf16.mxu1 %vm651_vm0, %v1393_v17 }
  0x7b   : > { %1259 = vmatpush3.bf16.xpose.msra.mxu0 %v758_v20 }
  0x7c   : > { %1277 = vmatpush3.bf16.xpose.msra.mxu1 %v806_v22  ;;  %1306 = vmatprep.subr.msk.bf16.mxu0 %vm651_vm0, %v1396_v21 }
  0x7d   : > { %1314 = vmatprep.subr.msk.bf16.mxu1 %vm651_vm0, %v1397_v23 }
  0x83   : > { %1261 = vmatpush3.bf16.xpose.msra.mxu0 %v755_v26 }
  0x84   : > { %1279 = vmatpush3.bf16.xpose.msra.mxu1 %v803_v28  ;;  %1307 = vmatprep.subr.msk.bf16.mxu0 %vm651_vm0, %v1400_v27 }
  0x85   : > { %1315 = vmatprep.subr.msk.bf16.mxu1 %vm651_vm0, %v1401_v29 }
  0x8b   : > { %1263 = vmatpush3.bf16.xpose.msra.mxu0 %v752_v33 }
  0x8c   : > { %1281 = vmatpush3.bf16.xpose.msra.mxu1 %v800_v34 }
  0x92   : > { %1265 = vmatmul.mubr.msk.bf16.vlgmr.msra.gmra.mxu0 %vm651_vm0, %v1513_v31 }
  0x93   : > { %1283 = vmatmul.mubr.msk.bf16.vlgmr.msra.gmra.mxu1 %vm651_vm0, %v1513_v31 }
 0x112   : > { %v881_v35 = vpop.f32.mrf.mxu0 }
 0x113   : > { %v922_v36 = vpop.f32.mrf.mxu1 }
 0x114   : > { %v883_v37 = vpop.f32.mrf.mxu0 }
 0x115   : > { %v1019_v38 = vcombine.low %v881_v35, %v883_v37  ;;  %v924_v39 = vpop.f32.mrf.mxu1 }
 0x116   : > { %v1020_v40 = vcombine.low %v922_v36, %v924_v39  ;;  %v885_v41 = vpop.f32.mrf.mxu0 }
 0x117   : > { %1027 = vst [vmem:[%s198_s24] sm:$0xff] %v1019_v38  ;;  %v926_v42 = vpop.f32.mrf.mxu1 }
 0x118   : > { %1028 = vst [vmem:[%s198_s24 + $0x8] sm:$0xff] %v1020_v40  ;;  %v886_v43 = vpop.f32.mrf.mxu0 }
 0x119   : > { %v927_v44 = vpop.f32.mrf.mxu1 }
 0x152   : > { %v963_v45 = vpop.f32.mrf.mxu0 }
 0x153   : > { %v1004_v46 = vpop.f32.mrf.mxu1 }
 0x154   : > { %v965_v31 = vpop.f32.mrf.mxu0 }
 0x155   : > { %v1021_v47 = vcombine.low %v963_v45, %v965_v31  ;;  %v1006_v48 = vpop.f32.mrf.mxu1 }
 0x156   : > { %v1022_v49 = vcombine.low %v1004_v46, %v1006_v48  ;;  %v967_v50 = vpop.f32.mrf.mxu0 }
 0x157   : > { %1029 = vst [vmem:[%s198_s24 + $0x10] sm:$0xff] %v1021_v47  ;;  %v1008_v51 = vpop.f32.mrf.mxu1 }
 0x158   : > { %1030 = vst [vmem:[%s198_s24 + $0x18] sm:$0xff] %v1022_v49  ;;  %v968_v52 = vpop.f32.mrf.mxu0 }
 0x159   : > { %v1009_v53 = vpop.f32.mrf.mxu1 }
 0x15a PF: > { %s12_s11 = sadd.s32 1, %s1426_s11   ;;  %s1635_s9 = smov %s1422_s10 }
 0x15b   : > { %p9_p5 = scmp.ge.s32.totalorder %s12_s11, 4   ;;  %s1636_s10 = smov %s1638_s12 }
 0x15d   :  { %11 = sbr.rel (!%p9_p5) target bundleno = 2 (0x2), region = 61 }

// kernel: mask_decoder_token_forward.12
= control target key start
LH: loop header
LB: loop body
LE: loop exit
PB: predicated region body
PF: predicated region fallthrough
CT: control target
= control target key end

     0   :  { %vm344_vm0 = vcmask 1043456   ;;  %vm247_vm1 = vcmask 64512   ;;  %vm1469_vm2 = vcmask 125952   ;;  %s2912_s1 = inlined_call_operand.vmem [shape: bf16[8,16], index: 1, kind: input, shape index: {}]   ;;  %s2913_s0 = inlined_call_operand.vmem [shape: bf16[512,8], index: 0, kind: input, shape index: {}]   ;;  %s2914_s2 = inlined_call_operand.vmem [shape: f32[1,16], index: 2, kind: input, shape index: {}]   ;;  %s2915_s3 = inlined_call_operand.vmem [shape: bf16[512,16], index: 3, kind: output, shape index: {}]  }
   0x1   :  { %v79_v0 = vld [vmem:[%s2912_s1] sm:$0xf]  ;;  %v1836_v4 = vld [vmem:[%s2913_s0 + $0x8] sm:$0xff]   ;;  %v1838_v6 = vld [vmem:[%s2913_s0 + $0x10] sm:$0xff]  }
   0x2   :  { %1832 = vmatprep.subr.msk.bf16.mxu0 %vm344_vm0, %v79_v0  ;;  %1833 = vmatprep.subr.msk.bf16.mxu1 %vm344_vm0, %v79_v0  ;;  %v346_v1 = vsel %vm344_vm0, %v79_v0, 0  ;;  %v1834_v2 = vld [vmem:[%s2913_s0] sm:$0xff]   ;;  %v1837_v5 = vld [vmem:[%s2913_s0 + $0x88] sm:$0xff]   ;;  %v1839_v7 = vld [vmem:[%s2913_s0 + $0x90] sm:$0xff]  }
   0x3   :  { %1765 = vmatpush3.bf16.msra.mxu0 %v346_v1  ;;  %1831 = vmatpush3.bf16.msra.mxu1 %v346_v1  ;;  %v1835_v3 = vld [vmem:[%s2913_s0 + $0x80] sm:$0xff]   ;;  %v1840_v8 = vld [vmem:[%s2913_s0 + $0x18] sm:$0xff]   ;;  %v1844_v12 = vld [vmem:[%s2913_s0 + $0x28] sm:$0xff]  }
   0x4   :  { %1766 = vmatprep.mubr.msk.bf16.mxu0 %vm247_vm1, %v1834_v2  ;;  %1798 = vmatprep.mubr.msk.bf16.mxu1 %vm247_vm1, %v1835_v3  ;;  %v1841_v9 = vld [vmem:[%s2913_s0 + $0x98] sm:$0xff]   ;;  %v1842_v10 = vld [vmem:[%s2913_s0 + $0x20] sm:$0xff]   ;;  %v1845_v13 = vld [vmem:[%s2913_s0 + $0xa8] sm:$0xff]  }
   0x5   :  { %v1843_v11 = vld [vmem:[%s2913_s0 + $0xa0] sm:$0xff]   ;;  %v1846_v14 = vld [vmem:[%s2913_s0 + $0x30] sm:$0xff]   ;;  %v1848_v16 = vld [vmem:[%s2913_s0 + $0x38] sm:$0xff]  }
   0x6   :  { %1767 = vmatmul.mubr.msk.bf16.vlgmr.msra.gmra.mxu0 %vm247_vm1, %v1836_v4  ;;  %1799 = vmatmul.mubr.msk.bf16.vlgmr.msra.gmra.mxu1 %vm247_vm1, %v1837_v5  ;;  %v1847_v15 = vld [vmem:[%s2913_s0 + $0xb0] sm:$0xff]   ;;  %v1849_v17 = vld [vmem:[%s2913_s0 + $0xb8] sm:$0xff]   ;;  %v1850_v18 = vld [vmem:[%s2913_s0 + $0x40] sm:$0xff]  }
   0x7   :  { %1770 = vmatprep.mubr.msk.bf16.mxu0 %vm247_vm1, %v1838_v6  ;;  %1802 = vmatprep.mubr.msk.bf16.mxu1 %vm247_vm1, %v1839_v7  ;;  %v1851_v19 = vld [vmem:[%s2913_s0 + $0xc0] sm:$0xff]   ;;  %v1852_v20 = vld [vmem:[%s2913_s0 + $0x48] sm:$0xff]   ;;  %v1854_v22 = vld [vmem:[%s2913_s0 + $0x50] sm:$0xff]  }
   0x8   :  { %v1853_v21 = vld [vmem:[%s2913_s0 + $0xc8] sm:$0xff]   ;;  %v1855_v23 = vld [vmem:[%s2913_s0 + $0xd0] sm:$0xff]   ;;  %v1856_v24 = vld [vmem:[%s2913_s0 + $0x58] sm:$0xff]  }
   0x9   :  { %v1857_v25 = vld [vmem:[%s2913_s0 + $0xd8] sm:$0xff]   ;;  %v1858_v26 = vld [vmem:[%s2913_s0 + $0x60] sm:$0xff]   ;;  %v1860_v28 = vld [vmem:[%s2913_s0 + $0x68] sm:$0xff]  }
   0xa   :  { %v1859_v27 = vld [vmem:[%s2913_s0 + $0xe0] sm:$0xff]   ;;  %v1861_v29 = vld [vmem:[%s2913_s0 + $0xe8] sm:$0xff]   ;;  %v1862_v30 = vld [vmem:[%s2913_s0 + $0x70] sm:$0xff]  }
   0xb   :  { %v1863_v31 = vld [vmem:[%s2913_s0 + $0xf0] sm:$0xff]   ;;  %v1864_v32 = vld [vmem:[%s2913_s0 + $0x78] sm:$0xff]   ;;  %v2149_v34 = vld [vmem:[%s2914_s2] ss:$0 sm:$0xff] }
   0xc   :  { %v1865_v33 = vld [vmem:[%s2913_s0 + $0xf8] sm:$0xff]  }
   0xe   :  { %1771 = vmatmul.mubr.msk.bf16.gmra.mxu0 %vm247_vm1, %v1840_v8  ;;  %1803 = vmatmul.mubr.msk.bf16.gmra.mxu1 %vm247_vm1, %v1841_v9 }
   0xf   :  { %1774 = vmatprep.mubr.msk.bf16.mxu0 %vm247_vm1, %v1842_v10  ;;  %1806 = vmatprep.mubr.msk.bf16.mxu1 %vm247_vm1, %v1843_v11 }
  0x16   :  { %1775 = vmatmul.mubr.msk.bf16.gmra.mxu0 %vm247_vm1, %v1844_v12  ;;  %1807 = vmatmul.mubr.msk.bf16.gmra.mxu1 %vm247_vm1, %v1845_v13 }
  0x17   :  { %1778 = vmatprep.mubr.msk.bf16.mxu0 %vm247_vm1, %v1846_v14  ;;  %1810 = vmatprep.mubr.msk.bf16.mxu1 %vm247_vm1, %v1847_v15 }
  0x1e   :  { %1779 = vmatmul.mubr.msk.bf16.gmra.mxu0 %vm247_vm1, %v1848_v16  ;;  %1811 = vmatmul.mubr.msk.bf16.gmra.mxu1 %vm247_vm1, %v1849_v17 }
  0x1f   :  { %1782 = vmatprep.mubr.msk.bf16.mxu0 %vm247_vm1, %v1850_v18  ;;  %1814 = vmatprep.mubr.msk.bf16.mxu1 %vm247_vm1, %v1851_v19 }
  0x26   :  { %1783 = vmatmul.mubr.msk.bf16.gmra.mxu0 %vm247_vm1, %v1852_v20  ;;  %1815 = vmatmul.mubr.msk.bf16.gmra.mxu1 %vm247_vm1, %v1853_v21 }
  0x27   :  { %1786 = vmatprep.mubr.msk.bf16.mxu0 %vm247_vm1, %v1854_v22  ;;  %1818 = vmatprep.mubr.msk.bf16.mxu1 %vm247_vm1, %v1855_v23 }
  0x2e   :  { %1787 = vmatmul.mubr.msk.bf16.gmra.mxu0 %vm247_vm1, %v1856_v24  ;;  %1819 = vmatmul.mubr.msk.bf16.gmra.mxu1 %vm247_vm1, %v1857_v25 }
  0x2f   :  { %1790 = vmatprep.mubr.msk.bf16.mxu0 %vm247_vm1, %v1858_v26  ;;  %1822 = vmatprep.mubr.msk.bf16.mxu1 %vm247_vm1, %v1859_v27 }
  0x36   :  { %1791 = vmatmul.mubr.msk.bf16.gmra.mxu0 %vm247_vm1, %v1860_v28  ;;  %1823 = vmatmul.mubr.msk.bf16.gmra.mxu1 %vm247_vm1, %v1861_v29 }
  0x37   :  { %1794 = vmatprep.mubr.msk.bf16.mxu0 %vm247_vm1, %v1862_v30  ;;  %1826 = vmatprep.mubr.msk.bf16.mxu1 %vm247_vm1, %v1863_v31 }
  0x3e   :  { %1795 = vmatmul.mubr.msk.bf16.gmra.mxu0 %vm247_vm1, %v1864_v32  ;;  %1827 = vmatmul.mubr.msk.bf16.gmra.mxu1 %vm247_vm1, %v1865_v33 }
  0xc6   :  { %v1768_v35 = vpop.f32.mrf.mxu0  ;;  %v1800_v37 = vpop.f32.mrf.mxu1 }
  0xc7   :  { %v391_v36 = vadd.f32 %v1768_v35, %v2149_v34  ;;  %v519_v38 = vadd.f32 %v1800_v37, %v2149_v34 }
  0xc8   :  { %v382_v39 = vpop.f32.mrf.mxu0  ;;  %v510_v42 = vpop.f32.mrf.mxu1 }
  0xc9   :  { %v703_v40 = vmul.f32 %v391_v36, %v391_v36  ;;  %v383_v41 = vadd.f32 %v2149_v34, %v382_v39  ;;  %v735_v43 = vmul.f32 %v519_v38, %v519_v38  ;;  %v2155_v44 = vadd.f32 %v2149_v34, %v510_v42 }
  0xca   :  { %v1769_v45 = vpop.f32.mrf.mxu0  ;;  %v1801_v49 = vpop.f32.mrf.mxu1  ;;  %v2181_v14 = vmul.f32 0.5, %v391_v36  ;;  %v671_v28 = vmul.f32 0.5, %v519_v38 }
  0xcb   :  { %v767_v46 = vmul.f32 %v703_v40, %v391_v36  ;;  %v701_v47 = vmul.f32 %v383_v41, %v383_v41  ;;  %v2158_v48 = vadd.f32 %v1769_v45, %v2149_v34  ;;  %v799_v50 = vmul.f32 %v735_v43, %v519_v38 }
  0xcc   :  { %v733_v51 = vmul.f32 %v2155_v44, %v2155_v44  ;;  %v2163_v52 = vadd.f32 %v1801_v49, %v2149_v34  ;;  %v385_v53 = vpop.f32.mrf.mxu0  ;;  %v513_v57 = vpop.f32.mrf.mxu1  ;;  %v2197_v32 = vmul.f32 0.5, %v383_v41  ;;  %v669_v42 = vmul.f32 0.5, %v2155_v44 }
  0xcd   :  { %v831_v54 = vmul.f32 0.044715, %v767_v46  ;;  %v765_v55 = vmul.f32 %v701_v47, %v383_v41  ;;  %v704_v56 = vmul.f32 %v2158_v48, %v2158_v48  ;;  %v863_v58 = vmul.f32 0.044715, %v799_v50 }
  0xce   :  { %v797_v59 = vmul.f32 %v733_v51, %v2155_v44  ;;  %v736_v60 = vmul.f32 %v2163_v52, %v2163_v52  ;;  %v2172_v0 = vadd.f32 %v2149_v34, %v385_v53  ;;  %v1772_v1 = vpop.f32.mrf.mxu0  ;;  %v1804_v5 = vpop.f32.mrf.mxu1  ;;  %v2176_v9 = vadd.f32 %v2149_v34, %v513_v57 }
  0xcf   :  { %v895_v61 = vadd.f32 %v831_v54, %v391_v36  ;;  %v829_v62 = vmul.f32 0.044715, %v765_v55  ;;  %v768_v63 = vmul.f32 %v704_v56, %v2158_v48  ;;  %v927_v2 = vadd.f32 %v863_v58, %v519_v38 }
  0xd0   :  { %v861_v3 = vmul.f32 0.044715, %v797_v59  ;;  %v800_v4 = vmul.f32 %v736_v60, %v2163_v52  ;;  %v702_v13 = vmul.f32 %v2172_v0, %v2172_v0  ;;  %v398_v17 = vpop.f32.mrf.mxu0  ;;  %v526_v21 = vpop.f32.mrf.mxu1  ;;  %v734_v23 = vmul.f32 %v2176_v9, %v2176_v9 }
  0xd1   :  { %v959_v6 = vmul.f32 0.7978846, %v895_v61  ;;  %v893_v7 = vadd.f32 %v829_v62, %v383_v41  ;;  %v832_v8 = vmul.f32 0.044715, %v768_v63  ;;  %v991_v10 = vmul.f32 0.7978846, %v927_v2 }
  0xd2   :  { %v925_v11 = vadd.f32 %v861_v3, %v2155_v44  ;;  %v864_v12 = vmul.f32 0.044715, %v800_v4  ;;  %v766_v20 = vmul.f32 %v702_v13, %v2172_v0  ;;  %v2189_v24 = vadd.f32 %v1772_v1, %v2149_v34  ;;  %v1773_v31 = vpop.f32.mrf.mxu0  ;;  %v1805_v36 = vpop.f32.mrf.mxu1 }
  0xd3   :  { %1866 = vtanh.f32 %v959_v6  ;;  %v957_v15 = vmul.f32 0.7978846, %v893_v7  ;;  %v896_v16 = vadd.f32 %v832_v8, %v2158_v48  ;;  %v2192_v27 = vadd.f32 %v1804_v5, %v2149_v34 }
  0xd4   :  { %1868 = vtanh.f32 %v991_v10  ;;  %v989_v18 = vmul.f32 0.7978846, %v925_v11  ;;  %v928_v19 = vadd.f32 %v864_v12, %v2163_v52  ;;  %v830_v26 = vmul.f32 0.044715, %v766_v20  ;;  %v401_v58 = vpop.f32.mrf.mxu0 }
  0xd5   :  { %1870 = vtanh.f32 %v957_v15  ;;  %v960_v22 = vmul.f32 0.7978846, %v896_v16  ;;  %v798_v29 = vmul.f32 %v734_v23, %v2176_v9  ;;  %v707_v30 = vmul.f32 %v2189_v24, %v2189_v24 }
  0xd6   :  { %1872 = vtanh.f32 %v989_v18  ;;  %v992_v25 = vmul.f32 0.7978846, %v928_v19  ;;  %v894_v33 = vadd.f32 %v830_v26, %v2172_v0  ;;  %v739_v35 = vmul.f32 %v2192_v27, %v2192_v27  ;;  %v529_v26 = vpop.f32.mrf.mxu1 }
  0xd7   :  { %1874 = vtanh.f32 %v960_v22  ;;  %v862_v37 = vmul.f32 0.044715, %v798_v29  ;;  %v771_v39 = vmul.f32 %v707_v30, %v2189_v24  ;;  %v2204_v38 = vadd.f32 %v2149_v34, %v398_v17 }
  0xd8   :  { %1876 = vtanh.f32 %v992_v25  ;;  %v2207_v40 = vadd.f32 %v2149_v34, %v526_v21  ;;  %v958_v41 = vmul.f32 0.7978846, %v894_v33  ;;  %v803_v43 = vmul.f32 %v739_v35, %v2192_v27 }
  0xd9   :  { %v2212_v45 = vadd.f32 %v1773_v31, %v2149_v34  ;;  %v926_v46 = vadd.f32 %v862_v37, %v2176_v9  ;;  %v835_v47 = vmul.f32 0.044715, %v771_v39  ;;  %v705_v49 = vmul.f32 %v2204_v38, %v2204_v38 }
  0xda   :  { %v2218_v50 = vadd.f32 %v1805_v36, %v2149_v34  ;;  %v640_v51 = vmul.f32 0.5, %v2158_v48  ;;  %1878 = vtanh.f32 %v958_v41  ;;  %v867_v44 = vmul.f32 0.044715, %v803_v43  ;;  %v1776_v43 = vpop.f32.mrf.mxu0 }
  0xdb   :  { %v737_v53 = vmul.f32 %v2207_v40, %v2207_v40  ;;  %v672_v54 = vmul.f32 0.5, %v2163_v52  ;;  %v990_v55 = vmul.f32 0.7978846, %v926_v46  ;;  %v899_v56 = vadd.f32 %v835_v47, %v2189_v24 }
  0xdc   :  { %v769_v57 = vmul.f32 %v705_v49, %v2204_v38  ;;  %v2227_v59 = vmul.f32 0.5, %v2172_v0  ;;  %v931_v60 = vadd.f32 %v867_v44, %v2192_v27  ;;  %v708_v61 = vmul.f32 %v2212_v45, %v2212_v45  ;;  %v1808_v49 = vpop.f32.mrf.mxu1 }
  0xdd   :  { %v801_v48 = vmul.f32 %v737_v53, %v2207_v40  ;;  %1880 = vtanh.f32 %v990_v55  ;;  %v963_v62 = vmul.f32 0.7978846, %v899_v56  ;;  %v740_v52 = vmul.f32 %v2218_v50, %v2218_v50 }
  0xde   :  { %v833_v63 = vmul.f32 0.044715, %v769_v57  ;;  %v995_v2 = vmul.f32 0.7978846, %v931_v60  ;;  %v772_v4 = vmul.f32 %v708_v61, %v2212_v45  ;;  %v2237_v0 = vadd.f32 %v2149_v34, %v401_v58  ;;  %v414_v61 = vpop.f32.mrf.mxu0 }
  0xdf   :  { %v865_v3 = vmul.f32 0.044715, %v801_v48  ;;  %1882 = vtanh.f32 %v963_v62  ;;  %v804_v8 = vmul.f32 %v740_v52, %v2218_v50  ;;  %v670_v46 = vmul.f32 0.5, %v2176_v9 }
  0xe0   :  { %v1867_v1 = vpop.eup %1866  ;;  %v897_v7 = vadd.f32 %v833_v63, %v2204_v38  ;;  %1884 = vtanh.f32 %v995_v2  ;;  %v836_v13 = vmul.f32 0.044715, %v772_v4  ;;  %v706_v47 = vmul.f32 %v2237_v0, %v2237_v0 }
  0xe1   :  { %v1869_v5 = vpop.eup %1868  ;;  %v1087_v6 = vadd.f32 1.0, %v1867_v1  ;;  %v929_v12 = vadd.f32 %v865_v3, %v2207_v40  ;;  %v868_v19 = vmul.f32 0.044715, %v804_v8  ;;  %v2262_v55 = vadd.f32 %v2149_v34, %v529_v26 }
  0xe2   :  { %v1871_v10 = vpop.eup %1870  ;;  %v1119_v11 = vadd.f32 1.0, %v1869_v5  ;;  %v961_v18 = vmul.f32 0.7978846, %v897_v7  ;;  %v900_v25 = vadd.f32 %v836_v13, %v2212_v45  ;;  %v770_v56 = vmul.f32 %v706_v47, %v2237_v0 }
  0xe3   :  { %v1873_v15 = vpop.eup %1872  ;;  %v1151_v16 = vmul.f32 %v1087_v6, %v2181_v14  ;;  %v1085_v17 = vadd.f32 1.0, %v1871_v10  ;;  %v993_v23 = vmul.f32 0.7978846, %v929_v12  ;;  %v932_v41 = vadd.f32 %v868_v19, %v2218_v50 }
  0xe4   :  { %v1875_v20 = vpop.eup %1874  ;;  %v1183_v21 = vmul.f32 %v1119_v11, %v671_v28  ;;  %v1117_v22 = vadd.f32 1.0, %v1873_v15  ;;  %1886 = vtanh.f32 %v961_v18  ;;  %v964_v39 = vmul.f32 0.7978846, %v900_v25  ;;  %v542_v15 = vpop.f32.mrf.mxu1 }
  0xe5   :  { %v1877_v29 = vpop.eup %1876  ;;  %v1669_v30 = vpack.c.bf16 %v1151_v16, %v1151_v16  ;;  %v1149_v31 = vmul.f32 %v1085_v17, %v2197_v32  ;;  %v1088_v33 = vadd.f32 1.0, %v1875_v20  ;;  %1888 = vtanh.f32 %v993_v23 }
  0xe6   :  { %v1701_v35 = vpack.c.bf16 %v1183_v21, %v1183_v21  ;;  %v1181_v36 = vmul.f32 %v1117_v22, %v669_v42  ;;  %v1120_v37 = vadd.f32 1.0, %v1877_v29  ;;  %1890 = vtanh.f32 %v964_v39 }
  0xe7   :  { %1472 = vst.msk [vmem:[%s2915_s3 + $0x8] sm:$0xf] %vm1469_vm2, %v1669_v30  ;;  %v1667_v14 = vpack.c.bf16 %v1149_v31, %v1149_v31  ;;  %v1152_v28 = vmul.f32 %v1088_v33, %v640_v51  ;;  %v1879_v44 = vpop.eup %1878  ;;  %v996_v53 = vmul.f32 0.7978846, %v932_v41  ;;  %v2270_v57 = vadd.f32 %v1776_v43, %v2149_v34  ;;  %v1777_v31 = vpop.f32.mrf.mxu0 }
  0xe8   :  { %1504 = vst.msk [vmem:[%s2915_s3 + $0x88] sm:$0xf] %vm1469_vm2, %v1701_v35  ;;  %v1699_v32 = vpack.c.bf16 %v1181_v36, %v1181_v36  ;;  %v1184_v42 = vmul.f32 %v1120_v37, %v672_v54  ;;  %v1086_v54 = vadd.f32 1.0, %v1879_v44  ;;  %v643_v58 = vmul.f32 0.5, %v2189_v24 }
  0xe9   :  { %1470 = vst.msk [vmem:[%s2915_s3] sm:$0xf] %vm1469_vm2, %v1667_v14  ;;  %v1670_v51 = vpack.c.bf16 %v1152_v28, %v1152_v28  ;;  %1892 = vtanh.f32 %v996_v53  ;;  %v738_v60 = vmul.f32 %v2262_v55, %v2262_v55  ;;  %v2280_v48 = vadd.f32 %v1808_v49, %v2149_v34  ;;  %v1809_v14 = vpop.f32.mrf.mxu1  ;;  %v417_v53 = vpop.f32.mrf.mxu0 }
  0xea   :  { %1502 = vst.msk [vmem:[%s2915_s3 + $0x80] sm:$0xf] %vm1469_vm2, %v1699_v32  ;;  %v1702_v9 = vpack.c.bf16 %v1184_v42, %v1184_v42  ;;  %v1881_v62 = vpop.eup %1880  ;;  %v1150_v63 = vmul.f32 %v1086_v54, %v2227_v59  ;;  %v675_v52 = vmul.f32 0.5, %v2192_v27  ;;  %v834_v1 = vmul.f32 0.044715, %v770_v56 }
  0xeb   :  { %1473 = vst.msk [vmem:[%s2915_s3 + $0xc] sm:$0xf] %vm1469_vm2, %v1670_v51  ;;  %v711_v24 = vmul.f32 %v2270_v57, %v2270_v57  ;;  %v1118_v2 = vadd.f32 1.0, %v1881_v62  ;;  %v641_v3 = vmul.f32 0.5, %v2204_v38  ;;  %v802_v4 = vmul.f32 %v738_v60, %v2262_v55 }
  0xec   :  { %1505 = vst.msk [vmem:[%s2915_s3 + $0x8c] sm:$0xf] %vm1469_vm2, %v1702_v9  ;;  %v743_v5 = vmul.f32 %v2280_v48, %v2280_v48  ;;  %v1883_v6 = vpop.eup %1882  ;;  %v1668_v7 = vpack.c.bf16 %v1150_v63, %v1150_v63  ;;  %v898_v8 = vadd.f32 %v834_v1, %v2237_v0  ;;  %v2297_v27 = vadd.f32 %v2149_v34, %v414_v61 }
  0xed   :  { %v775_v59 = vmul.f32 %v711_v24, %v2270_v57  ;;  %v1885_v10 = vpop.eup %1884  ;;  %v1182_v11 = vmul.f32 %v1118_v2, %v670_v46  ;;  %v1091_v12 = vadd.f32 1.0, %v1883_v6  ;;  %v866_v13 = vmul.f32 0.044715, %v802_v4  ;;  %v1780_v6 = vpop.f32.mrf.mxu0 }
  0xee   :  { %v807_v38 = vmul.f32 %v743_v5, %v2280_v48  ;;  %1471 = vst.msk [vmem:[%s2915_s3 + $0x4] sm:$0xf] %vm1469_vm2, %v1668_v7  ;;  %v1123_v16 = vadd.f32 1.0, %v1885_v10  ;;  %v673_v17 = vmul.f32 0.5, %v2207_v40  ;;  %v962_v18 = vmul.f32 0.7978846, %v898_v8 }
  0xef   :  { %v839_v19 = vmul.f32 0.044715, %v775_v59  ;;  %v1700_v20 = vpack.c.bf16 %v1182_v11, %v1182_v11  ;;  %v1155_v21 = vmul.f32 %v1091_v12, %v643_v58  ;;  %v930_v22 = vadd.f32 %v866_v13, %v2262_v55  ;;  %v545_v58 = vpop.f32.mrf.mxu1 }
  0xf0   :  { %v871_v23 = vmul.f32 0.044715, %v807_v38  ;;  %v1187_v26 = vmul.f32 %v1123_v16, %v675_v52  ;;  %1894 = vtanh.f32 %v962_v18  ;;  %v709_v30 = vmul.f32 %v2297_v27, %v2297_v27 }
  0xf1   :  { %v1887_v25 = vpop.eup %1886  ;;  %v903_v29 = vadd.f32 %v839_v19, %v2270_v57  ;;  %1503 = vst.msk [vmem:[%s2915_s3 + $0x84] sm:$0xf] %vm1469_vm2, %v1700_v20  ;;  %v1673_v40 = vpack.c.bf16 %v1155_v21, %v1155_v21  ;;  %v994_v36 = vmul.f32 0.7978846, %v930_v22  ;;  %v2320_v46 = vadd.f32 %v2149_v34, %v542_v15  ;;  %v1812_v38 = vpop.f32.mrf.mxu1 }
  0xf2   :  { %v1889_v33 = vpop.eup %1888  ;;  %v1089_v35 = vadd.f32 1.0, %v1887_v25  ;;  %v935_v37 = vadd.f32 %v871_v23, %v2280_v48  ;;  %v1705_v28 = vpack.c.bf16 %v1187_v26, %v1187_v26  ;;  %v773_v43 = vmul.f32 %v709_v30, %v2297_v27  ;;  %v430_v21 = vpop.f32.mrf.mxu0 }
  0xf3   :  { %v1121_v39 = vadd.f32 1.0, %v1889_v33  ;;  %v967_v41 = vmul.f32 0.7978846, %v903_v29  ;;  %1476 = vst.msk [vmem:[%s2915_s3 + $0x18] sm:$0xf] %vm1469_vm2, %v1673_v40  ;;  %1896 = vtanh.f32 %v994_v36  ;;  %v1891_v47 = vpop.eup %1890  ;;  %v2327_v51 = vadd.f32 %v1777_v31, %v2149_v34 }
  0xf4   :  { %v1153_v32 = vmul.f32 %v1089_v35, %v641_v3  ;;  %v999_v42 = vmul.f32 0.7978846, %v935_v37  ;;  %1508 = vst.msk [vmem:[%s2915_s3 + $0x98] sm:$0xf] %vm1469_vm2, %v1705_v28  ;;  %v837_v44 = vmul.f32 0.044715, %v773_v43  ;;  %v741_v52 = vmul.f32 %v2320_v46, %v2320_v46 }
  0xf5   :  { %v1185_v49 = vmul.f32 %v1121_v39, %v673_v17  ;;  %1898 = vtanh.f32 %v967_v41  ;;  %v644_v54 = vmul.f32 0.5, %v2212_v45  ;;  %v1092_v56 = vadd.f32 1.0, %v1891_v47  ;;  %v558_v47 = vpop.f32.mrf.mxu1 }
  0xf6   :  { %v1671_v9 = vpack.c.bf16 %v1153_v32, %v1153_v32  ;;  %1900 = vtanh.f32 %v999_v42  ;;  %v1893_v60 = vpop.eup %1892  ;;  %v676_v62 = vmul.f32 0.5, %v2218_v50  ;;  %v901_v63 = vadd.f32 %v837_v44, %v2297_v27 }
  0xf7   :  { %v1703_v61 = vpack.c.bf16 %v1185_v49, %v1185_v49  ;;  %v1156_v1 = vmul.f32 %v1092_v56, %v644_v54  ;;  %v1124_v24 = vadd.f32 1.0, %v1893_v60  ;;  %v712_v45 = vmul.f32 %v2327_v51, %v2327_v51 }
  0xf8   :  { %1474 = vst.msk [vmem:[%s2915_s3 + $0x10] sm:$0xf] %vm1469_vm2, %v1671_v9  ;;  %v2341_v2 = vadd.f32 %v1809_v14, %v2149_v34  ;;  %v965_v50 = vmul.f32 0.7978846, %v901_v63  ;;  %v805_v3 = vmul.f32 %v741_v52, %v2320_v46  ;;  %v2349_v4 = vadd.f32 %v2149_v34, %v417_v53 }
  0xf9   :  { %1506 = vst.msk [vmem:[%s2915_s3 + $0x90] sm:$0xf] %vm1469_vm2, %v1703_v61  ;;  %v2352_v5 = vadd.f32 %v2149_v34, %v545_v58  ;;  %v1674_v7 = vpack.c.bf16 %v1156_v1, %v1156_v1  ;;  %v1188_v8 = vmul.f32 %v1124_v24, %v676_v62  ;;  %v642_v59 = vmul.f32 0.5, %v2237_v0 }
  0xfa   :  { %v776_v10 = vmul.f32 %v712_v45, %v2327_v51  ;;  %v674_v11 = vmul.f32 0.5, %v2262_v55  ;;  %1902 = vtanh.f32 %v965_v50  ;;  %v869_v12 = vmul.f32 0.044715, %v805_v3  ;;  %v1781_v50 = vpop.f32.mrf.mxu0  ;;  %v1813_v3 = vpop.f32.mrf.mxu1 }
  0xfb   :  { %v744_v13 = vmul.f32 %v2341_v2, %v2341_v2  ;;  %1477 = vst.msk [vmem:[%s2915_s3 + $0x1c] sm:$0xf] %vm1469_vm2, %v1674_v7  ;;  %v1706_v15 = vpack.c.bf16 %v1188_v8, %v1188_v8  ;;  %v647_v16 = vmul.f32 0.5, %v2270_v57  ;;  %v710_v0 = vmul.f32 %v2349_v4, %v2349_v4 }
  0xfc   :  { %v840_v17 = vmul.f32 0.044715, %v776_v10  ;;  %v933_v55 = vadd.f32 %v869_v12, %v2320_v46  ;;  %v742_v19 = vmul.f32 %v2352_v5, %v2352_v5  ;;  %v2371_v20 = vadd.f32 %v1780_v6, %v2149_v34 }
  0xfd   :  { %v808_v18 = vmul.f32 %v744_v13, %v2341_v2  ;;  %v1895_v22 = vpop.eup %1894  ;;  %1509 = vst.msk [vmem:[%s2915_s3 + $0x9c] sm:$0xf] %vm1469_vm2, %v1706_v15  ;;  %v679_v57 = vmul.f32 0.5, %v2280_v48  ;;  %v774_v25 = vmul.f32 %v710_v0, %v2349_v4  ;;  %v2381_v26 = vadd.f32 %v1812_v38, %v2149_v34 }
  0xfe   :  { %v904_v23 = vadd.f32 %v840_v17, %v2327_v51  ;;  %v1090_v29 = vadd.f32 1.0, %v1895_v22  ;;  %v997_v30 = vmul.f32 0.7978846, %v933_v55  ;;  %v806_v33 = vmul.f32 %v742_v19, %v2352_v5  ;;  %v433_v55 = vpop.f32.mrf.mxu0 }
  0xff   :  { %v872_v31 = vmul.f32 0.044715, %v808_v18  ;;  %v838_v35 = vmul.f32 0.044715, %v774_v25  ;;  %v715_v36 = vmul.f32 %v2371_v20, %v2371_v20  ;;  %v2387_v37 = vadd.f32 %v2149_v34, %v430_v21 }
 0x100   :  { %v968_v40 = vmul.f32 0.7978846, %v904_v23  ;;  %v1897_v48 = vpop.eup %1896  ;;  %v1154_v14 = vmul.f32 %v1090_v29, %v642_v59  ;;  %1904 = vtanh.f32 %v997_v30  ;;  %v870_v39 = vmul.f32 0.044715, %v806_v33  ;;  %v561_v29 = vpop.f32.mrf.mxu1 }
 0x101   :  { %v936_v28 = vadd.f32 %v872_v31, %v2341_v2  ;;  %v1122_v43 = vadd.f32 1.0, %v1897_v48  ;;  %v902_v32 = vadd.f32 %v838_v35, %v2349_v4  ;;  %v779_v42 = vmul.f32 %v715_v36, %v2371_v20 }
 0x102   :  { %v1899_v41 = vpop.eup %1898  ;;  %1906 = vtanh.f32 %v968_v40  ;;  %v1672_v44 = vpack.c.bf16 %v1154_v14, %v1154_v14  ;;  %v934_v54 = vadd.f32 %v870_v39, %v2352_v5  ;;  %v645_v63 = vmul.f32 0.5, %v2297_v27 }
 0x103   :  { %v1901_v49 = vpop.eup %1900  ;;  %v1095_v53 = vadd.f32 1.0, %v1899_v41  ;;  %v1000_v9 = vmul.f32 0.7978846, %v936_v28  ;;  %v1186_v56 = vmul.f32 %v1122_v43, %v674_v11  ;;  %v966_v60 = vmul.f32 0.7978846, %v902_v32 }
 0x104   :  { %v1127_v58 = vadd.f32 1.0, %v1901_v49  ;;  %v843_v61 = vmul.f32 0.044715, %v779_v42  ;;  %1475 = vst.msk [vmem:[%s2915_s3 + $0x14] sm:$0xf] %vm1469_vm2, %v1672_v44  ;;  %v677_v7 = vmul.f32 0.5, %v2320_v46  ;;  %v747_v8 = vmul.f32 %v2381_v26, %v2381_v26 }
 0x105   :  { %v1159_v62 = vmul.f32 %v1095_v53, %v647_v16  ;;  %1908 = vtanh.f32 %v1000_v9  ;;  %v998_v52 = vmul.f32 0.7978846, %v934_v54  ;;  %v1704_v1 = vpack.c.bf16 %v1186_v56, %v1186_v56  ;;  %v1784_v9 = vpop.f32.mrf.mxu0 }
 0x106   :  { %v1191_v24 = vmul.f32 %v1127_v58, %v679_v57  ;;  %1910 = vtanh.f32 %v966_v60  ;;  %v907_v45 = vadd.f32 %v843_v61, %v2371_v20  ;;  %v713_v11 = vmul.f32 %v2387_v37, %v2387_v37 }
 0x107   :  { %v1677_v6 = vpack.c.bf16 %v1159_v62, %v1159_v62  ;;  %1912 = vtanh.f32 %v998_v52  ;;  %v1903_v59 = vpop.eup %1902  ;;  %1507 = vst.msk [vmem:[%s2915_s3 + $0x94] sm:$0xf] %vm1469_vm2, %v1704_v1  ;;  %v2409_v12 = vadd.f32 %v2149_v34, %v558_v47  ;;  %v811_v13 = vmul.f32 %v747_v8, %v2381_v26 }
 0x108   :  { %v1709_v27 = vpack.c.bf16 %v1191_v24, %v1191_v24  ;;  %v971_v10 = vmul.f32 0.7978846, %v907_v45  ;;  %v1093_v46 = vadd.f32 1.0, %v1903_v59  ;;  %v2417_v38 = vadd.f32 %v1781_v50, %v2149_v34 }
 0x109   :  { %1480 = vst.msk [vmem:[%s2915_s3 + $0x28] sm:$0xf] %vm1469_vm2, %v1677_v6  ;;  %v2420_v15 = vadd.f32 %v1813_v3, %v2149_v34  ;;  %v648_v16 = vmul.f32 0.5, %v2327_v51  ;;  %v777_v17 = vmul.f32 %v713_v11, %v2387_v37  ;;  %v745_v0 = vmul.f32 %v2409_v12, %v2409_v12  ;;  %v1816_v6 = vpop.f32.mrf.mxu1 }
 0x10a   :  { %1512 = vst.msk [vmem:[%s2915_s3 + $0xa8] sm:$0xf] %vm1469_vm2, %v1709_v27  ;;  %1914 = vtanh.f32 %v971_v10  ;;  %v1157_v18 = vmul.f32 %v1093_v46, %v645_v63  ;;  %v680_v19 = vmul.f32 0.5, %v2341_v2  ;;  %v875_v21 = vmul.f32 0.044715, %v811_v13  ;;  %v446_v27 = vpop.f32.mrf.mxu0 }
 0x10b   :  { %v716_v22 = vmul.f32 %v2417_v38, %v2417_v38  ;;  %v646_v57 = vmul.f32 0.5, %v2349_v4  ;;  %v841_v23 = vmul.f32 0.044715, %v777_v17  ;;  %v809_v25 = vmul.f32 %v745_v0, %v2409_v12 }
 0x10c   :  { %v748_v51 = vmul.f32 %v2420_v15, %v2420_v15  ;;  %v1675_v30 = vpack.c.bf16 %v1157_v18, %v1157_v18  ;;  %v939_v31 = vadd.f32 %v875_v21, %v2381_v26  ;;  %v2440_v2 = vadd.f32 %v2149_v34, %v433_v55 }
 0x10d   :  { %v780_v33 = vmul.f32 %v716_v22, %v2417_v38  ;;  %v1905_v40 = vpop.eup %1904  ;;  %v678_v35 = vmul.f32 0.5, %v2352_v5  ;;  %v905_v4 = vadd.f32 %v841_v23, %v2387_v37  ;;  %v873_v36 = vmul.f32 0.044715, %v809_v25 }
 0x10e   :  { %v812_v48 = vmul.f32 %v748_v51, %v2420_v15  ;;  %1478 = vst.msk [vmem:[%s2915_s3 + $0x20] sm:$0xf] %vm1469_vm2, %v1675_v30  ;;  %v1125_v28 = vadd.f32 1.0, %v1905_v40  ;;  %v1003_v39 = vmul.f32 0.7978846, %v939_v31  ;;  %v2450_v43 = vadd.f32 %v2149_v34, %v561_v29  ;;  %v1785_v29 = vpop.f32.mrf.mxu0 }
 0x10f   :  { %v1907_v14 = vpop.eup %1906  ;;  %v844_v41 = vmul.f32 0.044715, %v780_v33  ;;  %v969_v42 = vmul.f32 0.7978846, %v905_v4  ;;  %v937_v5 = vadd.f32 %v873_v36, %v2409_v12  ;;  %v714_v53 = vmul.f32 %v2440_v2, %v2440_v2 }
 0x110   :  { %v1096_v32 = vadd.f32 1.0, %v1907_v14  ;;  %v876_v47 = vmul.f32 0.044715, %v812_v48  ;;  %v1189_v49 = vmul.f32 %v1125_v28, %v677_v7  ;;  %1916 = vtanh.f32 %v1003_v39 }
 0x111   :  { %v908_v44 = vadd.f32 %v844_v41, %v2417_v38  ;;  %1918 = vtanh.f32 %v969_v42  ;;  %v1001_v58 = vmul.f32 0.7978846, %v937_v5  ;;  %v778_v1 = vmul.f32 %v714_v53, %v2440_v2 }
 0x112   :  { %v1909_v54 = vpop.eup %1908  ;;  %v1160_v56 = vmul.f32 %v1096_v32, %v648_v16  ;;  %v940_v60 = vadd.f32 %v876_v47, %v2420_v15  ;;  %v1707_v62 = vpack.c.bf16 %v1189_v49, %v1189_v49  ;;  %v651_v11 = vmul.f32 0.5, %v2371_v20  ;;  %v574_v20 = vpop.f32.mrf.mxu1 }
 0x113   :  { %v1911_v61 = vpop.eup %1910  ;;  %v1128_v63 = vadd.f32 1.0, %v1909_v54  ;;  %v972_v52 = vmul.f32 0.7978846, %v908_v44  ;;  %1920 = vtanh.f32 %v1001_v58  ;;  %v842_v59 = vmul.f32 0.044715, %v778_v1 }
 0x114   :  { %v1913_v24 = vpop.eup %1912  ;;  %v1678_v45 = vpack.c.bf16 %v1160_v56, %v1160_v56  ;;  %v1094_v50 = vadd.f32 1.0, %v1911_v61  ;;  %v1004_v3 = vmul.f32 0.7978846, %v940_v60  ;;  %1510 = vst.msk [vmem:[%s2915_s3 + $0xa0] sm:$0xf] %vm1469_vm2, %v1707_v62  ;;  %v746_v46 = vmul.f32 %v2450_v43, %v2450_v43  ;;  %v1817_v56 = vpop.f32.mrf.mxu1 }
 0x115   :  { %v1192_v7 = vmul.f32 %v1128_v63, %v680_v19  ;;  %v1126_v8 = vadd.f32 1.0, %v1913_v24  ;;  %1922 = vtanh.f32 %v972_v52  ;;  %v906_v0 = vadd.f32 %v842_v59, %v2440_v2  ;;  %v449_v61 = vpop.f32.mrf.mxu0 }
 0x116   :  { %1481 = vst.msk [vmem:[%s2915_s3 + $0x2c] sm:$0xf] %vm1469_vm2, %v1678_v45  ;;  %v1158_v10 = vmul.f32 %v1094_v50, %v646_v57  ;;  %1924 = vtanh.f32 %v1004_v3  ;;  %v2471_v55 = vadd.f32 %v1784_v9, %v2149_v34  ;;  %v810_v21 = vmul.f32 %v746_v46, %v2450_v43 }
 0x117   :  { %v1915_v13 = vpop.eup %1914  ;;  %v1710_v16 = vpack.c.bf16 %v1192_v7, %v1192_v7  ;;  %v1190_v17 = vmul.f32 %v1126_v8, %v678_v35  ;;  %v2475_v22 = vadd.f32 %v1816_v6, %v2149_v34  ;;  %v683_v23 = vmul.f32 0.5, %v2381_v26 }
 0x118   :  { %v1676_v18 = vpack.c.bf16 %v1158_v10, %v1158_v10  ;;  %v1099_v19 = vadd.f32 1.0, %v1915_v13  ;;  %v970_v25 = vmul.f32 0.7978846, %v906_v0  ;;  %v719_v51 = vmul.f32 %v2471_v55, %v2471_v55 }
 0x119   :  { %1513 = vst.msk [vmem:[%s2915_s3 + $0xac] sm:$0xf] %vm1469_vm2, %v1710_v16  ;;  %v1708_v57 = vpack.c.bf16 %v1190_v17, %v1190_v17  ;;  %v649_v31 = vmul.f32 0.5, %v2387_v37  ;;  %v874_v33 = vmul.f32 0.044715, %v810_v21  ;;  %v751_v40 = vmul.f32 %v2475_v22, %v2475_v22  ;;  %v1788_v17 = vpop.f32.mrf.mxu0 }
 0x11a   :  { %1479 = vst.msk [vmem:[%s2915_s3 + $0x24] sm:$0xf] %vm1469_vm2, %v1676_v18  ;;  %v1163_v30 = vmul.f32 %v1099_v19, %v651_v11  ;;  %1926 = vtanh.f32 %v970_v25  ;;  %v783_v26 = vmul.f32 %v719_v51, %v2471_v55  ;;  %v2497_v35 = vadd.f32 %v2149_v34, %v446_v27  ;;  %v577_v11 = vpop.f32.mrf.mxu1 }
 0x11b   :  { %1511 = vst.msk [vmem:[%s2915_s3 + $0xa4] sm:$0xf] %vm1469_vm2, %v1708_v57  ;;  %v2500_v4 = vadd.f32 %v2149_v34, %v574_v20  ;;  %v938_v37 = vadd.f32 %v874_v33, %v2450_v43  ;;  %v815_v48 = vmul.f32 %v751_v40, %v2475_v22  ;;  %v2505_v14 = vadd.f32 %v1785_v29, %v2149_v34 }
 0x11c   :  { %v1681_v36 = vpack.c.bf16 %v1163_v30, %v1163_v30  ;;  %v681_v28 = vmul.f32 0.5, %v2409_v12  ;;  %v652_v39 = vmul.f32 0.5, %v2417_v38  ;;  %v847_v41 = vmul.f32 0.044715, %v783_v26 }
 0x11d   :  { %v717_v32 = vmul.f32 %v2497_v35, %v2497_v35  ;;  %v1917_v42 = vpop.eup %1916  ;;  %v684_v5 = vmul.f32 0.5, %v2420_v15  ;;  %v1002_v47 = vmul.f32 0.7978846, %v938_v37  ;;  %v879_v49 = vmul.f32 0.044715, %v815_v48  ;;  %v462_v48 = vpop.f32.mrf.mxu0 }
 0x11e   :  { %1484 = vst.msk [vmem:[%s2915_s3 + $0x38] sm:$0xf] %vm1469_vm2, %v1681_v36  ;;  %v749_v44 = vmul.f32 %v2500_v4, %v2500_v4  ;;  %v1919_v12 = vpop.eup %1918  ;;  %v1131_v53 = vadd.f32 1.0, %v1917_v42  ;;  %v911_v38 = vadd.f32 %v847_v41, %v2471_v55  ;;  %v720_v54 = vmul.f32 %v2505_v14, %v2505_v14 }
 0x11f   :  { %v781_v9 = vmul.f32 %v717_v32, %v2497_v35  ;;  %v1097_v58 = vadd.f32 1.0, %v1919_v12  ;;  %1928 = vtanh.f32 %v1002_v47  ;;  %v943_v60 = vadd.f32 %v879_v49, %v2475_v22 }
 0x120   :  { %v813_v15 = vmul.f32 %v749_v44, %v2500_v4  ;;  %v1921_v62 = vpop.eup %1920  ;;  %v1195_v63 = vmul.f32 %v1131_v53, %v683_v23  ;;  %v975_v52 = vmul.f32 0.7978846, %v911_v38  ;;  %v784_v24 = vmul.f32 %v720_v54, %v2505_v14 }
 0x121   :  { %v845_v1 = vmul.f32 0.044715, %v781_v9  ;;  %v1161_v50 = vmul.f32 %v1097_v58, %v649_v31  ;;  %v1129_v3 = vadd.f32 1.0, %v1921_v62  ;;  %v1007_v6 = vmul.f32 0.7978846, %v943_v60  ;;  %v1820_v31 = vpop.f32.mrf.mxu1 }
 0x122   :  { %v1923_v45 = vpop.eup %1922  ;;  %v877_v7 = vmul.f32 0.044715, %v813_v15  ;;  %v1713_v59 = vpack.c.bf16 %v1195_v63, %v1195_v63  ;;  %1930 = vtanh.f32 %v975_v52  ;;  %v848_v21 = vmul.f32 0.044715, %v784_v24 }
 0x123   :  { %v1925_v8 = vpop.eup %1924  ;;  %v1100_v27 = vadd.f32 1.0, %v1923_v45  ;;  %v909_v10 = vadd.f32 %v845_v1, %v2497_v35  ;;  %v1679_v46 = vpack.c.bf16 %v1161_v50, %v1161_v50  ;;  %v1193_v13 = vmul.f32 %v1129_v3, %v681_v28  ;;  %v590_v3 = vpop.f32.mrf.mxu1 }
 0x124   :  { %v1132_v16 = vadd.f32 1.0, %v1925_v8  ;;  %1932 = vtanh.f32 %v1007_v6  ;;  %1516 = vst.msk [vmem:[%s2915_s3 + $0xb8] sm:$0xf] %vm1469_vm2, %v1713_v59  ;;  %v941_v19 = vadd.f32 %v877_v7, %v2500_v4  ;;  %v2536_v23 = vadd.f32 %v1817_v56, %v2149_v34 }
 0x125   :  { %v1164_v0 = vmul.f32 %v1100_v27, %v652_v39  ;;  %v973_v18 = vmul.f32 0.7978846, %v909_v10  ;;  %1482 = vst.msk [vmem:[%s2915_s3 + $0x30] sm:$0xf] %vm1469_vm2, %v1679_v46  ;;  %v1711_v20 = vpack.c.bf16 %v1193_v13, %v1193_v13  ;;  %v2539_v25 = vadd.f32 %v2149_v34, %v449_v61  ;;  %v1789_v46 = vpop.f32.mrf.mxu0 }
 0x126   :  { %v1196_v57 = vmul.f32 %v1132_v16, %v684_v5  ;;  %v1005_v29 = vmul.f32 0.7978846, %v941_v19  ;;  %v912_v30 = vadd.f32 %v848_v21, %v2505_v14  ;;  %v650_v26 = vmul.f32 0.5, %v2440_v2 }
 0x127   :  { %v1682_v51 = vpack.c.bf16 %v1164_v0, %v1164_v0  ;;  %1934 = vtanh.f32 %v973_v18  ;;  %v1927_v33 = vpop.eup %1926  ;;  %1514 = vst.msk [vmem:[%s2915_s3 + $0xb0] sm:$0xf] %vm1469_vm2, %v1711_v20  ;;  %v682_v36 = vmul.f32 0.5, %v2450_v43  ;;  %v752_v37 = vmul.f32 %v2536_v23, %v2536_v23  ;;  %v2605_v20 = vld [vmem:[%s2914_s2] ss:$0 sm:$0xff] }
 0x128   :  { %v1714_v40 = vpack.c.bf16 %v1196_v57, %v1196_v57  ;;  %v1098_v28 = vadd.f32 1.0, %v1927_v33  ;;  %1936 = vtanh.f32 %v1005_v29  ;;  %v976_v39 = vmul.f32 0.7978846, %v912_v30 }
 0x129   :  { %1485 = vst.msk [vmem:[%s2915_s3 + $0x3c] sm:$0xf] %vm1469_vm2, %v1682_v51  ;;  %v718_v41 = vmul.f32 %v2539_v25, %v2539_v25  ;;  %v816_v2 = vmul.f32 %v752_v37, %v2536_v23  ;;  %v2562_v43 = vadd.f32 %v2149_v34, %v577_v11  ;;  %v2565_v32 = vadd.f32 %v1788_v17, %v2149_v34  ;;  %v1821_v51 = vpop.f32.mrf.mxu1 }
 0x12a   :  { %1517 = vst.msk [vmem:[%s2915_s3 + $0xbc] sm:$0xf] %vm1469_vm2, %v1714_v40  ;;  %v2568_v42 = vadd.f32 %v1820_v31, %v2149_v34  ;;  %v1162_v5 = vmul.f32 %v1098_v28, %v650_v26  ;;  %1938 = vtanh.f32 %v976_v39  ;;  %v2572_v49 = vadd.f32 %v2149_v34, %v462_v48  ;;  %v465_v48 = vpop.f32.mrf.mxu0 }
 0x12b   :  { %v782_v47 = vmul.f32 %v718_v41, %v2539_v25  ;;  %v655_v44 = vmul.f32 0.5, %v2471_v55  ;;  %v687_v12 = vmul.f32 0.5, %v2475_v22  ;;  %v880_v53 = vmul.f32 0.044715, %v816_v2 }
 0x12c   :  { %v750_v38 = vmul.f32 %v2562_v43, %v2562_v43  ;;  %v1929_v9 = vpop.eup %1928  ;;  %v1680_v54 = vpack.c.bf16 %v1162_v5, %v1162_v5  ;;  %v653_v56 = vmul.f32 0.5, %v2497_v35  ;;  %v723_v60 = vmul.f32 %v2565_v32, %v2565_v32 }
 0x12d   :  { %v846_v58 = vmul.f32 0.044715, %v782_v47  ;;  %v1130_v15 = vadd.f32 1.0, %v1929_v9  ;;  %v944_v34 = vadd.f32 %v880_v53, %v2536_v23  ;;  %v755_v55 = vmul.f32 %v2568_v42, %v2568_v42 }
 0x12e   :  { %v814_v61 = vmul.f32 %v750_v38, %v2562_v43  ;;  %1483 = vst.msk [vmem:[%s2915_s3 + $0x34] sm:$0xf] %vm1469_vm2, %v1680_v54  ;;  %v685_v22 = vmul.f32 0.5, %v2500_v4  ;;  %v787_v62 = vmul.f32 %v723_v60, %v2565_v32  ;;  %v721_v63 = vmul.f32 %v2572_v49, %v2572_v49  ;;  %v1792_v60 = vpop.f32.mrf.mxu0 }
 0x12f   :  { %v910_v35 = vadd.f32 %v846_v58, %v2539_v25  ;;  %v1931_v52 = vpop.eup %1930  ;;  %v1194_v1 = vmul.f32 %v1130_v15, %v682_v36  ;;  %v1008_v24 = vmul.f32 0.7978846, %v944_v34  ;;  %v819_v50 = vmul.f32 %v755_v55, %v2568_v42 }
 0x130   :  { %v878_v45 = vmul.f32 0.044715, %v814_v61  ;;  %v1103_v7 = vadd.f32 1.0, %v1931_v52  ;;  %v851_v59 = vmul.f32 0.044715, %v787_v62  ;;  %v785_v4 = vmul.f32 %v721_v63, %v2572_v49 }
 0x131   :  { %v1933_v6 = vpop.eup %1932  ;;  %v974_v8 = vmul.f32 0.7978846, %v910_v35  ;;  %v1712_v27 = vpack.c.bf16 %v1194_v1, %v1194_v1  ;;  %1940 = vtanh.f32 %v1008_v24  ;;  %v883_v17 = vmul.f32 0.044715, %v819_v50 }
 0x132   :  { %v1135_v10 = vadd.f32 1.0, %v1933_v6  ;;  %v942_v11 = vadd.f32 %v878_v45, %v2562_v43  ;;  %v1167_v13 = vmul.f32 %v1103_v7, %v655_v44  ;;  %v915_v16 = vadd.f32 %v851_v59, %v2565_v32 }
 0x133   :  { %1942 = vtanh.f32 %v974_v8  ;;  %1515 = vst.msk [vmem:[%s2915_s3 + $0xb4] sm:$0xf] %vm1469_vm2, %v1712_v27  ;;  %v849_v21 = vmul.f32 0.044715, %v785_v4  ;;  %v2608_v57 = vadd.f32 %v2605_v20, %v590_v3  ;;  %v947_v33 = vadd.f32 %v883_v17, %v2568_v42 }
 0x134   :  { %v1935_v0 = vpop.eup %1934  ;;  %v1199_v18 = vmul.f32 %v1135_v10, %v687_v12  ;;  %v1006_v19 = vmul.f32 0.7978846, %v942_v11  ;;  %v1685_v29 = vpack.c.bf16 %v1167_v13, %v1167_v13  ;;  %v979_v31 = vmul.f32 0.7978846, %v915_v16  ;;  %v593_v12 = vpop.f32.mrf.mxu1 }
 0x135   :  { %v1101_v30 = vadd.f32 1.0, %v1935_v0  ;;  %v1937_v40 = vpop.eup %1936  ;;  %v656_v36 = vmul.f32 0.5, %v2505_v14  ;;  %v913_v37 = vadd.f32 %v849_v21, %v2572_v49  ;;  %v1011_v41 = vmul.f32 0.7978846, %v947_v33 }
 0x136   :  { %v1717_v26 = vpack.c.bf16 %v1199_v18, %v1199_v18  ;;  %1944 = vtanh.f32 %v1006_v19  ;;  %1488 = vst.msk [vmem:[%s2915_s3 + $0x48] sm:$0xf] %vm1469_vm2, %v1685_v29  ;;  %v1133_v39 = vadd.f32 1.0, %v1937_v40  ;;  %v753_v5 = vmul.f32 %v2608_v57, %v2608_v57  ;;  %v1824_v63 = vpop.f32.mrf.mxu1 }
 0x137   :  { %v1165_v28 = vmul.f32 %v1101_v30, %v653_v56  ;;  %1946 = vtanh.f32 %v979_v31  ;;  %v1939_v2 = vpop.eup %1938  ;;  %v977_v14 = vmul.f32 0.7978846, %v913_v37  ;;  %v2624_v47 = vadd.f32 %v2605_v20, %v1789_v46  ;;  %v478_v37 = vpop.f32.mrf.mxu0 }
 0x138   :  { %1520 = vst.msk [vmem:[%s2915_s3 + $0xc8] sm:$0xf] %vm1469_vm2, %v1717_v26  ;;  %v2627_v44 = vadd.f32 %v2605_v20, %v1821_v51  ;;  %v1197_v38 = vmul.f32 %v1133_v39, %v685_v22  ;;  %v1104_v9 = vadd.f32 1.0, %v1939_v2  ;;  %1948 = vtanh.f32 %v1011_v41 }
 0x139   :  { %v1683_v53 = vpack.c.bf16 %v1165_v28, %v1165_v28  ;;  %v688_v54 = vmul.f32 0.5, %v2536_v23  ;;  %1950 = vtanh.f32 %v977_v14  ;;  %v817_v56 = vmul.f32 %v753_v5, %v2608_v57 }
 0x13a   :  { %v724_v58 = vmul.f32 %v2624_v47, %v2624_v47  ;;  %v1715_v15 = vpack.c.bf16 %v1197_v38, %v1197_v38  ;;  %v1168_v34 = vmul.f32 %v1104_v9, %v656_v36  ;;  %v654_v61 = vmul.f32 0.5, %v2539_v25 }
 0x13b   :  { %1486 = vst.msk [vmem:[%s2915_s3 + $0x40] sm:$0xf] %vm1469_vm2, %v1683_v53  ;;  %v756_v55 = vmul.f32 %v2627_v44, %v2627_v44  ;;  %v881_v23 = vmul.f32 0.044715, %v817_v56  ;;  %v2642_v35 = vadd.f32 %v2605_v20, %v465_v48  ;;  %v2645_v62 = vadd.f32 %v2605_v20, %v593_v12  ;;  %v606_v48 = vpop.f32.mrf.mxu1 }
 0x13c   :  { %v788_v22 = vmul.f32 %v724_v58, %v2624_v47  ;;  %1518 = vst.msk [vmem:[%s2915_s3 + $0xc0] sm:$0xf] %vm1469_vm2, %v1715_v15  ;;  %v1686_v52 = vpack.c.bf16 %v1168_v34, %v1168_v34  ;;  %v686_v25 = vmul.f32 0.5, %v2562_v43  ;;  %v2654_v24 = vadd.f32 %v2605_v20, %v1792_v60 }
 0x13d   :  { %v820_v1 = vmul.f32 %v756_v55, %v2627_v44  ;;  %v659_v45 = vmul.f32 0.5, %v2565_v32  ;;  %v945_v50 = vadd.f32 %v881_v23, %v2608_v57  ;;  %v722_v6 = vmul.f32 %v2642_v35, %v2642_v35 }
 0x13e   :  { %v852_v3 = vmul.f32 0.044715, %v788_v22  ;;  %v1941_v7 = vpop.eup %1940  ;;  %1489 = vst.msk [vmem:[%s2915_s3 + $0x4c] sm:$0xf] %vm1469_vm2, %v1686_v52  ;;  %v691_v43 = vmul.f32 0.5, %v2568_v42  ;;  %v754_v59 = vmul.f32 %v2645_v62, %v2645_v62  ;;  %v2668_v32 = vadd.f32 %v2605_v20, %v1824_v63 }
 0x13f   :  { %v884_v8 = vmul.f32 0.044715, %v820_v1  ;;  %v1136_v27 = vadd.f32 1.0, %v1941_v7  ;;  %v1009_v10 = vmul.f32 0.7978846, %v945_v50  ;;  %v786_v46 = vmul.f32 %v722_v6, %v2642_v35 }
 0x140   :  { %v1943_v4 = vpop.eup %1942  ;;  %v916_v11 = vadd.f32 %v852_v3, %v2624_v47  ;;  %v818_v17 = vmul.f32 %v754_v59, %v2645_v62  ;;  %v727_v42 = vmul.f32 %v2654_v24, %v2654_v24  ;;  %v657_v5 = vmul.f32 0.5, %v2572_v49  ;;  %v1793_v49 = vpop.f32.mrf.mxu0 }
 0x141   :  { %v1102_v13 = vadd.f32 1.0, %v1943_v4  ;;  %v948_v16 = vadd.f32 %v884_v8, %v2627_v44  ;;  %v1200_v0 = vmul.f32 %v1136_v27, %v688_v54  ;;  %1952 = vtanh.f32 %v1009_v10 }
 0x142   :  { %v980_v18 = vmul.f32 0.7978846, %v916_v11  ;;  %v850_v19 = vmul.f32 0.044715, %v786_v46  ;;  %v882_v30 = vmul.f32 0.044715, %v818_v17  ;;  %v791_v31 = vmul.f32 %v727_v42, %v2654_v24  ;;  %v481_v59 = vpop.f32.mrf.mxu0 }
 0x143   :  { %v1945_v21 = vpop.eup %1944  ;;  %v1166_v51 = vmul.f32 %v1102_v13, %v654_v61  ;;  %v1012_v29 = vmul.f32 0.7978846, %v948_v16  ;;  %v1718_v40 = vpack.c.bf16 %v1200_v0, %v1200_v0  ;;  %v759_v58 = vmul.f32 %v2668_v32, %v2668_v32  ;;  %v1825_v61 = vpop.f32.mrf.mxu1 }
 0x144   :  { %v1947_v33 = vpop.eup %1946  ;;  %v1134_v26 = vadd.f32 1.0, %v1945_v21  ;;  %1954 = vtanh.f32 %v980_v18  ;;  %v914_v36 = vadd.f32 %v850_v19, %v2642_v35  ;;  %v946_v41 = vadd.f32 %v882_v30, %v2645_v62 }
 0x145   :  { %v1684_v28 = vpack.c.bf16 %v1166_v51, %v1166_v51  ;;  %v1107_v39 = vadd.f32 1.0, %v1947_v33  ;;  %1956 = vtanh.f32 %v1012_v29  ;;  %v1949_v2 = vpop.eup %1948  ;;  %1521 = vst.msk [vmem:[%s2915_s3 + $0xcc] sm:$0xf] %vm1469_vm2, %v1718_v40  ;;  %v855_v53 = vmul.f32 0.044715, %v791_v31 }
 0x146   :  { %v1198_v14 = vmul.f32 %v1134_v26, %v686_v25  ;;  %v978_v12 = vmul.f32 0.7978846, %v914_v36  ;;  %v1951_v38 = vpop.eup %1950  ;;  %v1139_v54 = vadd.f32 1.0, %v1949_v2  ;;  %v1010_v56 = vmul.f32 0.7978846, %v946_v41  ;;  %v1796_v2 = vpop.f32.mrf.mxu0 }
 0x147   :  { %1487 = vst.msk [vmem:[%s2915_s3 + $0x44] sm:$0xf] %vm1469_vm2, %v1684_v28  ;;  %v1171_v9 = vmul.f32 %v1107_v39, %v659_v45  ;;  %v1105_v15 = vadd.f32 1.0, %v1951_v38  ;;  %v919_v34 = vadd.f32 %v855_v53, %v2654_v24  ;;  %v823_v22 = vmul.f32 %v759_v58, %v2668_v32 }
 0x148   :  { %v1716_v60 = vpack.c.bf16 %v1198_v14, %v1198_v14  ;;  %1958 = vtanh.f32 %v978_v12  ;;  %v1203_v23 = vmul.f32 %v1139_v54, %v691_v43  ;;  %v2697_v25 = vadd.f32 %v2605_v20, %v478_v37 }
 0x149   :  { %v1689_v55 = vpack.c.bf16 %v1171_v9, %v1171_v9  ;;  %1960 = vtanh.f32 %v1010_v56  ;;  %v1169_v63 = vmul.f32 %v1105_v15, %v657_v5  ;;  %v983_v52 = vmul.f32 0.7978846, %v919_v34 }
 0x14a   :  { %1519 = vst.msk [vmem:[%s2915_s3 + $0xc4] sm:$0xf] %vm1469_vm2, %v1716_v60  ;;  %v2700_v1 = vadd.f32 %v2605_v20, %v606_v48  ;;  %v1721_v45 = vpack.c.bf16 %v1203_v23, %v1203_v23  ;;  %v887_v50 = vmul.f32 0.044715, %v823_v22  ;;  %v2707_v3 = vadd.f32 %v2605_v20, %v1793_v49 }
 0x14b   :  { %1492 = vst.msk [vmem:[%s2915_s3 + $0x58] sm:$0xf] %vm1469_vm2, %v1689_v55  ;;  %v2710_v6 = vadd.f32 %v2605_v20, %v1825_v61  ;;  %v1687_v7 = vpack.c.bf16 %v1169_v63, %v1169_v63  ;;  %v689_v43 = vmul.f32 0.5, %v2608_v57  ;;  %1962 = vtanh.f32 %v983_v52  ;;  %v494_v63 = vpop.f32.mrf.mxu0 }
 0x14c   :  { %v725_v8 = vmul.f32 %v2697_v25, %v2697_v25  ;;  %1524 = vst.msk [vmem:[%s2915_s3 + $0xd8] sm:$0xf] %vm1469_vm2, %v1721_v45  ;;  %v660_v4 = vmul.f32 0.5, %v2624_v47  ;;  %v692_v27 = vmul.f32 0.5, %v2627_v44  ;;  %v951_v10 = vadd.f32 %v887_v50, %v2668_v32  ;;  %v609_v44 = vpop.f32.mrf.mxu1 }
 0x14d   :  { %v757_v11 = vmul.f32 %v2700_v1, %v2700_v1  ;;  %1490 = vst.msk [vmem:[%s2915_s3 + $0x50] sm:$0xf] %vm1469_vm2, %v1687_v7  ;;  %v658_v57 = vmul.f32 0.5, %v2642_v35  ;;  %v728_v13 = vmul.f32 %v2707_v3, %v2707_v3  ;;  %v760_v47 = vmul.f32 %v2710_v6, %v2710_v6 }
 0x14e   :  { %v789_v46 = vmul.f32 %v725_v8, %v2697_v25  ;;  %v1953_v16 = vpop.eup %1952  ;;  %v690_v17 = vmul.f32 0.5, %v2645_v62  ;;  %v1015_v42 = vmul.f32 0.7978846, %v951_v10  ;;  %v2737_v18 = vadd.f32 %v2605_v20, %v481_v59  ;;  %v1828_v61 = vpop.f32.mrf.mxu1 }
 0x14f   :  { %v821_v0 = vmul.f32 %v757_v11, %v2700_v1  ;;  %v1137_v19 = vadd.f32 1.0, %v1953_v16  ;;  %v792_v21 = vmul.f32 %v728_v13, %v2707_v3  ;;  %v824_v51 = vmul.f32 %v760_v47, %v2710_v6 }
 0x150   :  { %v853_v35 = vmul.f32 0.044715, %v789_v46  ;;  %1964 = vtanh.f32 %v1015_v42  ;;  %v726_v31 = vmul.f32 %v2737_v18, %v2737_v18  ;;  %v2744_v62 = vadd.f32 %v2605_v20, %v609_v44  ;;  %v622_v11 = vpop.f32.mrf.mxu1  ;;  %v1797_v44 = vpop.f32.mrf.mxu0 }
 0x151   :  { %v1955_v29 = vpop.eup %1954  ;;  %v885_v30 = vmul.f32 0.044715, %v821_v0  ;;  %v1201_v40 = vmul.f32 %v1137_v19, %v689_v43  ;;  %v856_v37 = vmul.f32 0.044715, %v792_v21  ;;  %v888_v39 = vmul.f32 0.044715, %v824_v51 }
 0x152   :  { %v1957_v33 = vpop.eup %1956  ;;  %v1108_v26 = vadd.f32 1.0, %v1955_v29  ;;  %v917_v36 = vadd.f32 %v853_v35, %v2697_v25  ;;  %v790_v41 = vmul.f32 %v726_v31, %v2737_v18  ;;  %v663_v45 = vmul.f32 0.5, %v2654_v24  ;;  %v1829_v31 = vpop.f32.mrf.mxu1 }
 0x153   :  { %v1140_v48 = vadd.f32 1.0, %v1957_v33  ;;  %v949_v28 = vadd.f32 %v885_v30, %v2700_v1  ;;  %v1719_v14 = vpack.c.bf16 %v1201_v40, %v1201_v40  ;;  %v920_v53 = vadd.f32 %v856_v37, %v2707_v3 }
 0x154   :  { %v1172_v5 = vmul.f32 %v1108_v26, %v660_v4  ;;  %v981_v12 = vmul.f32 0.7978846, %v917_v36  ;;  %v952_v56 = vadd.f32 %v888_v39, %v2710_v6  ;;  %v854_v58 = vmul.f32 0.044715, %v790_v41 }
 0x155   :  { %v1959_v38 = vpop.eup %1958  ;;  %v1204_v9 = vmul.f32 %v1140_v48, %v692_v27  ;;  %v1013_v54 = vmul.f32 0.7978846, %v949_v28  ;;  %1522 = vst.msk [vmem:[%s2915_s3 + $0xd0] sm:$0xf] %vm1469_vm2, %v1719_v14  ;;  %v984_v49 = vmul.f32 0.7978846, %v920_v53  ;;  %v758_v8 = vmul.f32 %v2744_v62, %v2744_v62 }
 0x156   :  { %v1961_v60 = vpop.eup %1960  ;;  %v1690_v15 = vpack.c.bf16 %v1172_v5, %v1172_v5  ;;  %v1106_v34 = vadd.f32 1.0, %v1959_v38  ;;  %1966 = vtanh.f32 %v981_v12  ;;  %v1016_v22 = vmul.f32 0.7978846, %v952_v56 }
 0x157   :  { %v1722_v55 = vpack.c.bf16 %v1204_v9, %v1204_v9  ;;  %v1138_v23 = vadd.f32 1.0, %v1961_v60  ;;  %1968 = vtanh.f32 %v1013_v54  ;;  %v918_v50 = vadd.f32 %v854_v58, %v2737_v18 }
 0x158   :  { %1493 = vst.msk [vmem:[%s2915_s3 + $0x5c] sm:$0xf] %vm1469_vm2, %v1690_v15  ;;  %v1170_v52 = vmul.f32 %v1106_v34, %v658_v57  ;;  %1970 = vtanh.f32 %v984_v49  ;;  %v1963_v7 = vpop.eup %1962  ;;  %v2768_v59 = vadd.f32 %v2605_v20, %v1796_v2  ;;  %v2771_v10 = vadd.f32 %v2605_v20, %v1828_v61 }
 0x159   :  { %1525 = vst.msk [vmem:[%s2915_s3 + $0xdc] sm:$0xf] %vm1469_vm2, %v1722_v55  ;;  %v1202_v43 = vmul.f32 %v1138_v23, %v690_v17  ;;  %1972 = vtanh.f32 %v1016_v22  ;;  %v1111_v27 = vadd.f32 1.0, %v1963_v7  ;;  %v982_v24 = vmul.f32 0.7978846, %v918_v50 }
 0x15a   :  { %v1688_v4 = vpack.c.bf16 %v1170_v52, %v1170_v52  ;;  %v695_v46 = vmul.f32 0.5, %v2668_v32  ;;  %v822_v13 = vmul.f32 %v758_v8, %v2744_v62  ;;  %v731_v47 = vmul.f32 %v2768_v59, %v2768_v59 }
 0x15b   :  { %v1720_v57 = vpack.c.bf16 %v1202_v43, %v1202_v43  ;;  %v1175_v16 = vmul.f32 %v1111_v27, %v663_v45  ;;  %v661_v17 = vmul.f32 0.5, %v2697_v25  ;;  %1974 = vtanh.f32 %v982_v24 }
 0x15c   :  { %1491 = vst.msk [vmem:[%s2915_s3 + $0x54] sm:$0xf] %vm1469_vm2, %v1688_v4  ;;  %v763_v42 = vmul.f32 %v2771_v10, %v2771_v10  ;;  %v886_v32 = vmul.f32 0.044715, %v822_v13  ;;  %v795_v0 = vmul.f32 %v731_v47, %v2768_v59  ;;  %v2790_v19 = vadd.f32 %v2605_v20, %v494_v63 }
 0x15d   :  { %1523 = vst.msk [vmem:[%s2915_s3 + $0xd4] sm:$0xf] %vm1469_vm2, %v1720_v57  ;;  %v2793_v35 = vadd.f32 %v2605_v20, %v622_v11  ;;  %v1965_v21 = vpop.eup %1964  ;;  %v1693_v25 = vpack.c.bf16 %v1175_v16, %v1175_v16  ;;  %v693_v51 = vmul.f32 0.5, %v2700_v1  ;;  %v2798_v30 = vadd.f32 %v2605_v20, %v1797_v44  ;;  %v497_v11 = vpop.f32.mrf.mxu0 }
 0x15e   :  { %v827_v29 = vmul.f32 %v763_v42, %v2771_v10  ;;  %v1143_v33 = vadd.f32 1.0, %v1965_v21  ;;  %v664_v40 = vmul.f32 0.5, %v2707_v3  ;;  %v950_v26 = vadd.f32 %v886_v32, %v2744_v62  ;;  %v625_v16 = vpop.f32.mrf.mxu1 }
 0x15f   :  { %v859_v36 = vmul.f32 0.044715, %v795_v0  ;;  %1496 = vst.msk [vmem:[%s2915_s3 + $0x68] sm:$0xf] %vm1469_vm2, %v1693_v25  ;;  %v696_v37 = vmul.f32 0.5, %v2710_v6  ;;  %v729_v48 = vmul.f32 %v2790_v19, %v2790_v19  ;;  %v761_v28 = vmul.f32 %v2793_v35, %v2793_v35 }
 0x160   :  { %v891_v1 = vmul.f32 0.044715, %v827_v29  ;;  %v1207_v39 = vmul.f32 %v1143_v33, %v695_v46  ;;  %v1014_v41 = vmul.f32 0.7978846, %v950_v26  ;;  %v2813_v2 = vadd.f32 %v2605_v20, %v1829_v31 }
 0x161   :  { %v923_v3 = vadd.f32 %v859_v36, %v2768_v59  ;;  %v793_v5 = vmul.f32 %v729_v48, %v2790_v19  ;;  %v825_v6 = vmul.f32 %v761_v28, %v2793_v35  ;;  %v732_v12 = vmul.f32 %v2798_v30, %v2798_v30 }
 0x162   :  { %v955_v14 = vadd.f32 %v891_v1, %v2771_v10  ;;  %v1725_v38 = vpack.c.bf16 %v1207_v39, %v1207_v39  ;;  %v662_v9 = vmul.f32 0.5, %v2737_v18  ;;  %1976 = vtanh.f32 %v1014_v41 }
 0x163   :  { %v1967_v53 = vpop.eup %1966  ;;  %v987_v54 = vmul.f32 0.7978846, %v923_v3  ;;  %v857_v15 = vmul.f32 0.044715, %v793_v5  ;;  %v796_v34 = vmul.f32 %v732_v12, %v2798_v30  ;;  %v889_v55 = vmul.f32 0.044715, %v825_v6 }
 0x164   :  { %v1969_v56 = vpop.eup %1968  ;;  %v1109_v58 = vadd.f32 1.0, %v1967_v53  ;;  %v1019_v60 = vmul.f32 0.7978846, %v955_v14  ;;  %1528 = vst.msk [vmem:[%s2915_s3 + $0xe8] sm:$0xf] %vm1469_vm2, %v1725_v38  ;;  %v764_v18 = vmul.f32 %v2813_v2, %v2813_v2  ;;  %v2841_v25 = vadd.f32 %v2605_v20, %v497_v11 }
 0x165   :  { %v1971_v49 = vpop.eup %1970  ;;  %v1141_v61 = vadd.f32 1.0, %v1969_v56  ;;  %1978 = vtanh.f32 %v987_v54  ;;  %v921_v52 = vadd.f32 %v857_v15, %v2790_v19  ;;  %v953_v7 = vadd.f32 %v889_v55, %v2793_v35 }
 0x166   :  { %v1973_v23 = vpop.eup %1972  ;;  %v1173_v22 = vmul.f32 %v1109_v58, %v661_v17  ;;  %v1112_v63 = vadd.f32 1.0, %v1971_v49  ;;  %1980 = vtanh.f32 %v1019_v60  ;;  %v860_v43 = vmul.f32 0.044715, %v796_v34 }
 0x167   :  { %v1205_v45 = vmul.f32 %v1141_v61, %v693_v51  ;;  %v1144_v50 = vadd.f32 1.0, %v1973_v23  ;;  %v985_v27 = vmul.f32 0.7978846, %v921_v52  ;;  %v828_v24 = vmul.f32 %v764_v18, %v2813_v2 }
 0x168   :  { %v1691_v8 = vpack.c.bf16 %v1173_v22, %v1173_v22  ;;  %v1176_v4 = vmul.f32 %v1112_v63, %v664_v40  ;;  %v1975_v57 = vpop.eup %1974  ;;  %v1017_v47 = vmul.f32 0.7978846, %v953_v7  ;;  %v924_v44 = vadd.f32 %v860_v43, %v2798_v30 }
 0x169   :  { %v1723_v46 = vpack.c.bf16 %v1205_v45, %v1205_v45  ;;  %v1208_v13 = vmul.f32 %v1144_v50, %v696_v37  ;;  %v1110_v42 = vadd.f32 1.0, %v1975_v57  ;;  %1982 = vtanh.f32 %v985_v27 }
 0x16a   :  { %1494 = vst.msk [vmem:[%s2915_s3 + $0x60] sm:$0xf] %vm1469_vm2, %v1691_v8  ;;  %v1694_v17 = vpack.c.bf16 %v1176_v4, %v1176_v4  ;;  %v892_v32 = vmul.f32 0.044715, %v828_v24  ;;  %1984 = vtanh.f32 %v1017_v47  ;;  %v988_v21 = vmul.f32 0.7978846, %v924_v44 }
 0x16b   :  { %1526 = vst.msk [vmem:[%s2915_s3 + $0xe0] sm:$0xf] %vm1469_vm2, %v1723_v46  ;;  %v1726_v0 = vpack.c.bf16 %v1208_v13, %v1208_v13  ;;  %v1174_v51 = vmul.f32 %v1110_v42, %v662_v9  ;;  %v2849_v31 = vadd.f32 %v2605_v20, %v625_v16  ;;  %v730_v33 = vmul.f32 %v2841_v25, %v2841_v25 }
 0x16c   :  { %1497 = vst.msk [vmem:[%s2915_s3 + $0x6c] sm:$0xf] %vm1469_vm2, %v1694_v17  ;;  %v956_v29 = vadd.f32 %v892_v32, %v2813_v2  ;;  %1986 = vtanh.f32 %v988_v21  ;;  %v694_v48 = vmul.f32 0.5, %v2744_v62  ;;  %v667_v6 = vmul.f32 0.5, %v2768_v59 }
 0x16d   :  { %1529 = vst.msk [vmem:[%s2915_s3 + $0xec] sm:$0xf] %vm1469_vm2, %v1726_v0  ;;  %v1692_v40 = vpack.c.bf16 %v1174_v51, %v1174_v51  ;;  %v762_v36 = vmul.f32 %v2849_v31, %v2849_v31  ;;  %v794_v37 = vmul.f32 %v730_v33, %v2841_v25  ;;  %v699_v38 = vmul.f32 0.5, %v2771_v10 }
 0x16e   :  { %v1020_v26 = vmul.f32 0.7978846, %v956_v29  ;;  %v665_v10 = vmul.f32 0.5, %v2790_v19  ;;  %v697_v18 = vmul.f32 0.5, %v2793_v35  ;;  %v668_v19 = vmul.f32 0.5, %v2798_v30 }
 0x16f   :  { %v1977_v1 = vpop.eup %1976  ;;  %1495 = vst.msk [vmem:[%s2915_s3 + $0x64] sm:$0xf] %vm1469_vm2, %v1692_v40  ;;  %v826_v20 = vmul.f32 %v762_v36, %v2849_v31  ;;  %v858_v39 = vmul.f32 0.044715, %v794_v37  ;;  %v700_v35 = vmul.f32 0.5, %v2813_v2  ;;  %v666_v57 = vmul.f32 0.5, %v2841_v25 }
 0x170   :  { %1988 = vtanh.f32 %v1020_v26  ;;  %v1142_v28 = vadd.f32 1.0, %v1977_v1  ;;  %v698_v13 = vmul.f32 0.5, %v2849_v31 }
 0x171   :  { %v890_v3 = vmul.f32 0.044715, %v826_v20  ;;  %v922_v53 = vadd.f32 %v858_v39, %v2841_v25 }
 0x172   :  { %v1979_v41 = vpop.eup %1978  ;;  %v1206_v5 = vmul.f32 %v1142_v28, %v694_v48 }
 0x173   :  { %v1981_v14 = vpop.eup %1980  ;;  %v1115_v12 = vadd.f32 1.0, %v1979_v41  ;;  %v954_v54 = vadd.f32 %v890_v3, %v2849_v31  ;;  %v986_v60 = vmul.f32 0.7978846, %v922_v53 }
 0x174   :  { %v1147_v9 = vadd.f32 1.0, %v1981_v14  ;;  %v1724_v56 = vpack.c.bf16 %v1206_v5, %v1206_v5 }
 0x175   :  { %v1179_v58 = vmul.f32 %v1115_v12, %v667_v6  ;;  %v1018_v15 = vmul.f32 0.7978846, %v954_v54  ;;  %1990 = vtanh.f32 %v986_v60 }
 0x176   :  { %v1211_v62 = vmul.f32 %v1147_v9, %v699_v38  ;;  %v1983_v34 = vpop.eup %1982  ;;  %1527 = vst.msk [vmem:[%s2915_s3 + $0xe4] sm:$0xf] %vm1469_vm2, %v1724_v56 }
 0x177   :  { %v1697_v59 = vpack.c.bf16 %v1179_v58, %v1179_v58  ;;  %v1985_v49 = vpop.eup %1984  ;;  %v1113_v55 = vadd.f32 1.0, %v1983_v34  ;;  %1992 = vtanh.f32 %v1018_v15 }
 0x178   :  { %v1729_v61 = vpack.c.bf16 %v1211_v62, %v1211_v62  ;;  %v1145_v23 = vadd.f32 1.0, %v1985_v49 }
 0x179   :  { %1500 = vst.msk [vmem:[%s2915_s3 + $0x78] sm:$0xf] %vm1469_vm2, %v1697_v59  ;;  %v1987_v22 = vpop.eup %1986  ;;  %v1177_v63 = vmul.f32 %v1113_v55, %v665_v10 }
 0x17a   :  { %1532 = vst.msk [vmem:[%s2915_s3 + $0xf8] sm:$0xf] %vm1469_vm2, %v1729_v61  ;;  %v1209_v52 = vmul.f32 %v1145_v23, %v697_v18  ;;  %v1116_v45 = vadd.f32 1.0, %v1987_v22 }
 0x17b   :  { %v1695_v50 = vpack.c.bf16 %v1177_v63, %v1177_v63 }
 0x17c   :  { %v1727_v43 = vpack.c.bf16 %v1209_v52, %v1209_v52  ;;  %v1180_v8 = vmul.f32 %v1116_v45, %v668_v19 }
 0x17d   :  { %v1989_v7 = vpop.eup %1988  ;;  %1498 = vst.msk [vmem:[%s2915_s3 + $0x70] sm:$0xf] %vm1469_vm2, %v1695_v50 }
 0x17e   :  { %v1148_v4 = vadd.f32 1.0, %v1989_v7  ;;  %1530 = vst.msk [vmem:[%s2915_s3 + $0xf0] sm:$0xf] %vm1469_vm2, %v1727_v43  ;;  %v1698_v27 = vpack.c.bf16 %v1180_v8, %v1180_v8 }
 0x180   :  { %v1212_v30 = vmul.f32 %v1148_v4, %v700_v35  ;;  %1501 = vst.msk [vmem:[%s2915_s3 + $0x7c] sm:$0xf] %vm1469_vm2, %v1698_v27 }
 0x182   :  { %v1730_v24 = vpack.c.bf16 %v1212_v30, %v1212_v30  ;;  %v1991_v11 = vpop.eup %1990 }
 0x183   :  { %v1114_v46 = vadd.f32 1.0, %v1991_v11 }
 0x184   :  { %1533 = vst.msk [vmem:[%s2915_s3 + $0xfc] sm:$0xf] %vm1469_vm2, %v1730_v24  ;;  %v1993_v2 = vpop.eup %1992 }
 0x185   :  { %v1146_v47 = vadd.f32 1.0, %v1993_v2  ;;  %v1178_v44 = vmul.f32 %v1114_v46, %v666_v57 }
 0x187   :  { %v1210_v16 = vmul.f32 %v1146_v47, %v698_v13  ;;  %v1696_v17 = vpack.c.bf16 %v1178_v44, %v1178_v44 }
 0x189   :  { %v1728_v42 = vpack.c.bf16 %v1210_v16, %v1210_v16  ;;  %1499 = vst.msk [vmem:[%s2915_s3 + $0x74] sm:$0xf] %vm1469_vm2, %v1696_v17 }
 0x18b   :  { %1531 = vst.msk [vmem:[%s2915_s3 + $0xf4] sm:$0xf] %vm1469_vm2, %v1728_v42 }

// kernel: mask_decoder_token_forward.11
= control target key start
LH: loop header
LB: loop body
LE: loop exit
PB: predicated region body
PF: predicated region fallthrough
CT: control target
= control target key end

     0   :  { %vm100_vm0 = vcmask 261120   ;;  %s2640_s12 = smov 8   ;;  %s2641_s19 = smov 120   ;;  %vm224_vm1 = vcmask 64512   ;;  %vm2160_vm2 = vcmask 130048   ;;  %vm2177_vm3 = vcmask 195584   ;;  %s4854_s1 = inlined_call_operand.vmem [shape: bf16[32,32], index: 1, kind: input, shape index: {}]   ;;  %s4855_s0 = inlined_call_operand.vmem [shape: bf16[128,32], index: 0, kind: input, shape index: {}]   ;;  %s4856_s4 = inlined_call_operand.vmem [shape: f32[1,8], index: 4, kind: input, shape index: {}]   ;;  %s4857_s3 = inlined_call_operand.vmem [shape: f32[1,8], index: 3, kind: input, shape index: {}]   ;;  %s4858_s2 = inlined_call_operand.vmem [shape: f32[1,32], index: 2, kind: input, shape index: {}]   ;;  %s4859_s5 = inlined_call_operand.vmem [shape: bf16[128,32], index: 5, kind: output, shape index: {}]  }
   0x1   :  { %v2372_v0 = vld [vmem:[%s4854_s1 + $0x8] sm:$0xff]   ;;  %v2373_v1 = vld [vmem:[%s4854_s1] sm:$0xff]   ;;  %v2378_v6 = vld [vmem:[%s4855_s0 + $0x10] sm:$0xff]   ;;  %s2645_s23 = smov 24   ;;  %vm2258_vm4 = vcmask 257024  }
   0x2   :  { %2342 = vmatprep.subr.bf16.mxu0 %v2372_v0  ;;  %2362 = vmatprep.subr.bf16.mxu1 %v2372_v0  ;;  %v2374_v2 = vld [vmem:[%s4855_s0] sm:$0xff]   ;;  %v2376_v4 = vld [vmem:[%s4855_s0 + $0x8] sm:$0xff]   ;;  %v2380_v7 = vld [vmem:[%s4855_s0 + $0x30] sm:$0xff]  }
   0x3   :  { %2343 = vmatpush3.bf16.msra.mxu0 %v2372_v0  ;;  %2364 = vmatpush3.bf16.msra.mxu1 %v2372_v0  ;;  %v2375_v3 = vld [vmem:[%s4855_s0 + $0x20] sm:$0xff]   ;;  %v2377_v5 = vld [vmem:[%s4855_s0 + $0x28] sm:$0xff]   ;;  %v2379_v10 = vld [vmem:[%s4855_s0 + $0x18] sm:$0xff]  }
   0x4   :  { %2344 = vmatprep.subr.bf16.mxu0 %v2373_v1  ;;  %2363 = vmatprep.subr.bf16.mxu1 %v2373_v1  ;;  %v2299_v8 = vld [vmem:[%s4856_s4] ss:$0 sm:$0xff]  ;;  %v2381_v11 = vld [vmem:[%s4855_s0 + $0x38] sm:$0xff]   ;;  %s2642_s0 = smov 112  }
   0x5   :  { %2346 = vmatprep.mubr.msk.bf16.mxu0 %vm100_vm0, %v2374_v2  ;;  %2354 = vmatprep.mubr.msk.bf16.mxu1 %vm100_vm0, %v2375_v3  ;;  %v2298_v9 = vld [vmem:[%s4857_s3] ss:$0 sm:$0xff] }
   0x6   :  { %977 = vrot.lane.b32.xlu1 %v2299_v8, %s2640_s12  ;;  %958 = vrot.lane.b32.xlu0 %v2298_v9, %s2640_s12  ;;  %v2723_v12 = vld [vmem:[%s4858_s2] ss:$0 sm:$0xff]  ;;  %s2643_s2 = smov 104  }
   0x7   :  { %2345 = vmatpush3.bf16.msra.mxu0 %v2373_v1  ;;  %2365 = vmatpush3.bf16.msra.mxu1 %v2373_v1 }
   0xa   :  { %2347 = vmatmul.mubr.msk.bf16.vlgmr.msra.gmra.mxu0 %vm100_vm0, %v2376_v4  ;;  %2355 = vmatmul.mubr.msk.bf16.vlgmr.msra.gmra.mxu1 %vm100_vm0, %v2377_v5 }
   0xb   :  { %2350 = vmatprep.mubr.msk.bf16.mxu0 %vm100_vm0, %v2378_v6  ;;  %2358 = vmatprep.mubr.msk.bf16.mxu1 %vm100_vm0, %v2380_v7 }
  0x12   :  { %2351 = vmatmul.mubr.msk.bf16.gmra.mxu0 %vm100_vm0, %v2379_v10  ;;  %2359 = vmatmul.mubr.msk.bf16.gmra.mxu1 %vm100_vm0, %v2381_v11 }
  0x78   :  { %v2861_v51 = vpop.permute.xlu1 %977  ;;  %v2877_v58 = vpop.permute.xlu0 %958 }
  0xca   :  { %v2348_v13 = vpop.f32.mrf.mxu0  ;;  %v2356_v14 = vpop.f32.mrf.mxu1 }
  0xcb   :  { %v2726_v15 = vadd.f32 %v2348_v13, %v2723_v12  ;;  %v2729_v16 = vadd.f32 %v2356_v14, %v2723_v12 }
  0xcc   :  { %v159_v19 = vpop.f32.mrf.mxu0  ;;  %v191_v21 = vpop.f32.mrf.mxu1 }
  0xcd   :  { %658 = vrot.lane.b32.xlu0 %v2729_v16, %s2641_s19  ;;  %642 = vrot.lane.b32.xlu1 %v2726_v15, %s2641_s19  ;;  %v255_v17 = vsel %vm224_vm1, %v2729_v16, 0.0  ;;  %v231_v18 = vsel %vm224_vm1, %v2726_v15, 0.0  ;;  %v2748_v20 = vadd.f32 %v2723_v12, %v159_v19  ;;  %v2755_v22 = vadd.f32 %v2723_v12, %v191_v21 }
  0xce   :  { %v2349_v23 = vpop.f32.mrf.mxu0  ;;  %v2357_v25 = vpop.f32.mrf.mxu1 }
  0xcf   :  { %v2766_v24 = vadd.f32 %v2349_v23, %v2723_v12  ;;  %v2771_v26 = vadd.f32 %v2357_v25, %v2723_v12  ;;  %v225_v27 = vsel %vm224_vm1, %v2748_v20, 0.0  ;;  %v249_v30 = vsel %vm224_vm1, %v2755_v22, 0.0 }
  0xd0   :  { %v162_v28 = vpop.f32.mrf.mxu0  ;;  %v194_v33 = vpop.f32.mrf.mxu1 }
  0xd1   :  { %1144 = vrot.lane.b32.xlu0 %v2726_v15, %s2642_s0  ;;  %1646 = vrot.lane.b32.xlu1 %v2726_v15, %s2643_s2  ;;  %v2786_v29 = vadd.f32 %v2723_v12, %v162_v28  ;;  %v234_v36 = vsel %vm224_vm1, %v2766_v24, 0.0  ;;  %v258_v38 = vsel %vm224_vm1, %v2771_v26, 0.0  ;;  %v2815_v39 = vadd.f32 %v2723_v12, %v194_v33 }
  0xd2   :  { %v2352_v32 = vpop.f32.mrf.mxu0  ;;  %v2360_v35 = vpop.f32.mrf.mxu1 }
  0xd3   :  { %v228_v31 = vsel %vm224_vm1, %v2786_v29, 0.0  ;;  %v2793_v34 = vadd.f32 %v2352_v32, %v2723_v12  ;;  %v2800_v37 = vadd.f32 %v2360_v35, %v2723_v12  ;;  %v252_v46 = vsel %vm224_vm1, %v2815_v39, 0.0 }
  0xd4   :  { %v175_v42 = vpop.f32.mrf.mxu0  ;;  %v207_v44 = vpop.f32.mrf.mxu1 }
  0xd5   :  { %1160 = vrot.lane.b32.xlu0 %v2729_v16, %s2642_s0  ;;  %1662 = vrot.lane.b32.xlu1 %v2729_v16, %s2643_s2  ;;  %v243_v40 = vsel %vm224_vm1, %v2793_v34, 0.0  ;;  %v267_v41 = vsel %vm224_vm1, %v2800_v37, 0.0  ;;  %v2832_v43 = vadd.f32 %v2723_v12, %v175_v42  ;;  %v2837_v45 = vadd.f32 %v2723_v12, %v207_v44 }
  0xd6   :  { %v2353_v47 = vpop.f32.mrf.mxu0  ;;  %v2361_v49 = vpop.f32.mrf.mxu1 }
  0xd7   :  { %v2854_v48 = vadd.f32 %v2353_v47, %v2723_v12  ;;  %v2859_v50 = vadd.f32 %v2361_v49, %v2723_v12  ;;  %v237_v53 = vsel %vm224_vm1, %v2832_v43, 0.0  ;;  %v261_v54 = vsel %vm224_vm1, %v2837_v45, 0.0 }
  0xd8   :  { %v178_v10 = vpop.f32.mrf.mxu0 }
  0xd9   :  { %v246_v2 = vsel %vm224_vm1, %v2854_v48, 0.0  ;;  %v270_v4 = vsel %vm224_vm1, %v2859_v50, 0.0  ;;  %v2895_v13 = vadd.f32 %v2723_v12, %v178_v10 }
  0xf4   :  { %256 = vadd.xlane.f32.xlu0 %v255_v17 }
  0xf9   :  { %232 = vadd.xlane.f32.xlu1 %v231_v18  ;;  %v210_v18 = vpop.f32.mrf.mxu1 }
  0xfa   :  { %v2903_v21 = vadd.f32 %v2723_v12, %v210_v18 }
  0xfc   :  { %v264_v10 = vsel %vm224_vm1, %v2903_v21, 0.0 }
 0x10a   :  { %1140 = vrot.lane.b32.xlu1 %v2748_v20, %s2642_s0  ;;  %638 = vrot.lane.b32.xlu0 %v2748_v20, %s2641_s19 }
 0x10e   :  { %1642 = vrot.lane.b32.xlu1 %v2748_v20, %s2643_s2  ;;  %654 = vrot.lane.b32.xlu0 %v2755_v22, %s2641_s19 }
 0x112   :  { %1658 = vrot.lane.b32.xlu1 %v2755_v22, %s2643_s2  ;;  %1156 = vrot.lane.b32.xlu0 %v2755_v22, %s2642_s0 }
 0x116   :  { %644 = vrot.lane.b32.xlu1 %v2766_v24, %s2641_s19 }
 0x11a   :  { %660 = vrot.lane.b32.xlu1 %v2771_v26, %s2641_s19 }
 0x11e   :  { %1146 = vrot.lane.b32.xlu1 %v2766_v24, %s2642_s0 }
 0x122   :  { %1162 = vrot.lane.b32.xlu1 %v2771_v26, %s2642_s0 }
 0x126   :  { %1648 = vrot.lane.b32.xlu1 %v2766_v24, %s2643_s2 }
 0x12a   :  { %1664 = vrot.lane.b32.xlu1 %v2771_v26, %s2643_s2 }
 0x131   :  { %226 = vadd.xlane.f32.xlu0 %v225_v27 }
 0x135   :  { %250 = vadd.xlane.f32.xlu0 %v249_v30 }
 0x139   :  { %229 = vadd.xlane.f32.xlu0 %v228_v31 }
 0x13f   :  { %v643_v52 = vpop.permute.xlu1 %642  ;;  %v659_v60 = vpop.permute.xlu0 %658 }
 0x140   :  { %v692_v9 = vsel %vm224_vm1, %v643_v52, 0.0  ;;  %v716_v14 = vsel %vm224_vm1, %v659_v60, 0.0 }
 0x143   :  { %v1647_v55 = vpop.permute.xlu1 %1646  ;;  %v2881_v62 = vpop.permute.xlu0 %1144 }
 0x144   :  { %v1696_v27 = vsel %vm224_vm1, %v1647_v55, 0.0 }
 0x147   :  { %v1663_v56 = vpop.permute.xlu1 %1662  ;;  %v1161_v0 = vpop.permute.xlu0 %1160 }
 0x148   :  { %v1218_v23 = vsel %vm224_vm1, %v1161_v0, 0.0  ;;  %v1720_v12 = vsel %vm224_vm1, %v1663_v56, 0.0 }
 0x14e   :  { %235 = vadd.xlane.f32.xlu1 %v234_v36 }
 0x14f   :  { %650 = vrot.lane.b32.xlu0 %v2793_v34, %s2641_s19 }
 0x152   :  { %259 = vadd.xlane.f32.xlu1 %v258_v38 }
 0x153   :  { %666 = vrot.lane.b32.xlu0 %v2800_v37, %s2641_s19 }
 0x157   :  { %1152 = vrot.lane.b32.xlu0 %v2793_v34, %s2642_s0 }
 0x15b   :  { %1168 = vrot.lane.b32.xlu0 %v2800_v37, %s2642_s0 }
 0x15f   :  { %1670 = vrot.lane.b32.xlu0 %v2800_v37, %s2643_s2 }
 0x163   :  { %640 = vrot.lane.b32.xlu1 %v2786_v29, %s2641_s19 }
 0x167   :  { %656 = vrot.lane.b32.xlu1 %v2815_v39, %s2641_s19 }
 0x16b   :  { %1142 = vrot.lane.b32.xlu1 %v2786_v29, %s2642_s0 }
 0x16f   :  { %1158 = vrot.lane.b32.xlu1 %v2815_v39, %s2642_s0 }
 0x173   :  { %1644 = vrot.lane.b32.xlu1 %v2786_v29, %s2643_s2 }
 0x177   :  { %1660 = vrot.lane.b32.xlu1 %v2815_v39, %s2643_s2 }
 0x17d   :  { %v2885_v3 = vpop.xlane.xlu0 %256 }
 0x17e   :  { %244 = vadd.xlane.f32.xlu0 %v243_v40 }
 0x181   :  { %v639_v6 = vpop.permute.xlu0 %638 }
 0x182   :  { %268 = vadd.xlane.f32.xlu0 %v267_v41  ;;  %v2875_v57 = vpop.xlane.xlu1 %232  ;;  %v686_v32 = vsel %vm224_vm1, %v639_v6, 0.0 }
 0x185   :  { %v655_v8 = vpop.permute.xlu0 %654 }
 0x186   :  { %v1141_v59 = vpop.permute.xlu1 %1140  ;;  %v710_v36 = vsel %vm224_vm1, %v655_v8, 0.0 }
 0x187   :  { %v1188_v40 = vsel %vm224_vm1, %v1141_v59, 0.0 }
 0x189   :  { %v1157_v17 = vpop.permute.xlu0 %1156 }
 0x18a   :  { %v1643_v61 = vpop.permute.xlu1 %1642  ;;  %v1212_v44 = vsel %vm224_vm1, %v1157_v17, 0.0 }
 0x18b   :  { %v1690_v47 = vsel %vm224_vm1, %v1643_v61, 0.0 }
 0x18e   :  { %v1659_v63 = vpop.permute.xlu1 %1658 }
 0x18f   :  { %v1714_v52 = vsel %vm224_vm1, %v1659_v63, 0.0 }
 0x192   :  { %v645_v1 = vpop.permute.xlu1 %644 }
 0x193   :  { %v695_v55 = vsel %vm224_vm1, %v645_v1, 0.0 }
 0x196   :  { %v2889_v5 = vpop.permute.xlu1 %660 }
 0x198   :  { %646 = vrot.lane.b32.xlu0 %v2832_v43, %s2641_s19 }
 0x19a   :  { %v1147_v7 = vpop.permute.xlu1 %1146 }
 0x19b   :  { %253 = vadd.xlane.f32.xlu1 %v252_v46  ;;  %v1197_v59 = vsel %vm224_vm1, %v1147_v7, 0.0  ;;  %v240_v7 = vsel %vm224_vm1, %v2895_v13, 0.0 }
 0x19c   :  { %662 = vrot.lane.b32.xlu0 %v2837_v45, %s2641_s19 }
 0x19e   :  { %v2892_v11 = vpop.permute.xlu1 %1162 }
 0x1a0   :  { %1148 = vrot.lane.b32.xlu0 %v2832_v43, %s2642_s0 }
 0x1a2   :  { %v2900_v19 = vpop.permute.xlu1 %1648 }
 0x1a4   :  { %1164 = vrot.lane.b32.xlu0 %v2837_v45, %s2642_s0 }
 0x1a6   :  { %v2911_v28 = vpop.permute.xlu1 %1664 }
 0x1ac   :  { %1654 = vrot.lane.b32.xlu1 %v2793_v34, %s2643_s2 }
 0x1b0   :  { %1650 = vrot.lane.b32.xlu1 %v2832_v43, %s2643_s2 }
 0x1b4   :  { %1666 = vrot.lane.b32.xlu1 %v2837_v45, %s2643_s2 }
 0x1b8   :  { %652 = vrot.lane.b32.xlu1 %v2854_v48, %s2641_s19 }
 0x1ba   :  { %v2906_v25 = vpop.xlane.xlu0 %226 }
 0x1bc   :  { %668 = vrot.lane.b32.xlu1 %v2859_v50, %s2641_s19 }
 0x1be   :  { %v2915_v30 = vpop.xlane.xlu0 %250 }
 0x1c0   :  { %1154 = vrot.lane.b32.xlu1 %v2854_v48, %s2642_s0 }
 0x1c2   :  { %v2923_v33 = vpop.xlane.xlu0 %229 }
 0x1c3   :  { %238 = vadd.xlane.f32.xlu0 %v237_v53 }
 0x1c4   :  { %1170 = vrot.lane.b32.xlu1 %v2859_v50, %s2642_s0 }
 0x1c6   :  { %v651_v38 = vpop.permute.xlu0 %650 }
 0x1c7   :  { %262 = vadd.xlane.f32.xlu0 %v261_v54  ;;  %v704_v63 = vsel %vm224_vm1, %v651_v38, 0.0  ;;  %v1221_v38 = vsel %vm224_vm1, %v2892_v11, 0.0  ;;  %v276_v11 = vmul.f32 0.125, %v2875_v57 }
 0x1c8   :  { %1672 = vrot.lane.b32.xlu1 %v2859_v50, %s2643_s2 }
 0x1ca   :  { %v667_v42 = vpop.permute.xlu0 %666 }
 0x1cb   :  { %v728_v1 = vsel %vm224_vm1, %v667_v42, 0.0 }
 0x1ce   :  { %v1153_v49 = vpop.permute.xlu0 %1152 }
 0x1d2   :  { %v1169_v54 = vpop.permute.xlu0 %1168 }
 0x1d3   :  { %v1230_v17 = vsel %vm224_vm1, %v1169_v54, 0.0 }
 0x1d6   :  { %v2944_v60 = vpop.permute.xlu0 %1670 }
 0x1d7   :  { %v2918_v31 = vpop.xlane.xlu1 %235 }
 0x1db   :  { %v2927_v35 = vpop.xlane.xlu1 %259 }
 0x1dd   :  { %1656 = vrot.lane.b32.xlu0 %v2854_v48, %s2643_s2 }
 0x1df   :  { %v2933_v41 = vpop.permute.xlu1 %640 }
 0x1e0   :  { %v689_v54 = vsel %vm224_vm1, %v2933_v41, 0.0 }
 0x1e3   :  { %v2936_v46 = vpop.permute.xlu1 %656 }
 0x1e7   :  { %v1143_v53 = vpop.permute.xlu1 %1142 }
 0x1e8   :  { %v1191_v0 = vsel %vm224_vm1, %v1143_v53, 0.0 }
 0x1eb   :  { %v2941_v56 = vpop.permute.xlu1 %1158 }
 0x1ec   :  { %247 = vadd.xlane.f32.xlu1 %v246_v2 }
 0x1ef   :  { %v2947_v61 = vpop.permute.xlu1 %1644 }
 0x1f0   :  { %271 = vadd.xlane.f32.xlu1 %v270_v4 }
 0x1f3   :  { %v2952_v4 = vpop.permute.xlu1 %1660 }
 0x1fc   :  { %693 = vadd.xlane.f32.xlu0 %v692_v9  ;;  %v1206_v9 = vsel %vm224_vm1, %v1153_v49, 0.0  ;;  %v1723_v49 = vsel %vm224_vm1, %v2911_v28, 0.0  ;;  %v713_v28 = vsel %vm224_vm1, %v2936_v46, 0.0  ;;  %v282_v46 = vmul.f32 0.125, %v2915_v30 }
 0x200   :  { %717 = vadd.xlane.f32.xlu0 %v716_v14 }
 0x201   :  { %648 = vrot.lane.b32.xlu1 %v2895_v13, %s2641_s19 }
 0x204   :  { %1219 = vadd.xlane.f32.xlu0 %v1218_v23  ;;  %v1194_v23 = vsel %vm224_vm1, %v2881_v62, 0.0  ;;  %v1699_v62 = vsel %vm224_vm1, %v2900_v19, 0.0  ;;  %v284_v19 = vmul.f32 0.125, %v2885_v3 }
 0x205   :  { %664 = vrot.lane.b32.xlu1 %v2903_v21, %s2641_s19 }
 0x207   :  { %v2949_v2 = vpop.xlane.xlu0 %244 }
 0x208   :  { %1697 = vadd.xlane.f32.xlu0 %v1696_v27 }
 0x209   :  { %1150 = vrot.lane.b32.xlu1 %v2895_v13, %s2642_s0 }
 0x20b   :  { %v2955_v6 = vpop.xlane.xlu0 %268 }
 0x20c   :  { %1721 = vadd.xlane.f32.xlu0 %v1720_v12 }
 0x20d   :  { %1166 = vrot.lane.b32.xlu1 %v2903_v21, %s2642_s0 }
 0x20f   :  { %v647_v14 = vpop.permute.xlu0 %646 }
 0x210   :  { %687 = vadd.xlane.f32.xlu0 %v686_v32  ;;  %v719_v32 = vsel %vm224_vm1, %v2889_v5, 0.0 }
 0x211   :  { %1652 = vrot.lane.b32.xlu1 %v2895_v13, %s2643_s2 }
 0x213   :  { %v663_v12 = vpop.permute.xlu0 %662 }
 0x214   :  { %711 = vadd.xlane.f32.xlu0 %v710_v36  ;;  %v698_v36 = vsel %vm224_vm1, %v647_v14, 0.0  ;;  %v722_v42 = vsel %vm224_vm1, %v663_v12, 0.0  ;;  %v1693_v14 = vsel %vm224_vm1, %v2947_v61, 0.0 }
 0x215   :  { %1668 = vrot.lane.b32.xlu1 %v2903_v21, %s2643_s2 }
 0x218   :  { %1189 = vadd.xlane.f32.xlu0 %v1188_v40  ;;  %v1149_v40 = vpop.permute.xlu0 %1148 }
 0x21c   :  { %1213 = vadd.xlane.f32.xlu0 %v1212_v44  ;;  %v1165_v5 = vpop.permute.xlu0 %1164 }
 0x21d   :  { %v1224_v53 = vsel %vm224_vm1, %v1165_v5, 0.0 }
 0x220   :  { %1691 = vadd.xlane.f32.xlu0 %v1690_v47  ;;  %v1200_v47 = vsel %vm224_vm1, %v1149_v40, 0.0 }
 0x224   :  { %1715 = vadd.xlane.f32.xlu0 %v1714_v52  ;;  %v2959_v8 = vpop.xlane.xlu1 %253 }
 0x228   :  { %696 = vadd.xlane.f32.xlu0 %v695_v55  ;;  %v1655_v18 = vpop.permute.xlu1 %1654  ;;  %v2985_v55 = vsub.f32 %v2726_v15, %v276_v11 }
 0x229   :  { %v1708_v27 = vsel %vm224_vm1, %v1655_v18, 0.0 }
 0x22a   :  { %v308_v3 = vmul.f32 %v2985_v55, %v2985_v55 }
 0x22c   :  { %1198 = vadd.xlane.f32.xlu0 %v1197_v59  ;;  %v1651_v44 = vpop.permute.xlu1 %1650 }
 0x22d   :  { %v1702_v59 = vsel %vm224_vm1, %v1651_v44, 0.0 }
 0x230   :  { %1192 = vadd.xlane.f32.xlu0 %v1191_v0  ;;  %v1667_v52 = vpop.permute.xlu1 %1666  ;;  %v2991_v0 = vsub.f32 %v2729_v16, %v284_v19 }
 0x231   :  { %v1726_v41 = vsel %vm224_vm1, %v1667_v52, 0.0 }
 0x234   :  { %705 = vadd.xlane.f32.xlu0 %v704_v63  ;;  %v653_v57 = vpop.permute.xlu1 %652  ;;  %v274_v63 = vmul.f32 0.125, %v2906_v25  ;;  %v316_v25 = vmul.f32 %v2991_v0, %v2991_v0 }
 0x236   :  { %v352_v18 = vsel %vm224_vm1, %v316_v25, 0.0 }
 0x238   :  { %729 = vadd.xlane.f32.xlu0 %v728_v1  ;;  %v1215_v1 = vsel %vm224_vm1, %v2941_v56, 0.0  ;;  %v280_v56 = vmul.f32 0.125, %v2949_v2 }
 0x239   :  { %241 = vadd.xlane.f32.xlu1 %v240_v7  ;;  %v3000_v7 = vsub.f32 %v2748_v20, %v274_v63 }
 0x23a   :  { %v3018_v61 = vsub.f32 %v2793_v34, %v280_v56  ;;  %v1732_v56 = vsel %vm224_vm1, %v2944_v60, 0.0 }
 0x23b   :  { %v306_v30 = vmul.f32 %v3000_v7, %v3000_v7 }
 0x23c   :  { %1207 = vadd.xlane.f32.xlu0 %v1206_v9  ;;  %v669_v9 = vpop.permute.xlu1 %668  ;;  %v312_v44 = vmul.f32 %v3018_v61, %v3018_v61 }
 0x23d   :  { %265 = vadd.xlane.f32.xlu1 %v264_v10  ;;  %v328_v10 = vsel %vm224_vm1, %v308_v3, 0.0 }
 0x23e   :  { %v340_v11 = vsel %vm224_vm1, %v312_v44, 0.0  ;;  %v285_v44 = vmul.f32 0.125, %v2927_v35 }
 0x240   :  { %1231 = vadd.xlane.f32.xlu0 %v1230_v17  ;;  %v3009_v17 = vsub.f32 %v2755_v22, %v282_v46 }
 0x241   :  { %1195 = vadd.xlane.f32.xlu1 %v1194_v23  ;;  %v1717_v23 = vsel %vm224_vm1, %v2952_v4, 0.0 }
 0x242   :  { %v314_v2 = vmul.f32 %v3009_v17, %v3009_v17 }
 0x244   :  { %1709 = vadd.xlane.f32.xlu0 %v1708_v27  ;;  %v1155_v27 = vpop.permute.xlu1 %1154 }
 0x245   :  { %720 = vadd.xlane.f32.xlu1 %v719_v32  ;;  %v288_v32 = vmul.f32 0.125, %v2955_v6 }
 0x247   :  { %v3026_v40 = vsub.f32 %v2800_v37, %v288_v32 }
 0x248   :  { %699 = vadd.xlane.f32.xlu0 %v698_v36  ;;  %v322_v36 = vsel %vm224_vm1, %v306_v30, 0.0  ;;  %v1171_v4 = vpop.permute.xlu1 %1170 }
 0x249   :  { %1222 = vadd.xlane.f32.xlu1 %v1221_v38  ;;  %v707_v38 = vsel %vm224_vm1, %v653_v57, 0.0  ;;  %v320_v52 = vmul.f32 %v3026_v40, %v3026_v40  ;;  %v1233_v57 = vsel %vm224_vm1, %v1171_v4, 0.0 }
 0x24c   :  { %723 = vadd.xlane.f32.xlu0 %v722_v42  ;;  %v239_v12 = vpop.xlane.xlu0 %238 }
 0x24d   :  { %1700 = vadd.xlane.f32.xlu1 %v1699_v62  ;;  %v278_v42 = vmul.f32 0.125, %v239_v12  ;;  %v346_v62 = vsel %vm224_vm1, %v314_v2, 0.0  ;;  %v277_v2 = vmul.f32 0.125, %v2918_v31  ;;  %v275_v31 = vmul.f32 0.125, %v2923_v33 }
 0x24e   :  { %v283_v33 = vmul.f32 0.125, %v2959_v8 }
 0x24f   :  { %v3033_v5 = vsub.f32 %v2832_v43, %v278_v42 }
 0x250   :  { %1201 = vadd.xlane.f32.xlu0 %v1200_v47  ;;  %v263_v6 = vpop.xlane.xlu0 %262  ;;  %v731_v47 = vsel %vm224_vm1, %v669_v9, 0.0 }
 0x251   :  { %1724 = vadd.xlane.f32.xlu1 %v1723_v49  ;;  %v286_v49 = vmul.f32 0.125, %v263_v6 }
 0x253   :  { %v3042_v19 = vsub.f32 %v2837_v45, %v286_v49 }
 0x254   :  { %1225 = vadd.xlane.f32.xlu0 %v1224_v53  ;;  %v1209_v53 = vsel %vm224_vm1, %v1155_v27, 0.0  ;;  %v1657_v63 = vpop.permute.xlu0 %1656 }
 0x255   :  { %690 = vadd.xlane.f32.xlu1 %v689_v54  ;;  %v3039_v54 = vpop.permute.xlu1 %1672  ;;  %v1711_v46 = vsel %vm224_vm1, %v1657_v63, 0.0 }
 0x258   :  { %1703 = vadd.xlane.f32.xlu0 %v1702_v59  ;;  %v364_v59 = vsel %vm224_vm1, %v320_v52, 0.0  ;;  %v3076_v52 = vsub.f32 %v2771_v26, %v285_v44 }
 0x259   :  { %714 = vadd.xlane.f32.xlu1 %v713_v28  ;;  %v310_v28 = vmul.f32 %v3033_v5, %v3033_v5 }
 0x25b   :  { %v334_v3 = vsel %vm224_vm1, %v310_v28, 0.0  ;;  %v3084_v28 = vsub.f32 %v2786_v29, %v275_v31 }
 0x25c   :  { %1727 = vadd.xlane.f32.xlu0 %v1726_v41 }
 0x25d   :  { %1216 = vadd.xlane.f32.xlu1 %v1215_v1  ;;  %v318_v1 = vmul.f32 %v3042_v19, %v3042_v19 }
 0x260   :  { %329 = vadd.xlane.f32.xlu0 %v328_v10  ;;  %v358_v10 = vsel %vm224_vm1, %v318_v1, 0.0  ;;  %v3094_v1 = vsub.f32 %v2815_v39, %v283_v33 }
 0x261   :  { %1694 = vadd.xlane.f32.xlu1 %v1693_v14 }
 0x264   :  { %353 = vadd.xlane.f32.xlu0 %v352_v18 }
 0x265   :  { %1718 = vadd.xlane.f32.xlu1 %v1717_v23 }
 0x268   :  { %323 = vadd.xlane.f32.xlu0 %v322_v36 }
 0x269   :  { %708 = vadd.xlane.f32.xlu1 %v707_v38 }
 0x26c   :  { %347 = vadd.xlane.f32.xlu0 %v346_v62  ;;  %v3065_v62 = vsub.f32 %v2766_v24, %v277_v2 }
 0x26d   :  { %732 = vadd.xlane.f32.xlu1 %v731_v47 }
 0x270   :  { %341 = vadd.xlane.f32.xlu0 %v340_v11 }
 0x271   :  { %1210 = vadd.xlane.f32.xlu1 %v1209_v53 }
 0x274   :  { %365 = vadd.xlane.f32.xlu0 %v364_v59  ;;  %v309_v59 = vmul.f32 %v3065_v62, %v3065_v62 }
 0x275   :  { %1234 = vadd.xlane.f32.xlu1 %v1233_v57  ;;  %v248_v41 = vpop.xlane.xlu1 %247 }
 0x276   :  { %v331_v63 = vsel %vm224_vm1, %v309_v59, 0.0 }
 0x278   :  { %335 = vadd.xlane.f32.xlu0 %v334_v3  ;;  %v317_v3 = vmul.f32 %v3076_v52, %v3076_v52 }
 0x279   :  { %v272_v9 = vpop.xlane.xlu1 %271  ;;  %1712 = vadd.xlane.f32.xlu1 %v1711_v46 }
 0x27a   :  { %v355_v8 = vsel %vm224_vm1, %v317_v3, 0.0 }
 0x27c   :  { %359 = vadd.xlane.f32.xlu0 %v358_v10  ;;  %v307_v10 = vmul.f32 %v3084_v28, %v3084_v28 }
 0x27d   :  { %v649_v25 = vpop.permute.xlu1 %648 }
 0x27e   :  { %v701_v14 = vsel %vm224_vm1, %v649_v25, 0.0  ;;  %v281_v25 = vmul.f32 0.125, %v248_v41 }
 0x27f   :  { %702 = vadd.xlane.f32.xlu1 %v701_v14 }
 0x280   :  { %1733 = vadd.xlane.f32.xlu0 %v1732_v56 }
 0x281   :  { %v665_v18 = vpop.permute.xlu1 %664 }
 0x282   :  { %v725_v30 = vsel %vm224_vm1, %v665_v18, 0.0 }
 0x283   :  { %726 = vadd.xlane.f32.xlu1 %v725_v30  ;;  %v325_v30 = vsel %vm224_vm1, %v307_v10, 0.0 }
 0x285   :  { %v1151_v23 = vpop.permute.xlu1 %1150  ;;  %v3057_v27 = vpop.xlane.xlu0 %693 }
 0x286   :  { %v1203_v12 = vsel %vm224_vm1, %v1151_v23, 0.0  ;;  %v315_v23 = vmul.f32 %v3094_v1, %v3094_v1 }
 0x287   :  { %1204 = vadd.xlane.f32.xlu1 %v1203_v12  ;;  %v3106_v12 = vsub.f32 %v2854_v48, %v281_v25 }
 0x289   :  { %v1167_v32 = vpop.permute.xlu1 %1166  ;;  %v718_v36 = vpop.xlane.xlu0 %717 }
 0x28a   :  { %v1227_v38 = vsel %vm224_vm1, %v1167_v32, 0.0  ;;  %v744_v4 = vmul.f32 0.125, %v718_v36  ;;  %v289_v32 = vmul.f32 0.125, %v272_v9 }
 0x28b   :  { %1228 = vadd.xlane.f32.xlu1 %v1227_v38 }
 0x28c   :  { %v3070_v47 = vsub.f32 %v2729_v16, %v744_v4  ;;  %v349_v4 = vsel %vm224_vm1, %v315_v23, 0.0 }
 0x28d   :  { %v1653_v60 = vpop.permute.xlu1 %1652  ;;  %v3062_v42 = vpop.xlane.xlu0 %1219 }
 0x28e   :  { %v1705_v6 = vsel %vm224_vm1, %v1653_v60, 0.0  ;;  %4906 = vst [vmem:[#allocation2_spill] sm:$0xff] %v3070_v47  ;;  %v776_v35 = vmul.f32 %v3070_v47, %v3070_v47  ;;  %v3116_v60 = vsub.f32 %v2859_v50, %v289_v32 }
 0x28f   :  { %1706 = vadd.xlane.f32.xlu1 %v1705_v6  ;;  %v313_v6 = vmul.f32 %v3106_v12, %v3106_v12 }
 0x291   :  { %v1669_v49 = vpop.permute.xlu1 %1668  ;;  %v3073_v11 = vpop.xlane.xlu0 %1697  ;;  %v343_v59 = vsel %vm224_vm1, %v313_v6, 0.0 }
 0x292   :  { %v1729_v53 = vsel %vm224_vm1, %v1669_v49, 0.0 }
 0x293   :  { %1730 = vadd.xlane.f32.xlu1 %v1729_v53 }
 0x295   :  { %v3087_v57 = vpop.xlane.xlu0 %1721 }
 0x296   :  { %818 = vrot.lane.b32.xlu0 %v776_v35, %s2641_s19  ;;  %v321_v35 = vmul.f32 %v3116_v60, %v3116_v60 }
 0x297   :  { %332 = vadd.xlane.f32.xlu1 %v331_v63 }
 0x298   :  { %v367_v63 = vsel %vm224_vm1, %v321_v35, 0.0 }
 0x299   :  { %v688_v46 = vpop.xlane.xlu0 %687 }
 0x29a   :  { %v734_v14 = vmul.f32 0.125, %v688_v46 }
 0x29b   :  { %356 = vadd.xlane.f32.xlu1 %v355_v8 }
 0x29c   :  { %v3100_v56 = vsub.f32 %v2748_v20, %v734_v14 }
 0x29d   :  { %v712_v18 = vpop.xlane.xlu0 %711 }
 0x29e   :  { %4907 = vst [vmem:[#allocation3_spill] sm:$0xff] %v3100_v56  ;;  %v766_v41 = vmul.f32 %v3100_v56, %v3100_v56  ;;  %v742_v36 = vmul.f32 0.125, %v712_v18 }
 0x29f   :  { %326 = vadd.xlane.f32.xlu1 %v325_v30 }
 0x2a0   :  { %v3111_v2 = vsub.f32 %v2755_v22, %v742_v36  ;;  %798 = vrot.lane.b32.xlu0 %v766_v41, %s2641_s19 }
 0x2a1   :  { %v1190_v38 = vpop.xlane.xlu0 %1189 }
 0x2a2   :  { %4908 = vst [vmem:[#allocation4_spill] sm:$0xff] %v3111_v2  ;;  %v774_v44 = vmul.f32 %v3111_v2, %v3111_v2  ;;  %v1236_v9 = vmul.f32 0.125, %v1190_v38 }
 0x2a3   :  { %350 = vadd.xlane.f32.xlu1 %v349_v4 }
 0x2a4   :  { %v3123_v31 = vsub.f32 %v2748_v20, %v1236_v9  ;;  %814 = vrot.lane.b32.xlu0 %v774_v44, %s2641_s19 }
 0x2a5   :  { %v3126_v49 = vpop.xlane.xlu0 %1213 }
 0x2a6   :  { %4909 = vst [vmem:[#allocation5_spill] sm:$0xff] %v3123_v31  ;;  %v1268_v53 = vmul.f32 %v3123_v31, %v3123_v31 }
 0x2a7   :  { %344 = vadd.xlane.f32.xlu1 %v343_v59 }
 0x2a8   :  { %1300 = vrot.lane.b32.xlu0 %v1268_v53, %s2642_s0 }
 0x2a9   :  { %v3134_v33 = vpop.xlane.xlu0 %1691 }
 0x2ab   :  { %368 = vadd.xlane.f32.xlu1 %v367_v63 }
 0x2ad   :  { %v3137_v3 = vpop.xlane.xlu0 %1715 }
 0x2b1   :  { %v3139_v46 = vpop.xlane.xlu0 %696 }
 0x2b5   :  { %v1199_v10 = vpop.xlane.xlu0 %1198 }
 0x2b6   :  { %v1239_v25 = vmul.f32 0.125, %v1199_v10 }
 0x2b8   :  { %v3142_v14 = vsub.f32 %v2766_v24, %v1239_v25  ;;  %v1735_v25 = vsel %vm224_vm1, %v3039_v54, 0.0 }
 0x2b9   :  { %v3147_v18 = vpop.xlane.xlu0 %1192 }
 0x2ba   :  { %4910 = vst [vmem:[#allocation6_spill] sm:$0xff] %v3142_v14  ;;  %v1271_v8 = vmul.f32 %v3142_v14, %v3142_v14 }
 0x2bc   :  { %1306 = vrot.lane.b32.xlu0 %v1271_v8, %s2642_s0 }
 0x2bd   :  { %v706_v32 = vpop.xlane.xlu0 %705 }
 0x2be   :  { %v740_v47 = vmul.f32 0.125, %v706_v32 }
 0x2c1   :  { %v730_v6 = vpop.xlane.xlu0 %729 }
 0x2c2   :  { %v242_v30 = vpop.xlane.xlu1 %241 }
 0x2c3   :  { %v279_v23 = vmul.f32 0.125, %v242_v30 }
 0x2c5   :  { %v3150_v41 = vsub.f32 %v2895_v13, %v279_v23  ;;  %v3163_v10 = vpop.xlane.xlu0 %1207 }
 0x2c6   :  { %v266_v36 = vpop.xlane.xlu1 %265 }
 0x2c7   :  { %v287_v38 = vmul.f32 0.125, %v266_v36  ;;  %v311_v4 = vmul.f32 %v3150_v41, %v3150_v41 }
 0x2c9   :  { %v3155_v44 = vsub.f32 %v2903_v21, %v287_v38  ;;  %v337_v9 = vsel %vm224_vm1, %v311_v4, 0.0  ;;  %v3170_v36 = vpop.xlane.xlu0 %1231 }
 0x2ca   :  { %v1196_v53 = vpop.xlane.xlu1 %1195  ;;  %338 = vadd.xlane.f32.xlu1 %v337_v9 }
 0x2cb   :  { %v319_v59 = vmul.f32 %v3155_v44, %v3155_v44  ;;  %v1238_v14 = vmul.f32 0.125, %v1196_v53  ;;  %v1740_v53 = vmul.f32 0.125, %v3073_v11 }
 0x2cd   :  { %v361_v35 = vsel %vm224_vm1, %v319_v59, 0.0  ;;  %v736_v59 = vmul.f32 0.125, %v3057_v27  ;;  %v3206_v56 = vsub.f32 %v2726_v15, %v1740_v53  ;;  %v3230_v53 = vsub.f32 %v2793_v34, %v740_v47 }
 0x2ce   :  { %v3161_v63 = vpop.xlane.xlu1 %720  ;;  %362 = vadd.xlane.f32.xlu1 %v361_v35 }
 0x2cf   :  { %4915 = vst [vmem:[#allocation11_spill] sm:$0xff] %v3206_v56  ;;  %4919 = vst [vmem:[#allocation15_spill] sm:$0xff] %v3230_v53  ;;  %v772_v47 = vmul.f32 %v3230_v53, %v3230_v53 }
 0x2d2   :  { %v1223_v8 = vpop.xlane.xlu1 %1222  ;;  %1736 = vadd.xlane.f32.xlu1 %v1735_v25 }
 0x2d3   :  { %v1247_v30 = vmul.f32 0.125, %v1223_v8  ;;  %v3183_v8 = vpop.xlane.xlu0 %1709 }
 0x2d5   :  { %v3168_v23 = vsub.f32 %v2771_v26, %v1247_v30  ;;  %v3186_v30 = vsub.f32 %v2726_v15, %v736_v59 }
 0x2d6   :  { %v1701_v38 = vpop.xlane.xlu1 %1700 }
 0x2d7   :  { %4911 = vst [vmem:[#allocation7_spill] sm:$0xff] %v3168_v23  ;;  %v1279_v4 = vmul.f32 %v3168_v23, %v3168_v23  ;;  %v1741_v9 = vmul.f32 0.125, %v1701_v38  ;;  %v768_v27 = vmul.f32 %v3186_v30, %v3186_v30  ;;  %v700_v23 = vpop.xlane.xlu0 %699 }
 0x2d9   :  { %v3176_v35 = vsub.f32 %v2766_v24, %v1741_v9  ;;  %1322 = vrot.lane.b32.xlu0 %v1279_v4, %s2642_s0  ;;  %v1246_v9 = vmul.f32 0.125, %v3062_v42  ;;  %v3193_v4 = vsub.f32 %v2726_v15, %v1238_v14  ;;  %v1738_v15 = vmul.f32 0.125, %v3134_v33 }
 0x2da   :  { %v3179_v54 = vpop.xlane.xlu1 %1724 }
 0x2db   :  { %4912 = vst [vmem:[#allocation8_spill] sm:$0xff] %v3176_v35  ;;  %v1773_v25 = vmul.f32 %v3176_v35, %v3176_v35  ;;  %4913 = vst [vmem:[#allocation9_spill] sm:$0xff] %v3193_v4  ;;  %v3197_v35 = vsub.f32 %v2729_v16, %v1246_v9  ;;  %v1270_v59 = vmul.f32 %v3193_v4, %v3193_v4  ;;  %v724_v42 = vpop.xlane.xlu0 %723 }
 0x2dd   :  { %1808 = vrot.lane.b32.xlu0 %v1773_v25, %s2643_s2  ;;  %4914 = vst [vmem:[#allocation10_spill] sm:$0xff] %v3197_v35  ;;  %v1278_v14 = vmul.f32 %v3197_v35, %v3197_v35 }
 0x2de   :  { %v691_v38 = vpop.xlane.xlu1 %690 }
 0x2e2   :  { %v715_v31 = vpop.xlane.xlu1 %714 }
 0x2e3   :  { %802 = vrot.lane.b32.xlu1 %v768_v27, %s2641_s19  ;;  %v1244_v27 = vmul.f32 0.125, %v3126_v49 }
 0x2e5   :  { %v3218_v35 = vsub.f32 %v2755_v22, %v1244_v27  ;;  %v3238_v27 = vsub.f32 %v2748_v20, %v1738_v15  ;;  %v745_v15 = vmul.f32 0.125, %v3161_v63  ;;  %v735_v63 = vmul.f32 0.125, %v691_v38 }
 0x2e6   :  { %v1217_v25 = vpop.xlane.xlu1 %1216  ;;  %v743_v38 = vmul.f32 0.125, %v715_v31 }
 0x2e7   :  { %v1245_v2 = vmul.f32 0.125, %v1217_v25  ;;  %1304 = vrot.lane.b32.xlu1 %v1270_v59, %s2642_s0  ;;  %v1772_v59 = vmul.f32 %v3206_v56, %v3206_v56  ;;  %4917 = vst [vmem:[#allocation13_spill] sm:$0xff] %v3218_v35  ;;  %v1276_v33 = vmul.f32 %v3218_v35, %v3218_v35  ;;  %4920 = vst [vmem:[#allocation16_spill] sm:$0xff] %v3238_v27  ;;  %v738_v56 = vmul.f32 0.125, %v700_v23 }
 0x2e8   :  { %v1770_v20 = vmul.f32 %v3238_v27, %v3238_v27  ;;  %v3299_v31 = vsub.f32 %v2815_v39, %v743_v38 }
 0x2e9   :  { %v3210_v9 = vsub.f32 %v2815_v39, %v1245_v2  ;;  %v3225_v2 = vpop.xlane.xlu0 %1201  ;;  %v3264_v23 = vsub.f32 %v2832_v43, %v738_v56 }
 0x2ea   :  { %v1695_v11 = vpop.xlane.xlu1 %1694  ;;  %4927 = vst [vmem:[#allocation23_spill] sm:$0xff] %v3299_v31  ;;  %v775_v38 = vmul.f32 %v3299_v31, %v3299_v31 }
 0x2eb   :  { %4916 = vst [vmem:[#allocation12_spill] sm:$0xff] %v3210_v9  ;;  %v1277_v4 = vmul.f32 %v3210_v9, %v3210_v9  ;;  %v1739_v25 = vmul.f32 0.125, %v1695_v11  ;;  %1320 = vrot.lane.b32.xlu1 %v1278_v14, %s2642_s0  ;;  %v748_v14 = vmul.f32 0.125, %v730_v6  ;;  %4923 = vst [vmem:[#allocation19_spill] sm:$0xff] %v3264_v23  ;;  %v770_v27 = vmul.f32 %v3264_v23, %v3264_v23 }
 0x2ed   :  { %v3222_v49 = vsub.f32 %v2786_v29, %v1739_v25  ;;  %1318 = vrot.lane.b32.xlu0 %v1277_v4, %s2642_s0  ;;  %v737_v4 = vmul.f32 0.125, %v3139_v46  ;;  %v3247_v6 = vsub.f32 %v2800_v37, %v748_v14 }
 0x2ee   :  { %v3227_v32 = vpop.xlane.xlu1 %1718 }
 0x2ef   :  { %4918 = vst [vmem:[#allocation14_spill] sm:$0xff] %v3222_v49  ;;  %v1771_v11 = vmul.f32 %v3222_v49, %v3222_v49  ;;  %1806 = vrot.lane.b32.xlu1 %v1772_v59, %s2643_s2  ;;  %4921 = vst [vmem:[#allocation17_spill] sm:$0xff] %v3247_v6  ;;  %v3250_v59 = vpop.xlane.xlu0 %1225  ;;  %v3255_v46 = vsub.f32 %v2766_v24, %v737_v4  ;;  %v780_v14 = vmul.f32 %v3247_v6, %v3247_v6 }
 0x2f0   :  { %v3270_v24 = vsub.f32 %v2771_v26, %v745_v15  ;;  %v3284_v15 = vsub.f32 %v2786_v29, %v735_v63 }
 0x2f1   :  { %1804 = vrot.lane.b32.xlu0 %v1771_v11, %s2643_s2  ;;  %4922 = vst [vmem:[#allocation18_spill] sm:$0xff] %v3255_v46  ;;  %v769_v49 = vmul.f32 %v3255_v46, %v3255_v46 }
 0x2f2   :  { %v3242_v25 = vpop.xlane.xlu1 %708  ;;  %4925 = vst [vmem:[#allocation21_spill] sm:$0xff] %v3284_v15  ;;  %v767_v63 = vmul.f32 %v3284_v15, %v3284_v15 }
 0x2f3   :  { %1316 = vrot.lane.b32.xlu1 %v1276_v33, %s2642_s0  ;;  %v746_v33 = vmul.f32 0.125, %v724_v42  ;;  %v3273_v4 = vpop.xlane.xlu0 %1703 }
 0x2f5   :  { %810 = vrot.lane.b32.xlu0 %v772_v47, %s2641_s19  ;;  %v3278_v56 = vsub.f32 %v2837_v45, %v746_v33 }
 0x2f6   :  { %v3259_v11 = vpop.xlane.xlu1 %732 }
 0x2f7   :  { %1802 = vrot.lane.b32.xlu1 %v1770_v20, %s2643_s2  ;;  %4924 = vst [vmem:[#allocation20_spill] sm:$0xff] %v3278_v56  ;;  %v777_v20 = vmul.f32 %v3270_v24, %v3270_v24  ;;  %v778_v9 = vmul.f32 %v3278_v56, %v3278_v56  ;;  %v1242_v56 = vmul.f32 0.125, %v3163_v10 }
 0x2f9   :  { %826 = vrot.lane.b32.xlu0 %v780_v14, %s2641_s19  ;;  %v3328_v10 = vsub.f32 %v2793_v34, %v1242_v56 }
 0x2fa   :  { %v1211_v47 = vpop.xlane.xlu1 %1210 }
 0x2fb   :  { %v1243_v42 = vmul.f32 0.125, %v1211_v47  ;;  %804 = vrot.lane.b32.xlu1 %v769_v49, %s2641_s19  ;;  %v3293_v49 = vpop.xlane.xlu0 %1727  ;;  %v1237_v47 = vmul.f32 0.125, %v3147_v18  ;;  %4931 = vst [vmem:[#allocation27_spill] sm:$0xff] %v3328_v10 }
 0x2fd   :  { %806 = vrot.lane.b32.xlu0 %v770_v27, %s2641_s19  ;;  %v3290_v35 = vsub.f32 %v2854_v48, %v1243_v42  ;;  %v3309_v18 = vsub.f32 %v2786_v29, %v1237_v47  ;;  %v1250_v47 = vmul.f32 0.125, %v3170_v36 }
 0x2fe   :  { %v1235_v14 = vpop.xlane.xlu1 %1234 }
 0x2ff   :  { %4926 = vst [vmem:[#allocation22_spill] sm:$0xff] %v3290_v35  ;;  %v1251_v33 = vmul.f32 0.125, %v1235_v14  ;;  %820 = vrot.lane.b32.xlu1 %v777_v20, %s2641_s19  ;;  %v1275_v42 = vmul.f32 %v3290_v35, %v3290_v35  ;;  %4929 = vst [vmem:[#allocation25_spill] sm:$0xff] %v3309_v18  ;;  %v1269_v29 = vmul.f32 %v3309_v18, %v3309_v18 }
 0x300   :  { %v3341_v56 = vsub.f32 %v2800_v37, %v1250_v47 }
 0x301   :  { %822 = vrot.lane.b32.xlu0 %v778_v9, %s2641_s19  ;;  %v3305_v14 = vsub.f32 %v2859_v50, %v1251_v33  ;;  %v3315_v9 = vpop.xlane.xlu0 %329 }
 0x302   :  { %v1713_v27 = vpop.xlane.xlu1 %1712  ;;  %4932 = vst [vmem:[#allocation28_spill] sm:$0xff] %v3341_v56 }
 0x303   :  { %4928 = vst [vmem:[#allocation24_spill] sm:$0xff] %v3305_v14  ;;  %v1745_v20 = vmul.f32 0.125, %v1713_v27  ;;  %800 = vrot.lane.b32.xlu1 %v767_v63, %s2641_s19  ;;  %v1283_v35 = vmul.f32 %v3305_v14, %v3305_v14  ;;  %v1274_v14 = vmul.f32 %v3328_v10, %v3328_v10 }
 0x305   :  { %1314 = vrot.lane.b32.xlu0 %v1275_v42, %s2642_s0  ;;  %v3320_v33 = vsub.f32 %v2854_v48, %v1745_v20  ;;  %v1744_v42 = vmul.f32 0.125, %v3183_v8  ;;  %v3336_v20 = vpop.xlane.xlu0 %353  ;;  %v1282_v8 = vmul.f32 %v3341_v56, %v3341_v56 }
 0x307   :  { %4930 = vst [vmem:[#allocation26_spill] sm:$0xff] %v3320_v33  ;;  %816 = vrot.lane.b32.xlu1 %v775_v38, %s2641_s19  ;;  %v1777_v27 = vmul.f32 %v3320_v33, %v3320_v33  ;;  %v3346_v36 = vsub.f32 %v2793_v34, %v1744_v42 }
 0x308   :  { %v3323_v63 = vpop.xlane.xlu1 %702 }
 0x309   :  { %1330 = vrot.lane.b32.xlu0 %v1283_v35, %s2642_s0  ;;  %4933 = vst [vmem:[#allocation29_spill] sm:$0xff] %v3346_v36  ;;  %v3351_v18 = vpop.xlane.xlu0 %323 }
 0x30b   :  { %1302 = vrot.lane.b32.xlu1 %v1269_v29, %s2642_s0  ;;  %v1240_v29 = vmul.f32 0.125, %v3225_v2 }
 0x30c   :  { %v727_v38 = vpop.xlane.xlu1 %726 }
 0x30d   :  { %1816 = vrot.lane.b32.xlu0 %v1777_v27, %s2643_s2  ;;  %v3360_v34 = vsub.f32 %v2832_v43, %v1240_v29  ;;  %v1248_v27 = vmul.f32 0.125, %v3250_v59  ;;  %v1742_v59 = vmul.f32 0.125, %v3273_v4  ;;  %v741_v4 = vmul.f32 0.125, %v3242_v25 }
 0x30f   :  { %1312 = vrot.lane.b32.xlu1 %v1274_v14, %s2642_s0  ;;  %v1776_v14 = vmul.f32 %v3346_v36, %v3346_v36  ;;  %4935 = vst [vmem:[#allocation31_spill] sm:$0xff] %v3360_v34  ;;  %v1272_v29 = vmul.f32 %v3360_v34, %v3360_v34  ;;  %v3375_v36 = vsub.f32 %v2837_v45, %v1248_v27 }
 0x310   :  { %v1205_v35 = vpop.xlane.xlu1 %1204  ;;  %v3389_v27 = vsub.f32 %v2832_v43, %v1742_v59  ;;  %v3405_v25 = vsub.f32 %v2854_v48, %v741_v4 }
 0x311   :  { %v1241_v33 = vmul.f32 0.125, %v1205_v35  ;;  %4937 = vst [vmem:[#allocation33_spill] sm:$0xff] %v3375_v36 }
 0x312   :  { %4939 = vst [vmem:[#allocation35_spill] sm:$0xff] %v3389_v27  ;;  %v1774_v43 = vmul.f32 %v3389_v27, %v3389_v27  ;;  %4941 = vst [vmem:[#allocation37_spill] sm:$0xff] %v3405_v25 }
 0x313   :  { %v3354_v10 = vsub.f32 %v2895_v13, %v1241_v33  ;;  %1328 = vrot.lane.b32.xlu1 %v1282_v8, %s2642_s0  ;;  %v3370_v33 = vpop.xlane.xlu0 %347 }
 0x314   :  { %v1229_v47 = vpop.xlane.xlu1 %1228 }
 0x315   :  { %4934 = vst [vmem:[#allocation30_spill] sm:$0xff] %v3354_v10  ;;  %v1273_v2 = vmul.f32 %v3354_v10, %v3354_v10  ;;  %v1249_v42 = vmul.f32 0.125, %v1229_v47 }
 0x317   :  { %v3366_v35 = vsub.f32 %v2903_v21, %v1249_v42  ;;  %1814 = vrot.lane.b32.xlu1 %v1776_v14, %s2643_s2  ;;  %1310 = vrot.lane.b32.xlu0 %v1273_v2, %s2642_s0  ;;  %v1747_v42 = vmul.f32 0.125, %v3227_v32  ;;  %v1280_v2 = vmul.f32 %v3375_v36, %v3375_v36 }
 0x318   :  { %v1707_v8 = vpop.xlane.xlu1 %1706 }
 0x319   :  { %4936 = vst [vmem:[#allocation32_spill] sm:$0xff] %v3366_v35  ;;  %v1281_v47 = vmul.f32 %v3366_v35, %v3366_v35  ;;  %v1743_v56 = vmul.f32 0.125, %v1707_v8  ;;  %v1749_v35 = vmul.f32 0.125, %v3179_v54  ;;  %v3394_v32 = vsub.f32 %v2815_v39, %v1747_v42  ;;  %v3396_v8 = vpop.xlane.xlu0 %341 }
 0x31a   :  { %v749_v54 = vmul.f32 0.125, %v3259_v11  ;;  %v739_v11 = vmul.f32 0.125, %v3323_v63 }
 0x31b   :  { %1326 = vrot.lane.b32.xlu0 %v1281_v47, %s2642_s0  ;;  %1308 = vrot.lane.b32.xlu1 %v1272_v29, %s2642_s0  ;;  %v3384_v14 = vsub.f32 %v2895_v13, %v1743_v56  ;;  %4940 = vst [vmem:[#allocation36_spill] sm:$0xff] %v3394_v32  ;;  %v3409_v39 = vsub.f32 %v2771_v26, %v1749_v35 }
 0x31c   :  { %v1731_v56 = vpop.xlane.xlu1 %1730  ;;  %v1779_v59 = vmul.f32 %v3394_v32, %v3394_v32  ;;  %v3420_v48 = vsub.f32 %v2859_v50, %v749_v54  ;;  %v1746_v54 = vmul.f32 0.125, %v3137_v3 }
 0x31d   :  { %4938 = vst [vmem:[#allocation34_spill] sm:$0xff] %v3384_v14  ;;  %v1775_v29 = vmul.f32 %v3384_v14, %v3384_v14  ;;  %4942 = vst [vmem:[#allocation38_spill] sm:$0xff] %v3409_v39  ;;  %v1751_v47 = vmul.f32 0.125, %v1731_v56  ;;  %v3414_v42 = vpop.xlane.xlu0 %365  ;;  %v1781_v26 = vmul.f32 %v3409_v39, %v3409_v39  ;;  %v747_v56 = vmul.f32 0.125, %v727_v38 }
 0x31e   :  { %4943 = vst [vmem:[#allocation39_spill] sm:$0xff] %v3420_v48  ;;  %v781_v4 = vmul.f32 %v3420_v48, %v3420_v48  ;;  %v1748_v38 = vmul.f32 0.125, %v3087_v57 }
 0x31f   :  { %1324 = vrot.lane.b32.xlu1 %v1280_v2, %s2642_s0  ;;  %1812 = vrot.lane.b32.xlu0 %v1775_v29, %s2643_s2  ;;  %v773_v2 = vmul.f32 %v3405_v25, %v3405_v25  ;;  %v3426_v35 = vsub.f32 %v2903_v21, %v1751_v47  ;;  %v3433_v29 = vsub.f32 %v2895_v13, %v739_v11 }
 0x320   :  { %v3445_v47 = vsub.f32 %v2903_v21, %v747_v56  ;;  %v3460_v3 = vsub.f32 %v2729_v16, %v1748_v38 }
 0x321   :  { %4944 = vst [vmem:[#allocation40_spill] sm:$0xff] %v3426_v35  ;;  %4945 = vst [vmem:[#allocation41_spill] sm:$0xff] %v3433_v29  ;;  %v1783_v63 = vmul.f32 %v3426_v35, %v3426_v35 }
 0x322   :  { %4946 = vst [vmem:[#allocation42_spill] sm:$0xff] %v3445_v47  ;;  %v779_v11 = vmul.f32 %v3445_v47, %v3445_v47  ;;  %4948 = vst [vmem:[#allocation44_spill] sm:$0xff] %v3460_v3 }
 0x323   :  { %1810 = vrot.lane.b32.xlu1 %v1774_v43, %s2643_s2  ;;  %1820 = vrot.lane.b32.xlu0 %v1779_v59, %s2643_s2  ;;  %v3435_v43 = vpop.xlane.xlu0 %335  ;;  %v771_v59 = vmul.f32 %v3433_v29, %v3433_v29 }
 0x327   :  { %812 = vrot.lane.b32.xlu1 %v773_v2, %s2641_s19  ;;  %1824 = vrot.lane.b32.xlu0 %v1781_v26, %s2643_s2  ;;  %v3448_v13 = vpop.xlane.xlu0 %359  ;;  %v3452_v2 = vsub.f32 %v2755_v22, %v1746_v54  ;;  %v3456_v26 = vpop.xlane.xlu1 %332  ;;  %v1780_v22 = vmul.f32 %v3460_v3, %v3460_v3 }
 0x329   :  { %4947 = vst [vmem:[#allocation43_spill] sm:$0xff] %v3452_v2  ;;  %v1778_v21 = vmul.f32 %v3452_v2, %v3452_v2 }
 0x32b   :  { %828 = vrot.lane.b32.xlu1 %v781_v4, %s2641_s19  ;;  %1828 = vrot.lane.b32.xlu0 %v1783_v63, %s2643_s2  ;;  %v1750_v4 = vmul.f32 0.125, %v3293_v49  ;;  %v1734_v56 = vpop.xlane.xlu0 %1733  ;;  %v3465_v57 = vpop.xlane.xlu1 %356 }
 0x32c   :  { %v1752_v54 = vmul.f32 0.125, %v1734_v56 }
 0x32d   :  { %v3471_v63 = vsub.f32 %v2837_v45, %v1750_v4 }
 0x32f   :  { %808 = vrot.lane.b32.xlu1 %v771_v59, %s2641_s19  ;;  %4949 = vst [vmem:[#allocation45_spill] sm:$0xff] %v3471_v63  ;;  %v1782_v16 = vmul.f32 %v3471_v63, %v3471_v63  ;;  %v3477_v59 = vsub.f32 %v2800_v37, %v1752_v54  ;;  %v3479_v49 = vpop.xlane.xlu1 %326  ;;  %v819_v4 = vpop.permute.xlu0 %818 }
 0x330   :  { %v876_v25 = vsel %vm224_vm1, %v819_v4, 0.0 }
 0x331   :  { %4950 = vst [vmem:[#allocation46_spill] sm:$0xff] %v3477_v59  ;;  %v1784_v38 = vmul.f32 %v3477_v59, %v3477_v59 }
 0x333   :  { %824 = vrot.lane.b32.xlu1 %v779_v11, %s2641_s19  ;;  %v3484_v11 = vpop.xlane.xlu1 %350  ;;  %v799_v37 = vpop.permute.xlu0 %798 }
 0x337   :  { %1818 = vrot.lane.b32.xlu1 %v1778_v21, %s2643_s2  ;;  %v3487_v45 = vpop.xlane.xlu1 %344 }
 0x33b   :  { %1822 = vrot.lane.b32.xlu1 %v1780_v22, %s2643_s2  ;;  %v3489_v21 = vpop.xlane.xlu1 %368 }
 0x33f   :  { %1826 = vrot.lane.b32.xlu1 %v1782_v16, %s2643_s2  ;;  %v815_v16 = vpop.permute.xlu0 %814 }
 0x343   :  { %1830 = vrot.lane.b32.xlu1 %v1784_v38, %s2643_s2  ;;  %v1301_v63 = vpop.permute.xlu0 %1300 }
 0x344   :  { %v1348_v3 = vsel %vm224_vm1, %v1301_v63, 0.0 }
 0x353   :  { %v3491_v56 = vpop.xlane.xlu1 %338 }
 0x357   :  { %v3493_v22 = vpop.xlane.xlu1 %362 }
 0x35b   :  { %v1737_v54 = vpop.xlane.xlu1 %1736 }
 0x35c   :  { %v1753_v35 = vmul.f32 0.125, %v1737_v54  ;;  %v1307_v54 = vpop.permute.xlu0 %1306 }
 0x35e   :  { %v3496_v39 = vsub.f32 %v2859_v50, %v1753_v35 }
 0x35f   :  { %v803_v59 = vpop.permute.xlu1 %802 }
 0x360   :  { %4951 = vst [vmem:[#allocation47_spill] sm:$0xff] %v3496_v39  ;;  %v1785_v38 = vmul.f32 %v3496_v39, %v3496_v39  ;;  %v3508_v50 = vpop.permute.xlu0 %1322  ;;  %v852_v47 = vsel %vm224_vm1, %v803_v59, 0.0 }
 0x362   :  { %1832 = vrot.lane.b32.xlu0 %v1785_v38, %s2643_s2 }
 0x363   :  { %v1305_v32 = vpop.permute.xlu1 %1304 }
 0x364   :  { %v3512_v39 = vpop.permute.xlu0 %1808  ;;  %v1354_v6 = vsel %vm224_vm1, %v1305_v32, 0.0 }
 0x367   :  { %v3502_v2 = vpop.permute.xlu1 %1320  ;;  %1349 = vadd.xlane.f32.xlu1 %v1348_v3  ;;  %v1357_v3 = vsel %vm224_vm1, %v1307_v54, 0.0 }
 0x368   :  { %v3515_v34 = vpop.permute.xlu0 %1318 }
 0x36b   :  { %v3504_v14 = vpop.permute.xlu1 %1806 }
 0x36c   :  { %v3519_v29 = vpop.permute.xlu0 %1804 }
 0x36f   :  { %v3506_v27 = vpop.permute.xlu1 %1316 }
 0x370   :  { %v811_v53 = vpop.permute.xlu0 %810 }
 0x373   :  { %v3510_v35 = vpop.permute.xlu1 %1802 }
 0x374   :  { %v827_v54 = vpop.permute.xlu0 %826 }
 0x375   :  { %v888_v46 = vsel %vm224_vm1, %v827_v54, 0.0 }
 0x377   :  { %v805_v36 = vpop.permute.xlu1 %804 }
 0x37b   :  { %v821_v38 = vpop.permute.xlu1 %820 }
 0x37c   :  { %v879_v10 = vsel %vm224_vm1, %v821_v38, 0.0 }
 0x37d   :  { %880 = vadd.xlane.f32.xlu1 %v879_v10 }
 0x37f   :  { %v801_v63 = vpop.permute.xlu1 %800 }
 0x380   :  { %v849_v23 = vsel %vm224_vm1, %v801_v63, 0.0  ;;  %v870_v63 = vsel %vm224_vm1, %v815_v16, 0.0 }
 0x381   :  { %853 = vadd.xlane.f32.xlu0 %v852_v47  ;;  %1358 = vadd.xlane.f32.xlu1 %v1357_v3  ;;  %v846_v47 = vsel %vm224_vm1, %v799_v37, 0.0  ;;  %v864_v37 = vsel %vm224_vm1, %v811_v53, 0.0 }
 0x383   :  { %v817_v48 = vpop.permute.xlu1 %816 }
 0x384   :  { %v873_v10 = vsel %vm224_vm1, %v817_v48, 0.0 }
 0x385   :  { %877 = vadd.xlane.f32.xlu0 %v876_v25  ;;  %850 = vadd.xlane.f32.xlu1 %v849_v23  ;;  %v855_v23 = vsel %vm224_vm1, %v805_v36, 0.0  ;;  %v807_v25 = vpop.permute.xlu0 %806 }
 0x386   :  { %v858_v31 = vsel %vm224_vm1, %v807_v25, 0.0 }
 0x387   :  { %v1303_v38 = vpop.permute.xlu1 %1302 }
 0x388   :  { %v1351_v48 = vsel %vm224_vm1, %v1303_v38, 0.0 }
 0x389   :  { %1355 = vadd.xlane.f32.xlu0 %v1354_v6  ;;  %874 = vadd.xlane.f32.xlu1 %v873_v10  ;;  %v823_v6 = vpop.permute.xlu0 %822 }
 0x38b   :  { %v1313_v59 = vpop.permute.xlu1 %1312 }
 0x38d   :  { %847 = vadd.xlane.f32.xlu0 %v846_v47  ;;  %v1315_v16 = vpop.permute.xlu0 %1314 }
 0x38f   :  { %v1329_v3 = vpop.permute.xlu1 %1328 }
 0x391   :  { %871 = vadd.xlane.f32.xlu0 %v870_v63 }
 0x393   :  { %v3527_v4 = vpop.permute.xlu1 %1814 }
 0x395   :  { %856 = vadd.xlane.f32.xlu0 %v855_v23  ;;  %v1331_v23 = vpop.permute.xlu0 %1330 }
 0x397   :  { %v1309_v32 = vpop.permute.xlu1 %1308 }
 0x398   :  { %v1360_v54 = vsel %vm224_vm1, %v1309_v32, 0.0  ;;  %v1378_v32 = vsel %vm224_vm1, %v3502_v2, 0.0  ;;  %v1850_v2 = vsel %vm224_vm1, %v3510_v35, 0.0  ;;  %v380_v35 = vmul.f32 0.125, %v3336_v20 }
 0x399   :  { %1352 = vadd.xlane.f32.xlu0 %v1351_v48  ;;  %v882_v48 = vsel %vm224_vm1, %v823_v6, 0.0 }
 0x39b   :  { %v1325_v10 = vpop.permute.xlu1 %1324 }
 0x39d   :  { %865 = vadd.xlane.f32.xlu0 %v864_v37  ;;  %v3539_v37 = vpop.permute.xlu0 %1816 }
 0x39f   :  { %v1811_v47 = vpop.permute.xlu1 %1810 }
 0x3a1   :  { %889 = vadd.xlane.f32.xlu0 %v888_v46 }
 0x3a3   :  { %v813_v63 = vpop.permute.xlu1 %812 }
 0x3a4   :  { %v867_v36 = vsel %vm224_vm1, %v813_v63, 0.0 }
 0x3a5   :  { %868 = vadd.xlane.f32.xlu1 %v867_v36  ;;  %859 = vadd.xlane.f32.xlu0 %v858_v31  ;;  %v1366_v31 = vsel %vm224_vm1, %v1313_v59, 0.0  ;;  %v1311_v36 = vpop.permute.xlu0 %1310  ;;  %v1375_v59 = vsel %vm224_vm1, %v3515_v34, 0.0  ;;  %v1856_v34 = vsel %vm224_vm1, %v3504_v14, 0.0 }
 0x3a6   :  { %v1363_v6 = vsel %vm224_vm1, %v1311_v36, 0.0  ;;  %v1859_v36 = vsel %vm224_vm1, %v3512_v39, 0.0 }
 0x3a7   :  { %v829_v38 = vpop.permute.xlu1 %828 }
 0x3a8   :  { %v891_v15 = vsel %vm224_vm1, %v829_v38, 0.0  ;;  %v1369_v38 = vsel %vm224_vm1, %v1315_v16, 0.0 }
 0x3a9   :  { %892 = vadd.xlane.f32.xlu1 %v891_v15  ;;  %883 = vadd.xlane.f32.xlu0 %v882_v48  ;;  %v1372_v15 = vsel %vm224_vm1, %v3506_v27, 0.0  ;;  %v1384_v48 = vsel %vm224_vm1, %v1325_v10, 0.0  ;;  %v1381_v27 = vsel %vm224_vm1, %v3508_v50, 0.0  ;;  %v1393_v10 = vsel %vm224_vm1, %v1331_v23, 0.0 }
 0x3aa   :  { %v372_v50 = vmul.f32 0.125, %v3315_v9  ;;  %v378_v23 = vmul.f32 0.125, %v3370_v33  ;;  %v1868_v9 = vsel %vm224_vm1, %v3527_v4, 0.0  ;;  %v384_v33 = vmul.f32 0.125, %v3414_v42 }
 0x3ab   :  { %v809_v53 = vpop.permute.xlu1 %808  ;;  %v374_v4 = vmul.f32 0.125, %v3435_v43 }
 0x3ac   :  { %v861_v46 = vsel %vm224_vm1, %v809_v53, 0.0  ;;  %v1390_v53 = vsel %vm224_vm1, %v1329_v3, 0.0 }
 0x3ad   :  { %862 = vadd.xlane.f32.xlu1 %v861_v46  ;;  %1361 = vadd.xlane.f32.xlu0 %v1360_v54  ;;  %v1327_v54 = vpop.permute.xlu0 %1326  ;;  %v1853_v46 = vsel %vm224_vm1, %v3519_v29, 0.0  ;;  %v390_v42 = vadd.f32 1e-06, %v374_v4 }
 0x3ae   :  { %v1387_v16 = vsel %vm224_vm1, %v1327_v54, 0.0 }
 0x3af   :  { %v825_v25 = vpop.permute.xlu1 %824 }
 0x3b0   :  { %v885_v63 = vsel %vm224_vm1, %v825_v25, 0.0  ;;  %v1862_v25 = vsel %vm224_vm1, %v1811_v47, 0.0  ;;  %v394_v47 = vadd.f32 1e-06, %v378_v23 }
 0x3b1   :  { %886 = vadd.xlane.f32.xlu1 %v885_v63  ;;  %1367 = vadd.xlane.f32.xlu0 %v1366_v31  ;;  %v388_v31 = vadd.f32 1e-06, %v372_v50  ;;  %v370_v63 = vmul.f32 0.125, %v3351_v18  ;;  %v1813_v14 = vpop.permute.xlu0 %1812 }
 0x3b2   :  { %v1865_v18 = vsel %vm224_vm1, %v1813_v14, 0.0 }
 0x3b3   :  { %v1819_v3 = vpop.permute.xlu1 %1818  ;;  %2382 = vrsqrt.f32 %v388_v31  ;;  %v386_v20 = vadd.f32 1e-06, %v370_v63  ;;  %v371_v31 = vmul.f32 0.125, %v3479_v49  ;;  %v3597_v49 = vld [vmem:[%s4857_s3] ss:$0 sm:$0xff] }
 0x3b5   :  { %1373 = vadd.xlane.f32.xlu0 %v1372_v15  ;;  %1364 = vadd.xlane.f32.xlu1 %v1363_v6  ;;  %v396_v15 = vadd.f32 1e-06, %v380_v35  ;;  %v376_v6 = vmul.f32 0.125, %v3396_v8  ;;  %v1821_v39 = vpop.permute.xlu0 %1820  ;;  %v1871_v8 = vsel %vm224_vm1, %v3539_v37, 0.0  ;;  %v381_v37 = vmul.f32 0.125, %v3465_v57 }
 0x3b6   :  { %v1877_v43 = vsel %vm224_vm1, %v1821_v39, 0.0  ;;  %v379_v57 = vmul.f32 0.125, %v3484_v11 }
 0x3b7   :  { %v1823_v29 = vpop.permute.xlu1 %1822  ;;  %2384 = vrsqrt.f32 %v396_v15  ;;  %v397_v35 = vadd.f32 1e-06, %v381_v37  ;;  %v377_v15 = vmul.f32 0.125, %v3487_v45  ;;  %v375_v37 = vmul.f32 0.125, %v3491_v56 }
 0x3b8   :  { %2386 = vrsqrt.f32 %v386_v20  ;;  %v387_v20 = vadd.f32 1e-06, %v371_v31 }
 0x3b9   :  { %1379 = vadd.xlane.f32.xlu0 %v1378_v32  ;;  %1370 = vadd.xlane.f32.xlu1 %v1369_v38  ;;  %v1874_v32 = vsel %vm224_vm1, %v1819_v3, 0.0  ;;  %v382_v38 = vmul.f32 0.125, %v3448_v13  ;;  %2388 = vrsqrt.f32 %v394_v47 }
 0x3bb   :  { %v398_v54 = vadd.f32 1e-06, %v382_v38  ;;  %v3607_v38 = vld [vmem:[%s4856_s4] ss:$0 sm:$0xff]  ;;  %s2644_s4 = smov 16  }
 0x3bd   :  { %1385 = vadd.xlane.f32.xlu0 %v1384_v48  ;;  %1376 = vadd.xlane.f32.xlu1 %v1375_v59  ;;  %v1827_v59 = vpop.permute.xlu1 %1826  ;;  %v392_v48 = vadd.f32 1e-06, %v376_v6  ;;  %v395_v6 = vadd.f32 1e-06, %v379_v57 }
 0x3be   :  { %v1886_v13 = vsel %vm224_vm1, %v1827_v59, 0.0 }
 0x3bf   :  { %2390 = vrsqrt.f32 %v392_v48 }
 0x3c0   :  { %v2383_v50 = vpop.eup %2382 }
 0x3c1   :  { %1391 = vadd.xlane.f32.xlu0 %v1390_v53  ;;  %1382 = vadd.xlane.f32.xlu1 %v1381_v27  ;;  %v1880_v27 = vsel %vm224_vm1, %v1823_v29, 0.0  ;;  %v400_v53 = vadd.f32 1e-06, %v384_v33  ;;  %v420_v14 = vmul.f32 %v2383_v50, %v2985_v55 }
 0x3c3   :  { %2392 = vrsqrt.f32 %v400_v53  ;;  %v442_v55 = vmul.f32 %v3597_v49, %v420_v14  ;;  %v385_v53 = vmul.f32 0.125, %v3489_v21  ;;  %v391_v14 = vadd.f32 1e-06, %v375_v37 }
 0x3c4   :  { %2394 = vrsqrt.f32 %v390_v42 }
 0x3c5   :  { %1851 = vadd.xlane.f32.xlu0 %v1850_v2  ;;  %1388 = vadd.xlane.f32.xlu1 %v1387_v16  ;;  %v373_v2 = vmul.f32 0.125, %v3456_v26  ;;  %v1825_v16 = vpop.permute.xlu0 %1824  ;;  %2396 = vrsqrt.f32 %v398_v54 }
 0x3c6   :  { %v1883_v3 = vsel %vm224_vm1, %v1825_v16, 0.0 }
 0x3c9   :  { %1857 = vadd.xlane.f32.xlu0 %v1856_v34  ;;  %1394 = vadd.xlane.f32.xlu1 %v1393_v10  ;;  %v1831_v34 = vpop.permute.xlu1 %1830  ;;  %v389_v10 = vadd.f32 1e-06, %v373_v2 }
 0x3ca   :  { %v1892_v26 = vsel %vm224_vm1, %v1831_v34, 0.0 }
 0x3cb   :  { %2398 = vrsqrt.f32 %v389_v10 }
 0x3cc   :  { %2400 = vrsqrt.f32 %v397_v35 }
 0x3cd   :  { %1863 = vadd.xlane.f32.xlu0 %v1862_v25  ;;  %1854 = vadd.xlane.f32.xlu1 %v1853_v46  ;;  %v1829_v46 = vpop.permute.xlu0 %1828  ;;  %v2385_v25 = vpop.eup %2384  ;;  %2402 = vrsqrt.f32 %v387_v20 }
 0x3ce   :  { %v2387_v63 = vpop.eup %2386  ;;  %v1889_v23 = vsel %vm224_vm1, %v1829_v46, 0.0  ;;  %2404 = vrsqrt.f32 %v395_v6 }
 0x3cf   :  { %v418_v47 = vmul.f32 %v2387_v63, %v3000_v7 }
 0x3d1   :  { %1869 = vadd.xlane.f32.xlu0 %v1868_v9  ;;  %1860 = vadd.xlane.f32.xlu1 %v1859_v36  ;;  %v2389_v36 = vpop.eup %2388  ;;  %v428_v9 = vmul.f32 %v2385_v25, %v2991_v0  ;;  %v440_v39 = vmul.f32 %v3597_v49, %v418_v47  ;;  %v383_v25 = vmul.f32 0.125, %v3493_v22 }
 0x3d2   :  { %v426_v11 = vmul.f32 %v2389_v36, %v3009_v17  ;;  %v3610_v17 = vadd.f32 %v3607_v38, %v442_v55 }
 0x3d3   :  { %v450_v45 = vmul.f32 %v3597_v49, %v428_v9  ;;  %v3621_v54 = vadd.f32 %v3607_v38, %v440_v39 }
 0x3d4   :  { %v1833_v29 = vpop.permute.xlu0 %1832  ;;  %v448_v59 = vmul.f32 %v3597_v49, %v426_v11 }
 0x3d5   :  { %1875 = vadd.xlane.f32.xlu0 %v1874_v32  ;;  %1866 = vadd.xlane.f32.xlu1 %v1865_v18  ;;  %v1895_v0 = vsel %vm224_vm1, %v1833_v29, 0.0  ;;  %v2391_v18 = vpop.eup %2390  ;;  %v393_v32 = vadd.f32 1e-06, %v377_v15  ;;  %v494_v10 = vmul.f32 %v3621_v54, %v3621_v54  ;;  %v399_v29 = vadd.f32 1e-06, %v383_v25 }
 0x3d6   :  { %v2393_v33 = vpop.eup %2392  ;;  %v424_v48 = vmul.f32 %v2391_v18, %v3018_v61 }
 0x3d7   :  { %v2395_v7 = vpop.eup %2394  ;;  %2406 = vrsqrt.f32 %v393_v32 }
 0x3d8   :  { %v2397_v4 = vpop.eup %2396  ;;  %v422_v42 = vmul.f32 %v2395_v7, %v3033_v5  ;;  %v446_v61 = vmul.f32 %v3597_v49, %v424_v48  ;;  %v401_v5 = vadd.f32 1e-06, %v385_v53 }
 0x3d9   :  { %1881 = vadd.xlane.f32.xlu0 %v1880_v27  ;;  %1872 = vadd.xlane.f32.xlu1 %v1871_v8  ;;  %v3615_v8 = vadd.f32 %v3607_v38, %v450_v45  ;;  %v432_v27 = vmul.f32 %v2393_v33, %v3026_v40  ;;  %v430_v2 = vmul.f32 %v2397_v4, %v3042_v19  ;;  %v2399_v16 = vpop.eup %2398 }
 0x3da   :  { %v444_v34 = vmul.f32 %v3597_v49, %v422_v42  ;;  %v2401_v19 = vpop.eup %2400  ;;  %v3642_v46 = vadd.f32 %v3607_v38, %v446_v61  ;;  %2408 = vrsqrt.f32 %v401_v5 }
 0x3db   :  { %v504_v40 = vmul.f32 %v3615_v8, %v3615_v8  ;;  %v454_v21 = vmul.f32 %v3597_v49, %v432_v27  ;;  %v452_v50 = vmul.f32 %v3597_v49, %v430_v2  ;;  %v2403_v57 = vpop.eup %2402  ;;  %2410 = vrsqrt.f32 %v391_v14 }
 0x3dc   :  { %v3651_v63 = vadd.f32 %v3607_v38, %v444_v34  ;;  %v500_v15 = vmul.f32 %v3642_v46, %v3642_v46  ;;  %v419_v18 = vmul.f32 %v2403_v57, %v3084_v28  ;;  %2412 = vrsqrt.f32 %v399_v29 }
 0x3dd   :  { %1887 = vadd.xlane.f32.xlu0 %v1886_v13  ;;  %1878 = vadd.xlane.f32.xlu1 %v1877_v43  ;;  %v3625_v43 = vadd.f32 %v3607_v38, %v448_v59  ;;  %v496_v13 = vmul.f32 %v3610_v17, %v3610_v17  ;;  %v520_v56 = vmul.f32 %v504_v40, %v3615_v8 }
 0x3de   :  { %v3648_v31 = vadd.f32 %v3607_v38, %v454_v21  ;;  %v3656_v36 = vadd.f32 %v3607_v38, %v452_v50  ;;  %v498_v6 = vmul.f32 %v3651_v63, %v3651_v63  ;;  %v516_v39 = vmul.f32 %v500_v15, %v3642_v46 }
 0x3df   :  { %v512_v35 = vmul.f32 %v496_v13, %v3610_v17  ;;  %v536_v47 = vmul.f32 0.044715, %v520_v56  ;;  %v441_v2 = vmul.f32 %v3597_v49, %v419_v18 }
 0x3e0   :  { %v508_v55 = vmul.f32 %v3648_v31, %v3648_v31  ;;  %v506_v32 = vmul.f32 %v3656_v36, %v3656_v36  ;;  %v514_v53 = vmul.f32 %v498_v6, %v3651_v63  ;;  %v532_v13 = vmul.f32 0.044715, %v516_v39 }
 0x3e1   :  { %1893 = vadd.xlane.f32.xlu0 %v1892_v26  ;;  %1884 = vadd.xlane.f32.xlu1 %v1883_v3  ;;  %v421_v3 = vmul.f32 %v2399_v16, %v3065_v62  ;;  %v502_v26 = vmul.f32 %v3625_v43, %v3625_v43  ;;  %v429_v62 = vmul.f32 %v2401_v19, %v3076_v52  ;;  %v2405_v52 = vpop.eup %2404  ;;  %v528_v20 = vmul.f32 0.044715, %v512_v35 }
 0x3e2   :  { %v427_v4 = vmul.f32 %v2405_v52, %v3094_v1  ;;  %v524_v59 = vmul.f32 %v508_v55, %v3648_v31  ;;  %v552_v27 = vadd.f32 %v536_v47, %v3615_v8  ;;  %v522_v16 = vmul.f32 %v506_v32, %v3656_v36 }
 0x3e3   :  { %v443_v22 = vmul.f32 %v3597_v49, %v421_v3  ;;  %v518_v9 = vmul.f32 %v502_v26, %v3625_v43  ;;  %v544_v28 = vadd.f32 %v528_v20, %v3610_v17  ;;  %v3700_v3 = vadd.f32 %v3607_v38, %v441_v2 }
 0x3e4   :  { %v2407_v11 = vpop.eup %2406  ;;  %v449_v40 = vmul.f32 %v3597_v49, %v427_v4  ;;  %v540_v5 = vmul.f32 0.044715, %v524_v59  ;;  %v568_v19 = vmul.f32 0.7978846, %v552_v27  ;;  %v538_v35 = vmul.f32 0.044715, %v522_v16 }
 0x3e5   :  { %1890 = vadd.xlane.f32.xlu1 %v1889_v23  ;;  %v510_v23 = vmul.f32 %v494_v10, %v3621_v54  ;;  %v3674_v33 = vadd.f32 %v3607_v38, %v443_v22  ;;  %v534_v7 = vmul.f32 0.044715, %v518_v9  ;;  %v425_v48 = vmul.f32 %v2407_v11, %v3106_v12 }
 0x3e6   :  { %v560_v21 = vmul.f32 0.7978846, %v544_v28  ;;  %v530_v10 = vmul.f32 0.044715, %v514_v53  ;;  %v548_v14 = vadd.f32 %v532_v13, %v3642_v46  ;;  %v3707_v57 = vadd.f32 %v3607_v38, %v449_v40 }
 0x3e7   :  { %v526_v45 = vmul.f32 0.044715, %v510_v23  ;;  %v497_v61 = vmul.f32 %v3674_v33, %v3674_v33  ;;  %v550_v12 = vadd.f32 %v534_v7, %v3625_v43  ;;  %v447_v34 = vmul.f32 %v3597_v49, %v425_v48  ;;  %v2409_v37 = vpop.eup %2408 }
 0x3e8   :  { %2414 = vtanh.f32 %v560_v21  ;;  %v556_v23 = vadd.f32 %v540_v5, %v3648_v31  ;;  %v433_v9 = vmul.f32 %v2409_v37, %v3116_v60  ;;  %v546_v15 = vadd.f32 %v530_v10, %v3651_v63  ;;  %v2411_v47 = vpop.eup %2410 }
 0x3e9   :  { %1896 = vadd.xlane.f32.xlu1 %v1895_v0  ;;  %v451_v0 = vmul.f32 %v3597_v49, %v429_v62  ;;  %v542_v1 = vadd.f32 %v526_v45, %v3621_v54  ;;  %v513_v56 = vmul.f32 %v497_v61, %v3674_v33  ;;  %v566_v62 = vmul.f32 0.7978846, %v550_v12  ;;  %v2413_v18 = vpop.eup %2412 }
 0x3ea   :  { %v3711_v22 = vadd.f32 %v3607_v38, %v447_v34  ;;  %2416 = vtanh.f32 %v568_v19  ;;  %v495_v52 = vmul.f32 %v3700_v3, %v3700_v3  ;;  %v554_v55 = vadd.f32 %v538_v35, %v3656_v36 }
 0x3eb   :  { %v3685_v42 = vadd.f32 %v3607_v38, %v451_v0  ;;  %v558_v25 = vmul.f32 0.7978846, %v542_v1  ;;  %v529_v11 = vmul.f32 0.044715, %v513_v56  ;;  %v564_v0 = vmul.f32 0.7978846, %v548_v14 }
 0x3ec   :  { %v503_v60 = vmul.f32 %v3707_v57, %v3707_v57  ;;  %v572_v45 = vmul.f32 0.7978846, %v556_v23  ;;  %v501_v32 = vmul.f32 %v3711_v22, %v3711_v22  ;;  %v455_v7 = vmul.f32 %v3597_v49, %v433_v9 }
 0x3ed   :  { %v505_v50 = vmul.f32 %v3685_v42, %v3685_v42  ;;  %2418 = vtanh.f32 %v558_v25  ;;  %v562_v4 = vmul.f32 0.7978846, %v546_v15  ;;  %v511_v59 = vmul.f32 %v495_v52, %v3700_v3 }
 0x3ee   :  { %2420 = vtanh.f32 %v566_v62  ;;  %v423_v48 = vmul.f32 %v2411_v47, %v3150_v41  ;;  %v570_v2 = vmul.f32 0.7978846, %v554_v55  ;;  %v545_v1 = vadd.f32 %v529_v11, %v3674_v33 }
 0x3ef   :  { %v521_v29 = vmul.f32 %v505_v50, %v3685_v42  ;;  %v519_v61 = vmul.f32 %v503_v60, %v3707_v57  ;;  %v431_v12 = vmul.f32 %v2413_v18, %v3155_v44  ;;  %v517_v13 = vmul.f32 %v501_v32, %v3711_v22 }
 0x3f0   :  { %v3702_v26 = vpop.xlane.xlu1 %1349  ;;  %v3733_v40 = vadd.f32 %v3607_v38, %v455_v7  ;;  %v527_v5 = vmul.f32 0.044715, %v511_v59  ;;  %v445_v34 = vmul.f32 %v3597_v49, %v423_v48  ;;  %v561_v10 = vmul.f32 0.7978846, %v545_v1 }
 0x3f1   :  { %v537_v28 = vmul.f32 0.044715, %v521_v29  ;;  %v535_v44 = vmul.f32 0.044715, %v519_v61  ;;  %v453_v35 = vmul.f32 %v3597_v49, %v431_v12  ;;  %v533_v56 = vmul.f32 0.044715, %v517_v13 }
 0x3f2   :  { %v509_v62 = vmul.f32 %v3733_v40, %v3733_v40  ;;  %v543_v29 = vadd.f32 %v527_v5, %v3700_v3  ;;  %v3742_v52 = vadd.f32 %v3607_v38, %v445_v34  ;;  %v488_v59 = vmul.f32 0.5, %v3615_v8 }
 0x3f3   :  { %v553_v21 = vadd.f32 %v537_v28, %v3685_v42  ;;  %v549_v18 = vadd.f32 %v533_v56, %v3711_v22  ;;  %v480_v28 = vmul.f32 0.5, %v3610_v17  ;;  %v484_v17 = vmul.f32 0.5, %v3642_v46 }
 0x3f4   :  { %v559_v7 = vmul.f32 0.7978846, %v543_v29 }
 0x3f5   :  { %v2415_v9 = vpop.eup %2414  ;;  %v569_v15 = vmul.f32 0.7978846, %v553_v21  ;;  %v565_v12 = vmul.f32 0.7978846, %v549_v18 }
 0x3f7   :  { %1460 = vrot.lane.b32.xlu0 %v3597_v49, %s2644_s4  ;;  %v2417_v55 = vpop.eup %2416 }
 0x3fa   :  { %1962 = vrot.lane.b32.xlu1 %v3597_v49, %s2645_s23  ;;  %v2419_v11 = vpop.eup %2418 }
 0x3fb   :  { %1981 = vrot.lane.b32.xlu0 %v3607_v38, %s2645_s23  ;;  %v2421_v60 = vpop.eup %2420 }
 0x3fc   :  { %v598_v46 = vadd.f32 1.0, %v2421_v60 }
 0x3fe   :  { %1479 = vrot.lane.b32.xlu1 %v3607_v38, %s2644_s4 }
 0x406   :  { %v881_v20 = vpop.xlane.xlu1 %880 }
 0x407   :  { %v905_v6 = vmul.f32 0.125, %v881_v20 }
 0x409   :  { %v921_v39 = vadd.f32 1e-06, %v905_v6  ;;  %v551_v6 = vadd.f32 %v535_v44, %v3707_v57  ;;  %v590_v44 = vadd.f32 1.0, %v2419_v11 }
 0x40a   :  { %v3726_v27 = vpop.xlane.xlu1 %1358  ;;  %v854_v53 = vpop.xlane.xlu0 %853 }
 0x40b   :  { %2422 = vrsqrt.f32 %v921_v39  ;;  %v896_v16 = vmul.f32 0.125, %v854_v53  ;;  %v499_v39 = vmul.f32 %v3742_v52, %v3742_v52  ;;  %v478_v53 = vmul.f32 0.5, %v3621_v54 }
 0x40c   :  { %2424 = vtanh.f32 %v564_v0  ;;  %v3748_v0 = vadd.f32 %v3607_v38, %v453_v35  ;;  %v567_v1 = vmul.f32 0.7978846, %v551_v6 }
 0x40d   :  { %2426 = vtanh.f32 %v572_v45  ;;  %v912_v41 = vadd.f32 1e-06, %v896_v16  ;;  %v525_v45 = vmul.f32 %v509_v62, %v3733_v40  ;;  %v515_v8 = vmul.f32 %v499_v39, %v3742_v52 }
 0x40e   :  { %2428 = vtanh.f32 %v562_v4  ;;  %v851_v37 = vpop.xlane.xlu1 %850  ;;  %v878_v19 = vpop.xlane.xlu0 %877  ;;  %v507_v16 = vmul.f32 %v3748_v0, %v3748_v0 }
 0x40f   :  { %2430 = vtanh.f32 %v570_v2  ;;  %v895_v50 = vmul.f32 0.125, %v851_v37  ;;  %v904_v25 = vmul.f32 0.125, %v878_v19  ;;  %v486_v2 = vmul.f32 0.5, %v3625_v43 }
 0x410   :  { %2432 = vrsqrt.f32 %v912_v41  ;;  %v541_v13 = vmul.f32 0.044715, %v525_v45  ;;  %v592_v43 = vadd.f32 1.0, %v2415_v9  ;;  %v492_v37 = vmul.f32 0.5, %v3648_v31 }
 0x411   :  { %v911_v14 = vadd.f32 1e-06, %v895_v50  ;;  %v920_v23 = vadd.f32 1e-06, %v904_v25  ;;  %2434 = vtanh.f32 %v561_v10  ;;  %v600_v25 = vadd.f32 1.0, %v2417_v55 }
 0x412   :  { %v875_v20 = vpop.xlane.xlu1 %874  ;;  %v3744_v47 = vpop.xlane.xlu0 %1355  ;;  %v557_v56 = vadd.f32 %v541_v13, %v3733_v40  ;;  %v531_v9 = vmul.f32 0.044715, %v515_v8  ;;  %v3772_v45 = vmul.f32 %v592_v43, %v480_v28  ;;  %v4956_v8 = vld [vmem:[#allocation2_spill] sm:$0xff] }
 0x413   :  { %v903_v49 = vmul.f32 0.125, %v875_v20  ;;  %2436 = vrsqrt.f32 %v911_v14 }
 0x414   :  { %2438 = vrsqrt.f32 %v920_v23  ;;  %v573_v39 = vmul.f32 0.7978846, %v557_v56  ;;  %v547_v28 = vadd.f32 %v531_v9, %v3742_v52  ;;  %v1399_v56 = vmul.f32 0.125, %v3726_v27 }
 0x415   :  { %v919_v32 = vadd.f32 1e-06, %v903_v49  ;;  %2440 = vtanh.f32 %v569_v15  ;;  %v482_v49 = vmul.f32 0.5, %v3651_v63 }
 0x416   :  { %v848_v4 = vpop.xlane.xlu0 %847 }
 0x417   :  { %v894_v38 = vmul.f32 0.125, %v848_v4  ;;  %2442 = vrsqrt.f32 %v919_v32  ;;  %v3774_v32 = vmul.f32 %v600_v25, %v488_v59 }
 0x418   :  { %v2423_v48 = vpop.eup %2422  ;;  %2444 = vtanh.f32 %v559_v7  ;;  %v490_v7 = vmul.f32 0.5, %v3656_v36 }
 0x419   :  { %v2425_v61 = vpop.eup %2424  ;;  %v953_v41 = vmul.f32 %v2423_v48, %v3270_v24  ;;  %v910_v5 = vadd.f32 1e-06, %v894_v38  ;;  %2446 = vtanh.f32 %v567_v1  ;;  %v523_v24 = vmul.f32 %v507_v16, %v3748_v0 }
 0x41a   :  { %v2427_v21 = vpop.eup %2426  ;;  %v872_v54 = vpop.xlane.xlu0 %871  ;;  %2448 = vtanh.f32 %v565_v12  ;;  %v596_v14 = vadd.f32 1.0, %v2425_v61  ;;  %v3777_v38 = vmul.f32 %v590_v44, %v478_v53  ;;  %v487_v44 = vmul.f32 0.5, %v3707_v57 }
 0x41b   :  { %v2429_v34 = vpop.eup %2428  ;;  %v972_v19 = vmul.f32 %v2877_v58, %v953_v41  ;;  %v902_v10 = vmul.f32 0.125, %v872_v54  ;;  %v604_v23 = vadd.f32 1.0, %v2427_v21  ;;  %2450 = vrsqrt.f32 %v910_v5  ;;  %v4955_v21 = vld [vmem:[#allocation21_spill] sm:$0xff] }
 0x41c   :  { %v2431_v50 = vpop.eup %2430  ;;  %v594_v11 = vadd.f32 1.0, %v2429_v34  ;;  %v539_v60 = vmul.f32 0.044715, %v523_v24  ;;  %v3781_v48 = vmul.f32 %v596_v14, %v484_v17  ;;  %v489_v41 = vmul.f32 0.5, %v3685_v42  ;;  %v4957_v14 = vld [vmem:[#allocation23_spill] sm:$0xff] }
 0x41d   :  { %v2433_v35 = vpop.eup %2432  ;;  %v918_v62 = vadd.f32 1e-06, %v902_v10  ;;  %v3768_v15 = vadd.f32 %v2861_v51, %v972_v19  ;;  %v602_v6 = vadd.f32 1.0, %v2431_v50  ;;  %v3785_v61 = vmul.f32 %v604_v23, %v492_v37 }
 0x41e   :  { %v857_v31 = vpop.xlane.xlu0 %856  ;;  %v944_v29 = vmul.f32 %v2433_v35, %v3186_v30  ;;  %v2435_v55 = vpop.eup %2434  ;;  %v3779_v30 = vmul.f32 %v598_v46, %v486_v2  ;;  %v3791_v12 = vmul.f32 %v594_v11, %v482_v49  ;;  %v481_v2 = vmul.f32 0.5, %v3674_v33 }
 0x41f   :  { %2452 = vrsqrt.f32 %v918_v62  ;;  %v897_v20 = vmul.f32 0.125, %v857_v31  ;;  %4952 = vst [vmem:[#allocation48_spill] sm:$0xff] %v3785_v61  ;;  %v1023_v59 = vmul.f32 %v3768_v15, %v3768_v15  ;;  %v3793_v53 = vmul.f32 %v602_v6, %v490_v7 }
 0x420   :  { %v2437_v18 = vpop.eup %2436  ;;  %v963_v36 = vmul.f32 %v2877_v58, %v944_v29  ;;  %4953 = vst [vmem:[#allocation49_spill] sm:$0xff] %v3791_v12  ;;  %v555_v13 = vadd.f32 %v539_v60, %v3748_v0  ;;  %2454 = vtanh.f32 %v573_v39  ;;  %v593_v34 = vadd.f32 1.0, %v2435_v55 }
 0x421   :  { %v2439_v4 = vpop.eup %2438  ;;  %v913_v1 = vadd.f32 1e-06, %v897_v20  ;;  %4954 = vst [vmem:[#allocation50_spill] sm:$0xff] %v3793_v53  ;;  %v943_v17 = vmul.f32 %v2437_v18, %v4955_v21  ;;  %v479_v37 = vmul.f32 0.5, %v3700_v3  ;;  %v563_v50 = vmul.f32 0.7978846, %v547_v28 }
 0x422   :  { %v3783_v63 = vpop.xlane.xlu0 %1352  ;;  %v2441_v16 = vpop.eup %2440  ;;  %v952_v5 = vmul.f32 %v2439_v4, %v4956_v8  ;;  %v1396_v33 = vmul.f32 0.125, %v3702_v26  ;;  %v1039_v25 = vmul.f32 %v1023_v59, %v3768_v15  ;;  %v3804_v42 = vadd.f32 %v2861_v51, %v963_v36  ;;  %v4958_v59 = vld [vmem:[#allocation3_spill] sm:$0xff] }
 0x423   :  { %v601_v43 = vadd.f32 1.0, %v2441_v16  ;;  %2456 = vrsqrt.f32 %v913_v1  ;;  %v485_v24 = vmul.f32 0.5, %v3711_v22  ;;  %v3809_v35 = vmul.f32 0.5, %v3733_v40 }
 0x424   :  { %v2443_v54 = vpop.eup %2442  ;;  %v571_v46 = vmul.f32 0.7978846, %v555_v13  ;;  %v962_v62 = vmul.f32 %v2877_v58, %v943_v17  ;;  %v971_v26 = vmul.f32 %v2877_v58, %v952_v5  ;;  %v3815_v31 = vmul.f32 %v593_v34, %v481_v2  ;;  %v4959_v17 = vld [vmem:[#allocation4_spill] sm:$0xff] }
 0x425   :  { %v2445_v10 = vpop.eup %2444  ;;  %v951_v23 = vmul.f32 %v2443_v54, %v4957_v14  ;;  %v3817_v29 = vmul.f32 %v601_v43, %v489_v41  ;;  %2458 = vtanh.f32 %v563_v50  ;;  %v1412_v55 = vadd.f32 1e-06, %v1396_v33 }
 0x426   :  { %v866_v19 = vpop.xlane.xlu0 %865  ;;  %v2447_v3 = vpop.eup %2446  ;;  %v591_v57 = vadd.f32 1.0, %v2445_v10  ;;  %v1055_v49 = vmul.f32 0.044715, %v1039_v25  ;;  %v1014_v27 = vmul.f32 %v3804_v42, %v3804_v42  ;;  %2460 = vtanh.f32 %v571_v46 }
 0x427   :  { %v2449_v9 = vpop.eup %2448  ;;  %v900_v22 = vmul.f32 0.125, %v866_v19  ;;  %v599_v6 = vadd.f32 1.0, %v2447_v3  ;;  %v1398_v60 = vmul.f32 0.125, %v3744_v47  ;;  %v1415_v7 = vadd.f32 1e-06, %v1399_v56 }
 0x428   :  { %v2451_v40 = vpop.eup %2450  ;;  %v3823_v39 = vadd.f32 %v2861_v51, %v962_v62  ;;  %v3826_v4 = vadd.f32 %v2861_v51, %v971_v26  ;;  %v970_v1 = vmul.f32 %v2877_v58, %v951_v23  ;;  %v3829_v16 = vmul.f32 %v591_v57, %v479_v37 }
 0x429   :  { %v916_v18 = vadd.f32 1e-06, %v900_v22  ;;  %v597_v28 = vadd.f32 1.0, %v2449_v9  ;;  %v942_v36 = vmul.f32 %v2451_v40, %v4958_v59  ;;  %2462 = vrsqrt.f32 %v1412_v55 }
 0x42a   :  { %v890_v20 = vpop.xlane.xlu0 %889  ;;  %v1071_v47 = vadd.f32 %v1055_v49, %v3768_v15  ;;  %v1030_v21 = vmul.f32 %v1014_v27, %v3804_v42  ;;  %v3835_v5 = vmul.f32 %v599_v6, %v487_v44  ;;  %v1414_v54 = vadd.f32 1e-06, %v1398_v60  ;;  %v4961_v49 = vld [vmem:[#allocation18_spill] sm:$0xff] }
 0x42b   :  { %v908_v2 = vmul.f32 0.125, %v890_v20  ;;  %2464 = vrsqrt.f32 %v916_v18  ;;  %v1013_v43 = vmul.f32 %v3823_v39, %v3823_v39  ;;  %v1022_v37 = vmul.f32 %v3826_v4, %v3826_v4 }
 0x42c   :  { %v2453_v11 = vpop.eup %2452  ;;  %2466 = vrsqrt.f32 %v1415_v7  ;;  %v3842_v19 = vadd.f32 %v2861_v51, %v970_v1  ;;  %v3844_v50 = vmul.f32 %v597_v28, %v485_v24  ;;  %v961_v33 = vmul.f32 %v2877_v58, %v942_v36 }
 0x42d   :  { %v950_v8 = vmul.f32 %v2453_v11, %v4959_v17  ;;  %v924_v34 = vadd.f32 1e-06, %v908_v2  ;;  %v2455_v10 = vpop.eup %2454  ;;  %v1087_v62 = vmul.f32 0.7978846, %v1071_v47  ;;  %v1046_v26 = vmul.f32 0.044715, %v1030_v21 }
 0x42e   :  { %v869_v13 = vpop.xlane.xlu1 %868  ;;  %v860_v41 = vpop.xlane.xlu0 %859  ;;  %4960 = vst [vmem:[#allocation21_spill] sm:$0xff] %v3844_v50  ;;  %v1397_v23 = vmul.f32 0.125, %v3783_v63  ;;  %v1029_v24 = vmul.f32 %v1013_v43, %v3823_v39  ;;  %v1038_v22 = vmul.f32 %v1022_v37, %v3826_v4  ;;  %v1021_v20 = vmul.f32 %v3842_v19, %v3842_v19 }
 0x42f   :  { %v901_v25 = vmul.f32 0.125, %v869_v13  ;;  %v898_v44 = vmul.f32 0.125, %v860_v41  ;;  %v969_v14 = vmul.f32 %v2877_v58, %v950_v8  ;;  %2468 = vrsqrt.f32 %v924_v34 }
 0x430   :  { %v2457_v56 = vpop.eup %2456  ;;  %2470 = vrsqrt.f32 %v1414_v54  ;;  %v3854_v55 = vadd.f32 %v2861_v51, %v961_v33  ;;  %v605_v63 = vadd.f32 1.0, %v2455_v10  ;;  %v1062_v18 = vadd.f32 %v1046_v26, %v3804_v42 }
 0x431   :  { %v917_v9 = vadd.f32 1e-06, %v901_v25  ;;  %v914_v57 = vadd.f32 1e-06, %v898_v44  ;;  %v945_v27 = vmul.f32 %v2457_v56, %v4961_v49  ;;  %v3861_v7 = vadd.f32 %v2861_v51, %v969_v14 }
 0x432   :  { %v893_v46 = vpop.xlane.xlu1 %892  ;;  %v884_v3 = vpop.xlane.xlu0 %883  ;;  %v1413_v28 = vadd.f32 1e-06, %v1397_v23  ;;  %v1045_v13 = vmul.f32 0.044715, %v1029_v24  ;;  %v1054_v41 = vmul.f32 0.044715, %v1038_v22  ;;  %v1037_v47 = vmul.f32 %v1021_v20, %v3842_v19 }
 0x433   :  { %v909_v40 = vmul.f32 0.125, %v893_v46  ;;  %2472 = vrsqrt.f32 %v917_v9  ;;  %v906_v11 = vmul.f32 0.125, %v884_v3  ;;  %v2459_v1 = vpop.eup %2458  ;;  %v483_v17 = vmul.f32 0.5, %v3742_v52  ;;  %v4962_v24 = vld [vmem:[#allocation15_spill] sm:$0xff] }
 0x434   :  { %2474 = vtanh.f32 %v1087_v62  ;;  %v2461_v2 = vpop.eup %2460  ;;  %v1012_v8 = vmul.f32 %v3854_v55, %v3854_v55  ;;  %v964_v54 = vmul.f32 %v2877_v58, %v945_v27  ;;  %v1078_v37 = vmul.f32 0.7978846, %v1062_v18 }
 0x435   :  { %2476 = vrsqrt.f32 %v914_v57  ;;  %v925_v59 = vadd.f32 1e-06, %v909_v40  ;;  %v922_v36 = vadd.f32 1e-06, %v906_v11  ;;  %v1020_v10 = vmul.f32 %v3861_v7, %v3861_v7 }
 0x436   :  { %v863_v6 = vpop.xlane.xlu1 %862  ;;  %v3857_v60 = vpop.xlane.xlu0 %1361  ;;  %v595_v44 = vadd.f32 1.0, %v2459_v1  ;;  %v603_v46 = vadd.f32 1.0, %v2461_v2  ;;  %v491_v56 = vmul.f32 0.5, %v3748_v0  ;;  %v1061_v62 = vadd.f32 %v1045_v13, %v3823_v39  ;;  %v4966_v1 = vld [vmem:[#allocation5_spill] sm:$0xff] }
 0x437   :  { %v899_v21 = vmul.f32 0.125, %v863_v6  ;;  %2478 = vrsqrt.f32 %v925_v59  ;;  %v2463_v25 = vpop.eup %2462  ;;  %v1070_v26 = vadd.f32 %v1054_v41, %v3826_v4  ;;  %v1053_v14 = vmul.f32 0.044715, %v1037_v47  ;;  %v4970_v41 = vld [vmem:[#allocation17_spill] sm:$0xff] }
 0x438   :  { %2480 = vrsqrt.f32 %v922_v36  ;;  %v2465_v3 = vpop.eup %2464  ;;  %v1028_v9 = vmul.f32 %v1012_v8, %v3854_v55  ;;  %v3877_v57 = vadd.f32 %v2861_v51, %v964_v54  ;;  %v3885_v0 = vmul.f32 %v605_v63, %v3809_v35  ;;  %v4968_v35 = vld [vmem:[#allocation6_spill] sm:$0xff] }
 0x439   :  { %v915_v33 = vadd.f32 1e-06, %v899_v21  ;;  %2482 = vrsqrt.f32 %v1413_v28  ;;  %v2467_v23 = vpop.eup %2466  ;;  %v948_v22 = vmul.f32 %v2465_v3, %v4962_v24  ;;  %v1036_v49 = vmul.f32 %v1020_v10, %v3861_v7  ;;  %v4971_v3 = vld [vmem:[#allocation9_spill] sm:$0xff] }
 0x43a   :  { %v887_v34 = vpop.xlane.xlu1 %886  ;;  %v3868_v43 = vpop.xlane.xlu0 %1367  ;;  %4963 = vst [vmem:[#allocation2_spill] sm:$0xff] %v3885_v0  ;;  %v3888_v6 = vmul.f32 %v595_v44, %v483_v17  ;;  %v3890_v18 = vmul.f32 %v603_v46, %v491_v56  ;;  %v3893_v28 = vmul.f32 %v2463_v25, %v4966_v1  ;;  %v3897_v2 = vmul.f32 0.5, %v3768_v15 }
 0x43b   :  { %v907_v52 = vmul.f32 0.125, %v887_v34  ;;  %2484 = vrsqrt.f32 %v915_v33  ;;  %v967_v59 = vmul.f32 %v2877_v58, %v948_v22  ;;  %v3900_v63 = vmul.f32 %v2467_v23, %v4968_v35 }
 0x43c   :  { %2486 = vtanh.f32 %v1078_v37  ;;  %v2469_v11 = vpop.eup %2468  ;;  %4964 = vst [vmem:[#allocation23_spill] sm:$0xff] %v3888_v6  ;;  %4965 = vst [vmem:[#allocation3_spill] sm:$0xff] %v3890_v18  ;;  %v1069_v13 = vadd.f32 %v1053_v14, %v3842_v19  ;;  %v1077_v21 = vmul.f32 0.7978846, %v1061_v62  ;;  %v1086_v17 = vmul.f32 0.7978846, %v1070_v26 }
 0x43d   :  { %v923_v27 = vadd.f32 1e-06, %v907_v52  ;;  %4967 = vst [vmem:[#allocation4_spill] sm:$0xff] %v3893_v28  ;;  %v2471_v36 = vpop.eup %2470  ;;  %4969 = vst [vmem:[#allocation18_spill] sm:$0xff] %v3900_v63  ;;  %v956_v47 = vmul.f32 %v2469_v11, %v4970_v41  ;;  %v1044_v8 = vmul.f32 0.044715, %v1028_v9  ;;  %v1015_v54 = vmul.f32 %v3877_v57, %v3877_v57 }
 0x43e   :  { %v3880_v20 = vpop.xlane.xlu1 %1364  ;;  %v3882_v40 = vpop.xlane.xlu0 %1373  ;;  %v1052_v15 = vmul.f32 0.044715, %v1036_v49  ;;  %v3911_v33 = vadd.f32 %v2861_v51, %v967_v59  ;;  %v3915_v46 = vmul.f32 0.5, %v3804_v42  ;;  %v3918_v52 = vmul.f32 0.5, %v3823_v39  ;;  %v4973_v62 = vld [vmem:[#allocation37_spill] sm:$0xff]  ;;  %v4974_v49 = vld [vmem:[#allocation19_spill] sm:$0xff] }
 0x43f   :  { %v975_v25 = vmul.f32 %v2877_v58, %v956_v47  ;;  %2488 = vrsqrt.f32 %v923_v27  ;;  %v3921_v56 = vmul.f32 %v2471_v36, %v4971_v3  ;;  %v3925_v23 = vmul.f32 0.5, %v3826_v4  ;;  %v4980_v6 = vld [vmem:[#allocation42_spill] sm:$0xff] }
 0x440   :  { %v2473_v10 = vpop.eup %2472  ;;  %v3928_v9 = vmul.f32 0.5, %v3842_v19  ;;  %v1085_v24 = vmul.f32 0.7978846, %v1069_v13  ;;  %2490 = vtanh.f32 %v1077_v21  ;;  %v1060_v42 = vadd.f32 %v1044_v8, %v3854_v55  ;;  %v4975_v21 = vld [vmem:[#allocation39_spill] sm:$0xff] }
 0x441   :  { %v2475_v44 = vpop.eup %2474  ;;  %4972 = vst [vmem:[#allocation15_spill] sm:$0xff] %v3921_v56  ;;  %v949_v26 = vmul.f32 %v2473_v10, %v4973_v62  ;;  %v3931_v22 = vadd.f32 %v2861_v51, %v975_v25  ;;  %2492 = vtanh.f32 %v1086_v17  ;;  %v1068_v19 = vadd.f32 %v1052_v15, %v3861_v7  ;;  %v4976_v15 = vld [vmem:[#allocation20_spill] sm:$0xff] }
 0x442   :  { %v3906_v34 = vpop.xlane.xlu1 %1370  ;;  %v3908_v37 = vpop.xlane.xlu0 %1379  ;;  %v1031_v59 = vmul.f32 %v1015_v54, %v3877_v57  ;;  %v1018_v36 = vmul.f32 %v3911_v33, %v3911_v33  ;;  %2494 = vtanh.f32 %v1085_v24  ;;  %v3952_v17 = vmul.f32 0.5, %v3854_v55 }
 0x443   :  { %v2477_v14 = vpop.eup %2476  ;;  %v968_v39 = vmul.f32 %v2877_v58, %v949_v26  ;;  %v1026_v13 = vmul.f32 %v3931_v22, %v3931_v22  ;;  %v3955_v54 = vmul.f32 0.5, %v3861_v7  ;;  %v1119_v3 = vadd.f32 1.0, %v2475_v44 }
 0x444   :  { %v946_v27 = vmul.f32 %v2477_v14, %v4974_v49  ;;  %v2479_v4 = vpop.eup %2478  ;;  %v1076_v62 = vmul.f32 0.7978846, %v1060_v42  ;;  %v1047_v55 = vmul.f32 0.044715, %v1031_v59  ;;  %v1084_v42 = vmul.f32 0.7978846, %v1068_v19 }
 0x445   :  { %v2481_v35 = vpop.eup %2480  ;;  %v3947_v41 = vadd.f32 %v2861_v51, %v968_v39  ;;  %v957_v8 = vmul.f32 %v2479_v4, %v4975_v21  ;;  %v3985_v19 = vmul.f32 %v1119_v3, %v3897_v2  ;;  %v1402_v28 = vmul.f32 0.125, %v3868_v43 }
 0x446   :  { %v3936_v11 = vpop.xlane.xlu1 %1376  ;;  %v3938_v1 = vpop.xlane.xlu0 %1385  ;;  %v965_v47 = vmul.f32 %v2877_v58, %v946_v27  ;;  %v954_v25 = vmul.f32 %v2481_v35, %v4976_v15  ;;  %v1034_v27 = vmul.f32 %v1018_v36, %v3911_v33  ;;  %v4977_v35 = vld [vmem:[#allocation25_spill] sm:$0xff]  ;;  %v1400_v15 = vmul.f32 0.125, %v3857_v60 }
 0x447   :  { %v2483_v10 = vpop.eup %2482  ;;  %v1019_v26 = vmul.f32 %v3947_v41, %v3947_v41  ;;  %v976_v7 = vmul.f32 %v2877_v58, %v957_v8  ;;  %2496 = vtanh.f32 %v1076_v62 }
 0x448   :  { %v3961_v14 = vadd.f32 %v2861_v51, %v965_v47  ;;  %v2485_v24 = vpop.eup %2484  ;;  %v973_v4 = vmul.f32 %v2877_v58, %v954_v25  ;;  %v3971_v21 = vmul.f32 %v2483_v10, %v4977_v35  ;;  %v1042_v47 = vmul.f32 %v1026_v13, %v3931_v22  ;;  %v4979_v13 = vld [vmem:[#allocation41_spill] sm:$0xff] }
 0x449   :  { %v2487_v44 = vpop.eup %2486  ;;  %v1035_v63 = vmul.f32 %v1019_v26, %v3947_v41  ;;  %v3979_v36 = vadd.f32 %v2861_v51, %v976_v7  ;;  %v3988_v10 = vmul.f32 0.5, %v3877_v57  ;;  %v947_v60 = vmul.f32 %v2485_v24, %v4979_v13 }
 0x44a   :  { %v3963_v39 = vpop.xlane.xlu1 %1382  ;;  %v3965_v49 = vpop.xlane.xlu0 %1391  ;;  %4978 = vst [vmem:[#allocation5_spill] sm:$0xff] %v3971_v21  ;;  %v1016_v59 = vmul.f32 %v3961_v14, %v3961_v14  ;;  %v3982_v8 = vadd.f32 %v2861_v51, %v973_v4  ;;  %v3995_v35 = vadd.f32 1.0, %v2487_v44  ;;  %v1063_v7 = vadd.f32 %v1047_v55, %v3877_v57 }
 0x44b   :  { %v1050_v56 = vmul.f32 0.044715, %v1034_v27  ;;  %v1058_v2 = vmul.f32 0.044715, %v1042_v47  ;;  %v1027_v3 = vmul.f32 %v3979_v36, %v3979_v36  ;;  %v1416_v62 = vadd.f32 1e-06, %v1400_v15 }
 0x44c   :  { %v1032_v4 = vmul.f32 %v1016_v59, %v3961_v14  ;;  %v2489_v21 = vpop.eup %2488  ;;  %2498 = vtanh.f32 %v1084_v42  ;;  %v1051_v24 = vmul.f32 0.044715, %v1035_v63  ;;  %v1024_v13 = vmul.f32 %v3982_v8, %v3982_v8 }
 0x44d   :  { %v1401_v44 = vmul.f32 0.125, %v3880_v20  ;;  %v1043_v57 = vmul.f32 %v1027_v3, %v3979_v36  ;;  %v966_v55 = vmul.f32 %v2877_v58, %v947_v60  ;;  %v1404_v27 = vmul.f32 0.125, %v3882_v40  ;;  %v2491_v15 = vpop.eup %2490 }
 0x44e   :  { %v3991_v25 = vpop.xlane.xlu1 %1388  ;;  %v3993_v26 = vpop.xlane.xlu0 %1851  ;;  %v1048_v18 = vmul.f32 0.044715, %v1032_v4  ;;  %v1079_v43 = vmul.f32 0.7978846, %v1063_v7  ;;  %v1066_v63 = vadd.f32 %v1050_v56, %v3911_v33  ;;  %v1040_v42 = vmul.f32 %v1024_v13, %v3982_v8 }
 0x44f   :  { %v955_v53 = vmul.f32 %v2489_v21, %v4980_v6  ;;  %v2493_v20 = vpop.eup %2492  ;;  %v1074_v4 = vadd.f32 %v1058_v2, %v3931_v22  ;;  %v1059_v3 = vmul.f32 0.044715, %v1043_v57  ;;  %v4017_v60 = vadd.f32 %v2861_v51, %v966_v55 }
 0x450   :  { %v1418_v40 = vadd.f32 1e-06, %v1402_v28  ;;  %v1067_v0 = vadd.f32 %v1051_v24, %v3947_v41  ;;  %v1056_v12 = vmul.f32 0.044715, %v1040_v42  ;;  %v1417_v7 = vadd.f32 1e-06, %v1401_v44  ;;  %v2495_v61 = vpop.eup %2494 }
 0x451   :  { %v974_v50 = vmul.f32 %v2877_v58, %v955_v53  ;;  %v1064_v56 = vadd.f32 %v1048_v18, %v3961_v14  ;;  %v1017_v6 = vmul.f32 %v4017_v60, %v4017_v60  ;;  %2500 = vrsqrt.f32 %v1416_v62 }
 0x452   :  { %v4008_v47 = vpop.xlane.xlu1 %1394  ;;  %v4010_v59 = vpop.xlane.xlu0 %1857  ;;  %v1420_v21 = vadd.f32 1e-06, %v1404_v27  ;;  %2502 = vtanh.f32 %v1079_v43  ;;  %v1082_v28 = vmul.f32 0.7978846, %v1066_v63  ;;  %v1403_v58 = vmul.f32 0.125, %v3906_v34 }
 0x453   :  { %v4029_v24 = vadd.f32 %v2861_v51, %v974_v50  ;;  %v1090_v53 = vmul.f32 0.7978846, %v1074_v4  ;;  %v1075_v44 = vadd.f32 %v1059_v3, %v3979_v36  ;;  %v1033_v18 = vmul.f32 %v1017_v6, %v4017_v60 }
 0x454   :  { %2504 = vrsqrt.f32 %v1418_v40  ;;  %v1083_v57 = vmul.f32 0.7978846, %v1067_v0  ;;  %v1072_v62 = vadd.f32 %v1056_v12, %v3982_v8  ;;  %v1080_v27 = vmul.f32 0.7978846, %v1064_v56  ;;  %v2497_v63 = vpop.eup %2496 }
 0x455   :  { %v1025_v55 = vmul.f32 %v4029_v24, %v4029_v24  ;;  %2506 = vrsqrt.f32 %v1417_v7  ;;  %v1049_v43 = vmul.f32 0.044715, %v1033_v18  ;;  %v1406_v51 = vmul.f32 0.125, %v3908_v37 }
 0x456   :  { %v4024_v2 = vpop.xlane.xlu1 %1854  ;;  %v4026_v13 = vpop.xlane.xlu0 %1863  ;;  %2508 = vrsqrt.f32 %v1420_v21  ;;  %v1419_v0 = vadd.f32 1e-06, %v1403_v58  ;;  %v1405_v12 = vmul.f32 0.125, %v3936_v11  ;;  %v1109_v4 = vadd.f32 1.0, %v2491_v15 }
 0x457   :  { %2510 = vtanh.f32 %v1082_v28  ;;  %v1041_v42 = vmul.f32 %v1025_v55, %v4029_v24  ;;  %v1091_v3 = vmul.f32 0.7978846, %v1075_v44  ;;  %v1408_v40 = vmul.f32 0.125, %v3938_v1 }
 0x458   :  { %2512 = vtanh.f32 %v1090_v53  ;;  %v1088_v7 = vmul.f32 0.7978846, %v1072_v62  ;;  %v1407_v37 = vmul.f32 0.125, %v3963_v39  ;;  %v4051_v21 = vsel %vm224_vm1, %v3817_v29, %v3985_v19 }
 0x459   :  { %2514 = vtanh.f32 %v1083_v57  ;;  %v1057_v56 = vmul.f32 0.044715, %v1041_v42  ;;  %v4046_v6 = vpop.eup %2498  ;;  %4981 = vst [vmem:[#allocation6_spill] sm:$0xff] %v4051_v21  ;;  %v1065_v11 = vadd.f32 %v1049_v43, %v4017_v60  ;;  %v1422_v15 = vadd.f32 1e-06, %v1406_v51 }
 0x45a   :  { %v4038_v50 = vpop.xlane.xlu1 %1860  ;;  %v4040_v34 = vpop.xlane.xlu0 %1869  ;;  %2516 = vtanh.f32 %v1080_v27  ;;  %v1126_v1 = vmul.f32 %v3995_v35, %v3915_v46  ;;  %v1421_v53 = vadd.f32 1e-06, %v1405_v12  ;;  %v1410_v39 = vmul.f32 0.125, %v3965_v49 }
 0x45b   :  { %2518 = vrsqrt.f32 %v1419_v0  ;;  %v1118_v44 = vadd.f32 1.0, %v2493_v20  ;;  %v1424_v18 = vadd.f32 1e-06, %v1408_v40  ;;  %v1409_v57 = vmul.f32 0.125, %v3991_v25 }
 0x45c   :  { %2520 = vtanh.f32 %v1091_v3  ;;  %v1125_v29 = vmul.f32 %v1109_v4, %v3918_v52  ;;  %v1073_v19 = vadd.f32 %v1057_v56, %v4029_v24  ;;  %v1423_v62 = vadd.f32 1e-06, %v1407_v37 }
 0x45d   :  { %2522 = vtanh.f32 %v1088_v7  ;;  %v1117_v55 = vadd.f32 1.0, %v2495_v61  ;;  %v1081_v27 = vmul.f32 0.7978846, %v1065_v11  ;;  %v1898_v46 = vmul.f32 0.125, %v3993_v26 }
 0x45e   :  { %v1867_v28 = vpop.xlane.xlu1 %1866  ;;  %v1876_v58 = vpop.xlane.xlu0 %1875  ;;  %2524 = vrsqrt.f32 %v1422_v15  ;;  %v4065_v49 = vsel %vm224_vm1, %v3772_v45, %v1126_v1  ;;  %v1426_v25 = vadd.f32 1e-06, %v1410_v39  ;;  %v1411_v52 = vmul.f32 0.125, %v4008_v47 }
 0x45f   :  { %v4061_v51 = vpop.eup %2500  ;;  %4982 = vst [vmem:[#allocation17_spill] sm:$0xff] %v4065_v49  ;;  %2526 = vrsqrt.f32 %v1421_v53  ;;  %v1134_v61 = vmul.f32 %v1118_v44, %v3925_v23  ;;  %v1425_v42 = vadd.f32 1e-06, %v1409_v57  ;;  %v1900_v26 = vmul.f32 0.125, %v4010_v59 }
 0x460   :  { %v4068_v20 = vpop.eup %2502  ;;  %2528 = vrsqrt.f32 %v1424_v18  ;;  %v4076_v12 = vsel %vm224_vm1, %v3829_v16, %v1125_v29  ;;  %v1089_v45 = vmul.f32 0.7978846, %v1073_v19  ;;  %v1899_v4 = vmul.f32 0.125, %v4024_v2 }
 0x461   :  { %v4072_v0 = vpop.eup %2504  ;;  %4983 = vst [vmem:[#allocation9_spill] sm:$0xff] %v4076_v12  ;;  %2530 = vrsqrt.f32 %v1423_v62  ;;  %v1133_v47 = vmul.f32 %v1117_v55, %v3928_v9  ;;  %v1914_v23 = vadd.f32 1e-06, %v1898_v46  ;;  %v1902_v40 = vmul.f32 0.125, %v4026_v13 }
 0x462   :  { %v1873_v35 = vpop.xlane.xlu1 %1872  ;;  %v1882_v43 = vpop.xlane.xlu0 %1881  ;;  %2532 = vtanh.f32 %v1081_v27  ;;  %v1108_v56 = vadd.f32 1.0, %v2497_v63  ;;  %v1427_v37 = vadd.f32 1e-06, %v1411_v52  ;;  %v1901_v16 = vmul.f32 0.125, %v4038_v50 }
 0x463   :  { %v4079_v3 = vpop.eup %2506  ;;  %2534 = vrsqrt.f32 %v1426_v25  ;;  %v4088_v2 = vsel %vm224_vm1, %v3774_v32, %v1134_v61  ;;  %v1916_v9 = vadd.f32 1e-06, %v1900_v26  ;;  %v1904_v1 = vmul.f32 0.125, %v4040_v34 }
 0x464   :  { %v4083_v59 = vpop.eup %2508  ;;  %4984 = vst [vmem:[#allocation37_spill] sm:$0xff] %v4088_v2  ;;  %2536 = vrsqrt.f32 %v1425_v42  ;;  %v4092_v13 = vmul.f32 0.5, %v3911_v33  ;;  %v1915_v63 = vadd.f32 1e-06, %v1899_v4  ;;  %v1903_v39 = vmul.f32 0.125, %v1867_v28 }
 0x465   :  { %v2511_v15 = vpop.eup %2510  ;;  %2538 = vtanh.f32 %v1089_v45  ;;  %v4096_v50 = vsel %vm224_vm1, %v3835_v5, %v1133_v47  ;;  %v1918_v18 = vadd.f32 1e-06, %v1902_v40  ;;  %v1906_v32 = vmul.f32 0.125, %v1876_v58 }
 0x466   :  { %v1879_v7 = vpop.xlane.xlu1 %1878  ;;  %v1888_v11 = vpop.xlane.xlu0 %1887  ;;  %4985 = vst [vmem:[#allocation19_spill] sm:$0xff] %v4096_v50  ;;  %2540 = vrsqrt.f32 %v1914_v23  ;;  %v1124_v19 = vmul.f32 %v1108_v56, %v3952_v17  ;;  %v1917_v34 = vadd.f32 1e-06, %v1901_v16  ;;  %v1905_v62 = vmul.f32 0.125, %v1873_v35 }
 0x467   :  { %v2513_v53 = vpop.eup %2512  ;;  %2542 = vrsqrt.f32 %v1427_v37  ;;  %v4102_v55 = vmul.f32 0.5, %v3931_v22  ;;  %v1920_v28 = vadd.f32 1e-06, %v1904_v1  ;;  %v1908_v27 = vmul.f32 0.125, %v1882_v43 }
 0x468   :  { %v2515_v44 = vpop.eup %2514  ;;  %2544 = vrsqrt.f32 %v1916_v9  ;;  %v1116_v46 = vadd.f32 1.0, %v4046_v6  ;;  %v1003_v58 = vmul.f32 0.5, %v3947_v41  ;;  %v1919_v25 = vadd.f32 1e-06, %v1903_v39 }
 0x469   :  { %v2517_v29 = vpop.eup %2516  ;;  %2546 = vrsqrt.f32 %v1915_v63  ;;  %v1922_v61 = vadd.f32 1e-06, %v1906_v32  ;;  %v1907_v35 = vmul.f32 0.125, %v1879_v7  ;;  %v1910_v42 = vmul.f32 0.125, %v1888_v11 }
 0x46a   :  { %v1885_v57 = vpop.xlane.xlu1 %1884  ;;  %v4099_v33 = vpop.eup %2518  ;;  %2548 = vrsqrt.f32 %v1918_v18  ;;  %v4110_v22 = vsel %vm224_vm1, %v3777_v38, %v1124_v19  ;;  %v1921_v43 = vadd.f32 1e-06, %v1905_v62  ;;  %v1000_v41 = vmul.f32 0.5, %v3961_v14 }
 0x46b   :  { %v2521_v5 = vpop.eup %2520  ;;  %v1894_v52 = vpop.xlane.xlu0 %1893  ;;  %4986 = vst [vmem:[#allocation39_spill] sm:$0xff] %v4110_v22  ;;  %2550 = vrsqrt.f32 %v1917_v34  ;;  %v1909_v6 = vmul.f32 0.125, %v1885_v57  ;;  %v1924_v47 = vadd.f32 1e-06, %v1908_v27  ;;  %v1132_v7 = vmul.f32 %v1116_v46, %v3955_v54 }
 0x46c   :  { %v2523_v17 = vpop.eup %2522  ;;  %2552 = vrsqrt.f32 %v1920_v28  ;;  %v1912_v23 = vmul.f32 0.125, %v1894_v52  ;;  %v1111_v56 = vadd.f32 1.0, %v4068_v20  ;;  %v1923_v37 = vadd.f32 1e-06, %v1907_v35  ;;  %v4988_v28 = vld [vmem:[#allocation31_spill] sm:$0xff] }
 0x46d   :  { %v4106_v45 = vpop.eup %2524  ;;  %2554 = vrsqrt.f32 %v1919_v25  ;;  %v1011_v16 = vmul.f32 0.5, %v3979_v36  ;;  %v1926_v11 = vadd.f32 1e-06, %v1910_v42  ;;  %v1114_v63 = vadd.f32 1.0, %v2511_v15 }
 0x46e   :  { %v1891_v26 = vpop.xlane.xlu1 %1890  ;;  %v4112_v4 = vpop.eup %2526  ;;  %2556 = vrsqrt.f32 %v1922_v61  ;;  %v1122_v39 = vadd.f32 1.0, %v2513_v53  ;;  %v1925_v18 = vadd.f32 1e-06, %v1909_v6  ;;  %v1115_v54 = vadd.f32 1.0, %v2515_v44 }
 0x46f   :  { %v4115_v40 = vpop.eup %2528  ;;  %v1911_v9 = vmul.f32 0.125, %v1891_v26  ;;  %2558 = vrsqrt.f32 %v1921_v43  ;;  %v1928_v20 = vadd.f32 1e-06, %v1912_v23  ;;  %v4128_v36 = vsel %vm224_vm1, %v3779_v30, %v1132_v7  ;;  %v4990_v43 = vld [vmem:[#allocation27_spill] sm:$0xff] }
 0x470   :  { %v4119_v38 = vpop.eup %2530  ;;  %2560 = vrsqrt.f32 %v1924_v47  ;;  %4987 = vst [vmem:[#allocation20_spill] sm:$0xff] %v4128_v36  ;;  %v1127_v34 = vmul.f32 %v1111_v56, %v3988_v10  ;;  %v1112_v62 = vadd.f32 1.0, %v2517_v29  ;;  %v1008_v53 = vmul.f32 0.5, %v3982_v8 }
 0x471   :  { %v2533_v14 = vpop.eup %2532  ;;  %2562 = vrsqrt.f32 %v1923_v37  ;;  %v4134_v27 = vmul.f32 %v4061_v51, %v4988_v28  ;;  %v1927_v44 = vadd.f32 1e-06, %v1911_v9  ;;  %v1123_v25 = vadd.f32 1.0, %v2521_v5  ;;  %v5004_v28 = vld [vmem:[#allocation14_spill] sm:$0xff] }
 0x472   :  { %v1897_v1 = vpop.xlane.xlu1 %1896  ;;  %v4122_v32 = vpop.eup %2534  ;;  %2564 = vrsqrt.f32 %v1926_v11  ;;  %v1120_v52 = vadd.f32 1.0, %v2523_v17  ;;  %v1130_v35 = vmul.f32 %v1114_v63, %v4092_v13  ;;  %v1138_v10 = vmul.f32 %v1122_v39, %v4102_v55  ;;  %v4991_v13 = vld [vmem:[#allocation30_spill] sm:$0xff] }
 0x473   :  { %v1913_v57 = vmul.f32 0.125, %v1897_v1  ;;  %v4124_v19 = vpop.eup %2536  ;;  %2566 = vrsqrt.f32 %v1925_v18  ;;  %v1131_v29 = vmul.f32 %v1115_v54, %v1003_v58  ;;  %v4140_v8 = vsel %vm224_vm1, %v3815_v31, %v1127_v34  ;;  %v4992_v31 = vld [vmem:[#allocation13_spill] sm:$0xff]  ;;  %v5000_v63 = vld [vmem:[#allocation22_spill] sm:$0xff]  ;;  %v4180_v54 = vpop.permute.xlu0 %1460  ;;  %v5002_v34 = vld [vmem:[#allocation12_spill] sm:$0xff] }
 0x474   :  { %v2539_v15 = vpop.eup %2538  ;;  %2568 = vrsqrt.f32 %v1928_v20  ;;  %4989 = vst [vmem:[#allocation25_spill] sm:$0xff] %v4140_v8  ;;  %v1128_v51 = vmul.f32 %v1112_v62, %v1000_v41  ;;  %v1113_v26 = vadd.f32 1.0, %v2533_v14  ;;  %v4144_v5 = vmul.f32 %v4072_v0, %v4990_v43  ;;  %v4998_v1 = vld [vmem:[#allocation49_spill] sm:$0xff]  ;;  %v5001_v39 = vld [vmem:[#allocation10_spill] sm:$0xff]  ;;  %v5012_v43 = vld [vmem:[#allocation11_spill] sm:$0xff] }
 0x475   :  { %v2541_v46 = vpop.eup %2540  ;;  %v1929_v61 = vadd.f32 1e-06, %v1913_v57  ;;  %v1001_v6 = vmul.f32 0.5, %v4017_v60  ;;  %v1121_v47 = vadd.f32 1.0, %v2539_v15  ;;  %v4149_v55 = vmul.f32 %v4079_v3, %v4991_v13  ;;  %v4994_v60 = vld [vmem:[#allocation48_spill] sm:$0xff]  ;;  %v4996_v3 = vld [vmem:[#allocation21_spill] sm:$0xff] }
 0x476   :  { %v2543_v30 = vpop.eup %2542  ;;  %2570 = vrsqrt.f32 %v1927_v44  ;;  %v1139_v23 = vmul.f32 %v1123_v25, %v1011_v16  ;;  %v1136_v7 = vmul.f32 %v1120_v52, %v1008_v53  ;;  %v4153_v41 = vmul.f32 %v4083_v59, %v4992_v31  ;;  %v4182_v20 = vpop.permute.xlu1 %1962  ;;  %v5003_v15 = vld [vmem:[#allocation16_spill] sm:$0xff]  ;;  %v5005_v25 = vld [vmem:[#allocation2_spill] sm:$0xff] }
 0x477   :  { %v2545_v42 = vpop.eup %2544  ;;  %2572 = vrsqrt.f32 %v1929_v61  ;;  %v4157_v0 = vsel %vm224_vm1, %v3781_v48, %v1130_v35  ;;  %v4161_v37 = vsel %vm224_vm1, %v4994_v60, %v1138_v10  ;;  %v4165_v11 = vsel %vm224_vm1, %v4996_v3, %v1131_v29  ;;  %v5009_v35 = vld [vmem:[#allocation33_spill] sm:$0xff]  ;;  %v5010_v29 = vld [vmem:[#allocation7_spill] sm:$0xff]  ;;  %v5016_v31 = vld [vmem:[#allocation24_spill] sm:$0xff] }
 0x478   :  { %v2547_v17 = vpop.eup %2546  ;;  %4993 = vst [vmem:[#allocation41_spill] sm:$0xff] %v4157_v0  ;;  %4995 = vst [vmem:[#allocation42_spill] sm:$0xff] %v4161_v37  ;;  %v1009_v16 = vmul.f32 0.5, %v4029_v24  ;;  %v4170_v59 = vsel %vm224_vm1, %v4998_v1, %v1128_v51  ;;  %v1129_v14 = vmul.f32 %v1113_v26, %v1001_v6  ;;  %v4174_v48 = vmul.f32 %v4099_v33, %v5000_v63  ;;  %v5011_v51 = vld [vmem:[#allocation28_spill] sm:$0xff]  ;;  %v5018_v1 = vld [vmem:[#allocation3_spill] sm:$0xff] }
 0x479   :  { %v2549_v58 = vpop.eup %2548  ;;  %4997 = vst [vmem:[#allocation31_spill] sm:$0xff] %v4165_v11  ;;  %4999 = vst [vmem:[#allocation27_spill] sm:$0xff] %v4170_v59  ;;  %v4178_v18 = vmul.f32 %v4106_v45, %v5001_v39  ;;  %v4186_v62 = vmul.f32 %v4112_v4, %v5002_v34  ;;  %v1946_v53 = vmul.f32 %v2541_v46, %v5003_v15  ;;  %v5007_v45 = vld [vmem:[#allocation50_spill] sm:$0xff]  ;;  %v5020_v39 = vld [vmem:[#allocation8_spill] sm:$0xff] }
 0x47a   :  { %v2551_v56 = vpop.eup %2550  ;;  %v1137_v24 = vmul.f32 %v1121_v47, %v1009_v16  ;;  %v1947_v44 = vmul.f32 %v2547_v17, %v5004_v28  ;;  %v4192_v52 = vsel %vm224_vm1, %v5005_v25, %v1139_v23  ;;  %v4196_v61 = vsel %vm224_vm1, %v5007_v45, %v1136_v7  ;;  %v5013_v23 = vld [vmem:[#allocation23_spill] sm:$0xff]  ;;  %v5015_v7 = vld [vmem:[#allocation32_spill] sm:$0xff]  ;;  %v4225_v16 = vpop.permute.xlu0 %1981 }
 0x47b   :  { %v2553_v9 = vpop.eup %2552  ;;  %5006 = vst [vmem:[#allocation30_spill] sm:$0xff] %v4192_v52  ;;  %5008 = vst [vmem:[#allocation13_spill] sm:$0xff] %v4196_v61  ;;  %v4200_v10 = vmul.f32 %v4115_v40, %v5009_v35  ;;  %v4204_v4 = vmul.f32 %v4119_v38, %v5010_v29  ;;  %v4208_v26 = vmul.f32 %v4122_v32, %v5011_v51  ;;  %v5017_v32 = vld [vmem:[#allocation35_spill] sm:$0xff]  ;;  %v5021_v15 = vld [vmem:[#allocation4_spill] sm:$0xff] }
 0x47c   :  { %v2555_v57 = vpop.eup %2554  ;;  %v1948_v17 = vmul.f32 %v2545_v42, %v5012_v43  ;;  %v1965_v6 = vmul.f32 %v4182_v20, %v1946_v53  ;;  %v1966_v47 = vmul.f32 %v4182_v20, %v1947_v44  ;;  %v4215_v40 = vsel %vm224_vm1, %v5013_v23, %v1129_v14  ;;  %v5023_v44 = vld [vmem:[#allocation5_spill] sm:$0xff]  ;;  %v5024_v45 = vld [vmem:[#allocation15_spill] sm:$0xff]  ;;  %v5025_v35 = vld [vmem:[#allocation34_spill] sm:$0xff] }
 0x47d   :  { %v2557_v33 = vpop.eup %2556  ;;  %5014 = vst [vmem:[#allocation48_spill] sm:$0xff] %v4215_v40  ;;  %v4219_v38 = vmul.f32 %v4124_v19, %v5015_v7  ;;  %v4222_v60 = vmul.f32 %v2543_v30, %v5016_v31  ;;  %v1950_v3 = vmul.f32 %v2549_v58, %v5017_v32  ;;  %v4229_v63 = vsel %vm224_vm1, %v5018_v1, %v1137_v24  ;;  %v5022_v30 = vld [vmem:[#allocation29_spill] sm:$0xff]  ;;  %v5026_v23 = vld [vmem:[#allocation43_spill] sm:$0xff]  ;;  %v5027_v31 = vld [vmem:[#allocation26_spill] sm:$0xff] }
 0x47e   :  { %v2559_v46 = vpop.eup %2558  ;;  %5019 = vst [vmem:[#allocation21_spill] sm:$0xff] %v4229_v63  ;;  %v1949_v34 = vmul.f32 %v2551_v56, %v5020_v39  ;;  %v1967_v14 = vmul.f32 %v4182_v20, %v1948_v17  ;;  %v4235_v19 = vmul.f32 %v4180_v54, %v5021_v15  ;;  %v1952_v28 = vmul.f32 %v2553_v9, %v5022_v30  ;;  %v5029_v15 = vld [vmem:[#allocation36_spill] sm:$0xff] }
 0x47f   :  { %v2561_v13 = vpop.eup %2560  ;;  %v1969_v58 = vmul.f32 %v4182_v20, %v1950_v3  ;;  %v4241_v25 = vmul.f32 %v4180_v54, %v5023_v44  ;;  %v4245_v24 = vmul.f32 %v4180_v54, %v5024_v45  ;;  %v1951_v29 = vmul.f32 %v2555_v57, %v5025_v35  ;;  %v5028_v3 = vld [vmem:[#allocation44_spill] sm:$0xff]  ;;  %v5031_v45 = vld [vmem:[#allocation45_spill] sm:$0xff]  ;;  %v5033_v35 = vld [vmem:[#allocation38_spill] sm:$0xff] }
 0x480   :  { %v2563_v42 = vpop.eup %2562  ;;  %v1968_v51 = vmul.f32 %v4182_v20, %v1949_v34  ;;  %v4250_v43 = vadd.f32 %v4225_v16, %v1965_v6  ;;  %v4253_v9 = vadd.f32 %v4225_v16, %v1966_v47  ;;  %v1954_v7 = vmul.f32 %v2557_v33, %v5026_v23  ;;  %v5030_v6 = vld [vmem:[#allocation18_spill] sm:$0xff] }
 0x481   :  { %v2565_v53 = vpop.eup %2564  ;;  %v1953_v32 = vmul.f32 %v2559_v46, %v5027_v31  ;;  %v1956_v1 = vmul.f32 %v2561_v13, %v5028_v3  ;;  %v1971_v39 = vmul.f32 %v4182_v20, %v1952_v28  ;;  %v1955_v30 = vmul.f32 %v2563_v42, %v5029_v15  ;;  %v5037_v15 = vld [vmem:[#allocation40_spill] sm:$0xff] }
 0x482   :  { %v2567_v56 = vpop.eup %2566  ;;  %v1970_v57 = vmul.f32 %v4182_v20, %v1951_v29  ;;  %v4262_v34 = vadd.f32 %v4225_v16, %v1967_v14  ;;  %v4266_v47 = vmul.f32 %v4180_v54, %v5030_v6  ;;  %v1958_v33 = vmul.f32 %v2565_v53, %v5031_v45  ;;  %v5034_v29 = vld [vmem:[#allocation46_spill] sm:$0xff]  ;;  %v5039_v45 = vld [vmem:[#allocation47_spill] sm:$0xff] }
 0x483   :  { %v2569_v17 = vpop.eup %2568  ;;  %v1973_v46 = vmul.f32 %v4182_v20, %v1954_v7  ;;  %v4271_v13 = vadd.f32 %v4225_v16, %v1969_v58  ;;  %v4275_v42 = vmul.f32 %v4180_v54, %v4134_v27  ;;  %v1957_v14 = vmul.f32 %v2567_v56, %v5033_v35 }
 0x484   :  { %v2571_v44 = vpop.eup %2570  ;;  %v1960_v23 = vmul.f32 %v2569_v17, %v5034_v29  ;;  %v4280_v31 = vadd.f32 %v4225_v16, %v1968_v51  ;;  %v4283_v3 = vmul.f32 0.5, %v4250_v43  ;;  %v1972_v53 = vmul.f32 %v4182_v20, %v1953_v32 }
 0x485   :  { %5032 = vst [vmem:[#allocation49_spill] sm:$0xff] %v4275_v42  ;;  %v2573_v28 = vpop.eup %2572  ;;  %v1975_v58 = vmul.f32 %v4182_v20, %v1956_v1  ;;  %v4288_v7 = vadd.f32 %v4225_v16, %v1971_v39  ;;  %v4291_v27 = vmul.f32 0.5, %v4253_v9  ;;  %v1959_v56 = vmul.f32 %v2571_v44, %v5037_v15 }
 0x486   :  { %5035 = vst [vmem:[#allocation22_spill] sm:$0xff] %v4283_v3  ;;  %v1974_v17 = vmul.f32 %v4182_v20, %v1955_v30  ;;  %v4296_v51 = vadd.f32 %v4225_v16, %v1970_v57  ;;  %v4299_v6 = vmul.f32 0.5, %v4262_v34  ;;  %v1961_v32 = vmul.f32 %v2573_v28, %v5039_v45 }
 0x487   :  { %5036 = vst [vmem:[#allocation10_spill] sm:$0xff] %v4291_v27  ;;  %v1977_v1 = vmul.f32 %v4182_v20, %v1958_v33  ;;  %v4304_v39 = vadd.f32 %v4225_v16, %v1973_v46  ;;  %v4307_v35 = vmul.f32 0.5, %v4271_v13  ;;  %v1976_v44 = vmul.f32 %v4182_v20, %v1957_v14 }
 0x488   :  { %5038 = vst [vmem:[#allocation12_spill] sm:$0xff] %v4299_v6  ;;  %v1979_v30 = vmul.f32 %v4182_v20, %v1960_v23  ;;  %v4312_v57 = vmul.f32 0.5, %v4280_v31  ;;  %v2016_v29 = vmul.f32 %v4250_v43, %v4250_v43  ;;  %v4317_v28 = vadd.f32 %v4225_v16, %v1972_v53 }
 0x489   :  { %5040 = vst [vmem:[#allocation16_spill] sm:$0xff] %v4307_v35  ;;  %v4320_v33 = vadd.f32 %v4225_v16, %v1975_v58  ;;  %v4323_v46 = vmul.f32 0.5, %v4288_v7  ;;  %v2017_v14 = vmul.f32 %v4253_v9, %v4253_v9  ;;  %v1978_v23 = vmul.f32 %v4182_v20, %v1959_v56 }
 0x48a   :  { %5041 = vst [vmem:[#allocation14_spill] sm:$0xff] %v4312_v57  ;;  %v4329_v15 = vadd.f32 %v4225_v16, %v1974_v17  ;;  %v4332_v45 = vmul.f32 0.5, %v4296_v51  ;;  %v2018_v53 = vmul.f32 %v4262_v34, %v4262_v34  ;;  %v1980_v58 = vmul.f32 %v4182_v20, %v1961_v32 }
 0x48b   :  { %5042 = vst [vmem:[#allocation2_spill] sm:$0xff] %v4323_v46  ;;  %v4338_v52 = vadd.f32 %v4225_v16, %v1977_v1  ;;  %v4341_v37 = vmul.f32 0.5, %v4304_v39  ;;  %v2019_v56 = vmul.f32 %v4280_v31, %v4280_v31  ;;  %v4346_v17 = vadd.f32 %v4225_v16, %v1976_v44 }
 0x48c   :  { %5043 = vst [vmem:[#allocation50_spill] sm:$0xff] %v4332_v45  ;;  %v4349_v63 = vadd.f32 %v4225_v16, %v1979_v30  ;;  %v2020_v61 = vmul.f32 %v4271_v13, %v4271_v13  ;;  %v2021_v20 = vmul.f32 %v4296_v51, %v4296_v51  ;;  %v4356_v32 = vmul.f32 0.5, %v4317_v28 }
 0x48d   :  { %5044 = vst [vmem:[#allocation33_spill] sm:$0xff] %v4341_v37  ;;  %v4359_v1 = vmul.f32 0.5, %v4320_v33  ;;  %v2022_v21 = vmul.f32 %v4288_v7, %v4288_v7  ;;  %v2032_v44 = vmul.f32 %v2016_v29, %v4250_v43  ;;  %v4365_v30 = vadd.f32 %v4225_v16, %v1978_v23 }
 0x48e   :  { %5045 = vst [vmem:[#allocation7_spill] sm:$0xff] %v4356_v32  ;;  %v4368_v2 = vmul.f32 0.5, %v4329_v15  ;;  %v2023_v50 = vmul.f32 %v4317_v28, %v4317_v28  ;;  %v2024_v36 = vmul.f32 %v4304_v39, %v4304_v39  ;;  %v4375_v11 = vadd.f32 %v4225_v16, %v1980_v58 }
 0x48f   :  { %5046 = vst [vmem:[#allocation28_spill] sm:$0xff] %v4359_v1  ;;  %v4378_v0 = vmul.f32 0.5, %v4338_v52  ;;  %v2025_v29 = vmul.f32 %v4329_v15, %v4329_v15  ;;  %v2026_v23 = vmul.f32 %v4320_v33, %v4320_v33  ;;  %v4385_v40 = vmul.f32 0.5, %v4346_v17 }
 0x490   :  { %5047 = vst [vmem:[#allocation11_spill] sm:$0xff] %v4368_v2  ;;  %v4388_v59 = vmul.f32 0.5, %v4349_v63  ;;  %v2027_v8 = vmul.f32 %v4346_v17, %v4346_v17  ;;  %v2033_v16 = vmul.f32 %v2017_v14, %v4253_v9  ;;  %v2028_v58 = vmul.f32 %v4338_v52, %v4338_v52 }
 0x491   :  { %5048 = vst [vmem:[#allocation23_spill] sm:$0xff] %v4378_v0  ;;  %5049 = vst [vmem:[#allocation32_spill] sm:$0xff] %v4385_v40  ;;  %v2030_v49 = vmul.f32 %v4349_v63, %v4349_v63  ;;  %v2034_v12 = vmul.f32 %v2018_v53, %v4262_v34  ;;  %v2048_v22 = vmul.f32 0.044715, %v2032_v44  ;;  %v4399_v0 = vmul.f32 0.5, %v4365_v30 }
 0x492   :  { %5050 = vst [vmem:[#allocation24_spill] sm:$0xff] %v4388_v59  ;;  %v2029_v59 = vmul.f32 %v4365_v30, %v4365_v30  ;;  %v2035_v40 = vmul.f32 %v2019_v56, %v4280_v31  ;;  %v2036_v1 = vmul.f32 %v2020_v61, %v4271_v13  ;;  %v4406_v14 = vmul.f32 0.5, %v4375_v11 }
 0x493   :  { %5051 = vst [vmem:[#allocation35_spill] sm:$0xff] %v4399_v0  ;;  %v2031_v2 = vmul.f32 %v4375_v11, %v4375_v11  ;;  %v2037_v37 = vmul.f32 %v2021_v20, %v4296_v51  ;;  %v2038_v53 = vmul.f32 %v2022_v21, %v4288_v7  ;;  %v2039_v44 = vmul.f32 %v2023_v50, %v4317_v28 }
 0x494   :  { %5052 = vst [vmem:[#allocation3_spill] sm:$0xff] %v4406_v14  ;;  %v2040_v0 = vmul.f32 %v2024_v36, %v4304_v39  ;;  %v2041_v32 = vmul.f32 %v2025_v29, %v4329_v15  ;;  %v2049_v46 = vmul.f32 0.044715, %v2033_v16  ;;  %v2042_v56 = vmul.f32 %v2026_v23, %v4320_v33 }
 0x495   :  { %v2043_v61 = vmul.f32 %v2027_v8, %v4346_v17  ;;  %v2050_v45 = vmul.f32 0.044715, %v2034_v12  ;;  %v2064_v14 = vadd.f32 %v2048_v22, %v4250_v43  ;;  %v2044_v35 = vmul.f32 %v2028_v58, %v4338_v52 }
 0x496   :  { %v2045_v20 = vmul.f32 %v2029_v59, %v4365_v30  ;;  %v2046_v21 = vmul.f32 %v2030_v49, %v4349_v63  ;;  %v2051_v57 = vmul.f32 0.044715, %v2035_v40  ;;  %v2047_v50 = vmul.f32 %v2031_v2, %v4375_v11 }
 0x497   :  { %v2052_v36 = vmul.f32 0.044715, %v2036_v1  ;;  %v2053_v6 = vmul.f32 0.044715, %v2037_v37  ;;  %v2054_v29 = vmul.f32 0.044715, %v2038_v53  ;;  %v2065_v8 = vadd.f32 %v2049_v46, %v4253_v9 }
 0x498   :  { %v2055_v16 = vmul.f32 0.044715, %v2039_v44  ;;  %v2056_v27 = vmul.f32 0.044715, %v2040_v0  ;;  %v2057_v23 = vmul.f32 0.044715, %v2041_v32  ;;  %v2066_v22 = vadd.f32 %v2050_v45, %v4262_v34 }
 0x499   :  { %v2058_v12 = vmul.f32 0.044715, %v2042_v56  ;;  %v2059_v3 = vmul.f32 0.044715, %v2043_v61  ;;  %v2080_v43 = vmul.f32 0.7978846, %v2064_v14  ;;  %v1468_v49 = vmul.f32 %v4180_v54, %v4149_v55 }
 0x49a   :  { %v2060_v58 = vmul.f32 0.044715, %v2044_v35  ;;  %v2061_v59 = vmul.f32 0.044715, %v2045_v20  ;;  %v2062_v42 = vmul.f32 0.044715, %v2046_v21  ;;  %v2067_v37 = vadd.f32 %v2051_v57, %v4280_v31 }
 0x49b   :  { %v2063_v2 = vmul.f32 0.044715, %v2047_v50  ;;  %v2068_v40 = vadd.f32 %v2052_v36, %v4271_v13  ;;  %v2069_v0 = vadd.f32 %v2053_v6, %v4296_v51  ;;  %v2070_v9 = vadd.f32 %v2054_v29, %v4288_v7 }
 0x49c   :  { %v2071_v46 = vadd.f32 %v2055_v16, %v4317_v28  ;;  %v2072_v34 = vadd.f32 %v2056_v27, %v4304_v39  ;;  %v2081_v45 = vmul.f32 0.7978846, %v2065_v8  ;;  %v2073_v35 = vadd.f32 %v2057_v23, %v4329_v15 }
 0x49d   :  { %v2074_v32 = vadd.f32 %v2058_v12, %v4320_v33  ;;  %v2082_v1 = vmul.f32 0.7978846, %v2066_v22  ;;  %2574 = vtanh.f32 %v2080_v43  ;;  %v2075_v55 = vadd.f32 %v2059_v3, %v4346_v17 }
 0x49e   :  { %v2076_v31 = vadd.f32 %v2060_v58, %v4338_v52  ;;  %v2077_v13 = vadd.f32 %v2061_v59, %v4365_v30  ;;  %v1469_v7 = vmul.f32 %v4180_v54, %v4144_v5  ;;  %v2078_v51 = vadd.f32 %v2062_v42, %v4349_v63 }
 0x49f   :  { %v2079_v27 = vadd.f32 %v2063_v2, %v4375_v11  ;;  %v2083_v6 = vmul.f32 0.7978846, %v2067_v37  ;;  %v2084_v39 = vmul.f32 0.7978846, %v2068_v40  ;;  %v2085_v57 = vmul.f32 0.7978846, %v2069_v0  ;;  %v1480_v11 = vpop.permute.xlu1 %1479 }
 0x4a0   :  { %v2086_v28 = vmul.f32 0.7978846, %v2070_v9  ;;  %v2087_v33 = vmul.f32 0.7978846, %v2071_v46  ;;  %2576 = vtanh.f32 %v2081_v45  ;;  %v2088_v15 = vmul.f32 0.7978846, %v2072_v34 }
 0x4a1   :  { %v2089_v14 = vmul.f32 0.7978846, %v2073_v35  ;;  %v2090_v3 = vmul.f32 0.7978846, %v2074_v32  ;;  %2578 = vtanh.f32 %v2082_v1  ;;  %v2091_v52 = vmul.f32 0.7978846, %v2075_v55 }
 0x4a2   :  { %v2092_v17 = vmul.f32 0.7978846, %v2076_v31  ;;  %v2093_v30 = vmul.f32 0.7978846, %v2077_v13  ;;  %v1470_v5 = vmul.f32 %v4180_v54, %v4174_v48  ;;  %v2094_v53 = vmul.f32 0.7978846, %v2078_v51 }
 0x4a3   :  { %v2095_v63 = vmul.f32 0.7978846, %v2079_v27  ;;  %2580 = vtanh.f32 %v2083_v6  ;;  %v1471_v42 = vmul.f32 %v4180_v54, %v4153_v41  ;;  %v1472_v44 = vmul.f32 %v4180_v54, %v4186_v62  ;;  %v5058_v27 = vld [vmem:[#allocation22_spill] sm:$0xff] }
 0x4a4   :  { %2582 = vtanh.f32 %v2084_v39  ;;  %v1473_v56 = vmul.f32 %v4180_v54, %v4178_v18  ;;  %v1474_v61 = vmul.f32 %v4180_v54, %v4204_v4  ;;  %v1475_v48 = vmul.f32 %v4180_v54, %v4200_v10 }
 0x4a5   :  { %2584 = vtanh.f32 %v2085_v57  ;;  %v1476_v20 = vmul.f32 %v4180_v54, %v4219_v38  ;;  %v1477_v41 = vmul.f32 %v4180_v54, %v4208_v26  ;;  %v1478_v62 = vmul.f32 %v4180_v54, %v4222_v60  ;;  %v5053_v38 = vld [vmem:[#allocation49_spill] sm:$0xff] }
 0x4a6   :  { %2586 = vtanh.f32 %v2086_v28  ;;  %v4460_v21 = vadd.f32 %v1480_v11, %v4235_v19  ;;  %v4463_v18 = vadd.f32 %v1480_v11, %v4241_v25  ;;  %v4466_v4 = vadd.f32 %v1480_v11, %v4245_v24 }
 0x4a7   :  { %2588 = vtanh.f32 %v2087_v33  ;;  %v4469_v10 = vadd.f32 %v1480_v11, %v4266_v47  ;;  %v4472_v50 = vadd.f32 %v1480_v11, %v5053_v38  ;;  %v4474_v26 = vadd.f32 %v1480_v11, %v1468_v49 }
 0x4a8   :  { %2590 = vtanh.f32 %v2088_v15  ;;  %v4476_v54 = vadd.f32 %v1480_v11, %v1469_v7  ;;  %v4478_v60 = vadd.f32 %v1480_v11, %v1470_v5  ;;  %v4480_v19 = vadd.f32 %v1480_v11, %v1471_v42  ;;  %v5062_v42 = vld [vmem:[#allocation10_spill] sm:$0xff] }
 0x4a9   :  { %2592 = vtanh.f32 %v2089_v14  ;;  %v4482_v25 = vadd.f32 %v1480_v11, %v1472_v44  ;;  %v4484_v24 = vadd.f32 %v1480_v11, %v1473_v56  ;;  %v4486_v47 = vadd.f32 %v1480_v11, %v1474_v61 }
 0x4aa   :  { %v2575_v36 = vpop.eup %2574  ;;  %2594 = vtanh.f32 %v2090_v3  ;;  %v4488_v29 = vadd.f32 %v1480_v11, %v1475_v48  ;;  %v4490_v16 = vadd.f32 %v1480_v11, %v1476_v20  ;;  %v4492_v23 = vadd.f32 %v1480_v11, %v1477_v41 }
 0x4ab   :  { %2596 = vtanh.f32 %v2091_v52  ;;  %v4494_v8 = vadd.f32 %v1480_v11, %v1478_v62  ;;  %v4497_v12 = vmul.f32 0.5, %v4460_v21  ;;  %v4500_v22 = vmul.f32 0.5, %v4463_v18 }
 0x4ac   :  { %2598 = vtanh.f32 %v2092_v17  ;;  %v4503_v43 = vmul.f32 0.5, %v4466_v4  ;;  %v4506_v58 = vmul.f32 0.5, %v4469_v10  ;;  %v2112_v49 = vadd.f32 1.0, %v2575_v36 }
 0x4ad   :  { %v2577_v59 = vpop.eup %2576  ;;  %2600 = vtanh.f32 %v2093_v30  ;;  %v4509_v2 = vmul.f32 0.5, %v4472_v50  ;;  %v4512_v37 = vmul.f32 0.5, %v4474_v26  ;;  %v4515_v0 = vmul.f32 0.5, %v4476_v54 }
 0x4ae   :  { %v2579_v40 = vpop.eup %2578  ;;  %v1514_v9 = vmul.f32 %v4460_v21, %v4460_v21  ;;  %v1515_v46 = vmul.f32 %v4463_v18, %v4463_v18  ;;  %v1516_v34 = vmul.f32 %v4466_v4, %v4466_v4  ;;  %2602 = vtanh.f32 %v2094_v53 }
 0x4af   :  { %5054 = vst [vmem:[#allocation8_spill] sm:$0xff] %v4515_v0  ;;  %v4524_v45 = vmul.f32 0.5, %v4478_v60  ;;  %v4527_v35 = vmul.f32 0.5, %v4480_v19  ;;  %v1517_v32 = vmul.f32 %v4469_v10, %v4469_v10  ;;  %2604 = vtanh.f32 %v2095_v63 }
 0x4b0   :  { %v2581_v1 = vpop.eup %2580  ;;  %v2113_v55 = vadd.f32 1.0, %v2577_v59  ;;  %v4532_v31 = vmul.f32 0.5, %v4482_v25  ;;  %v1518_v13 = vmul.f32 %v4472_v50, %v4472_v50  ;;  %v4538_v51 = vadd.f32 1.0, %v2579_v40 }
 0x4b1   :  { %5055 = vst [vmem:[#allocation4_spill] sm:$0xff] %v4524_v45  ;;  %5056 = vst [vmem:[#allocation29_spill] sm:$0xff] %v4527_v35  ;;  %v4536_v7 = vpop.eup %2582  ;;  %v4541_v6 = vmul.f32 %v2112_v49, %v5058_v27  ;;  %v4544_v39 = vmul.f32 0.5, %v4484_v24  ;;  %v1519_v57 = vmul.f32 %v4474_v26, %v4474_v26  ;;  %v1520_v33 = vmul.f32 %v4476_v54, %v4476_v54 }
 0x4b2   :  { %5057 = vst [vmem:[#allocation5_spill] sm:$0xff] %v4532_v31  ;;  %v4548_v28 = vpop.eup %2584  ;;  %v1530_v15 = vmul.f32 %v1514_v9, %v4460_v21  ;;  %v1531_v14 = vmul.f32 %v1515_v46, %v4463_v18  ;;  %v1532_v3 = vmul.f32 %v1516_v34, %v4466_v4  ;;  %v4558_v17 = vmul.f32 0.5, %v4486_v47 }
 0x4b3   :  { %5059 = vst [vmem:[#allocation15_spill] sm:$0xff] %v4544_v39  ;;  %v4555_v52 = vpop.eup %2586  ;;  %v4561_v30 = vmul.f32 0.5, %v4488_v29  ;;  %v1521_v5 = vmul.f32 %v4478_v60, %v4478_v60  ;;  %v1533_v53 = vmul.f32 %v1517_v32, %v4469_v10  ;;  %v4568_v11 = vadd.f32 1.0, %v2581_v1 }
 0x4b4   :  { %5060 = vst [vmem:[#allocation34_spill] sm:$0xff] %v4558_v17  ;;  %v4566_v63 = vpop.eup %2588  ;;  %v4571_v44 = vmul.f32 %v2113_v55, %v5062_v42  ;;  %v1522_v56 = vmul.f32 %v4480_v19, %v4480_v19  ;;  %v1534_v61 = vmul.f32 %v1518_v13, %v4472_v50  ;;  %v4579_v20 = vmul.f32 0.5, %v4490_v16 }
 0x4b5   :  { %5061 = vst [vmem:[#allocation43_spill] sm:$0xff] %v4561_v30  ;;  %v4576_v48 = vpop.eup %2590  ;;  %v1523_v41 = vmul.f32 %v4482_v25, %v4482_v25  ;;  %v1524_v62 = vmul.f32 %v4484_v24, %v4484_v24  ;;  %v1535_v38 = vmul.f32 %v1519_v57, %v4474_v26  ;;  %v1536_v59 = vmul.f32 %v1520_v33, %v4476_v54 }
 0x4b6   :  { %5063 = vst [vmem:[#allocation26_spill] sm:$0xff] %v4579_v20  ;;  %v4586_v36 = vpop.eup %2592  ;;  %v1546_v49 = vmul.f32 0.044715, %v1530_v15  ;;  %v1547_v40 = vmul.f32 0.044715, %v1531_v14  ;;  %v4592_v34 = vmul.f32 0.5, %v4492_v23  ;;  %v1525_v32 = vmul.f32 %v4486_v47, %v4486_v47 }
 0x4b7   :  { %v1548_v9 = vmul.f32 0.044715, %v1532_v3  ;;  %v4589_v46 = vpop.eup %2594  ;;  %v1537_v1 = vmul.f32 %v1521_v5, %v4478_v60  ;;  %v1549_v55 = vmul.f32 0.044715, %v1533_v53  ;;  %v1526_v27 = vmul.f32 %v4488_v29, %v4488_v29 }
 0x4b8   :  { %5064 = vst [vmem:[#allocation44_spill] sm:$0xff] %v4592_v34  ;;  %v4597_v13 = vpop.eup %2596  ;;  %v1527_v57 = vmul.f32 %v4490_v16, %v4490_v16  ;;  %v1538_v33 = vmul.f32 %v1522_v56, %v4480_v19  ;;  %v1550_v15 = vmul.f32 0.044715, %v1534_v61  ;;  %v1528_v3 = vmul.f32 %v4492_v23, %v4492_v23 }
 0x4b9   :  { %v4604_v14 = vpop.eup %2598  ;;  %v1539_v42 = vmul.f32 %v1523_v41, %v4482_v25  ;;  %v1540_v5 = vmul.f32 %v1524_v62, %v4484_v24  ;;  %v1551_v53 = vmul.f32 0.044715, %v1535_v38  ;;  %v1552_v20 = vmul.f32 0.044715, %v1536_v59 }
 0x4ba   :  { %v4610_v34 = vpop.eup %2600  ;;  %v1562_v30 = vadd.f32 %v1546_v49, %v4460_v21  ;;  %v1563_v17 = vadd.f32 %v1547_v40, %v4463_v18  ;;  %v1564_v56 = vadd.f32 %v1548_v9, %v4466_v4  ;;  %v1529_v61 = vmul.f32 %v4494_v8, %v4494_v8 }
 0x4bb   :  { %v1541_v39 = vmul.f32 %v1525_v32, %v4486_v47  ;;  %v1553_v31 = vmul.f32 0.044715, %v1537_v1  ;;  %v1565_v41 = vadd.f32 %v1549_v55, %v4469_v10  ;;  %v4619_v35 = vpop.eup %2602  ;;  %v1542_v62 = vmul.f32 %v1526_v27, %v4488_v29 }
 0x4bc   :  { %v1543_v38 = vmul.f32 %v1527_v57, %v4490_v16  ;;  %v1554_v59 = vmul.f32 0.044715, %v1538_v33  ;;  %v1566_v21 = vadd.f32 %v1550_v15, %v4472_v50  ;;  %v4624_v18 = vpop.eup %2604  ;;  %v1544_v4 = vmul.f32 %v1528_v3, %v4492_v23 }
 0x4bd   :  { %v1555_v49 = vmul.f32 0.044715, %v1539_v42  ;;  %v1556_v40 = vmul.f32 0.044715, %v1540_v5  ;;  %v1567_v9 = vadd.f32 %v1551_v53, %v4474_v26  ;;  %v1568_v32 = vadd.f32 %v1552_v20, %v4476_v54  ;;  %v5065_v53 = vld [vmem:[#allocation12_spill] sm:$0xff] }
 0x4be   :  { %v1578_v10 = vmul.f32 0.7978846, %v1562_v30  ;;  %v1579_v1 = vmul.f32 0.7978846, %v1563_v17  ;;  %v1580_v55 = vmul.f32 0.7978846, %v1564_v56  ;;  %v1545_v27 = vmul.f32 %v1529_v61, %v4494_v8 }
 0x4bf   :  { %v1557_v45 = vmul.f32 0.044715, %v1541_v39  ;;  %v1569_v57 = vadd.f32 %v1553_v31, %v4478_v60  ;;  %v1581_v33 = vmul.f32 0.7978846, %v1565_v41  ;;  %v1558_v50 = vmul.f32 0.044715, %v1542_v62 }
 0x4c0   :  { %v1570_v15 = vadd.f32 %v1554_v59, %v4480_v19  ;;  %v1582_v0 = vmul.f32 0.7978846, %v1566_v21  ;;  %2606 = vtanh.f32 %v1578_v10  ;;  %v1559_v3 = vmul.f32 0.044715, %v1543_v38  ;;  %v5066_v41 = vld [vmem:[#allocation14_spill] sm:$0xff]  ;;  %v5067_v62 = vld [vmem:[#allocation16_spill] sm:$0xff] }
 0x4c1   :  { %v1571_v42 = vadd.f32 %v1555_v49, %v4482_v25  ;;  %v1583_v26 = vmul.f32 0.7978846, %v1567_v9  ;;  %2608 = vtanh.f32 %v1579_v1  ;;  %v1560_v54 = vmul.f32 0.044715, %v1544_v4  ;;  %v5068_v21 = vld [vmem:[#allocation50_spill] sm:$0xff] }
 0x4c2   :  { %v1572_v17 = vadd.f32 %v1556_v40, %v4484_v24  ;;  %v1584_v30 = vmul.f32 0.7978846, %v1568_v32  ;;  %2610 = vtanh.f32 %v1580_v55  ;;  %v1561_v20 = vmul.f32 0.044715, %v1545_v27  ;;  %v5069_v32 = vld [vmem:[#allocation2_spill] sm:$0xff]  ;;  %v5070_v27 = vld [vmem:[#allocation7_spill] sm:$0xff] }
 0x4c3   :  { %v1573_v39 = vadd.f32 %v1557_v45, %v4486_v47  ;;  %v1585_v60 = vmul.f32 0.7978846, %v1569_v57  ;;  %2612 = vtanh.f32 %v1581_v33  ;;  %v2116_v31 = vadd.f32 1.0, %v4536_v7  ;;  %v5071_v33 = vld [vmem:[#allocation33_spill] sm:$0xff] }
 0x4c4   :  { %v1574_v19 = vadd.f32 %v1558_v50, %v4488_v29  ;;  %v1586_v5 = vmul.f32 0.7978846, %v1570_v15  ;;  %2614 = vtanh.f32 %v1582_v0  ;;  %v4639_v25 = vmul.f32 %v4538_v51, %v5065_v53  ;;  %v5072_v15 = vld [vmem:[#allocation11_spill] sm:$0xff] }
 0x4c5   :  { %v1575_v56 = vadd.f32 %v1559_v3, %v4490_v16  ;;  %v1587_v24 = vmul.f32 0.7978846, %v1571_v42  ;;  %2616 = vtanh.f32 %v1583_v26  ;;  %v2117_v61 = vadd.f32 1.0, %v4548_v28  ;;  %v5073_v42 = vld [vmem:[#allocation28_spill] sm:$0xff] }
 0x4c6   :  { %v1576_v47 = vadd.f32 %v1560_v54, %v4492_v23  ;;  %v1588_v45 = vmul.f32 0.7978846, %v1572_v17  ;;  %2618 = vtanh.f32 %v1584_v30  ;;  %v4645_v7 = vmul.f32 0.5, %v4494_v8  ;;  %v5074_v54 = vld [vmem:[#allocation32_spill] sm:$0xff]  ;;  %v5075_v30 = vld [vmem:[#allocation23_spill] sm:$0xff] }
 0x4c7   :  { %v1577_v29 = vadd.f32 %v1561_v20, %v4494_v8  ;;  %v1589_v0 = vmul.f32 0.7978846, %v1573_v39  ;;  %2620 = vtanh.f32 %v1585_v60  ;;  %v2118_v51 = vadd.f32 1.0, %v4555_v52 }
 0x4c8   :  { %v4651_v16 = vmul.f32 %v4568_v11, %v5066_v41  ;;  %v1590_v28 = vmul.f32 0.7978846, %v1574_v19  ;;  %2622 = vtanh.f32 %v1586_v5  ;;  %v2119_v23 = vadd.f32 1.0, %v4566_v63  ;;  %v5077_v5 = vld [vmem:[#allocation24_spill] sm:$0xff] }
 0x4c9   :  { %v4655_v38 = vmul.f32 %v2116_v31, %v5067_v62  ;;  %v1591_v59 = vmul.f32 0.7978846, %v1575_v56  ;;  %2624 = vtanh.f32 %v1587_v24  ;;  %v2120_v8 = vadd.f32 1.0, %v4576_v48  ;;  %v5076_v31 = vld [vmem:[#allocation35_spill] sm:$0xff]  ;;  %v5080_v62 = vld [vmem:[#allocation9_spill] sm:$0xff] }
 0x4ca   :  { %v4659_v4 = vmul.f32 %v2117_v61, %v5068_v21  ;;  %v1592_v52 = vmul.f32 0.7978846, %v1576_v47  ;;  %2626 = vtanh.f32 %v1588_v45  ;;  %v2121_v11 = vadd.f32 1.0, %v4586_v36  ;;  %v5078_v47 = vld [vmem:[#allocation3_spill] sm:$0xff] }
 0x4cb   :  { %v2122_v49 = vadd.f32 1.0, %v4589_v46  ;;  %v1593_v40 = vmul.f32 0.7978846, %v1577_v29  ;;  %2628 = vtanh.f32 %v1589_v0  ;;  %v2123_v63 = vadd.f32 1.0, %v4597_v13 }
 0x4cc   :  { %v2124_v9 = vadd.f32 1.0, %v4604_v14  ;;  %v4666_v10 = vmul.f32 %v2118_v51, %v5069_v32  ;;  %2630 = vtanh.f32 %v1590_v28  ;;  %v2125_v1 = vadd.f32 1.0, %v4610_v34  ;;  %v5079_v51 = vld [vmem:[#allocation39_spill] sm:$0xff] }
 0x4cd   :  { %v2607_v48 = vpop.eup %2606  ;;  %v2126_v55 = vadd.f32 1.0, %v4619_v35  ;;  %v4671_v57 = vmul.f32 %v2119_v23, %v5070_v27  ;;  %2632 = vtanh.f32 %v1591_v59  ;;  %v2127_v46 = vadd.f32 1.0, %v4624_v18  ;;  %v5084_v27 = vld [vmem:[#allocation27_spill] sm:$0xff] }
 0x4ce   :  { %v2609_v36 = vpop.eup %2608  ;;  %v4675_v13 = vmul.f32 %v2120_v8, %v5071_v33  ;;  %2634 = vtanh.f32 %v1592_v52  ;;  %v1610_v14 = vadd.f32 1.0, %v2607_v48  ;;  %v4678_v3 = vmul.f32 %v2121_v11, %v5072_v15  ;;  %v5081_v11 = vld [vmem:[#allocation17_spill] sm:$0xff] }
 0x4cf   :  { %v2611_v50 = vpop.eup %2610  ;;  %v4681_v34 = vmul.f32 %v2122_v49, %v5073_v42  ;;  %2636 = vtanh.f32 %v1593_v40  ;;  %v1611_v35 = vadd.f32 1.0, %v2609_v36  ;;  %v4684_v17 = vmul.f32 %v2123_v63, %v5074_v54 }
 0x4d0   :  { %v2613_v26 = vpop.eup %2612  ;;  %v4687_v18 = vmul.f32 %v2124_v9, %v5075_v30  ;;  %v1612_v20 = vadd.f32 1.0, %v2611_v50  ;;  %v1626_v39 = vmul.f32 %v1610_v14, %v4497_v12  ;;  %v4691_v19 = vmul.f32 %v2125_v1, %v5076_v31  ;;  %v5082_v9 = vld [vmem:[#allocation25_spill] sm:$0xff]  ;;  %v5083_v1 = vld [vmem:[#allocation8_spill] sm:$0xff] }
 0x4d1   :  { %v2615_v60 = vpop.eup %2614  ;;  %v4694_v53 = vmul.f32 %v2126_v55, %v5077_v5  ;;  %v1613_v56 = vadd.f32 1.0, %v2613_v26  ;;  %v1627_v24 = vmul.f32 %v1611_v35, %v4500_v22  ;;  %v4698_v45 = vmul.f32 %v2127_v46, %v5078_v47  ;;  %v5086_v50 = vld [vmem:[#allocation48_spill] sm:$0xff]  ;;  %v5087_v26 = vld [vmem:[#allocation29_spill] sm:$0xff] }
 0x4d2   :  { %v2617_v61 = vpop.eup %2616  ;;  %v1614_v29 = vadd.f32 1.0, %v2615_v60  ;;  %v1628_v0 = vmul.f32 %v1612_v20, %v4503_v43  ;;  %v2161_v12 = vsel %vm2160_vm2, %v5079_v51, %v1626_v39  ;;  %v5088_v30 = vld [vmem:[#allocation41_spill] sm:$0xff]  ;;  %v5092_v51 = vld [vmem:[#allocation20_spill] sm:$0xff] }
 0x4d3   :  { %v2619_v41 = vpop.eup %2618  ;;  %v1615_v28 = vadd.f32 1.0, %v2617_v61  ;;  %v1629_v23 = vmul.f32 %v1613_v56, %v4506_v58  ;;  %v2162_v59 = vsel %vm2160_vm2, %v5080_v62, %v1627_v24  ;;  %v4708_v22 = vsel %vm2177_vm3, %v2161_v12, %v4541_v6  ;;  %v5089_v31 = vld [vmem:[#allocation5_spill] sm:$0xff]  ;;  %v5090_v56 = vld [vmem:[#allocation31_spill] sm:$0xff] }
 0x4d4   :  { %v2621_v8 = vpop.eup %2620  ;;  %v1616_v21 = vadd.f32 1.0, %v2619_v41  ;;  %v1630_v52 = vmul.f32 %v1614_v29, %v4509_v2  ;;  %v2163_v43 = vsel %vm2160_vm2, %v5081_v11, %v1628_v0  ;;  %v4715_v49 = vsel %vm2177_vm3, %v2162_v59, %v4571_v44  ;;  %v5091_v29 = vld [vmem:[#allocation15_spill] sm:$0xff] }
 0x4d5   :  { %v2623_v40 = vpop.eup %2622  ;;  %v1617_v58 = vadd.f32 1.0, %v2621_v8  ;;  %v1631_v63 = vmul.f32 %v1615_v28, %v4512_v37  ;;  %v2164_v6 = vsel %vm2160_vm2, %v5082_v9, %v1629_v23  ;;  %v4722_v32 = vsel %vm2177_vm3, %v2163_v43, %v4639_v25  ;;  %v5085_v37 = vld [vmem:[#allocation4_spill] sm:$0xff]  ;;  %v5093_v23 = vld [vmem:[#allocation34_spill] sm:$0xff]  ;;  %v5094_v59 = vld [vmem:[#allocation19_spill] sm:$0xff] }
 0x4d6   :  { %v2625_v2 = vpop.eup %2624  ;;  %v1618_v48 = vadd.f32 1.0, %v2623_v40  ;;  %v1632_v55 = vmul.f32 %v1616_v21, %v5083_v1  ;;  %v2165_v44 = vsel %vm2160_vm2, %v5084_v27, %v1630_v52  ;;  %v2181_v36 = vsel %vm2177_vm3, %v2164_v6, %v4651_v16  ;;  %v5095_v11 = vld [vmem:[#allocation43_spill] sm:$0xff]  ;;  %v5096_v40 = vld [vmem:[#allocation37_spill] sm:$0xff]  ;;  %v5097_v9 = vld [vmem:[#allocation26_spill] sm:$0xff] }
 0x4d7   :  { %v2627_v46 = vpop.eup %2626  ;;  %v1619_v33 = vadd.f32 1.0, %v2625_v2  ;;  %v1633_v14 = vmul.f32 %v1617_v58, %v5085_v37  ;;  %v2166_v15 = vsel %vm2160_vm2, %v5086_v50, %v1631_v63  ;;  %v2182_v25 = vsel %vm2177_vm3, %v2165_v44, %v4655_v38  ;;  %v5098_v2 = vld [vmem:[#allocation6_spill] sm:$0xff]  ;;  %v5100_v27 = vld [vmem:[#allocation13_spill] sm:$0xff] }
 0x4d8   :  { %v2629_v42 = vpop.eup %2628  ;;  %v1620_v35 = vadd.f32 1.0, %v2627_v46  ;;  %v1634_v54 = vmul.f32 %v1618_v48, %v5087_v26  ;;  %v2167_v20 = vsel %vm2160_vm2, %v5088_v30, %v1632_v55  ;;  %v2183_v16 = vsel %vm2177_vm3, %v2166_v15, %v4659_v4  ;;  %v5101_v37 = vld [vmem:[#allocation21_spill] sm:$0xff]  ;;  %v5102_v15 = vld [vmem:[#allocation42_spill] sm:$0xff] }
 0x4d9   :  { %v2631_v39 = vpop.eup %2630  ;;  %v1621_v60 = vadd.f32 1.0, %v2629_v42  ;;  %v1635_v5 = vmul.f32 %v1619_v33, %v5089_v31  ;;  %v2168_v24 = vsel %vm2160_vm2, %v5090_v56, %v1633_v14  ;;  %v2184_v38 = vsel %vm2177_vm3, %v2167_v20, %v4666_v10 }
 0x4da   :  { %v2633_v61 = vpop.eup %2632  ;;  %v1622_v47 = vadd.f32 1.0, %v2631_v39  ;;  %v1636_v0 = vmul.f32 %v1620_v35, %v5091_v29  ;;  %v2169_v12 = vsel %vm2160_vm2, %v5092_v51, %v1634_v54  ;;  %v2185_v4 = vsel %vm2177_vm3, %v2168_v24, %v4671_v57 }
 0x4db   :  { %v2635_v41 = vpop.eup %2634  ;;  %v1623_v28 = vadd.f32 1.0, %v2633_v61  ;;  %v1637_v62 = vmul.f32 %v1621_v60, %v5093_v23  ;;  %v2170_v8 = vsel %vm2160_vm2, %v5094_v59, %v1635_v5  ;;  %v2186_v10 = vsel %vm2177_vm3, %v2169_v12, %v4675_v13  ;;  %v5099_v13 = vld [vmem:[#allocation44_spill] sm:$0xff] }
 0x4dc   :  { %v2637_v21 = vpop.eup %2636  ;;  %v1624_v52 = vadd.f32 1.0, %v2635_v41  ;;  %v1638_v43 = vmul.f32 %v1622_v47, %v5095_v11  ;;  %v2171_v58 = vsel %vm2160_vm2, %v5096_v40, %v1636_v0  ;;  %v2187_v57 = vsel %vm2177_vm3, %v2170_v8, %v4678_v3 }
 0x4dd   :  { %v1625_v63 = vadd.f32 1.0, %v2637_v21  ;;  %v1639_v6 = vmul.f32 %v1623_v28, %v5097_v9  ;;  %v2172_v48 = vsel %vm2160_vm2, %v5098_v2, %v1637_v62  ;;  %v2188_v1 = vsel %vm2177_vm3, %v2171_v58, %v4681_v34 }
 0x4de   :  { %v1640_v55 = vmul.f32 %v1624_v52, %v5099_v13  ;;  %v2173_v44 = vsel %vm2160_vm2, %v5100_v27, %v1638_v43  ;;  %v2189_v46 = vsel %vm2177_vm3, %v2172_v48, %v4684_v17  ;;  %v2316_v3 = vpack.c.bf16 %v4708_v22, %v4708_v22 }
 0x4df   :  { %v1641_v33 = vmul.f32 %v1625_v63, %v4645_v7  ;;  %v2174_v14 = vsel %vm2160_vm2, %v5101_v37, %v1639_v6  ;;  %v2190_v50 = vsel %vm2177_vm3, %v2173_v44, %v4687_v18  ;;  %v2317_v34 = vpack.c.bf16 %v4715_v49, %v4715_v49  ;;  %v5103_v7 = vld [vmem:[#allocation30_spill] sm:$0xff] }
 0x4e0   :  { %v2175_v42 = vsel %vm2160_vm2, %v5102_v15, %v1640_v55  ;;  %v2191_v17 = vsel %vm2177_vm3, %v2174_v14, %v4691_v19  ;;  %v2318_v22 = vpack.c.bf16 %v4722_v32, %v4722_v32  ;;  %v2319_v35 = vpack.c.bf16 %v2181_v36, %v2181_v36  ;;  %2259 = vst.msk [vmem:[%s4859_s5] sm:$0xf] %vm2258_vm4, %v2316_v3 }
 0x4e1   :  { %v2176_v18 = vsel %vm2160_vm2, %v5103_v7, %v1641_v33  ;;  %v2192_v49 = vsel %vm2177_vm3, %v2175_v42, %v4694_v53  ;;  %v2320_v26 = vpack.c.bf16 %v2182_v25, %v2182_v25  ;;  %v2321_v54 = vpack.c.bf16 %v2183_v16, %v2183_v16  ;;  %2260 = vst.msk [vmem:[%s4859_s5 + $0x4] sm:$0xf] %vm2258_vm4, %v2317_v34 }
 0x4e2   :  { %v2193_v19 = vsel %vm2177_vm3, %v2176_v18, %v4698_v45  ;;  %v2322_v32 = vpack.c.bf16 %v2184_v38, %v2184_v38  ;;  %v2323_v36 = vpack.c.bf16 %v2185_v4, %v2185_v4  ;;  %v2324_v30 = vpack.c.bf16 %v2186_v10, %v2186_v10  ;;  %2261 = vst.msk [vmem:[%s4859_s5 + $0x8] sm:$0xf] %vm2258_vm4, %v2318_v22 }
 0x4e3   :  { %2262 = vst.msk [vmem:[%s4859_s5 + $0xc] sm:$0xf] %vm2258_vm4, %v2319_v35  ;;  %v2325_v53 = vpack.c.bf16 %v2187_v57, %v2187_v57  ;;  %v2326_v25 = vpack.c.bf16 %v2188_v1, %v2188_v1  ;;  %v2327_v20 = vpack.c.bf16 %v2189_v46, %v2189_v46  ;;  %v2328_v16 = vpack.c.bf16 %v2190_v50, %v2190_v50 }
 0x4e4   :  { %2263 = vst.msk [vmem:[%s4859_s5 + $0x10] sm:$0xf] %vm2258_vm4, %v2320_v26  ;;  %2264 = vst.msk [vmem:[%s4859_s5 + $0x14] sm:$0xf] %vm2258_vm4, %v2321_v54  ;;  %v2329_v45 = vpack.c.bf16 %v2191_v17, %v2191_v17  ;;  %v2330_v39 = vpack.c.bf16 %v2192_v49, %v2192_v49  ;;  %v2331_v60 = vpack.c.bf16 %v2193_v19, %v2193_v19 }
 0x4e5   :  { %2265 = vst.msk [vmem:[%s4859_s5 + $0x18] sm:$0xf] %vm2258_vm4, %v2322_v32  ;;  %2266 = vst.msk [vmem:[%s4859_s5 + $0x1c] sm:$0xf] %vm2258_vm4, %v2323_v36 }
 0x4e6   :  { %2267 = vst.msk [vmem:[%s4859_s5 + $0x20] sm:$0xf] %vm2258_vm4, %v2324_v30  ;;  %2268 = vst.msk [vmem:[%s4859_s5 + $0x24] sm:$0xf] %vm2258_vm4, %v2325_v53 }
 0x4e7   :  { %2269 = vst.msk [vmem:[%s4859_s5 + $0x28] sm:$0xf] %vm2258_vm4, %v2326_v25  ;;  %2270 = vst.msk [vmem:[%s4859_s5 + $0x2c] sm:$0xf] %vm2258_vm4, %v2327_v20 }
 0x4e8   :  { %2271 = vst.msk [vmem:[%s4859_s5 + $0x30] sm:$0xf] %vm2258_vm4, %v2328_v16  ;;  %2272 = vst.msk [vmem:[%s4859_s5 + $0x34] sm:$0xf] %vm2258_vm4, %v2329_v45 }
 0x4e9   :  { %2273 = vst.msk [vmem:[%s4859_s5 + $0x38] sm:$0xf] %vm2258_vm4, %v2330_v39  ;;  %2274 = vst.msk [vmem:[%s4859_s5 + $0x3c] sm:$0xf] %vm2258_vm4, %v2331_v60 }

</bundles_post_ra>
